<compile_context>
chip_gen: v7x
topology: tpu7x:2x2x1
jax: 0.10.0
libtpu: 0.0.40
codegen_flags: <defaults>
</compile_context>

<pallas_src>
import math

import numpy as np
import jax
import jax.numpy as jnp
from jax.experimental import pallas as pl
from jax.experimental.pallas import tpu as pltpu


def _make_resblock_kernel(H, W, C, WP, NB, X_FRONT, MID_FRONT, MID_TOT):
    K = 3
    M = H * WP          # accumulator rows: one per (h, padded_w) pair

    def kernel(x_ref, res_ref, w1_ref, b1_ref, w2_ref, b2_ref, out_ref, mid_ref):
        # x_ref  : (NB, X_TOT, C)  bf16  flat zero-padded image(s)
        # res_ref: (NB, H, W*C)    f32   lane-dense residual (unpadded input)
        # w*_ref : (9, C, C)       bf16  per-tap weights, tap index = kh*3 + kw
        # b*_ref : (1, C)          f32
        # out_ref: (NB, H, W*C)
        # mid_ref: (MID_TOT, C)    bf16  conv1 output in padded-flat layout
        #
        # Invariant: mid_ref is fully initialised every grid step.  Rows
        # [0, MID_FRONT+WP) and [MID_FRONT+(H+1)*WP, MID_TOT) are zeroed below;
        # the interior store covers rows [MID_FRONT+WP, MID_FRONT+(H+1)*WP) with
        # halo columns (padded col 0 and >= W+1) zeroed by the `keep` select.
        # conv2 therefore never reads junk VMEM, even for discarded rows.

        mid_ref[pl.ds(0, MID_FRONT + WP), :] = jnp.zeros(
            (MID_FRONT + WP, C), jnp.bfloat16)                       # 16-row aligned
        tail_start = MID_FRONT + (H + 1) * WP
        mid_ref[pl.ds(tail_start, MID_TOT - tail_start), :] = jnp.zeros(
            (MID_TOT - tail_start, C), jnp.bfloat16)                 # 16-row aligned

        # Keep mask over the padded column index: cols 1..W are real pixels,
        # cols 0 and W+1..WP-1 are halo / pad and must be zero.  Hoisted out of
        # the per-image loop.
        col = jax.lax.broadcasted_iota(jnp.int32, (1, WP, 1), 1)
        keep = (col >= 1) & (col <= W)

        def conv9(lhs_slice, w_ref):
            # Nine (M, C) x (C, C) bf16 matmuls, f32 accumulation.  Both kh and kw
            # tap shifts are row offsets into the flat padded buffer.
            acc = None
            for kh in range(K):
                for kw in range(K):
                    lhs = lhs_slice(kh * WP + kw)                    # (M, C) bf16
                    part = jnp.dot(lhs, w_ref[kh * K + kw],
                                   preferred_element_type=jnp.float32)
                    acc = part if acc is None else acc + part
            return acc                                               # (M, C) f32

        for i in range(NB):
            # ---- conv1 + bias + ReLU -> one aligned, full-width masked store.
            # Tap base shifted by one pixel (X_FRONT - 1) so accumulator row r
            # maps to padded-mid row WP + r: the store needs no column offset.
            a1 = conv9(lambda off: x_ref[i, pl.ds(X_FRONT - 1 + off, M), :], w1_ref)
            a1 = jnp.maximum(a1 + b1_ref[...], 0.0).reshape(H, WP, C)  # WP%8==0: free
            a1 = jnp.where(keep, a1, 0.0)
            mid_ref[pl.ds(MID_FRONT + WP, M), :] = (
                a1.reshape(M, C).astype(jnp.bfloat16))

            # ---- conv2 + bias + residual, lane-dense store --------------------
            a2 = conv9(lambda off: mid_ref[pl.ds(MID_FRONT + off, M), :], w2_ref)
            o = a2.reshape(H, WP, C)[:, :W, :] + b2_ref[...]          # (H, W, C)
            # (W, C) -> (W*C) lane merge is a real relayout, kept deliberately so
            # the output store is an unmasked full-lane vst (see perf review).
            o = o.reshape(H, W * C) + res_ref[i]
            out_ref[i] = o.astype(out_ref.dtype)

    return kernel


def _num_grid_steps(n_images):
    """>=2 parallel steps on multi-TensorCore chips (v7x/v4/v3 use both cores);
    fold the batch into a single step on single-TC v5e/v6e (grid is a serial
    loop there, each extra step is ~0.35us of pure overhead)."""
    try:
        kind = jax.devices()[0].device_kind.lower()
    except Exception:
        kind = ""
    single_tc = any(s in kind for s in
                    ("v5e", "v5 lite", "v5litepod", "v6e", "v6 lite"))
    steps = 1 if single_tc else min(n_images, 2)
    while steps > 1 and n_images % steps != 0:
        steps -= 1
    return max(steps, 1)


def resblock_pallas(x_nchw, w1, b1, w2, b2, grid_steps=None):
    """x_nchw: (N, C, H, W) float32.  w*: (3, 3, C, C) HWIO.  b*: (C,)."""
    N, C, H, W = x_nchw.shape
    WP = ((W + 2 + 7) // 8) * 8            # padded width, multiple of 8
    X_FRONT, X_BACK = 8, 8                 # flat-row padding for shifted tap slices
    MID_FRONT, MID_BACK = 8, 8
    X_TOT = X_FRONT + (H + 2) * WP + X_BACK
    MID_TOT = MID_FRONT + (H + 2) * WP + MID_BACK

    steps = _num_grid_steps(N) if grid_steps is None else grid_steps
    assert N % steps == 0, "batch must be divisible by grid steps"
    NB = N // steps

    # NCHW -> NHWC; lane-dense f32 residual; flat zero-padded bf16 matmul input.
    x_nhwc = jnp.transpose(x_nchw, (0, 2, 3, 1))
    x_res = x_nhwc.reshape(N, H, W * C).astype(jnp.float32)
    x_pad = jnp.pad(x_nhwc, ((0, 0), (1, 1), (1, WP - W - 1), (0, 0)))
    x_flat = x_pad.reshape(N, (H + 2) * WP, C)
    x_flat = jnp.pad(x_flat, ((0, 0), (X_FRONT, X_BACK), (0, 0))).astype(jnp.bfloat16)

    def prep_w(w):   # (kh, kw, ci, co) HWIO -> (9, ci, co) bf16 for the MXU
        return w.reshape(9, C, C).astype(jnp.bfloat16)

    w1s, w2s = prep_w(w1), prep_w(w2)
    b1_2d = b1.reshape(1, C).astype(jnp.float32)
    b2_2d = b2.reshape(1, C).astype(jnp.float32)

    kernel = _make_resblock_kernel(H, W, C, WP, NB, X_FRONT, MID_FRONT, MID_TOT)

    out_flat = pl.pallas_call(
        kernel,
        out_shape=jax.ShapeDtypeStruct((N, H, W * C), x_nchw.dtype),
        grid_spec=pltpu.PrefetchScalarGridSpec(
            num_scalar_prefetch=0,
            grid=(steps,),
            in_specs=[
                pl.BlockSpec((NB, X_TOT, C), lambda n: (n, 0, 0)),
                pl.BlockSpec((NB, H, W * C), lambda n: (n, 0, 0)),
                pl.BlockSpec((9, C, C), lambda n: (0, 0, 0)),
                pl.BlockSpec((1, C), lambda n: (0, 0)),
                pl.BlockSpec((9, C, C), lambda n: (0, 0, 0)),
                pl.BlockSpec((1, C), lambda n: (0, 0)),
            ],
            out_specs=pl.BlockSpec((NB, H, W * C), lambda n: (n, 0, 0)),
            scratch_shapes=[pltpu.VMEM((MID_TOT, C), jnp.bfloat16)],
        ),
        # TODO(synk): when scaling H/W (e.g. 256x256), add an H-strip grid axis
        # and set vmem_limit_bytes explicitly (v7x: 64 MiB physical / 32 MiB scoped).
        compiler_params=pltpu.CompilerParams(
            dimension_semantics=("parallel",),
        ),
    )(x_flat, x_res, w1s, b1_2d, w2s, b2_2d)

    out_nhwc = out_flat.reshape(N, H, W, C)
    return jnp.transpose(out_nhwc, (0, 3, 1, 2))


def resblock_reference(x_nchw, w1, b1, w2, b2):
    """Pure-JAX f32 reference (lax conv) for correctness checking."""
    x = jnp.transpose(x_nchw, (0, 2, 3, 1))
    dn = ("NHWC", "HWIO", "NHWC")
    y = jax.lax.conv_general_dilated(x, w1, (1, 1), "SAME", dimension_numbers=dn) + b1
    y = jnp.maximum(y, 0.0)
    y = jax.lax.conv_general_dilated(y, w2, (1, 1), "SAME", dimension_numbers=dn) + b2
    y = y + x
    return jnp.transpose(y, (0, 3, 1, 2))


if __name__ == "__main__":
    # Small shapes consistent with ResBlock(n_filters=64): NCHW input.
    N, C, H, W = 2, 64, 16, 16

    key = jax.random.PRNGKey(0)
    kx, kw1, kb1, kw2, kb2 = jax.random.split(key, 5)

    x = jax.random.normal(kx, (N, C, H, W), dtype=jnp.float32)

    # Deterministic Conv2d-style init (uniform in +-1/sqrt(fan_in)); HWIO layout.
    fan_in = C * 3 * 3
    bound = 1.0 / math.sqrt(fan_in)
    w1 = jax.random.uniform(kw1, (3, 3, C, C), minval=-bound, maxval=bound, dtype=jnp.float32)
    b1 = jax.random.uniform(kb1, (C,), minval=-bound, maxval=bound, dtype=jnp.float32)
    w2 = jax.random.uniform(kw2, (3, 3, C, C), minval=-bound, maxval=bound, dtype=jnp.float32)
    b2 = jax.random.uniform(kb2, (C,), minval=-bound, maxval=bound, dtype=jnp.float32)

    out = resblock_pallas(x, w1, b1, w2, b2)
    out = jax.block_until_ready(out)

    ref = jax.block_until_ready(resblock_reference(x, w1, b1, w2, b2))
    # bf16 matmul operands (f32 accumulation) => slightly looser tolerance than pure f32.
    np.testing.assert_allclose(np.asarray(out), np.asarray(ref), rtol=2e-2, atol=5e-3)

    print("KERNEL_OK")
</pallas_src>

<mosaic_0001>
module attributes {stable_mosaic.version = 11 : i64} {
  func.func @kernel(%arg0: i32, %arg1: memref<1x448x64xbf16, #tpu.memory_space<vmem>>, %arg2: memref<1x16x1024xf32, #tpu.memory_space<vmem>>, %arg3: memref<9x64x64xbf16, #tpu.memory_space<vmem>>, %arg4: memref<1x64xf32, #tpu.memory_space<vmem>>, %arg5: memref<9x64x64xbf16, #tpu.memory_space<vmem>>, %arg6: memref<1x64xf32, #tpu.memory_space<vmem>>, %arg7: memref<1x16x1024xf32, #tpu.memory_space<vmem>>, %arg8: memref<448x64xbf16, #tpu.memory_space<vmem>>) attributes {dimension_semantics = [#tpu.dimension_semantics<parallel>], iteration_bounds = array<i64: 2>, scalar_prefetch = 0 : i64, scratch_operands = 1 : i64, tpu.core_type = #tpu.core_type<tc>, window_params = [{transform_indices = @transform_0, window_bounds = array<i64: 1, 448, 64>}, {transform_indices = @transform_1, window_bounds = array<i64: 1, 16, 1024>}, {pipeline_mode = #tpu.pipeline_mode<synchronous>, transform_indices = @transform_2, window_bounds = array<i64: 9, 64, 64>}, {pipeline_mode = #tpu.pipeline_mode<synchronous>, transform_indices = @transform_3, window_bounds = array<i64: 1, 64>}, {pipeline_mode = #tpu.pipeline_mode<synchronous>, transform_indices = @transform_4, window_bounds = array<i64: 9, 64, 64>}, {pipeline_mode = #tpu.pipeline_mode<synchronous>, transform_indices = @transform_5, window_bounds = array<i64: 1, 64>}, {transform_indices = @transform_6, window_bounds = array<i64: 1, 16, 1024>}]} {
    %cst = arith.constant 0.000000e+00 : bf16
    %0 = vector.broadcast %cst : bf16 to vector<32x64xbf16>
    %c0 = arith.constant 0 : index
    %c0_0 = arith.constant 0 : index
    %1 = vector.load %arg8[%c0, %c0_0] : memref<448x64xbf16, #tpu.memory_space<vmem>>, vector<32x64xbf16>
    tpu.vector_store %arg8[%c0, %c0_0], %0 {strides = array<i32>} : memref<448x64xbf16, #tpu.memory_space<vmem>>, vector<32x64xbf16>,
    %cst_1 = arith.constant 0.000000e+00 : bf16
    %2 = vector.broadcast %cst_1 : bf16 to vector<32x64xbf16>
    %c416 = arith.constant 416 : index
    %c0_2 = arith.constant 0 : index
    %3 = vector.load %arg8[%c416, %c0_2] : memref<448x64xbf16, #tpu.memory_space<vmem>>, vector<32x64xbf16>
    tpu.vector_store %arg8[%c416, %c0_2], %2 {strides = array<i32>} : memref<448x64xbf16, #tpu.memory_space<vmem>>, vector<32x64xbf16>,
    %4 = tpu.iota {dimensions = array<i32: 1>} : vector<1x24x1xi32>
    %c1_i32 = arith.constant 1 : i32
    %5 = vector.broadcast %c1_i32 : i32 to vector<1x24x1xi32>
    %6 = arith.cmpi sge, %4, %5 : vector<1x24x1xi32>
    %c16_i32 = arith.constant 16 : i32
    %7 = vector.broadcast %c16_i32 : i32 to vector<1x24x1xi32>
    %8 = arith.cmpi sle, %4, %7 : vector<1x24x1xi32>
    %9 = arith.andi %6, %8 : vector<1x24x1xi1>
    %c0_3 = arith.constant 0 : index
    %c7 = arith.constant 7 : index
    %c0_4 = arith.constant 0 : index
    %10 = vector.load %arg1[%c0_3, %c7, %c0_4] : memref<1x448x64xbf16, #tpu.memory_space<vmem>>, vector<1x384x64xbf16>
    %11 = vector.shape_cast %10 : vector<1x384x64xbf16> to vector<384x64xbf16>
    %c0_5 = arith.constant 0 : index
    %c0_6 = arith.constant 0 : index
    %c0_7 = arith.constant 0 : index
    %12 = vector.load %arg3[%c0_5, %c0_6, %c0_7] : memref<9x64x64xbf16, #tpu.memory_space<vmem>>, vector<1x64x64xbf16>
    %13 = vector.shape_cast %12 : vector<1x64x64xbf16> to vector<64x64xbf16>
    %cst_8 = arith.constant dense<0.000000e+00> : vector<384x64xf32>
    %14 = tpu.matmul %11, %13, %cst_8 {dimension_numbers = #tpu.dot_dimension_numbers<[1], [0], [0], [1], [0, 0, 1, 1], [], []>} : vector<384x64xbf16>, vector<64x64xbf16>, vector<384x64xf32> -> vector<384x64xf32>
    %c0_9 = arith.constant 0 : index
    %c8 = arith.constant 8 : index
    %c0_10 = arith.constant 0 : index
    %15 = vector.load %arg1[%c0_9, %c8, %c0_10] : memref<1x448x64xbf16, #tpu.memory_space<vmem>>, vector<1x384x64xbf16>
    %16 = vector.shape_cast %15 : vector<1x384x64xbf16> to vector<384x64xbf16>
    %c1 = arith.constant 1 : index
    %c0_11 = arith.constant 0 : index
    %c0_12 = arith.constant 0 : index
    %17 = vector.load %arg3[%c1, %c0_11, %c0_12] : memref<9x64x64xbf16, #tpu.memory_space<vmem>>, vector<1x64x64xbf16>
    %18 = vector.shape_cast %17 : vector<1x64x64xbf16> to vector<64x64xbf16>
    %cst_13 = arith.constant dense<0.000000e+00> : vector<384x64xf32>
    %19 = tpu.matmul %16, %18, %cst_13 {dimension_numbers = #tpu.dot_dimension_numbers<[1], [0], [0], [1], [0, 0, 1, 1], [], []>} : vector<384x64xbf16>, vector<64x64xbf16>, vector<384x64xf32> -> vector<384x64xf32>
    %20 = arith.addf %14, %19 : vector<384x64xf32>
    %c0_14 = arith.constant 0 : index
    %c9 = arith.constant 9 : index
    %c0_15 = arith.constant 0 : index
    %21 = vector.load %arg1[%c0_14, %c9, %c0_15] : memref<1x448x64xbf16, #tpu.memory_space<vmem>>, vector<1x384x64xbf16>
    %22 = vector.shape_cast %21 : vector<1x384x64xbf16> to vector<384x64xbf16>
    %c2 = arith.constant 2 : index
    %c0_16 = arith.constant 0 : index
    %c0_17 = arith.constant 0 : index
    %23 = vector.load %arg3[%c2, %c0_16, %c0_17] : memref<9x64x64xbf16, #tpu.memory_space<vmem>>, vector<1x64x64xbf16>
    %24 = vector.shape_cast %23 : vector<1x64x64xbf16> to vector<64x64xbf16>
    %cst_18 = arith.constant dense<0.000000e+00> : vector<384x64xf32>
    %25 = tpu.matmul %22, %24, %cst_18 {dimension_numbers = #tpu.dot_dimension_numbers<[1], [0], [0], [1], [0, 0, 1, 1], [], []>} : vector<384x64xbf16>, vector<64x64xbf16>, vector<384x64xf32> -> vector<384x64xf32>
    %26 = arith.addf %20, %25 : vector<384x64xf32>
    %c0_19 = arith.constant 0 : index
    %c31 = arith.constant 31 : index
    %c0_20 = arith.constant 0 : index
    %27 = vector.load %arg1[%c0_19, %c31, %c0_20] : memref<1x448x64xbf16, #tpu.memory_space<vmem>>, vector<1x384x64xbf16>
    %28 = vector.shape_cast %27 : vector<1x384x64xbf16> to vector<384x64xbf16>
    %c3 = arith.constant 3 : index
    %c0_21 = arith.constant 0 : index
    %c0_22 = arith.constant 0 : index
    %29 = vector.load %arg3[%c3, %c0_21, %c0_22] : memref<9x64x64xbf16, #tpu.memory_space<vmem>>, vector<1x64x64xbf16>
    %30 = vector.shape_cast %29 : vector<1x64x64xbf16> to vector<64x64xbf16>
    %cst_23 = arith.constant dense<0.000000e+00> : vector<384x64xf32>
    %31 = tpu.matmul %28, %30, %cst_23 {dimension_numbers = #tpu.dot_dimension_numbers<[1], [0], [0], [1], [0, 0, 1, 1], [], []>} : vector<384x64xbf16>, vector<64x64xbf16>, vector<384x64xf32> -> vector<384x64xf32>
    %32 = arith.addf %26, %31 : vector<384x64xf32>
    %c0_24 = arith.constant 0 : index
    %c32 = arith.constant 32 : index
    %c0_25 = arith.constant 0 : index
    %33 = vector.load %arg1[%c0_24, %c32, %c0_25] : memref<1x448x64xbf16, #tpu.memory_space<vmem>>, vector<1x384x64xbf16>
    %34 = vector.shape_cast %33 : vector<1x384x64xbf16> to vector<384x64xbf16>
    %c4 = arith.constant 4 : index
    %c0_26 = arith.constant 0 : index
    %c0_27 = arith.constant 0 : index
    %35 = vector.load %arg3[%c4, %c0_26, %c0_27] : memref<9x64x64xbf16, #tpu.memory_space<vmem>>, vector<1x64x64xbf16>
    %36 = vector.shape_cast %35 : vector<1x64x64xbf16> to vector<64x64xbf16>
    %cst_28 = arith.constant dense<0.000000e+00> : vector<384x64xf32>
    %37 = tpu.matmul %34, %36, %cst_28 {dimension_numbers = #tpu.dot_dimension_numbers<[1], [0], [0], [1], [0, 0, 1, 1], [], []>} : vector<384x64xbf16>, vector<64x64xbf16>, vector<384x64xf32> -> vector<384x64xf32>
    %38 = arith.addf %32, %37 : vector<384x64xf32>
    %c0_29 = arith.constant 0 : index
    %c33 = arith.constant 33 : index
    %c0_30 = arith.constant 0 : index
    %39 = vector.load %arg1[%c0_29, %c33, %c0_30] : memref<1x448x64xbf16, #tpu.memory_space<vmem>>, vector<1x384x64xbf16>
    %40 = vector.shape_cast %39 : vector<1x384x64xbf16> to vector<384x64xbf16>
    %c5 = arith.constant 5 : index
    %c0_31 = arith.constant 0 : index
    %c0_32 = arith.constant 0 : index
    %41 = vector.load %arg3[%c5, %c0_31, %c0_32] : memref<9x64x64xbf16, #tpu.memory_space<vmem>>, vector<1x64x64xbf16>
    %42 = vector.shape_cast %41 : vector<1x64x64xbf16> to vector<64x64xbf16>
    %cst_33 = arith.constant dense<0.000000e+00> : vector<384x64xf32>
    %43 = tpu.matmul %40, %42, %cst_33 {dimension_numbers = #tpu.dot_dimension_numbers<[1], [0], [0], [1], [0, 0, 1, 1], [], []>} : vector<384x64xbf16>, vector<64x64xbf16>, vector<384x64xf32> -> vector<384x64xf32>
    %44 = arith.addf %38, %43 : vector<384x64xf32>
    %c0_34 = arith.constant 0 : index
    %c55 = arith.constant 55 : index
    %c0_35 = arith.constant 0 : index
    %45 = vector.load %arg1[%c0_34, %c55, %c0_35] : memref<1x448x64xbf16, #tpu.memory_space<vmem>>, vector<1x384x64xbf16>
    %46 = vector.shape_cast %45 : vector<1x384x64xbf16> to vector<384x64xbf16>
    %c6 = arith.constant 6 : index
    %c0_36 = arith.constant 0 : index
    %c0_37 = arith.constant 0 : index
    %47 = vector.load %arg3[%c6, %c0_36, %c0_37] : memref<9x64x64xbf16, #tpu.memory_space<vmem>>, vector<1x64x64xbf16>
    %48 = vector.shape_cast %47 : vector<1x64x64xbf16> to vector<64x64xbf16>
    %cst_38 = arith.constant dense<0.000000e+00> : vector<384x64xf32>
    %49 = tpu.matmul %46, %48, %cst_38 {dimension_numbers = #tpu.dot_dimension_numbers<[1], [0], [0], [1], [0, 0, 1, 1], [], []>} : vector<384x64xbf16>, vector<64x64xbf16>, vector<384x64xf32> -> vector<384x64xf32>
    %50 = arith.addf %44, %49 : vector<384x64xf32>
    %c0_39 = arith.constant 0 : index
    %c56 = arith.constant 56 : index
    %c0_40 = arith.constant 0 : index
    %51 = vector.load %arg1[%c0_39, %c56, %c0_40] : memref<1x448x64xbf16, #tpu.memory_space<vmem>>, vector<1x384x64xbf16>
    %52 = vector.shape_cast %51 : vector<1x384x64xbf16> to vector<384x64xbf16>
    %c7_41 = arith.constant 7 : index
    %c0_42 = arith.constant 0 : index
    %c0_43 = arith.constant 0 : index
    %53 = vector.load %arg3[%c7_41, %c0_42, %c0_43] : memref<9x64x64xbf16, #tpu.memory_space<vmem>>, vector<1x64x64xbf16>
    %54 = vector.shape_cast %53 : vector<1x64x64xbf16> to vector<64x64xbf16>
    %cst_44 = arith.constant dense<0.000000e+00> : vector<384x64xf32>
    %55 = tpu.matmul %52, %54, %cst_44 {dimension_numbers = #tpu.dot_dimension_numbers<[1], [0], [0], [1], [0, 0, 1, 1], [], []>} : vector<384x64xbf16>, vector<64x64xbf16>, vector<384x64xf32> -> vector<384x64xf32>
    %56 = arith.addf %50, %55 : vector<384x64xf32>
    %c0_45 = arith.constant 0 : index
    %c57 = arith.constant 57 : index
    %c0_46 = arith.constant 0 : index
    %57 = vector.load %arg1[%c0_45, %c57, %c0_46] : memref<1x448x64xbf16, #tpu.memory_space<vmem>>, vector<1x384x64xbf16>
    %58 = vector.shape_cast %57 : vector<1x384x64xbf16> to vector<384x64xbf16>
    %c8_47 = arith.constant 8 : index
    %c0_48 = arith.constant 0 : index
    %c0_49 = arith.constant 0 : index
    %59 = vector.load %arg3[%c8_47, %c0_48, %c0_49] : memref<9x64x64xbf16, #tpu.memory_space<vmem>>, vector<1x64x64xbf16>
    %60 = vector.shape_cast %59 : vector<1x64x64xbf16> to vector<64x64xbf16>
    %cst_50 = arith.constant dense<0.000000e+00> : vector<384x64xf32>
    %61 = tpu.matmul %58, %60, %cst_50 {dimension_numbers = #tpu.dot_dimension_numbers<[1], [0], [0], [1], [0, 0, 1, 1], [], []>} : vector<384x64xbf16>, vector<64x64xbf16>, vector<384x64xf32> -> vector<384x64xf32>
    %62 = arith.addf %56, %61 : vector<384x64xf32>
    %c0_51 = arith.constant 0 : index
    %c0_52 = arith.constant 0 : index
    %63 = vector.load %arg4[%c0_51, %c0_52] : memref<1x64xf32, #tpu.memory_space<vmem>>, vector<1x64xf32>
    %64 = vector.broadcast %63 : vector<1x64xf32> to vector<384x64xf32>
    %65 = arith.addf %62, %64 : vector<384x64xf32>
    %cst_53 = arith.constant 0.000000e+00 : f32
    %66 = vector.broadcast %cst_53 : f32 to vector<384x64xf32>
    %67 = arith.maximumf %65, %66 : vector<384x64xf32>
    %68 = vector.shape_cast %67 : vector<384x64xf32> to vector<16x24x64xf32>
    %cst_54 = arith.constant 0.000000e+00 : f32
    %69 = vector.shape_cast %9 : vector<1x24x1xi1> to vector<1x24x1xi1>
    %70 = vector.broadcast %69 : vector<1x24x1xi1> to vector<16x24x64xi1>
    %71 = vector.broadcast %cst_54 : f32 to vector<16x24x64xf32>
    %72 = arith.select %70, %68, %71 : vector<16x24x64xi1>, vector<16x24x64xf32>
    %73 = vector.shape_cast %72 : vector<16x24x64xf32> to vector<384x64xf32>
    %74 = arith.truncf %73 : vector<384x64xf32> to vector<384x64xbf16>
    %c32_55 = arith.constant 32 : index
    %c0_56 = arith.constant 0 : index
    %75 = vector.load %arg8[%c32_55, %c0_56] : memref<448x64xbf16, #tpu.memory_space<vmem>>, vector<384x64xbf16>
    tpu.vector_store %arg8[%c32_55, %c0_56], %74 {strides = array<i32>} : memref<448x64xbf16, #tpu.memory_space<vmem>>, vector<384x64xbf16>,
    %c8_57 = arith.constant 8 : index
    %c0_58 = arith.constant 0 : index
    %76 = vector.load %arg8[%c8_57, %c0_58] : memref<448x64xbf16, #tpu.memory_space<vmem>>, vector<384x64xbf16>
    %c0_59 = arith.constant 0 : index
    %c0_60 = arith.constant 0 : index
    %c0_61 = arith.constant 0 : index
    %77 = vector.load %arg5[%c0_59, %c0_60, %c0_61] : memref<9x64x64xbf16, #tpu.memory_space<vmem>>, vector<1x64x64xbf16>
    %78 = vector.shape_cast %77 : vector<1x64x64xbf16> to vector<64x64xbf16>
    %cst_62 = arith.constant dense<0.000000e+00> : vector<384x64xf32>
    %79 = tpu.matmul %76, %78, %cst_62 {dimension_numbers = #tpu.dot_dimension_numbers<[1], [0], [0], [1], [0, 0, 1, 1], [], []>} : vector<384x64xbf16>, vector<64x64xbf16>, vector<384x64xf32> -> vector<384x64xf32>
    %c9_63 = arith.constant 9 : index
    %c0_64 = arith.constant 0 : index
    %80 = vector.load %arg8[%c9_63, %c0_64] : memref<448x64xbf16, #tpu.memory_space<vmem>>, vector<384x64xbf16>
    %c1_65 = arith.constant 1 : index
    %c0_66 = arith.constant 0 : index
    %c0_67 = arith.constant 0 : index
    %81 = vector.load %arg5[%c1_65, %c0_66, %c0_67] : memref<9x64x64xbf16, #tpu.memory_space<vmem>>, vector<1x64x64xbf16>
    %82 = vector.shape_cast %81 : vector<1x64x64xbf16> to vector<64x64xbf16>
    %cst_68 = arith.constant dense<0.000000e+00> : vector<384x64xf32>
    %83 = tpu.matmul %80, %82, %cst_68 {dimension_numbers = #tpu.dot_dimension_numbers<[1], [0], [0], [1], [0, 0, 1, 1], [], []>} : vector<384x64xbf16>, vector<64x64xbf16>, vector<384x64xf32> -> vector<384x64xf32>
    %84 = arith.addf %79, %83 : vector<384x64xf32>
    %c10 = arith.constant 10 : index
    %c0_69 = arith.constant 0 : index
    %85 = vector.load %arg8[%c10, %c0_69] : memref<448x64xbf16, #tpu.memory_space<vmem>>, vector<384x64xbf16>
    %c2_70 = arith.constant 2 : index
    %c0_71 = arith.constant 0 : index
    %c0_72 = arith.constant 0 : index
    %86 = vector.load %arg5[%c2_70, %c0_71, %c0_72] : memref<9x64x64xbf16, #tpu.memory_space<vmem>>, vector<1x64x64xbf16>
    %87 = vector.shape_cast %86 : vector<1x64x64xbf16> to vector<64x64xbf16>
    %cst_73 = arith.constant dense<0.000000e+00> : vector<384x64xf32>
    %88 = tpu.matmul %85, %87, %cst_73 {dimension_numbers = #tpu.dot_dimension_numbers<[1], [0], [0], [1], [0, 0, 1, 1], [], []>} : vector<384x64xbf16>, vector<64x64xbf16>, vector<384x64xf32> -> vector<384x64xf32>
    %89 = arith.addf %84, %88 : vector<384x64xf32>
    %c32_74 = arith.constant 32 : index
    %c0_75 = arith.constant 0 : index
    %90 = vector.load %arg8[%c32_74, %c0_75] : memref<448x64xbf16, #tpu.memory_space<vmem>>, vector<384x64xbf16>
    %c3_76 = arith.constant 3 : index
    %c0_77 = arith.constant 0 : index
    %c0_78 = arith.constant 0 : index
    %91 = vector.load %arg5[%c3_76, %c0_77, %c0_78] : memref<9x64x64xbf16, #tpu.memory_space<vmem>>, vector<1x64x64xbf16>
    %92 = vector.shape_cast %91 : vector<1x64x64xbf16> to vector<64x64xbf16>
    %cst_79 = arith.constant dense<0.000000e+00> : vector<384x64xf32>
    %93 = tpu.matmul %90, %92, %cst_79 {dimension_numbers = #tpu.dot_dimension_numbers<[1], [0], [0], [1], [0, 0, 1, 1], [], []>} : vector<384x64xbf16>, vector<64x64xbf16>, vector<384x64xf32> -> vector<384x64xf32>
    %94 = arith.addf %89, %93 : vector<384x64xf32>
    %c33_80 = arith.constant 33 : index
    %c0_81 = arith.constant 0 : index
    %95 = vector.load %arg8[%c33_80, %c0_81] : memref<448x64xbf16, #tpu.memory_space<vmem>>, vector<384x64xbf16>
    %c4_82 = arith.constant 4 : index
    %c0_83 = arith.constant 0 : index
    %c0_84 = arith.constant 0 : index
    %96 = vector.load %arg5[%c4_82, %c0_83, %c0_84] : memref<9x64x64xbf16, #tpu.memory_space<vmem>>, vector<1x64x64xbf16>
    %97 = vector.shape_cast %96 : vector<1x64x64xbf16> to vector<64x64xbf16>
    %cst_85 = arith.constant dense<0.000000e+00> : vector<384x64xf32>
    %98 = tpu.matmul %95, %97, %cst_85 {dimension_numbers = #tpu.dot_dimension_numbers<[1], [0], [0], [1], [0, 0, 1, 1], [], []>} : vector<384x64xbf16>, vector<64x64xbf16>, vector<384x64xf32> -> vector<384x64xf32>
    %99 = arith.addf %94, %98 : vector<384x64xf32>
    %c34 = arith.constant 34 : index
    %c0_86 = arith.constant 0 : index
    %100 = vector.load %arg8[%c34, %c0_86] : memref<448x64xbf16, #tpu.memory_space<vmem>>, vector<384x64xbf16>
    %c5_87 = arith.constant 5 : index
    %c0_88 = arith.constant 0 : index
    %c0_89 = arith.constant 0 : index
    %101 = vector.load %arg5[%c5_87, %c0_88, %c0_89] : memref<9x64x64xbf16, #tpu.memory_space<vmem>>, vector<1x64x64xbf16>
    %102 = vector.shape_cast %101 : vector<1x64x64xbf16> to vector<64x64xbf16>
    %cst_90 = arith.constant dense<0.000000e+00> : vector<384x64xf32>
    %103 = tpu.matmul %100, %102, %cst_90 {dimension_numbers = #tpu.dot_dimension_numbers<[1], [0], [0], [1], [0, 0, 1, 1], [], []>} : vector<384x64xbf16>, vector<64x64xbf16>, vector<384x64xf32> -> vector<384x64xf32>
    %104 = arith.addf %99, %103 : vector<384x64xf32>
    %c56_91 = arith.constant 56 : index
    %c0_92 = arith.constant 0 : index
    %105 = vector.load %arg8[%c56_91, %c0_92] : memref<448x64xbf16, #tpu.memory_space<vmem>>, vector<384x64xbf16>
    %c6_93 = arith.constant 6 : index
    %c0_94 = arith.constant 0 : index
    %c0_95 = arith.constant 0 : index
    %106 = vector.load %arg5[%c6_93, %c0_94, %c0_95] : memref<9x64x64xbf16, #tpu.memory_space<vmem>>, vector<1x64x64xbf16>
    %107 = vector.shape_cast %106 : vector<1x64x64xbf16> to vector<64x64xbf16>
    %cst_96 = arith.constant dense<0.000000e+00> : vector<384x64xf32>
    %108 = tpu.matmul %105, %107, %cst_96 {dimension_numbers = #tpu.dot_dimension_numbers<[1], [0], [0], [1], [0, 0, 1, 1], [], []>} : vector<384x64xbf16>, vector<64x64xbf16>, vector<384x64xf32> -> vector<384x64xf32>
    %109 = arith.addf %104, %108 : vector<384x64xf32>
    %c57_97 = arith.constant 57 : index
    %c0_98 = arith.constant 0 : index
    %110 = vector.load %arg8[%c57_97, %c0_98] : memref<448x64xbf16, #tpu.memory_space<vmem>>, vector<384x64xbf16>
    %c7_99 = arith.constant 7 : index
    %c0_100 = arith.constant 0 : index
    %c0_101 = arith.constant 0 : index
    %111 = vector.load %arg5[%c7_99, %c0_100, %c0_101] : memref<9x64x64xbf16, #tpu.memory_space<vmem>>, vector<1x64x64xbf16>
    %112 = vector.shape_cast %111 : vector<1x64x64xbf16> to vector<64x64xbf16>
    %cst_102 = arith.constant dense<0.000000e+00> : vector<384x64xf32>
    %113 = tpu.matmul %110, %112, %cst_102 {dimension_numbers = #tpu.dot_dimension_numbers<[1], [0], [0], [1], [0, 0, 1, 1], [], []>} : vector<384x64xbf16>, vector<64x64xbf16>, vector<384x64xf32> -> vector<384x64xf32>
    %114 = arith.addf %109, %113 : vector<384x64xf32>
    %c58 = arith.constant 58 : index
    %c0_103 = arith.constant 0 : index
    %115 = vector.load %arg8[%c58, %c0_103] : memref<448x64xbf16, #tpu.memory_space<vmem>>, vector<384x64xbf16>
    %c8_104 = arith.constant 8 : index
    %c0_105 = arith.constant 0 : index
    %c0_106 = arith.constant 0 : index
    %116 = vector.load %arg5[%c8_104, %c0_105, %c0_106] : memref<9x64x64xbf16, #tpu.memory_space<vmem>>, vector<1x64x64xbf16>
    %117 = vector.shape_cast %116 : vector<1x64x64xbf16> to vector<64x64xbf16>
    %cst_107 = arith.constant dense<0.000000e+00> : vector<384x64xf32>
    %118 = tpu.matmul %115, %117, %cst_107 {dimension_numbers = #tpu.dot_dimension_numbers<[1], [0], [0], [1], [0, 0, 1, 1], [], []>} : vector<384x64xbf16>, vector<64x64xbf16>, vector<384x64xf32> -> vector<384x64xf32>
    %119 = arith.addf %114, %118 : vector<384x64xf32>
    %120 = vector.shape_cast %119 : vector<384x64xf32> to vector<16x24x64xf32>
    %121 = vector.extract_strided_slice %120 {offsets = [0, 0, 0], sizes = [16, 16, 64], strides = [1, 1, 1]} : vector<16x24x64xf32> to vector<16x16x64xf32>
    %c0_108 = arith.constant 0 : index
    %c0_109 = arith.constant 0 : index
    %122 = vector.load %arg6[%c0_108, %c0_109] : memref<1x64xf32, #tpu.memory_space<vmem>>, vector<1x64xf32>
    %123 = vector.shape_cast %122 : vector<1x64xf32> to vector<1x1x64xf32>
    %124 = vector.broadcast %123 : vector<1x1x64xf32> to vector<16x16x64xf32>
    %125 = arith.addf %121, %124 : vector<16x16x64xf32>
    %126 = vector.shape_cast %125 : vector<16x16x64xf32> to vector<16x1024xf32>
    %c0_110 = arith.constant 0 : index
    %c0_111 = arith.constant 0 : index
    %c0_112 = arith.constant 0 : index
    %127 = vector.load %arg2[%c0_110, %c0_111, %c0_112] : memref<1x16x1024xf32, #tpu.memory_space<vmem>>, vector<1x16x1024xf32>
    %128 = vector.shape_cast %127 : vector<1x16x1024xf32> to vector<16x1024xf32>
    %129 = arith.addf %126, %128 : vector<16x1024xf32>
    %c0_113 = arith.constant 0 : index
    %c0_114 = arith.constant 0 : index
    %c0_115 = arith.constant 0 : index
    %130 = vector.load %arg7[%c0_113, %c0_114, %c0_115] : memref<1x16x1024xf32, #tpu.memory_space<vmem>>, vector<1x16x1024xf32>
    %131 = vector.shape_cast %130 : vector<1x16x1024xf32> to vector<16x1024xf32>
    %132 = vector.shape_cast %129 : vector<16x1024xf32> to vector<1x16x1024xf32>
    tpu.vector_store %arg7[%c0_113, %c0_114, %c0_115], %132 {strides = array<i32>} : memref<1x16x1024xf32, #tpu.memory_space<vmem>>, vector<1x16x1024xf32>,
    return
  }
  func.func @transform_0(%arg0: i32) -> (i32, i32, i32) {
    %c0_i32 = arith.constant 0 : i32
    %c0_i32_0 = arith.constant 0 : i32
    %c0_i32_1 = arith.constant 0 : i32
    return %arg0, %c0_i32, %c0_i32_0 : i32, i32, i32
  }
  func.func @transform_1(%arg0: i32) -> (i32, i32, i32) {
    %c0_i32 = arith.constant 0 : i32
    %c0_i32_0 = arith.constant 0 : i32
    %c0_i32_1 = arith.constant 0 : i32
    return %arg0, %c0_i32, %c0_i32_0 : i32, i32, i32
  }
  func.func @transform_2(%arg0: i32) -> (i32, i32, i32) {
    %c0_i32 = arith.constant 0 : i32
    %c0_i32_0 = arith.constant 0 : i32
    %c0_i32_1 = arith.constant 0 : i32
    %c0_i32_2 = arith.constant 0 : i32
    return %c0_i32, %c0_i32_0, %c0_i32_1 : i32, i32, i32
  }
  func.func @transform_3(%arg0: i32) -> (i32, i32) {
    %c0_i32 = arith.constant 0 : i32
    %c0_i32_0 = arith.constant 0 : i32
    %c0_i32_1 = arith.constant 0 : i32
    return %c0_i32, %c0_i32_0 : i32, i32
  }
  func.func @transform_4(%arg0: i32) -> (i32, i32, i32) {
    %c0_i32 = arith.constant 0 : i32
    %c0_i32_0 = arith.constant 0 : i32
    %c0_i32_1 = arith.constant 0 : i32
    %c0_i32_2 = arith.constant 0 : i32
    return %c0_i32, %c0_i32_0, %c0_i32_1 : i32, i32, i32
  }
  func.func @transform_5(%arg0: i32) -> (i32, i32) {
    %c0_i32 = arith.constant 0 : i32
    %c0_i32_0 = arith.constant 0 : i32
    %c0_i32_1 = arith.constant 0 : i32
    return %c0_i32, %c0_i32_0 : i32, i32
  }
  func.func @transform_6(%arg0: i32) -> (i32, i32, i32) {
    %c0_i32 = arith.constant 0 : i32
    %c0_i32_0 = arith.constant 0 : i32
    %c0_i32_1 = arith.constant 0 : i32
    return %arg0, %c0_i32, %c0_i32_0 : i32, i32, i32
  }
}

</mosaic_0001>

<bundles_post_ra>
// kernel: tpu_custom_call.1
= control target key start
LH: loop header
LB: loop body
LE: loop exit
PB: predicated region body
PF: predicated region fallthrough
CT: control target
= control target key end

     0   :  { %11 = vsyncpa [#allocation4], 0  ;;  %s18420_s0 = inlined_call_operand.vmem [shape: bf16[2,448,64], index: 0, kind: input, shape index: {}]   ;;  %s18421_s1 = inlined_call_operand.hbm [shape: f32[2,16,1024], index: 1, kind: input, shape index: {}]   ;;  %s18422_s2 = inlined_call_operand.vmem [shape: bf16[9,64,64], index: 2, kind: input, shape index: {}]   ;;  %s18423_s3 = inlined_call_operand.vmem [shape: f32[1,64], index: 3, kind: input, shape index: {}]   ;;  %s18424_s4 = inlined_call_operand.vmem [shape: bf16[9,64,64], index: 4, kind: input, shape index: {}]   ;;  %s18425_s5 = inlined_call_operand.vmem [shape: f32[1,64], index: 5, kind: input, shape index: {}]   ;;  %s18426_s6 = inlined_call_operand.hbm [shape: f32[2,16,1024], index: 6, kind: output, shape index: {}]  }
   0x1   :  { %13 = vsyncpa [#allocation4 + $0x1], 0 }
   0x2   :  { %14 = vsyncpa [#allocation5], 0 }
   0x3   :  { %16 = vsyncpa [#allocation5 + $0x1], 0  ;;  %s14410_s21 = smov 0   ;;  %s14412_s22 = smov 0  }
   0x4   :  { %s14414_s23 = smov 0   ;;  %s14416_s24 = smov 0  }
   0x5 LB: > { %s14431_s25 = sadd.s32 4294967295, %s14364_s24   ;;  %s11120_s26 = sadd.s32 4294967294, %s14364_s24   ;;  %s14364_s24 = sphi %s14416_s24, %s18625_s24   ;;  %s14360_s23 = sphi %s14414_s23, %s18624_s23   ;;  %s14356_s22 = sphi %s14412_s22, %s18623_s22   ;;  %s14352_s21 = sphi %s14410_s21, %s18622_s21  }
   0x6   : > { %s14435_s27 = sadd.s32 1, %s14364_s24   ;;  %s55_s28 = sadd.s32 1, %s14360_s23 }
   0x7   : > { %s52_s29 = ssub.s32 %s14364_s24, %s14435_s27  ;;  %p62_p0 = scmp.ne.s32.totalorder %s14360_s23, %s14356_s22 }
   0x8   : > { %p53_p1 = scmp.eq.s32.totalorder %s52_s29, 0  ;;  %p63_p2 = scmp.eq.s32.totalorder %s14364_s24, 0 }
   0x9   : > { %p68_p3 = scmp.ne.s32.totalorder %s14356_s22, %s14352_s21  ;;  %p69_p4 = scmp.eq.s32.totalorder %s14431_s25, 0 }
   0xa   : > { %s14447_s30 = scalar_select %p53_p1, %s14360_s23, %s55_s28  }
   0xb   : > { %p14449_p5 = por %p63_p2, %p62_p0  ;;  %p14453_p6 = por %p69_p4, %p68_p3 }
   0xc   : > { %p176_p7 = scmp.eq.s32.totalorder %s14431_s25, 1  ;;  %p182_p8 = scmp.eq.s32.totalorder %s11120_s26, 1 }
   0xd   : > { %p13902_p10 = scmp.lt.s32.totalorder %s14364_s24, 2  ;;  %s222_s11 = sand.u32 1, %s14360_s23  }
   0xe   : > { %p14460_p11 = por %p176_p7, %p62_p0  ;;  %p14464_p12 = por %p182_p8, %p68_p3 }
   0xf   : > { %s11991_s12 = sshll.u32 %s14364_s24, 11  ;;  %s11123_s13 = sshll.u32 %s222_s11, 7 }
  0x10   : > { %s18483_s9 = scalar_select %p14460_p11, 1, 0 }
  0x11   : > { %s18484_s10 = scalar_select %p14464_p12, 1, 0 }
  0x12   : > { %s14473_s16 = scalar_lea.hbm %s18421_s1, %s11991_s12  ;;  %s226_s17 = scalar_lea.vmem [#allocation3], %s11123_s13 }
  0x13   : > { %s233_s18 = sshll.u32 %s226_s17, 4  ;;  %p14477_p13 = pnand %p13902_p10, %p14449_p5  ;;  %s14481_s18 = int_to_ptr.vmem [resolvable:$true] %s233_s18 }
  0x14   : > { %s14483_s20 = scalar_lea.sflag [#allocation4], %s222_s11  ;;  %s14268_s26 = scalar_lea.hbm %s14473_s16, 2048 }
  0x15   : > { %p14269_p0 = scmp.ne.s32.totalorder %s14473_s16, %s14268_s26  ;;  %p14270_p1 = pneg %p14477_p13 }
  0x16   : > { %s14273_s7 = scalar_lea.hbm %s18421_s1, 4096  ;;  %p14274_p4 = scmp.lt.u32.totalorder %s14473_s16, %s18421_s1 }
  0x17   : > { %p14271_p2 = pnand %p14270_p1, %p14269_p0  ;;  %p14275_p5 = scmp.lt.u32.totalorder %s14273_s7, %s14268_s26 }
  0x18   : > { %p14277_p8 = scmp.lt.u32.totalorder %s14268_s26, %s14473_s16 }
  0x19   : > { %p14272_p3 = pneg %p14271_p2  ;;  %p14276_p7 = por %p14275_p5, %p14274_p4 }
  0x1b   : > { %p14278_p10 = por %p14277_p8, %p14276_p7 }
  0x1d   : > { %p14279_p9 = pnand %p14278_p10, %p14272_p3 }
  0x1f   : > { %14282 = shalt.err (!%p14279_p9)
}
  0x20   : > { %s14283_s11 = scalar_lea.vmem %s14481_s18, 2048  ;;  %s14366_s14 = smov [#allocation3]  }
  0x21   : > { %p14284_p0 = scmp.ne.s32.totalorder %s14481_s18, %s14283_s11  ;;  %s14288_s15 = sshll.u32 %s14366_s14, 4  ;;  %s14289_s15 = int_to_ptr.vmem [resolvable:$false] %s14288_s15 }
  0x22   : > { %s14290_s17 = scalar_lea.vmem %s14289_s15, 4096  ;;  %p14291_p11 = scmp.lt.s32.totalorder %s14481_s18, %s14289_s15 }
  0x23   : > { %p14286_p2 = pnand %p14284_p0, %p14270_p1  ;;  %p14292_p4 = scmp.lt.s32.totalorder %s14290_s17, %s14283_s11 }
  0x25   : > { %p14287_p12 = pneg %p14286_p2  ;;  %p14293_p5 = por %p14292_p4, %p14291_p11 }
  0x27   : > { %p14294_p7 = pnand %p14293_p5, %p14287_p12 }
  0x29   : > { %14297 = shalt.err (!%p14294_p7)
}
  0x2a   : > { %s14367_s26 = smov 1024   ;;  %s14368_s28 = smov 64  }
  0x2b   : > { %13897 = dma.hbm_to_vmem [thread:$0]  (!%p14477_p13), %s14473_s16, 2048, %s14481_s18, %s14483_s20, %s14367_s26, %s14367_s26, %s14368_s28  }
  0x2c   : > { %p11126_p9 = scmp.ge.s32.totalorder %s14364_s24, 1  ;;  %p241_p1 = scmp.lt.s32.totalorder %s14364_s24, 3 }
  0x2e   : > { %p242_p3 = pnand %p11126_p9, %p241_p1 }
  0x30   : > { %245 = sbr.rel (%p242_p3) target bundleno = 2323 (0x913), region = 44 }
  0x37   : > { %s14514_s29 = sand.u32 1, %s14356_s22  }
  0x38   : > { %s11127_s7 = sshll.u32 %s14514_s29, 7  ;;  %s248_s12 = scalar_lea.sflag [#allocation4], %s14514_s29 }
  0x39   : > { %s14520_s13 = scalar_lea.vmem [#allocation3], %s11127_s7 }
  0x3a   : > { %14343 = dma.done.wait (%p14453_p6), %s248_s12, 2048  }
  0x3b   : > { %14345 = vsyncadd (%p14453_p6), %s248_s12, 4294965248  ;;  %p285_p11 = scmp.lt.s32.totalorder %s14431_s25, 1  ;;  %v13943_v0 = vld [vmem:[%s18422_s2 + $0x20] sm:$0xff]   ;;  %v13944_v1 = vld [vmem:[%s18422_s2 + $0x28] sm:$0xff]   ;;  %vm291_vm0 = vcmask 523264   ;;  %vm6783_vm6 = vcmask 1043456  }
  0x3c   : > { %12497 = vmatprep.subr.bf16.mxu0 %v13943_v0  ;;  %v13945_v2 = vld [vmem:[%s18422_s2 + $0x30] sm:$0xff]   ;;  %v13946_v13 = vld [vmem:[%s18422_s2 + $0x38] sm:$0xff]   ;;  %vm843_vm1 = vsmask.f32 4352  ;;  %v13952_v32 = vld [vmem:[%s18422_s2] sm:$0xff]   ;;  %vm7150_vm7 = vcmask 1042432  }
  0x3d   : > { %s286_s16 = scalar_select %p285_p11, %s14431_s25, 1  ;;  %12498 = vmatpush3.bf16.msra.mxu0 %v13943_v0  ;;  %v13964_v48 = vld [vmem:[%s18422_s2 + $0x8] sm:$0xff]   ;;  %vm1570_vm2 = vsmask.f32 7424  ;;  %vm6228_vm3 = vsmask.f32 3328 }
  0x3e   : > { %12499 = vmatprep.subr.bf16.mxu0 %v13944_v1  ;;  %vm8509_vm8 = vcmask 1046528   ;;  %s14372_s19 = smov 64   ;;  %s18283_s20 = scalar_lea.vmem [#allocation6], %s11127_s7 }
  0x3f   : > { %s13889_s18 = smul.u32 224, %s286_s16  ;;  %s11992_s7 = sshll.u32 %s14431_s25, 11 }
  0x40   : > { %s11035_s11 = sshll.u32 %s18283_s20, 4  ;;  %s18372_s17 = scalar_lea.hbm %s18426_s6, %s11992_s7  ;;  %s18374_s11 = int_to_ptr.vmem [resolvable:$true] %s11035_s11 }
  0x41   : > { %s14537_s26 = scalar_lea.vmem %s18420_s0, %s13889_s18  ;;  %12500 = vmatpush3.bf16.msra.mxu0 %v13944_v1  ;;  %s11022_s25 = scalar_lea.sflag [#allocation5], %s14514_s29 }
  0x42   : > { %v309_v3 = vld [vmem:[%s14537_s26] sm:$0x8]  ;;  %v310_v4 = vld [vmem:[%s14537_s26 + $0x4] sm:$0xf]  ;;  %v311_v5 = vld [vmem:[%s14537_s26 + $0x8] sm:$0xf]  ;;  %12501 = vmatprep.subr.bf16.mxu0 %v13945_v2 }
  0x43   : > { %v14546_v6 = vld [vmem:[%s14537_s26 + $0xc] sm:$0xf]  ;;  %v14549_v7 = vld [vmem:[%s14537_s26 + $0x10] sm:$0xf]  ;;  %v14552_v8 = vld [vmem:[%s14537_s26 + $0x14] sm:$0xf]  ;;  %v11138_v9 = vcombine.low %v310_v4, %v311_v5  ;;  %v11190_v10 = vcombine.low %v309_v3, %v310_v4 }
  0x44   : > { %v11191_v11 = vcombine.low %v311_v5, %v14546_v6  ;;  %v11192_v12 = vcombine.low %v14549_v7, %v14552_v8  ;;  %v315_v20 = vld [vmem:[%s14537_s26 + $0x18] sm:$0xf]  ;;  %v14563_v21 = vld [vmem:[%s14537_s26 + $0x1c] sm:$0xf]  ;;  %v14566_v22 = vld [vmem:[%s14537_s26 + $0x20] sm:$0xf]  ;;  %v11139_v47 = vcombine.low %v14546_v6, %v14549_v7 }
  0x45   : > { %12505 = vmatprep.mubr.msk.bf16.mxu0 %vm291_vm0, %v11138_v9  ;;  %v845_v14 = vshrl.u32 %v11190_v10, 16  ;;  %v848_v15 = vshll.u32 %v11190_v10, 16  ;;  %v14569_v25 = vld [vmem:[%s14537_s26 + $0x24] sm:$0xf]  ;;  %v14572_v26 = vld [vmem:[%s14537_s26 + $0x28] sm:$0xf]  ;;  %12502 = vmatpush3.bf16.msra.mxu0 %v13945_v2  ;;  %v14581_v33 = vcombine.low %v315_v20, %v14563_v21  ;;  %v11140_v53 = vcombine.low %v14552_v8, %v315_v20 }
  0x46   : > { %v853_v16 = vshrl.u32 %v11191_v11, 16  ;;  %v856_v17 = vshll.u32 %v11191_v11, 16  ;;  %v862_v18 = vshrl.u32 %v11192_v12, 16  ;;  %v865_v19 = vshll.u32 %v11192_v12, 16  ;;  %v14575_v31 = vld [vmem:[%s14537_s26 + $0x2c] sm:$0xf]  ;;  %12503 = vmatprep.subr.bf16.mxu0 %v13946_v13 }
  0x47   : > { %v847_v23 = vrot.slane %v845_v14, 3  ;;  %v850_v24 = vrot.slane %v848_v15, 4  ;;  %v14585_v34 = vcombine.low %v14566_v22, %v14569_v25  ;;  %v14588_v35 = vld [vmem:[%s14537_s26 + $0x30] sm:$0xf]  ;;  %v14592_v36 = vcombine.low %v14572_v26, %v14575_v31  ;;  %v14595_v37 = vld [vmem:[%s14537_s26 + $0x34] sm:$0xf] }
  0x48   : > { %v855_v27 = vrot.slane %v853_v16, 3  ;;  %v858_v28 = vrot.slane %v856_v17, 4  ;;  %v864_v29 = vrot.slane %v862_v18, 3  ;;  %v867_v30 = vrot.slane %v865_v19, 4  ;;  %v14600_v39 = vld [vmem:[%s14537_s26 + $0x38] sm:$0xf] }
  0x49   : > { %v14604_v40 = vcombine.low %v14588_v35, %v14595_v37  ;;  %v14607_v41 = vld [vmem:[%s14537_s26 + $0x3c] sm:$0xf]  ;;  %v14610_v42 = vld [vmem:[%s14537_s26 + $0x40] sm:$0xf]  ;;  %v14617_v44 = vld [vmem:[%s14537_s26 + $0x44] sm:$0xf]  ;;  %v851_v45 = vor.u32 %v850_v24, %v847_v23  ;;  %12504 = vmatpush3.bf16.msra.mxu0 %v13946_v13  ;;  %v11141_v20 = vcombine.low %v14563_v21, %v14566_v22 }
  0x4a   : > { %v14597_v38 = vor.u32 %v867_v30, %v864_v29  ;;  %v14614_v43 = vcombine.low %v14600_v39, %v14607_v41  ;;  %v859_v46 = vor.u32 %v858_v28, %v855_v27  ;;  %v14625_v49 = vld [vmem:[%s14537_s26 + $0x48] sm:$0xf]  ;;  %v14629_v50 = vcombine.low %v14610_v42, %v14617_v44  ;;  %v14632_v51 = vld [vmem:[%s14537_s26 + $0x4c] sm:$0xf]  ;;  %v14635_v52 = vld [vmem:[%s14537_s26 + $0x50] sm:$0xf]  ;;  %12553 = vmatprep.subr.bf16.mxu0 %v13952_v32 }
  0x4b   : > { %v14640_v54 = vcombine.low %v14625_v49, %v14632_v51  ;;  %v14643_v55 = vld [vmem:[%s14537_s26 + $0x54] sm:$0xf]  ;;  %v14646_v56 = vld [vmem:[%s14537_s26 + $0x58] sm:$0xf]  ;;  %v14649_v57 = vld [vmem:[%s14537_s26 + $0x5c] sm:$0xf]  ;;  %v11142_v28 = vcombine.low %v14569_v25, %v14572_v26 }
  0x4c   : > { %v14652_v58 = vsel %vm843_vm1, %v851_v45, %v859_v46  ;;  %v14656_v59 = vcombine.low %v14635_v52, %v14643_v55  ;;  %v14659_v60 = vld [vmem:[%s14537_s26 + $0x60] sm:$0xf]  ;;  %v14663_v61 = vcombine.low %v14646_v56, %v14649_v57  ;;  %v14666_v62 = vld [vmem:[%s14537_s26 + $0x64] sm:$0xf]  ;;  %v14669_v63 = vld [vmem:[%s14537_s26 + $0x68] sm:$0xf]  ;;  %v14673_v0 = vsel %vm843_vm1, %v859_v46, %v14597_v38  ;;  %12506 = vmatmul.mubr.msk.bf16.vlgmr.msra.gmra.mrb[0].mxu0 %vm291_vm0, %v11139_v47 }
  0x4d   : > { %18486 = vst [vmem:[#allocation9_spill] sm:$0xff] %v14652_v58  ;;  %18487 = vst [vmem:[#allocation10_spill] sm:$0xff] %v14673_v0  ;;  %v14677_v1 = vcombine.low %v14659_v60, %v14666_v62  ;;  %v14680_v2 = vld [vmem:[%s14537_s26 + $0x6c] sm:$0xf]  ;;  %v14683_v3 = vld [vmem:[%s14537_s26 + $0x70] sm:$0xf]  ;;  %12554 = vmatpush3.bf16.msra.mxu0 %v13952_v32  ;;  %12509 = vmatprep.mubr.msk.bf16.mxu0 %vm291_vm0, %v11140_v53  ;;  %v11143_v46 = vcombine.low %v14575_v31, %v14588_v35 }
  0x4e   : > { %v14688_v4 = vcombine.low %v14669_v63, %v14680_v2  ;;  %v13977_v5 = vld [vmem:[%s18422_s2 + $0x10] sm:$0xff]   ;;  %v14698_v7 = vld [vmem:[%s14537_s26 + $0x78] sm:$0xf]  ;;  %v14705_v9 = vld [vmem:[%s14537_s26 + $0x7c] sm:$0xf]  ;;  %12555 = vmatprep.subr.bf16.mxu0 %v13964_v48  ;;  %v871_v30 = vshrl.u32 %v14581_v33, 16  ;;  %v11144_v47 = vcombine.low %v14595_v37, %v14600_v39 }
  0x4f   : > { %v14694_v6 = vld [vmem:[%s14537_s26 + $0x74] sm:$0xf]  ;;  %v14708_v10 = vld [vmem:[%s14537_s26 + $0x80] sm:$0xf]  ;;  %v14712_v11 = vcombine.low %v14698_v7, %v14705_v9  ;;  %v14715_v12 = vld [vmem:[%s14537_s26 + $0x84] sm:$0xf] }
  0x50   : > { %v14702_v8 = vcombine.low %v14683_v3, %v14694_v6  ;;  %v14718_v13 = vld [vmem:[%s14537_s26 + $0x88] sm:$0xf]  ;;  %v14721_v14 = vld [vmem:[%s14537_s26 + $0x8c] sm:$0xf]  ;;  %v14725_v15 = vcombine.low %v14708_v10, %v14715_v12  ;;  %v14728_v16 = vld [vmem:[%s14537_s26 + $0x90] sm:$0xf] }
  0x51   : > { %18488 = vst [vmem:[#allocation11_spill] sm:$0xff] %v14721_v14  ;;  %18489 = vst [vmem:[#allocation12_spill] sm:$0xff] %v14728_v16  ;;  %v14732_v17 = vcombine.low %v14718_v13, %v14721_v14  ;;  %v14735_v18 = vld [vmem:[%s14537_s26 + $0x94] sm:$0xf]  ;;  %v14738_v19 = vld [vmem:[%s14537_s26 + $0x98] sm:$0xf]  ;;  %12556 = vmatpush3.bf16.msra.mxu0 %v13964_v48 }
  0x52   : > { %18490 = vst [vmem:[#allocation13_spill] sm:$0xff] %v14735_v18  ;;  %18491 = vst [vmem:[#allocation14_spill] sm:$0xff] %v14738_v19  ;;  %v14744_v23 = vcombine.low %v14728_v16, %v14735_v18  ;;  %v14747_v24 = vld [vmem:[%s14537_s26 + $0x9c] sm:$0xf]  ;;  %v14750_v27 = vld [vmem:[%s14537_s26 + $0xa0] sm:$0xf]  ;;  %12557 = vmatprep.subr.bf16.mxu0 %v13977_v5 }
  0x53   : > { %18492 = vst [vmem:[#allocation15_spill] sm:$0xff] %v14747_v24  ;;  %18493 = vst [vmem:[#allocation16_spill] sm:$0xff] %v14750_v27  ;;  %v14756_v29 = vcombine.low %v14738_v19, %v14747_v24  ;;  %v13990_v21 = vld [vmem:[%s18422_s2 + $0x18] sm:$0xff]   ;;  %v14762_v22 = vld [vmem:[%s14537_s26 + $0xa4] sm:$0xf]  ;;  %v873_v35 = vrot.slane %v871_v30, 3 }
  0x54   : > { %18494 = vst [vmem:[#allocation17_spill] sm:$0xff] %v14762_v22  ;;  %v14766_v32 = vld [vmem:[%s14537_s26 + $0xa8] sm:$0xf]  ;;  %v14770_v25 = vcombine.low %v14750_v27, %v14762_v22  ;;  %v14773_v26 = vld [vmem:[%s14537_s26 + $0xac] sm:$0xf]  ;;  %12510 = vmatmul.mubr.msk.bf16.gmra.mrb[4].mxu0 %vm291_vm0, %v11141_v20  ;;  %v14816_v20 = vld [vmem:[%s18422_s2 + $0x40] sm:$0xff]  }
  0x55   : > { %18495 = vst [vmem:[#allocation18_spill] sm:$0xff] %v14766_v32  ;;  %18496 = vst [vmem:[#allocation19_spill] sm:$0xff] %v14773_v26  ;;  %v14776_v45 = vld [vmem:[%s14537_s26 + $0xb0] sm:$0xf]  ;;  %v14786_v53 = vcombine.low %v14766_v32, %v14773_v26  ;;  %v14789_v0 = vld [vmem:[%s14537_s26 + $0xb4] sm:$0xf]  ;;  %12513 = vmatprep.mubr.msk.bf16.mxu0 %vm291_vm0, %v11142_v28  ;;  %12558 = vmatpush3.bf16.msra.mxu0 %v13977_v5 }
  0x56   : > { %18497 = vst [vmem:[#allocation20_spill] sm:$0xff] %v14776_v45  ;;  %18498 = vst [vmem:[#allocation21_spill] sm:$0xff] %v14789_v0  ;;  %v14792_v58 = vld [vmem:[%s14537_s26 + $0xb8] sm:$0xf]  ;;  %v14795_v22 = vld [vmem:[%s14537_s26 + $0xbc] sm:$0xf]  ;;  %v14804_v37 = vcombine.low %v14776_v45, %v14789_v0  ;;  %12559 = vmatprep.subr.bf16.mxu0 %v13990_v21 }
  0x57   : > { %18499 = vst [vmem:[#allocation22_spill] sm:$0xff] %v14792_v58  ;;  %18500 = vst [vmem:[#allocation23_spill] sm:$0xff] %v14795_v22  ;;  %v14808_v39 = vcombine.low %v14792_v58, %v14795_v22  ;;  %v874_v31 = vshll.u32 %v14581_v33, 16  ;;  %v880_v0 = vshrl.u32 %v14585_v34, 16  ;;  %v883_v22 = vshll.u32 %v14585_v34, 16  ;;  %p18619_p12 = scmp.ne.s32.totalorder %s18483_s9, 0 }
  0x58   : > { %v889_v58 = vshrl.u32 %v14592_v36, 16  ;;  %v892_v28 = vshll.u32 %v14592_v36, 16  ;;  %v898_v48 = vshrl.u32 %v14604_v40, 16  ;;  %v901_v45 = vshll.u32 %v14604_v40, 16  ;;  %s14373_s8 = smov [#allocation6]  }
  0x59   : > { %v876_v5 = vrot.slane %v874_v31, 4  ;;  %v882_v26 = vrot.slane %v880_v0, 3  ;;  %v907_v32 = vshrl.u32 %v14614_v43, 16  ;;  %v885_v30 = vrot.slane %v883_v22, 4  ;;  %12560 = vmatpush3.bf16.msra.mxu0 %v13990_v21  ;;  %s14302_s28 = sshll.u32 %s14373_s8, 4  ;;  %s14303_s28 = int_to_ptr.vmem [resolvable:$false] %s14302_s28 }
  0x5a   : > { %v891_v24 = vrot.slane %v889_v58, 3  ;;  %v894_v33 = vrot.slane %v892_v28, 4  ;;  %v900_v27 = vrot.slane %v898_v48, 3  ;;  %v903_v19 = vrot.slane %v901_v45, 4  ;;  %12609 = vmatprep.subr.bf16.mxu0 %v14816_v20  ;;  %s14304_s12 = scalar_lea.vmem %s14303_s28, 4096  ;;  %p14305_p10 = scmp.lt.s32.totalorder %s18374_s11, %s14303_s28 }
  0x5b   : > { %v877_v18 = vor.u32 %v876_v5, %v873_v35  ;;  %v909_v34 = vrot.slane %v907_v32, 3  ;;  %v910_v14 = vshll.u32 %v14614_v43, 16  ;;  %v886_v36 = vor.u32 %v885_v30, %v882_v26 }
  0x5c   : > { %v895_v16 = vor.u32 %v894_v33, %v891_v24  ;;  %v916_v0 = vshrl.u32 %v14629_v50, 16  ;;  %v919_v40 = vshll.u32 %v14629_v50, 16  ;;  %v904_v58 = vor.u32 %v903_v19, %v900_v27  ;;  %12514 = vmatmul.mubr.msk.bf16.gmra.mrb[8].mxu0 %vm291_vm0, %v11143_v46 }
  0x5d   : > { %v14832_v22 = vsel %vm843_vm1, %v14597_v38, %v877_v18  ;;  %v912_v48 = vrot.slane %v910_v14, 4  ;;  %v925_v21 = vshrl.u32 %v14640_v54, 16  ;;  %v14837_v43 = vsel %vm843_vm1, %v877_v18, %v886_v36  ;;  %12517 = vmatprep.mubr.msk.bf16.mxu0 %vm291_vm0, %v11144_v47 }
  0x5e   : > { %v14840_v32 = vsel %vm843_vm1, %v886_v36, %v895_v16  ;;  %v918_v24 = vrot.slane %v916_v0, 3  ;;  %v921_v26 = vrot.slane %v919_v40, 4  ;;  %v14844_v50 = vsel %vm843_vm1, %v895_v16, %v904_v58 }
  0x5f   : > { %v913_v38 = vor.u32 %v912_v48, %v909_v34  ;;  %v927_v19 = vrot.slane %v925_v21, 3  ;;  %v928_v14 = vshll.u32 %v14640_v54, 16  ;;  %v934_v45 = vshrl.u32 %v14656_v59, 16 }
  0x60   : > { %v922_v27 = vor.u32 %v921_v26, %v918_v24  ;;  %v937_v18 = vshll.u32 %v14656_v59, 16  ;;  %v943_v46 = vshrl.u32 %v14663_v61, 16  ;;  %v946_v47 = vshll.u32 %v14663_v61, 16 }
  0x61   : > { %v14851_v31 = vsel %vm843_vm1, %v904_v58, %v913_v38  ;;  %v930_v35 = vrot.slane %v928_v14, 4  ;;  %v952_v16 = vshrl.u32 %v14677_v1, 16  ;;  %v936_v5 = vrot.slane %v934_v45, 3 }
  0x62   : > { %v14856_v28 = vsel %vm843_vm1, %v913_v38, %v922_v27  ;;  %v939_v54 = vrot.slane %v937_v18, 4  ;;  %v945_v30 = vrot.slane %v943_v46, 3  ;;  %v948_v34 = vrot.slane %v946_v47, 4 }
  0x63   : > { %v931_v33 = vor.u32 %v930_v35, %v927_v19  ;;  %v954_v36 = vrot.slane %v952_v16, 3  ;;  %v955_v59 = vshll.u32 %v14677_v1, 16  ;;  %v961_v40 = vshrl.u32 %v14688_v4, 16 }
  0x64   : > { %v940_v0 = vor.u32 %v939_v54, %v936_v5  ;;  %v964_v58 = vshll.u32 %v14688_v4, 16  ;;  %v970_v61 = vshrl.u32 %v14702_v8, 16  ;;  %v949_v21 = vor.u32 %v948_v34, %v945_v30 }
  0x65   : > { %v14863_v48 = vsel %vm843_vm1, %v922_v27, %v931_v33  ;;  %v957_v24 = vrot.slane %v955_v59, 4  ;;  %v973_v26 = vshll.u32 %v14702_v8, 16  ;;  %v18501_v38 = vcombine.low %v14607_v41, %v14610_v42 }
  0x66   : > { %v14871_v1 = vsel %vm843_vm1, %v931_v33, %v940_v0  ;;  %v963_v19 = vrot.slane %v961_v40, 3  ;;  %v966_v14 = vrot.slane %v964_v58, 4  ;;  %v972_v4 = vrot.slane %v970_v61, 3 }
  0x67   : > { %12518 = vmatmul.mubr.msk.bf16.gmra.mrb[12].mxu0 %vm291_vm0, %v18501_v38  ;;  %v18502_v45 = vcombine.low %v14617_v44, %v14625_v49  ;;  %v14878_v27 = vsel %vm843_vm1, %v940_v0, %v949_v21  ;;  %v958_v8 = vor.u32 %v957_v24, %v954_v36  ;;  %v975_v18 = vrot.slane %v973_v26, 4 }
  0x68   : > { %v979_v41 = vshrl.u32 %v14712_v11, 16  ;;  %v967_v42 = vor.u32 %v966_v14, %v963_v19  ;;  %v982_v46 = vshll.u32 %v14712_v11, 16  ;;  %v988_v35 = vshrl.u32 %v14725_v15, 16 }
  0x69   : > { %12521 = vmatprep.mubr.msk.bf16.mxu0 %vm291_vm0, %v18502_v45  ;;  %v991_v47 = vshll.u32 %v14725_v15, 16  ;;  %v14885_v16 = vsel %vm843_vm1, %v949_v21, %v958_v8  ;;  %v976_v44 = vor.u32 %v975_v18, %v972_v4  ;;  %v997_v5 = vshrl.u32 %v14732_v17, 16 }
  0x6a   : > { %v981_v49 = vrot.slane %v979_v41, 3  ;;  %v14889_v54 = vsel %vm843_vm1, %v958_v8, %v967_v42  ;;  %v984_v30 = vrot.slane %v982_v46, 4  ;;  %v990_v33 = vrot.slane %v988_v35, 3 }
  0x6b   : > { %v993_v34 = vrot.slane %v991_v47, 4  ;;  %v14892_v36 = vsel %vm843_vm1, %v967_v42, %v976_v44  ;;  %v999_v11 = vrot.slane %v997_v5, 3  ;;  %v1000_v59 = vshll.u32 %v14732_v17, 16 }
  0x6c   : > { %v1006_v15 = vshrl.u32 %v14744_v23, 16  ;;  %v985_v0 = vor.u32 %v984_v30, %v981_v49  ;;  %v1009_v58 = vshll.u32 %v14744_v23, 16  ;;  %v18503_v24 = vcombine.low %v14632_v51, %v14635_v52 }
  0x6d   : > { %v994_v40 = vor.u32 %v993_v34, %v990_v33  ;;  %v1002_v61 = vrot.slane %v1000_v59, 4  ;;  %v1015_v19 = vshrl.u32 %v14756_v29, 16  ;;  %v18504_v14 = vcombine.low %v14643_v55, %v14646_v56 }
  0x6e   : > { %v1008_v21 = vrot.slane %v1006_v15, 3  ;;  %v14902_v26 = vsel %vm843_vm1, %v976_v44, %v985_v0  ;;  %v1011_v17 = vrot.slane %v1009_v58, 4  ;;  %v1018_v4 = vshll.u32 %v14756_v29, 16 }
  0x6f   : > { %12522 = vmatmul.mubr.msk.bf16.gmra.mrb[16].mxu0 %vm291_vm0, %v18503_v24  ;;  %v14905_v38 = vsel %vm843_vm1, %v985_v0, %v994_v40  ;;  %v1003_v23 = vor.u32 %v1002_v61, %v999_v11  ;;  %v1024_v51 = vshrl.u32 %v14770_v25, 16  ;;  %v1027_v52 = vshll.u32 %v14770_v25, 16 }
  0x70   : > { %12525 = vmatprep.mubr.msk.bf16.mxu0 %vm291_vm0, %v18504_v14  ;;  %v1012_v45 = vor.u32 %v1011_v17, %v1008_v21  ;;  %v1017_v8 = vrot.slane %v1015_v19, 3  ;;  %v1020_v41 = vrot.slane %v1018_v4, 4  ;;  %v11149_v55 = vcombine.low %v14649_v57, %v14659_v60 }
  0x71   : > { %v14916_v18 = vsel %vm843_vm1, %v994_v40, %v1003_v23  ;;  %v1026_v42 = vrot.slane %v1024_v51, 3  ;;  %v1029_v46 = vrot.slane %v1027_v52, 4  ;;  %v11150_v29 = vcombine.low %v14666_v62, %v14669_v63  ;;  %v357_v63 = vld [vmem:[%s14537_s26 + $0xc0] sm:$0xf]  ;;  %v18505_v51 = vld [vmem:[#allocation12_spill] sm:$0xff]  ;;  %v18506_v52 = vld [vmem:[#allocation11_spill] sm:$0xff] }
  0x72   : > { %v14921_v56 = vsel %vm843_vm1, %v1003_v23, %v1012_v45  ;;  %v1021_v35 = vor.u32 %v1020_v41, %v1017_v8  ;;  %v1033_v49 = vshrl.u32 %v14786_v53, 16  ;;  %v1036_v57 = vshll.u32 %v14786_v53, 16  ;;  %v18507_v8 = vld [vmem:[#allocation14_spill] sm:$0xff]  ;;  %v18508_v41 = vld [vmem:[#allocation13_spill] sm:$0xff] }
  0x73   : > { %v1030_v25 = vor.u32 %v1029_v46, %v1026_v42  ;;  %v1042_v60 = vshrl.u32 %v14804_v37, 16  ;;  %v1045_v62 = vshll.u32 %v14804_v37, 16  ;;  %v11151_v11 = vcombine.low %v14680_v2, %v14683_v3  ;;  %v18511_v42 = vld [vmem:[#allocation18_spill] sm:$0xff]  ;;  %v18512_v46 = vld [vmem:[#allocation17_spill] sm:$0xff] }
  0x74   : > { %v14926_v47 = vsel %vm843_vm1, %v1012_v45, %v1021_v35  ;;  %v1035_v5 = vrot.slane %v1033_v49, 3  ;;  %v1038_v30 = vrot.slane %v1036_v57, 4  ;;  %v11152_v15 = vcombine.low %v14694_v6, %v14698_v7  ;;  %v18515_v49 = vld [vmem:[#allocation22_spill] sm:$0xff]  ;;  %v18516_v57 = vld [vmem:[#allocation21_spill] sm:$0xff] }
  0x75   : > { %v14929_v44 = vsel %vm843_vm1, %v1021_v35, %v1030_v25  ;;  %v1044_v33 = vrot.slane %v1042_v60, 3  ;;  %v1047_v34 = vrot.slane %v1045_v62, 4  ;;  %v11214_v0 = vcombine.low %v357_v63, %v357_v63  ;;  %v18514_v35 = vld [vmem:[#allocation19_spill] sm:$0xff] }
  0x76   : > { %v1039_v59 = vor.u32 %v1038_v30, %v1035_v5  ;;  %v1051_v37 = vshrl.u32 %v14808_v39, 16  ;;  %v1054_v61 = vshll.u32 %v14808_v39, 16  ;;  %v11153_v17 = vcombine.low %v14705_v9, %v14708_v10  ;;  %v18509_v10 = vld [vmem:[#allocation16_spill] sm:$0xff]  ;;  %v18517_v62 = vld [vmem:[#allocation23_spill] sm:$0xff]  ;;  %v18518_v30 = vld [vmem:[#allocation9_spill] sm:$0xff] }
  0x77   : > { %12526 = vmatmul.mubr.msk.bf16.gmra.mrb[20].mxu0 %vm291_vm0, %v11149_v55  ;;  %v1048_v53 = vor.u32 %v1047_v34, %v1044_v33  ;;  %v1060_v2 = vshrl.u32 %v11214_v0, 16  ;;  %v1063_v3 = vshll.u32 %v11214_v0, 16  ;;  %v11154_v14 = vcombine.low %v14715_v12, %v14718_v13  ;;  %v18510_v12 = vld [vmem:[#allocation15_spill] sm:$0xff]  ;;  %v14001_v33 = vld [vmem:[%s18422_s2 + $0x48] sm:$0xff]  }
  0x78   : > { %12529 = vmatprep.mubr.msk.bf16.mxu0 %vm291_vm0, %v11150_v29  ;;  %v14943_v40 = vsel %vm843_vm1, %v1030_v25, %v1039_v59  ;;  %v1053_v21 = vrot.slane %v1051_v37, 3  ;;  %v1056_v6 = vrot.slane %v1054_v61, 4  ;;  %v11155_v45 = vcombine.low %v18506_v52, %v18505_v51  ;;  %v18513_v29 = vld [vmem:[#allocation20_spill] sm:$0xff]  ;;  %v18519_v34 = vld [vmem:[#allocation10_spill] sm:$0xff] }
  0x79   : > { %v14946_v58 = vsel %vm843_vm1, %v1039_v59, %v1048_v53  ;;  %v1062_v7 = vrot.slane %v1060_v2, 3  ;;  %v1065_v24 = vrot.slane %v1063_v3, 4  ;;  %v11156_v9 = vcombine.low %v18508_v41, %v18507_v8 }
  0x7a   : > { %v1057_v19 = vor.u32 %v1056_v6, %v1053_v21  ;;  %v11157_v13 = vcombine.low %v18510_v12, %v18509_v10  ;;  %v11158_v55 = vcombine.low %v18512_v46, %v18511_v42  ;;  %v11159_v25 = vcombine.low %v18514_v35, %v18513_v29  ;;  %v14028_v10 = vld [vmem:[%s18422_s2 + $0x78] sm:$0xff]   ;;  %v14015_v29 = vld [vmem:[%s14537_s26 + $0x4c] sm:$0xff]   ;;  %v15082_v35 = vld [vmem:[%s18422_s2 + $0x80] sm:$0xff]  }
  0x7b   : > { %v1066_v23 = vor.u32 %v1065_v24, %v1062_v7  ;;  %v11160_v60 = vcombine.low %v18516_v57, %v18515_v49  ;;  %v11161_v5 = vcombine.low %v18517_v62, %v357_v63  ;;  %v14002_v63 = vld [vmem:[%s18422_s2 + $0x50] sm:$0xff]   ;;  %v14014_v7 = vld [vmem:[%s18422_s2 + $0x68] sm:$0xff]  }
  0x7c   : > { %v1058_v4 = vsel %vm843_vm1, %v1048_v53, %v1057_v19 }
  0x7d   : > { %v14958_v39 = vsel %vm843_vm1, %v1057_v19, %v1066_v23 }
  0x7f   : > { %12530 = vmatmul.mubr.msk.bf16.gmra.mrb[24].mxu0 %vm291_vm0, %v11151_v11  ;;  %v14003_v11 = vld [vmem:[%s18422_s2 + $0x58] sm:$0xff]  }
  0x80   : > { %12533 = vmatprep.mubr.msk.bf16.mxu0 %vm291_vm0, %v11152_v15  ;;  %v14009_v15 = vld [vmem:[%s14537_s26 + $0x24] sm:$0xff]  }
  0x81   : > { %v1603_v37 = vshll.u32 %v14009_v15, 16  ;;  %v1607_v21 = vshrl.u32 %v14009_v15, 16 }
  0x83   : > { %v1605_v24 = vrot.slane %v1603_v37, 1 }
  0x87   : > { %12534 = vmatmul.mubr.msk.bf16.gmra.mrb[28].mxu0 %vm291_vm0, %v11153_v17  ;;  %v14011_v17 = vld [vmem:[%s14537_s26 + $0x34] sm:$0xff]  }
  0x88   : > { %12537 = vmatprep.mubr.msk.bf16.mxu0 %vm291_vm0, %v11154_v14  ;;  %v1609_v14 = vor.u32 %v1607_v21, %v1605_v24  ;;  %v1619_v51 = vshll.u32 %v14011_v17, 16  ;;  %v1623_v41 = vshrl.u32 %v14011_v17, 16 }
  0x8a   : > { %v1621_v12 = vrot.slane %v1619_v51, 1  ;;  %v14024_v51 = vld [vmem:[%s14537_s26 + $0x8c] sm:$0xff]  }
  0x8c   : > { %v1625_v46 = vor.u32 %v1623_v41, %v1621_v12 }
  0x8f   : > { %12538 = vmatmul.mubr.msk.bf16.gmra.mrb[32].mxu0 %vm291_vm0, %v11155_v45 }
  0x90   : > { %12541 = vmatprep.mubr.msk.bf16.mxu0 %vm291_vm0, %v11156_v9 }
  0x97   : > { %12542 = vmatmul.mubr.msk.bf16.gmra.mrb[36].mxu0 %vm291_vm0, %v11157_v13  ;;  %v14013_v13 = vld [vmem:[%s14537_s26 + $0x44] sm:$0xff]  }
  0x98   : > { %12545 = vmatprep.mubr.msk.bf16.mxu0 %vm291_vm0, %v11158_v55  ;;  %v1639_v62 = vshrl.u32 %v14013_v13, 16 }
  0x9f   : > { %12546 = vmatmul.mubr.msk.bf16.gmra.mrb[40].mxu0 %vm291_vm0, %v11159_v25  ;;  %v1635_v25 = vshll.u32 %v14013_v13, 16  ;;  %v14025_v13 = vld [vmem:[%s14537_s26 + $0x94] sm:$0xff]  }
  0xa0   : > { %12549 = vmatprep.mubr.msk.bf16.mxu0 %vm291_vm0, %v11160_v60 }
  0xa7   : > { %12550 = vmatmul.mubr.msk.bf16.gmra.mrb[44].mxu0 %vm291_vm0, %v11161_v5  ;;  %v1643_v5 = vshll.u32 %v14015_v29, 16 }
  0xa8   : > { %12561 = vmatprep.mubr.msk.bf16.mxu0 %vm291_vm0, %v18518_v30  ;;  %v1637_v30 = vrot.slane %v1635_v25, 1  ;;  %v1715_v25 = vshll.u32 %v14025_v13, 16 }
  0xaf   : > { %12562 = vmatmul.mubr.msk.bf16.vlgmr.msra.gmra.mrb[0].mxu0 %vm291_vm0, %v18519_v34 }
  0xb0   : > { %12610 = vmatpush3.bf16.msra.mxu0 %v14816_v20  ;;  %12565 = vmatprep.mubr.msk.bf16.mxu0 %vm291_vm0, %v14832_v22  ;;  %v14007_v20 = vld [vmem:[%s18422_s2 + $0x60] sm:$0xff]   ;;  %v15028_v22 = vld [vmem:[%s14537_s26 + $0x18] sm:$0xf] }
  0xb1   : > { %12611 = vmatprep.subr.bf16.mxu0 %v14001_v33 }
  0xb4   : > { %12612 = vmatpush3.bf16.msra.mxu0 %v14001_v33  ;;  %v14016_v33 = vld [vmem:[%s14537_s26 + $0x54] sm:$0xff]  }
  0xb5   : > { %12613 = vmatprep.subr.bf16.mxu0 %v14002_v63 }
  0xb7   : > { %12566 = vmatmul.mubr.msk.bf16.gmra.mrb[4].mxu0 %vm291_vm0, %v14837_v43  ;;  %v15031_v43 = vld [vmem:[%s14537_s26 + $0x1c] sm:$0xf] }
  0xb8   : > { %12569 = vmatprep.mubr.msk.bf16.mxu0 %vm291_vm0, %v14840_v32  ;;  %12614 = vmatpush3.bf16.msra.mxu0 %v14002_v63  ;;  %v1641_v63 = vor.u32 %v1639_v62, %v1637_v30  ;;  %v1719_v62 = vshrl.u32 %v14025_v13, 16  ;;  %v15359_v32 = vld [vmem:[%s14537_s26 + $0xc0] sm:$0xf] }
  0xb9   : > { %12615 = vmatprep.subr.bf16.mxu0 %v14003_v11  ;;  %18523 = vst [vmem:[#allocation13_spill] sm:$0xff] %v15359_v32 }
  0xbc   : > { %12616 = vmatpush3.bf16.msra.mxu0 %v14003_v11  ;;  %v1645_v11 = vrot.slane %v1643_v5, 1 }
  0xbd   : > { %12665 = vmatprep.subr.bf16.mxu0 %v14007_v20 }
  0xbf   : > { %12570 = vmatmul.mubr.msk.bf16.gmra.mrb[8].mxu0 %vm291_vm0, %v14844_v50  ;;  %v14004_v50 = vld [vmem:[%s14537_s26 + $0x4] sm:$0xff]  }
  0xc0   : > { %12573 = vmatprep.mubr.msk.bf16.mxu0 %vm291_vm0, %v14851_v31  ;;  %v14005_v31 = vld [vmem:[%s14537_s26 + $0xc] sm:$0xff]  }
  0xc7   : > { %12574 = vmatmul.mubr.msk.bf16.gmra.mrb[12].mxu0 %vm291_vm0, %v14856_v28  ;;  %v1574_v28 = vshll.u32 %v14004_v50, 16 }
  0xc8   : > { %12577 = vmatprep.mubr.msk.bf16.mxu0 %vm291_vm0, %v14863_v48  ;;  %v1572_v48 = vshrl.u32 %v14004_v50, 16  ;;  %v1651_v50 = vshll.u32 %v14016_v33, 16 }
  0xcf   : > { %12578 = vmatmul.mubr.msk.bf16.gmra.mrb[16].mxu0 %vm291_vm0, %v14871_v1  ;;  %v1576_v1 = vrot.slane %v1574_v28, 1  ;;  %v1647_v28 = vshrl.u32 %v14015_v29, 16  ;;  %v14026_v29 = vld [vmem:[%s14537_s26 + $0x9c] sm:$0xff]  }
  0xd0   : > { %12581 = vmatprep.mubr.msk.bf16.mxu0 %vm291_vm0, %v14878_v27  ;;  %v1579_v27 = vshll.u32 %v14005_v31, 16  ;;  %v1723_v5 = vshll.u32 %v14026_v29, 16 }
  0xd7   : > { %12582 = vmatmul.mubr.msk.bf16.gmra.mrb[20].mxu0 %vm291_vm0, %v14885_v16  ;;  %v14006_v16 = vld [vmem:[%s14537_s26 + $0x14] sm:$0xff]  }
  0xd8   : > { %12585 = vmatprep.mubr.msk.bf16.mxu0 %vm291_vm0, %v14889_v54  ;;  %v1577_v54 = vor.u32 %v1576_v1, %v1572_v48  ;;  %v1646_v48 = vsel %vm1570_vm2, %v1641_v63, %v1645_v11  ;;  %v1655_v1 = vshrl.u32 %v14016_v33, 16  ;;  %v14027_v33 = vld [vmem:[%s14537_s26 + $0xa4] sm:$0xff]  }
  0xdf   : > { %12586 = vmatmul.mubr.msk.bf16.gmra.mrb[24].mxu0 %vm291_vm0, %v14892_v36  ;;  %v1581_v36 = vrot.slane %v1579_v27, 1 }
  0xe0   : > { %12589 = vmatprep.mubr.msk.bf16.mxu0 %vm291_vm0, %v14902_v26  ;;  %v14008_v26 = vld [vmem:[%s14537_s26 + $0x1c] sm:$0xff]  }
  0xe1   : > { %v1599_v2 = vshrl.u32 %v14008_v26, 16 }
  0xe7   : > { %12590 = vmatmul.mubr.msk.bf16.gmra.mrb[28].mxu0 %vm291_vm0, %v14905_v38  ;;  %v1587_v38 = vshll.u32 %v14006_v16, 16 }
  0xe8   : > { %12593 = vmatprep.mubr.msk.bf16.mxu0 %vm291_vm0, %v14916_v18  ;;  %v1583_v18 = vshrl.u32 %v14005_v31, 16 }
  0xe9   : > { %v1589_v59 = vrot.slane %v1587_v38, 1 }
  0xea   : > { %v1585_v0 = vor.u32 %v1583_v18, %v1581_v36  ;;  %v14019_v18 = vld [vmem:[%s14537_s26 + $0x6c] sm:$0xff]  }
  0xec   : > { %v1590_v61 = vsel %vm1570_vm2, %v1585_v0, %v1589_v59  ;;  %v1675_v0 = vshll.u32 %v14019_v18, 16 }
  0xef   : > { %12594 = vmatmul.mubr.msk.bf16.gmra.mrb[32].mxu0 %vm291_vm0, %v14921_v56  ;;  %v1582_v56 = vsel %vm1570_vm2, %v1577_v54, %v1581_v36  ;;  %v14018_v54 = vld [vmem:[%s14537_s26 + $0x64] sm:$0xff]   ;;  %v1649_v36 = vor.u32 %v1647_v28, %v1645_v11  ;;  %v1725_v11 = vrot.slane %v1723_v5, 1  ;;  %v1727_v28 = vshrl.u32 %v14026_v29, 16  ;;  %v15160_v5 = vld [vmem:[%s14537_s26 + $0x2c] sm:$0xf] }
  0xf0   : > { %12597 = vmatprep.mubr.msk.bf16.mxu0 %vm291_vm0, %v14926_v47  ;;  %v1591_v47 = vshrl.u32 %v14006_v16, 16  ;;  %v1653_v16 = vrot.slane %v1651_v50, 1  ;;  %v1671_v15 = vshrl.u32 %v14018_v54, 16  ;;  %v1731_v50 = vshll.u32 %v14027_v33, 16 }
  0xf2   : > { %v1593_v53 = vor.u32 %v1591_v47, %v1589_v59  ;;  %v1654_v47 = vsel %vm1570_vm2, %v1649_v36, %v1653_v16  ;;  %v1729_v36 = vor.u32 %v1727_v28, %v1725_v11 }
  0xf7   : > { %12598 = vmatmul.mubr.msk.bf16.gmra.mrb[36].mxu0 %vm291_vm0, %v14929_v44  ;;  %v1595_v44 = vshll.u32 %v14008_v26, 16  ;;  %v1657_v26 = vor.u32 %v1655_v1, %v1653_v16  ;;  %v1735_v1 = vshrl.u32 %v14027_v33, 16  ;;  %v14030_v16 = vld [vmem:[%s14537_s26 + $0xb4] sm:$0xff]  }
  0xf8   : > { %12601 = vmatprep.mubr.msk.bf16.mxu0 %vm291_vm0, %v14943_v40  ;;  %v15166_v33 = vld [vmem:[%s14537_s26 + $0x34] sm:$0xf] }
  0xf9   : > { %v1597_v40 = vrot.slane %v1595_v44, 1 }
  0xfb   : > { %v1598_v3 = vsel %vm1570_vm2, %v1593_v53, %v1597_v40  ;;  %v1601_v19 = vor.u32 %v1599_v2, %v1597_v40  ;;  %v14020_v40 = vld [vmem:[%s14537_s26 + $0x74] sm:$0xff]   ;;  %v14022_v2 = vld [vmem:[%s14537_s26 + $0x7c] sm:$0xff]  }
  0xfc   : > { %v1691_v17 = vshll.u32 %v14022_v2, 16 }
  0xfd   : > { %v1606_v52 = vsel %vm1570_vm2, %v1601_v19, %v1605_v24  ;;  %v1687_v24 = vshrl.u32 %v14020_v40, 16 }
  0xff   : > { %12602 = vmatmul.mubr.msk.bf16.gmra.mrb[40].mxu0 %vm291_vm0, %v14946_v58  ;;  %v14010_v58 = vld [vmem:[%s14537_s26 + $0x2c] sm:$0xff]  }
 0x100   : > { %12605 = vmatprep.mubr.msk.bf16.mxu0 %vm291_vm0, %v1058_v4  ;;  %v1611_v6 = vshll.u32 %v14010_v58, 16  ;;  %v14012_v4 = vld [vmem:[%s14537_s26 + $0x3c] sm:$0xff]   ;;  %v1615_v45 = vshrl.u32 %v14010_v58, 16 }
 0x101   : > { %v1627_v9 = vshll.u32 %v14012_v4, 16  ;;  %v1631_v57 = vshrl.u32 %v14012_v4, 16 }
 0x102   : > { %v1613_v23 = vrot.slane %v1611_v6, 1  ;;  %v1679_v6 = vshrl.u32 %v14019_v18, 16 }
 0x103   : > { %v1629_v55 = vrot.slane %v1627_v9, 1 }
 0x104   : > { %v1614_v8 = vsel %vm1570_vm2, %v1609_v14, %v1613_v23  ;;  %v1617_v42 = vor.u32 %v1615_v45, %v1613_v23  ;;  %v14023_v14 = vld [vmem:[%s14537_s26 + $0x84] sm:$0xff]  }
 0x105   : > { %v1630_v60 = vsel %vm1570_vm2, %v1625_v46, %v1629_v55  ;;  %v1633_v34 = vor.u32 %v1631_v57, %v1629_v55  ;;  %v1703_v9 = vshrl.u32 %v14023_v14, 16  ;;  %v1711_v57 = vshrl.u32 %v14024_v51, 16 }
 0x106   : > { %v1622_v49 = vsel %vm1570_vm2, %v1617_v42, %v1621_v12 }
 0x107   : > { %12606 = vmatmul.mubr.msk.bf16.gmra.mrb[44].mxu0 %vm291_vm0, %v14958_v39  ;;  %v14021_v39 = vld [vmem:[%s18422_s2 + $0x70] sm:$0xff]   ;;  %v1638_v31 = vsel %vm1570_vm2, %v1633_v34, %v1637_v30  ;;  %v1717_v30 = vrot.slane %v1715_v25, 1 }
 0x108   : > { %12617 = vmatprep.mubr.msk.bf16.mxu0 %vm291_vm0, %v1582_v56  ;;  %v1667_v56 = vshll.u32 %v14018_v54, 16  ;;  %v1733_v54 = vrot.slane %v1731_v50, 1 }
 0x109   : > { %v1721_v63 = vor.u32 %v1719_v62, %v1717_v30 }
 0x10a   : > { %v1669_v53 = vrot.slane %v1667_v56, 1  ;;  %v2136_v56 = vld [vmem:[%s14537_s26 + $0xc] sm:$0x8] }
 0x10c   : > { %v1673_v37 = vor.u32 %v1671_v15, %v1669_v53 }
 0x10f   : > { %12618 = vmatmul.mubr.msk.bf16.vlgmr.msra.gmra.mrb[0].mxu0 %vm291_vm0, %v1590_v61  ;;  %v1677_v61 = vrot.slane %v1675_v0, 1  ;;  %v1734_v0 = vsel %vm1570_vm2, %v1729_v36, %v1733_v54 }
 0x110   : > { %12666 = vmatpush3.bf16.msra.mxu0 %v14007_v20  ;;  %12621 = vmatprep.mubr.msk.bf16.mxu0 %vm291_vm0, %v1598_v3  ;;  %v14017_v20 = vld [vmem:[%s14537_s26 + $0x5c] sm:$0xff]   ;;  %v1683_v3 = vshll.u32 %v14020_v40, 16 }
 0x111   : > { %12667 = vmatprep.subr.bf16.mxu0 %v14014_v7  ;;  %v1659_v27 = vshll.u32 %v14017_v20, 16  ;;  %v1663_v44 = vshrl.u32 %v14017_v20, 16  ;;  %v1681_v23 = vor.u32 %v1679_v6, %v1677_v61  ;;  %v14029_v20 = vld [vmem:[%s14537_s26 + $0xac] sm:$0xff]  }
 0x112   : > { %v1685_v19 = vrot.slane %v1683_v3, 1  ;;  %v1743_v15 = vshrl.u32 %v14029_v20, 16 }
 0x113   : > { %v1661_v38 = vrot.slane %v1659_v27, 1  ;;  %v1739_v27 = vshll.u32 %v14029_v20, 16 }
 0x114   : > { %12668 = vmatpush3.bf16.msra.mxu0 %v14014_v7  ;;  %v1678_v7 = vsel %vm1570_vm2, %v1673_v37, %v1677_v61  ;;  %v1689_v4 = vor.u32 %v1687_v24, %v1685_v19  ;;  %v1686_v45 = vsel %vm1570_vm2, %v1681_v23, %v1685_v19 }
 0x115   : > { %12669 = vmatprep.subr.bf16.mxu0 %v14021_v39  ;;  %v1662_v59 = vsel %vm1570_vm2, %v1657_v26, %v1661_v38  ;;  %v1665_v58 = vor.u32 %v1663_v44, %v1661_v38  ;;  %v14031_v26 = vld [vmem:[%s14537_s26 + $0xbc] sm:$0xff]   ;;  %v1737_v38 = vor.u32 %v1735_v1, %v1733_v54  ;;  %v1741_v18 = vrot.slane %v1739_v27, 1 }
 0x116   : > { %v1747_v44 = vshll.u32 %v14030_v16, 16  ;;  %v1755_v40 = vshll.u32 %v14031_v26, 16 }
 0x117   : > { %12622 = vmatmul.mubr.msk.bf16.gmra.mrb[4].mxu0 %vm291_vm0, %v1606_v52  ;;  %v1670_v21 = vsel %vm1570_vm2, %v1665_v58, %v1669_v53  ;;  %v1699_v52 = vshll.u32 %v14023_v14, 16  ;;  %v1751_v53 = vshrl.u32 %v14030_v16, 16  ;;  %v1742_v37 = vsel %vm1570_vm2, %v1737_v38, %v1741_v18 }
 0x118   : > { %12625 = vmatprep.mubr.msk.bf16.mxu0 %vm291_vm0, %v1614_v8  ;;  %12670 = vmatpush3.bf16.msra.mxu0 %v14021_v39  ;;  %v1693_v39 = vrot.slane %v1691_v17, 1  ;;  %v1695_v8 = vshrl.u32 %v14022_v2, 16  ;;  %v1749_v2 = vrot.slane %v1747_v44, 1  ;;  %v1745_v3 = vor.u32 %v1743_v15, %v1741_v18  ;;  %v15143_v17 = vld [vmem:[%s14537_s26 + $0x20] sm:$0xf] }
 0x119   : > { %12671 = vmatprep.subr.bf16.mxu0 %v14028_v10  ;;  %v1701_v12 = vrot.slane %v1699_v52, 1  ;;  %v1757_v6 = vrot.slane %v1755_v40, 1  ;;  %v1759_v52 = vshrl.u32 %v14031_v26, 16  ;;  %v15180_v18 = vld [vmem:[%s14537_s26 + $0x3c] sm:$0xf] }
 0x11a   : > { %v1694_v41 = vsel %vm1570_vm2, %v1689_v4, %v1693_v39  ;;  %v1697_v42 = vor.u32 %v1695_v8, %v1693_v39  ;;  %v15146_v4 = vld [vmem:[%s14537_s26 + $0x24] sm:$0xf]  ;;  %v15149_v39 = vld [vmem:[%s14537_s26 + $0x28] sm:$0xf] }
 0x11b   : > { %v1705_v46 = vor.u32 %v1703_v9, %v1701_v12  ;;  %v15186_v44 = vld [vmem:[%s14537_s26 + $0x44] sm:$0xf]  ;;  %v15189_v15 = vld [vmem:[%s14537_s26 + $0x48] sm:$0xf] }
 0x11c   : > { %12672 = vmatpush3.bf16.msra.mxu0 %v14028_v10  ;;  %v1707_v10 = vshll.u32 %v14024_v51, 16  ;;  %v1750_v51 = vsel %vm1570_vm2, %v1745_v3, %v1749_v2  ;;  %v11319_v3 = vcombine.low %v15186_v44, %v15189_v15 }
 0x11d   : > { %12721 = vmatprep.subr.bf16.mxu0 %v15082_v35 }
 0x11e   : > { %v1709_v55 = vrot.slane %v1707_v10, 1 }
 0x11f   : > { %12626 = vmatmul.mubr.msk.bf16.gmra.mrb[8].mxu0 %vm291_vm0, %v1622_v49  ;;  %v1702_v49 = vsel %vm1570_vm2, %v1697_v42, %v1701_v12  ;;  %v11315_v42 = vcombine.low %v15146_v4, %v15149_v39 }
 0x120   : > { %12629 = vmatprep.mubr.msk.bf16.mxu0 %vm291_vm0, %v1630_v60  ;;  %v1710_v60 = vsel %vm1570_vm2, %v1705_v46, %v1709_v55  ;;  %v1713_v34 = vor.u32 %v1711_v57, %v1709_v55  ;;  %v1761_v46 = vor.u32 %v1759_v52, %v1757_v6  ;;  %v15207_v52 = vld [vmem:[%s14537_s26 + $0x50] sm:$0xf] }
 0x121   : > { %v2347_v62 = vshll.u32 %v11315_v42, 16 }
 0x127   : > { %12630 = vmatmul.mubr.msk.bf16.gmra.mrb[12].mxu0 %vm291_vm0, %v1638_v31  ;;  %v1718_v31 = vsel %vm1570_vm2, %v1713_v34, %v1717_v30  ;;  %v15163_v30 = vld [vmem:[%s14537_s26 + $0x30] sm:$0xf]  ;;  %v15169_v34 = vld [vmem:[%s14537_s26 + $0x38] sm:$0xf] }
 0x128   : > { %12633 = vmatprep.mubr.msk.bf16.mxu0 %vm291_vm0, %v1646_v48  ;;  %v1726_v48 = vsel %vm1570_vm2, %v1721_v63, %v1725_v11  ;;  %v11316_v50 = vcombine.low %v15160_v5, %v15163_v30  ;;  %v11317_v1 = vcombine.low %v15166_v33, %v15169_v34 }
 0x12a   : > { %v2353_v16 = vshrl.u32 %v11316_v50, 16  ;;  %v2356_v54 = vshll.u32 %v11316_v50, 16  ;;  %v2362_v26 = vshrl.u32 %v11317_v1, 16  ;;  %v2365_v38 = vshll.u32 %v11317_v1, 16  ;;  %v15238_v50 = vld [vmem:[%s18422_s2 + $0xa0] sm:$0xff]  }
 0x12c   : > { %v2358_v40 = vrot.slane %v2356_v54, 4 }
 0x12f   : > { %12634 = vmatmul.mubr.msk.bf16.gmra.mrb[16].mxu0 %vm291_vm0, %v1654_v47  ;;  %v15129_v47 = vld [vmem:[%s14537_s26 + $0x10] sm:$0xf] }
 0x130   : > { %12637 = vmatprep.mubr.msk.bf16.mxu0 %vm291_vm0, %v1662_v59  ;;  %v15132_v59 = vld [vmem:[%s14537_s26 + $0x14] sm:$0xf]  ;;  %v11312_v58 = vcombine.low %v2136_v56, %v15129_v47  ;;  %v15183_v56 = vld [vmem:[%s14537_s26 + $0x40] sm:$0xf] }
 0x131   : > { %v11313_v61 = vcombine.low %v15132_v59, %v15028_v22 }
 0x132   : > { %v2318_v24 = vshrl.u32 %v11312_v58, 16  ;;  %v2321_v19 = vshll.u32 %v11312_v58, 16  ;;  %v11318_v58 = vcombine.low %v15180_v18, %v15183_v56 }
 0x133   : > { %v2326_v14 = vshrl.u32 %v11313_v61, 16  ;;  %v2329_v23 = vshll.u32 %v11313_v61, 16  ;;  %v2364_v61 = vrot.slane %v2362_v26, 3 }
 0x134   : > { %v2320_v9 = vrot.slane %v2318_v24, 3  ;;  %v2323_v10 = vrot.slane %v2321_v19, 4  ;;  %v2374_v24 = vshll.u32 %v11318_v58, 16  ;;  %v15204_v19 = vld [vmem:[%s14537_s26 + $0x4c] sm:$0xf] }
 0x135   : > { %v2328_v12 = vrot.slane %v2326_v14, 3  ;;  %v2331_v13 = vrot.slane %v2329_v23, 4  ;;  %v2380_v23 = vshrl.u32 %v11319_v3, 16 }
 0x137   : > { %12638 = vmatmul.mubr.msk.bf16.gmra.mrb[20].mxu0 %vm291_vm0, %v1670_v21  ;;  %v1753_v21 = vor.u32 %v1751_v53, %v1749_v2  ;;  %v2332_v57 = vor.u32 %v2331_v13, %v2328_v12  ;;  %v2355_v53 = vrot.slane %v2353_v16, 3  ;;  %v2367_v2 = vrot.slane %v2365_v38, 4 }
 0x138   : > { %12641 = vmatprep.mubr.msk.bf16.mxu0 %vm291_vm0, %v1678_v7  ;;  %v14032_v7 = vld [vmem:[%s14537_s26 + $0xc4] ss:$0 sps:$4 sm:$0x11]   ;;  %v11320_v12 = vcombine.low %v15204_v19, %v15207_v52 }
 0x139   : > { %v1763_v8 = vshll.u32 %v14032_v7, 16  ;;  %v2371_v7 = vshrl.u32 %v11318_v58, 16  ;;  %v2368_v14 = vor.u32 %v2367_v2, %v2364_v61  ;;  %v15256_v2 = vld [vmem:[%s14537_s26 + $0x6c] sm:$0xf] }
 0x13b   : > { %v1765_v55 = vrot.slane %v1763_v8, 1  ;;  %v15213_v8 = vld [vmem:[%s14537_s26 + $0x54] sm:$0xf] }
 0x13d   : > { %v1766_v63 = vsel %vm1570_vm2, %v1761_v46, %v1765_v55 }
 0x13f   : > { %12642 = vmatmul.mubr.msk.bf16.gmra.mrb[24].mxu0 %vm291_vm0, %v1686_v45  ;;  %v1758_v45 = vsel %vm1570_vm2, %v1753_v21, %v1757_v6  ;;  %v14044_v21 = vld [vmem:[%s18422_s2 + $0x88] sm:$0xff]   ;;  %v2359_v6 = vor.u32 %v2358_v40, %v2355_v53 }
 0x140   : > { %12645 = vmatprep.mubr.msk.bf16.mxu0 %vm291_vm0, %v1694_v41  ;;  %v11314_v41 = vcombine.low %v15031_v43, %v15143_v17 }
 0x141   : > { %v2369_v13 = vsel %vm843_vm1, %v2359_v6, %v2368_v14 }
 0x142   : > { %v2335_v29 = vshrl.u32 %v11314_v41, 16  ;;  %v2338_v25 = vshll.u32 %v11314_v41, 16 }
 0x144   : > { %v2337_v11 = vrot.slane %v2335_v29, 3  ;;  %v2340_v20 = vrot.slane %v2338_v25, 4  ;;  %v14058_v29 = vld [vmem:[%s18422_s2 + $0x98] sm:$0xff]  }
 0x146   : > { %v2341_v27 = vor.u32 %v2340_v20, %v2337_v11  ;;  %v15233_v20 = vld [vmem:[%s14537_s26 + $0x60] sm:$0xf] }
 0x147   : > { %12646 = vmatmul.mubr.msk.bf16.gmra.mrb[28].mxu0 %vm291_vm0, %v1702_v49  ;;  %v2324_v49 = vor.u32 %v2323_v10, %v2320_v9  ;;  %v2373_v9 = vrot.slane %v2371_v7, 3  ;;  %v2376_v10 = vrot.slane %v2374_v24, 4 }
 0x148   : > { %12649 = vmatprep.mubr.msk.bf16.mxu0 %vm291_vm0, %v1710_v60  ;;  %v2344_v60 = vshrl.u32 %v11315_v42, 16  ;;  %v2382_v42 = vrot.slane %v2380_v23, 3 }
 0x149   : > { %v2377_v25 = vor.u32 %v2376_v10, %v2373_v9 }
 0x14a   : > { %v2346_v28 = vrot.slane %v2344_v60, 3  ;;  %v15230_v60 = vld [vmem:[%s14537_s26 + $0x5c] sm:$0xf] }
 0x14b   : > { %v11322_v16 = vcombine.low %v15230_v60, %v15233_v20 }
 0x14d   : > { %v2407_v53 = vshrl.u32 %v11322_v16, 16  ;;  %v2410_v40 = vshll.u32 %v11322_v16, 16 }
 0x14f   : > { %12650 = vmatmul.mubr.msk.bf16.gmra.mrb[32].mxu0 %vm291_vm0, %v1718_v31  ;;  %v2333_v31 = vsel %vm843_vm1, %v2324_v49, %v2332_v57  ;;  %v2389_v49 = vshrl.u32 %v11320_v12, 16  ;;  %v2409_v24 = vrot.slane %v2407_v53, 3 }
 0x150   : > { %12653 = vmatprep.mubr.msk.bf16.mxu0 %vm291_vm0, %v1726_v48  ;;  %v2349_v48 = vrot.slane %v2347_v62, 4 }
 0x151   : > { %v2391_v1 = vrot.slane %v2389_v49, 3  ;;  %v15282_v49 = vld [vmem:[%s14537_s26 + $0x84] sm:$0xf] }
 0x152   : > { %v2350_v36 = vor.u32 %v2349_v48, %v2346_v28  ;;  %v15244_v28 = vld [vmem:[%s14537_s26 + $0x68] sm:$0xf]  ;;  %v2378_v48 = vsel %vm843_vm1, %v2368_v14, %v2377_v25  ;;  %v2412_v14 = vrot.slane %v2410_v40, 4 }
 0x154   : > { %v2360_v41 = vsel %vm843_vm1, %v2350_v36, %v2359_v6  ;;  %v15265_v6 = vld [vmem:[%s14537_s26 + $0x78] sm:$0xf]  ;;  %v2413_v10 = vor.u32 %v2412_v14, %v2409_v24 }
 0x157   : > { %12654 = vmatmul.mubr.msk.bf16.gmra.mrb[36].mxu0 %vm291_vm0, %v1734_v0  ;;  %v2342_v0 = vsel %vm843_vm1, %v2332_v57, %v2341_v27  ;;  %v2392_v57 = vshll.u32 %v11320_v12, 16 }
 0x158   : > { %12657 = vmatprep.mubr.msk.bf16.mxu0 %vm291_vm0, %v1742_v37  ;;  %v2351_v37 = vsel %vm843_vm1, %v2341_v27, %v2350_v36 }
 0x159   : > { %v2394_v27 = vrot.slane %v2392_v57, 4  ;;  %v15285_v57 = vld [vmem:[%s14537_s26 + $0x88] sm:$0xf] }
 0x15f   : > { %12658 = vmatmul.mubr.msk.bf16.gmra.mrb[40].mxu0 %vm291_vm0, %v1750_v51  ;;  %v2383_v51 = vshll.u32 %v11319_v3, 16  ;;  %v15259_v3 = vld [vmem:[%s14537_s26 + $0x70] sm:$0xf] }
 0x160   : > { %12661 = vmatprep.mubr.msk.bf16.mxu0 %vm291_vm0, %v1758_v45  ;;  %v14051_v45 = vld [vmem:[%s18422_s2 + $0x90] sm:$0xff]   ;;  %v11324_v23 = vcombine.low %v15256_v2, %v15259_v3 }
 0x161   : > { %v2385_v46 = vrot.slane %v2383_v51, 4 }
 0x162   : > { %v2425_v12 = vshrl.u32 %v11324_v23, 16 }
 0x163   : > { %v2386_v62 = vor.u32 %v2385_v46, %v2382_v42 }
 0x165   : > { %v2387_v54 = vsel %vm843_vm1, %v2377_v25, %v2386_v62  ;;  %v15279_v25 = vld [vmem:[%s14537_s26 + $0x80] sm:$0xf] }
 0x167   : > { %12662 = vmatmul.mubr.msk.bf16.gmra.mrb[44].mxu0 %vm291_vm0, %v1766_v63 }
 0x168   : > { %12673 = vmatprep.mubr.msk.bf16.mxu0 %vm291_vm0, %v2333_v31  ;;  %v15241_v31 = vld [vmem:[%s14537_s26 + $0x64] sm:$0xf] }
 0x169   : > { %v11323_v38 = vcombine.low %v15241_v31, %v15244_v28 }
 0x16b   : > { %v2419_v61 = vshll.u32 %v11323_v38, 16 }
 0x16f   : > { %12674 = vmatmul.mubr.msk.bf16.vlgmr.msra.gmra.mrb[0].mxu0 %vm291_vm0, %v2342_v0  ;;  %v2395_v0 = vor.u32 %v2394_v27, %v2391_v1 }
 0x170   : > { %12722 = vmatpush3.bf16.msra.mxu0 %v15082_v35  ;;  %12677 = vmatprep.mubr.msk.bf16.mxu0 %vm291_vm0, %v2351_v37  ;;  %v15216_v35 = vld [vmem:[%s14537_s26 + $0x58] sm:$0xf]  ;;  %v2416_v37 = vshrl.u32 %v11323_v38, 16 }
 0x171   : > { %12723 = vmatprep.subr.bf16.mxu0 %v14044_v21  ;;  %v11321_v55 = vcombine.low %v15213_v8, %v15216_v35  ;;  %v2396_v7 = vsel %vm843_vm1, %v2386_v62, %v2395_v0 }
 0x173   : > { %v2398_v63 = vshrl.u32 %v11321_v55, 16  ;;  %v2401_v11 = vshll.u32 %v11321_v55, 16 }
 0x174   : > { %12724 = vmatpush3.bf16.msra.mxu0 %v14044_v21  ;;  %v15262_v21 = vld [vmem:[%s14537_s26 + $0x74] sm:$0xf] }
 0x175   : > { %12725 = vmatprep.subr.bf16.mxu0 %v14051_v45  ;;  %v2400_v36 = vrot.slane %v2398_v63, 3  ;;  %v2403_v26 = vrot.slane %v2401_v11, 4  ;;  %v11325_v9 = vcombine.low %v15262_v21, %v15265_v6  ;;  %v2427_v63 = vrot.slane %v2425_v12, 3 }
 0x177   : > { %12678 = vmatmul.mubr.msk.bf16.gmra.mrb[4].mxu0 %vm291_vm0, %v2360_v41  ;;  %v2404_v58 = vor.u32 %v2403_v26, %v2400_v36  ;;  %v2421_v41 = vrot.slane %v2419_v61, 4  ;;  %v2434_v46 = vshrl.u32 %v11325_v9, 16  ;;  %v2437_v55 = vshll.u32 %v11325_v9, 16  ;;  %v15302_v61 = vld [vmem:[%s14537_s26 + $0x94] sm:$0xf] }
 0x178   : > { %12681 = vmatprep.mubr.msk.bf16.mxu0 %vm291_vm0, %v2369_v13  ;;  %12726 = vmatpush3.bf16.msra.mxu0 %v14051_v45  ;;  %v2418_v45 = vrot.slane %v2416_v37, 3  ;;  %v2428_v13 = vshll.u32 %v11324_v23, 16  ;;  %v15299_v37 = vld [vmem:[%s14537_s26 + $0x90] sm:$0xf] }
 0x179   : > { %12727 = vmatprep.subr.bf16.mxu0 %v14058_v29  ;;  %v2405_v51 = vsel %vm843_vm1, %v2395_v0, %v2404_v58  ;;  %v2414_v62 = vsel %vm843_vm1, %v2404_v58, %v2413_v10  ;;  %v2436_v27 = vrot.slane %v2434_v46, 3  ;;  %v2439_v16 = vrot.slane %v2437_v55, 4  ;;  %v15296_v58 = vld [vmem:[%s14537_s26 + $0x8c] sm:$0xf] }
 0x17a   : > { %v2422_v42 = vor.u32 %v2421_v41, %v2418_v45  ;;  %v2430_v11 = vrot.slane %v2428_v13, 4 }
 0x17b   : > { %v2440_v0 = vor.u32 %v2439_v16, %v2436_v27 }
 0x17c   : > { %12728 = vmatpush3.bf16.msra.mxu0 %v14058_v29  ;;  %v15276_v29 = vld [vmem:[%s14537_s26 + $0x7c] sm:$0xf]  ;;  %v2423_v1 = vsel %vm843_vm1, %v2413_v10, %v2422_v42  ;;  %v2431_v36 = vor.u32 %v2430_v11, %v2427_v63  ;;  %v15319_v11 = vld [vmem:[%s14537_s26 + $0xa0] sm:$0xf] }
 0x17d   : > { %12777 = vmatprep.subr.bf16.mxu0 %v15238_v50  ;;  %v15316_v63 = vld [vmem:[%s14537_s26 + $0x9c] sm:$0xf] }
 0x17e   : > { %v2432_v24 = vsel %vm843_vm1, %v2422_v42, %v2431_v36  ;;  %v2441_v45 = vsel %vm843_vm1, %v2431_v36, %v2440_v0  ;;  %v11330_v36 = vcombine.low %v15316_v63, %v15319_v11 }
 0x17f   : > { %12682 = vmatmul.mubr.msk.bf16.gmra.mrb[8].mxu0 %vm291_vm0, %v2378_v48  ;;  %v11326_v48 = vcombine.low %v15276_v29, %v15279_v25 }
 0x180   : > { %12685 = vmatprep.mubr.msk.bf16.mxu0 %vm291_vm0, %v2387_v54  ;;  %v11327_v54 = vcombine.low %v15282_v49, %v15285_v57 }
 0x181   : > { %v2443_v26 = vshrl.u32 %v11326_v48, 16  ;;  %v2446_v38 = vshll.u32 %v11326_v48, 16  ;;  %v15322_v48 = vld [vmem:[%s14537_s26 + $0xa4] sm:$0xf] }
 0x182   : > { %v2452_v53 = vshrl.u32 %v11327_v54, 16  ;;  %v2455_v40 = vshll.u32 %v11327_v54, 16 }
 0x183   : > { %v2445_v14 = vrot.slane %v2443_v26, 3  ;;  %v2448_v23 = vrot.slane %v2446_v38, 4 }
 0x184   : > { %v2454_v41 = vrot.slane %v2452_v53, 3  ;;  %v2457_v9 = vrot.slane %v2455_v40, 4 }
 0x185   : > { %v2449_v12 = vor.u32 %v2448_v23, %v2445_v14  ;;  %v2482_v14 = vshll.u32 %v11330_v36, 16 }
 0x186   : > { %v2458_v46 = vor.u32 %v2457_v9, %v2454_v41  ;;  %v15336_v41 = vld [vmem:[%s14537_s26 + $0xac] sm:$0xf]  ;;  %v15339_v9 = vld [vmem:[%s14537_s26 + $0xb0] sm:$0xf] }
 0x187   : > { %12686 = vmatmul.mubr.msk.bf16.gmra.mrb[12].mxu0 %vm291_vm0, %v2396_v7  ;;  %v15305_v7 = vld [vmem:[%s14537_s26 + $0x98] sm:$0xf]  ;;  %v2450_v27 = vsel %vm843_vm1, %v2440_v0, %v2449_v12  ;;  %18520 = vst [vmem:[#allocation12_spill] sm:$0xff] %v15339_v9 }
 0x188   : > { %12689 = vmatprep.mubr.msk.bf16.mxu0 %vm291_vm0, %v2405_v51  ;;  %v11328_v51 = vcombine.low %v15296_v58, %v15299_v37  ;;  %v11329_v10 = vcombine.low %v15302_v61, %v15305_v7  ;;  %v2459_v26 = vsel %vm843_vm1, %v2449_v12, %v2458_v46  ;;  %v15345_v12 = vld [vmem:[%s14537_s26 + $0xb8] sm:$0xf] }
 0x189   : > { %18522 = vst [vmem:[#allocation14_spill] sm:$0xff] %v15345_v12 }
 0x18a   : > { %v2461_v13 = vshrl.u32 %v11328_v51, 16  ;;  %v2464_v42 = vshll.u32 %v11328_v51, 16  ;;  %v2470_v55 = vshrl.u32 %v11329_v10, 16 }
 0x18c   : > { %v2463_v16 = vrot.slane %v2461_v13, 3  ;;  %v2466_v54 = vrot.slane %v2464_v42, 4  ;;  %v2472_v38 = vrot.slane %v2470_v55, 3  ;;  %v2484_v55 = vrot.slane %v2482_v14, 4  ;;  %v15356_v14 = vld [vmem:[%s14537_s26 + $0xbc] sm:$0xf] }
 0x18e   : > { %v2467_v0 = vor.u32 %v2466_v54, %v2463_v16 }
 0x18f   : > { %12690 = vmatmul.mubr.msk.bf16.gmra.mrb[16].mxu0 %vm291_vm0, %v2414_v62  ;;  %v2473_v62 = vshll.u32 %v11329_v10, 16  ;;  %v15342_v10 = vld [vmem:[%s14537_s26 + $0xb4] sm:$0xf] }
 0x190   : > { %12693 = vmatprep.mubr.msk.bf16.mxu0 %vm291_vm0, %v2423_v1  ;;  %v15325_v1 = vld [vmem:[%s14537_s26 + $0xa8] sm:$0xf]  ;;  %18521 = vst [vmem:[#allocation11_spill] sm:$0xff] %v15342_v10  ;;  %v2468_v13 = vsel %vm843_vm1, %v2458_v46, %v2467_v0 }
 0x191   : > { %v2475_v53 = vrot.slane %v2473_v62, 4  ;;  %v11331_v40 = vcombine.low %v15322_v48, %v15325_v1  ;;  %v11332_v62 = vcombine.low %v15336_v41, %v15339_v9 }
 0x193   : > { %v2476_v23 = vor.u32 %v2475_v53, %v2472_v38  ;;  %v2488_v51 = vshrl.u32 %v11331_v40, 16  ;;  %v2500_v38 = vshll.u32 %v11332_v62, 16 }
 0x195   : > { %v2490_v16 = vrot.slane %v2488_v51, 3  ;;  %v15365_v51 = vld [vmem:[%s14537_s26 + $0xc8] sm:$0xf] }
 0x196   : > { %18525 = vst [vmem:[#allocation15_spill] sm:$0xff] %v15365_v51 }
 0x197   : > { %12694 = vmatmul.mubr.msk.bf16.gmra.mrb[20].mxu0 %vm291_vm0, %v2432_v24  ;;  %v2479_v24 = vshrl.u32 %v11330_v36, 16  ;;  %v11333_v36 = vcombine.low %v15342_v10, %v15345_v12  ;;  %v2502_v12 = vrot.slane %v2500_v38, 4  ;;  %v15376_v10 = vld [vmem:[%s14537_s26 + $0xcc] sm:$0xf] }
 0x198   : > { %12697 = vmatprep.mubr.msk.bf16.mxu0 %vm291_vm0, %v2441_v45  ;;  %v2491_v45 = vshll.u32 %v11331_v40, 16 }
 0x199   : > { %v2481_v42 = vrot.slane %v2479_v24, 3  ;;  %v2506_v40 = vshrl.u32 %v11333_v36, 16  ;;  %v2509_v24 = vshll.u32 %v11333_v36, 16 }
 0x19a   : > { %v2493_v54 = vrot.slane %v2491_v45, 4 }
 0x19b   : > { %v2485_v46 = vor.u32 %v2484_v55, %v2481_v42  ;;  %v11334_v42 = vcombine.low %v15356_v14, %v15359_v32 }
 0x19c   : > { %v2494_v53 = vor.u32 %v2493_v54, %v2490_v16 }
 0x19d   : > { %v2486_v45 = vsel %vm843_vm1, %v2476_v23, %v2485_v46  ;;  %v2515_v36 = vshrl.u32 %v11334_v42, 16 }
 0x19e   : > { %v2495_v55 = vsel %vm843_vm1, %v2485_v46, %v2494_v53 }
 0x19f   : > { %12698 = vmatmul.mubr.msk.bf16.gmra.mrb[24].mxu0 %vm291_vm0, %v2450_v27  ;;  %v2477_v27 = vsel %vm843_vm1, %v2467_v0, %v2476_v23  ;;  %v15362_v0 = vld [vmem:[%s14537_s26 + $0xc4] sm:$0xf]  ;;  %v2518_v23 = vshll.u32 %v11334_v42, 16  ;;  %v2517_v46 = vrot.slane %v2515_v36, 3 }
 0x1a0   : > { %12701 = vmatprep.mubr.msk.bf16.mxu0 %vm291_vm0, %v2459_v26  ;;  %v2497_v26 = vshrl.u32 %v11332_v62, 16  ;;  %18524 = vst [vmem:[#allocation16_spill] sm:$0xff] %v15362_v0  ;;  %v2508_v62 = vrot.slane %v2506_v40, 3  ;;  %v11335_v16 = vcombine.low %v15362_v0, %v15365_v51 }
 0x1a1   : > { %v2520_v40 = vrot.slane %v2518_v23, 4  ;;  %v18532_v23 = vld [vmem:[#allocation15_spill] sm:$0xff] }
 0x1a2   : > { %v2527_v38 = vshll.u32 %v11335_v16, 16 }
 0x1a4   : > { %v2529_v0 = vrot.slane %v2527_v38, 4 }
 0x1a7   : > { %12702 = vmatmul.mubr.msk.bf16.gmra.mrb[28].mxu0 %vm291_vm0, %v2468_v13  ;;  %v2499_v13 = vrot.slane %v2497_v26, 3  ;;  %v2524_v26 = vshrl.u32 %v11335_v16, 16 }
 0x1a8   : > { %12705 = vmatprep.mubr.msk.bf16.mxu0 %vm291_vm0, %v2477_v27  ;;  %v2511_v27 = vrot.slane %v2509_v24, 4  ;;  %v11336_v24 = vcombine.low %v15376_v10, %v15376_v10 }
 0x1a9   : > { %v2503_v54 = vor.u32 %v2502_v12, %v2499_v13  ;;  %v2521_v12 = vor.u32 %v2520_v40, %v2517_v46 }
 0x1aa   : > { %v2512_v9 = vor.u32 %v2511_v27, %v2508_v62  ;;  %v2533_v13 = vshrl.u32 %v11336_v24, 16  ;;  %v2536_v42 = vshll.u32 %v11336_v24, 16 }
 0x1ab   : > { %v2504_v32 = vsel %vm843_vm1, %v2494_v53, %v2503_v54 }
 0x1ac   : > { %v2513_v51 = vsel %vm843_vm1, %v2503_v54, %v2512_v9  ;;  %v2522_v62 = vsel %vm843_vm1, %v2512_v9, %v2521_v12  ;;  %v2535_v53 = vrot.slane %v2533_v13, 3  ;;  %v2538_v27 = vrot.slane %v2536_v42, 4 }
 0x1ad   : > { %v11375_v9 = vcombine.low %v15143_v17, %v15146_v4  ;;  %v11377_v17 = vcombine.low %v15163_v30, %v15166_v33  ;;  %v11378_v4 = vcombine.low %v15169_v34, %v15180_v18  ;;  %v11381_v30 = vcombine.low %v15207_v52, %v15213_v8  ;;  %v15458_v8 = vld [vmem:[%s14537_s26 + $0x24] sm:$0xf] }
 0x1ae   : > { %v2539_v54 = vor.u32 %v2538_v27, %v2535_v53  ;;  %v11382_v33 = vcombine.low %v15216_v35, %v15230_v60  ;;  %v11383_v34 = vcombine.low %v15233_v20, %v15241_v31  ;;  %v11384_v18 = vcombine.low %v15244_v28, %v15256_v2  ;;  %v15461_v35 = vld [vmem:[%s14537_s26 + $0x28] sm:$0xf]  ;;  %v18527_v28 = vld [vmem:[#allocation11_spill] sm:$0xff]  ;;  %v18528_v2 = vld [vmem:[#allocation12_spill] sm:$0xff] }
 0x1af   : > { %12706 = vmatmul.mubr.msk.bf16.gmra.mrb[32].mxu0 %vm291_vm0, %v2486_v45  ;;  %v2526_v45 = vrot.slane %v2524_v26, 3  ;;  %v11389_v52 = vcombine.low %v15299_v37, %v15302_v61  ;;  %v11390_v20 = vcombine.low %v15305_v7, %v15316_v63  ;;  %v11392_v31 = vcombine.low %v15325_v1, %v15336_v41  ;;  %v14094_v41 = vld [vmem:[%s14537_s26 + $0x28] sm:$0xff]  }
 0x1b0   : > { %12709 = vmatprep.mubr.msk.bf16.mxu0 %vm291_vm0, %v2495_v55  ;;  %v11396_v26 = vcombine.low %v18532_v23, %v15376_v10  ;;  %v3517_v24 = vshll.u32 %v14094_v41, 16  ;;  %v3521_v27 = vshrl.u32 %v14094_v41, 16  ;;  %v14104_v41 = vld [vmem:[%s14537_s26 + $0x70] sm:$0xff]   ;;  %v15797_v60 = vld [vmem:[%s14537_s26 + $0xcc] sm:$0xf] }
 0x1b1   : > { %v2530_v55 = vor.u32 %v2529_v0, %v2526_v45  ;;  %v14071_v0 = vld [vmem:[%s18422_s2 + $0xa8] sm:$0xff]   ;;  %18536 = vst [vmem:[#allocation19_spill] sm:$0xff] %v15797_v60 }
 0x1b3   : > { %v2531_v16 = vsel %vm843_vm1, %v2521_v12, %v2530_v55  ;;  %v2540_v36 = vsel %vm843_vm1, %v2530_v55, %v2539_v54  ;;  %v14095_v12 = vld [vmem:[%s14537_s26 + $0x30] sm:$0xff]   ;;  %v3519_v55 = vrot.slane %v3517_v24, 1 }
 0x1b4   : > { %v3525_v53 = vshll.u32 %v14095_v12, 16  ;;  %v3529_v54 = vshrl.u32 %v14095_v12, 16  ;;  %v3593_v12 = vshrl.u32 %v14104_v41, 16 }
 0x1b7   : > { %12710 = vmatmul.mubr.msk.bf16.gmra.mrb[36].mxu0 %vm291_vm0, %v2504_v32  ;;  %v11373_v32 = vcombine.low %v15129_v47, %v15132_v59  ;;  %v14078_v47 = vld [vmem:[%s18422_s2 + $0xb0] sm:$0xff]   ;;  %v11376_v59 = vcombine.low %v15149_v39, %v15160_v5  ;;  %v11379_v39 = vcombine.low %v15183_v56, %v15186_v44  ;;  %v11380_v5 = vcombine.low %v15189_v15, %v15204_v19 }
 0x1b8   : > { %12713 = vmatprep.mubr.msk.bf16.mxu0 %vm291_vm0, %v2513_v51  ;;  %v18526_v51 = vcombine.low %v15028_v22, %v15031_v43  ;;  %v14085_v22 = vld [vmem:[%s18422_s2 + $0xb8] sm:$0xff]   ;;  %v15419_v43 = vld [vmem:[%s18422_s2 + $0xc0] sm:$0xff]   ;;  %v11385_v56 = vcombine.low %v15259_v3, %v15262_v21  ;;  %v11386_v44 = vcombine.low %v15265_v6, %v15276_v29  ;;  %v11387_v15 = vcombine.low %v15279_v25, %v15282_v49  ;;  %v14090_v21 = vld [vmem:[%s14537_s26 + $0x10] sm:$0xff]  }
 0x1b9   : > { %v11388_v19 = vcombine.low %v15285_v57, %v15296_v58  ;;  %v11393_v3 = vcombine.low %v18528_v2, %v18527_v28  ;;  %v14091_v6 = vld [vmem:[%s14537_s26 + $0x18] sm:$0xff]   ;;  %v3496_v29 = vshll.u32 %v14090_v21, 16  ;;  %v18529_v25 = vld [vmem:[#allocation14_spill] sm:$0xff]  ;;  %v18531_v58 = vld [vmem:[#allocation13_spill] sm:$0xff]  ;;  %v3494_v61 = vshrl.u32 %v14090_v21, 16 }
 0x1ba   : > { %v11394_v49 = vcombine.low %v18529_v25, %v15356_v14  ;;  %v18530_v57 = vld [vmem:[#allocation16_spill] sm:$0xff]  ;;  %v3501_v63 = vshll.u32 %v14091_v6, 16  ;;  %v3505_v38 = vshrl.u32 %v14091_v6, 16 }
 0x1bb   : > { %v11395_v37 = vcombine.low %v18531_v58, %v18530_v57  ;;  %v3498_v7 = vrot.slane %v3496_v29, 1  ;;  %v14102_v29 = vld [vmem:[%s14537_s26 + $0x60] sm:$0xff]   ;;  %v14103_v58 = vld [vmem:[%s14537_s26 + $0x68] sm:$0xff]  }
 0x1bc   : > { %v3503_v1 = vrot.slane %v3501_v63, 1  ;;  %v3585_v24 = vshrl.u32 %v14103_v58, 16 }
 0x1be   : > { %v3507_v13 = vor.u32 %v3505_v38, %v3503_v1  ;;  %v14105_v38 = vld [vmem:[%s14537_s26 + $0x78] sm:$0xff]  }
 0x1bf   : > { %12714 = vmatmul.mubr.msk.bf16.gmra.mrb[40].mxu0 %vm291_vm0, %v2522_v62  ;;  %v14096_v62 = vld [vmem:[%s14537_s26 + $0x38] sm:$0xff]  }
 0x1c0   : > { %12717 = vmatprep.mubr.msk.bf16.mxu0 %vm291_vm0, %v2531_v16 }
 0x1c7   : > { %12718 = vmatmul.mubr.msk.bf16.gmra.mrb[44].mxu0 %vm291_vm0, %v2540_v36  ;;  %v3533_v36 = vshll.u32 %v14096_v62, 16 }
 0x1c8   : > { %12729 = vmatprep.mubr.msk.bf16.mxu0 %vm291_vm0, %v11373_v32  ;;  %v14100_v32 = vld [vmem:[%s18422_s2 + $0xc8] sm:$0xff]  }
 0x1cf   : > { %12730 = vmatmul.mubr.msk.bf16.vlgmr.msra.gmra.mrb[0].mxu0 %vm291_vm0, %v18526_v51  ;;  %v3523_v51 = vor.u32 %v3521_v27, %v3519_v55  ;;  %v14108_v27 = vld [vmem:[%s14537_s26 + $0x88] sm:$0xff]  }
 0x1d0   : > { %12778 = vmatpush3.bf16.msra.mxu0 %v15238_v50  ;;  %12733 = vmatprep.mubr.msk.bf16.mxu0 %vm291_vm0, %v11375_v9  ;;  %v11391_v50 = vcombine.low %v15319_v11, %v15322_v48  ;;  %v14092_v11 = vld [vmem:[%s14537_s26 + $0x20] sm:$0xff]   ;;  %v3499_v48 = vor.u32 %v3498_v7, %v3494_v61  ;;  %v3527_v9 = vrot.slane %v3525_v53, 1 }
 0x1d1   : > { %12779 = vmatprep.subr.bf16.mxu0 %v14071_v0  ;;  %v3509_v14 = vshll.u32 %v14092_v11, 16  ;;  %v3513_v40 = vshrl.u32 %v14092_v11, 16  ;;  %v3577_v11 = vshrl.u32 %v14102_v29, 16 }
 0x1d2   : > { %v3504_v46 = vsel %vm1570_vm2, %v3499_v48, %v3503_v1  ;;  %v3581_v48 = vshll.u32 %v14103_v58, 16  ;;  %v14115_v58 = vld [vmem:[%s14537_s26 + $0xb8] sm:$0xff]  }
 0x1d3   : > { %v3511_v45 = vrot.slane %v3509_v14, 1 }
 0x1d4   : > { %12780 = vmatpush3.bf16.msra.mxu0 %v14071_v0  ;;  %v14097_v0 = vld [vmem:[%s14537_s26 + $0x40] sm:$0xff]   ;;  %v3583_v14 = vrot.slane %v3581_v48, 1  ;;  %v3661_v48 = vshll.u32 %v14115_v58, 16 }
 0x1d5   : > { %12781 = vmatprep.subr.bf16.mxu0 %v14078_v47  ;;  %v3515_v42 = vor.u32 %v3513_v40, %v3511_v45  ;;  %v3512_v10 = vsel %vm1570_vm2, %v3507_v13, %v3511_v45  ;;  %v3597_v13 = vshll.u32 %v14105_v38, 16 }
 0x1d7   : > { %12734 = vmatmul.mubr.msk.bf16.gmra.mrb[4].mxu0 %vm291_vm0, %v11376_v59  ;;  %v3520_v16 = vsel %vm1570_vm2, %v3515_v42, %v3519_v55  ;;  %v3535_v59 = vrot.slane %v3533_v36, 1  ;;  %v14106_v55 = vld [vmem:[%s14537_s26 + $0x80] sm:$0xff]   ;;  %v3601_v36 = vshrl.u32 %v14105_v38, 16  ;;  %v3663_v38 = vrot.slane %v3661_v48, 1 }
 0x1d8   : > { %12737 = vmatprep.mubr.msk.bf16.mxu0 %vm291_vm0, %v11377_v17  ;;  %12782 = vmatpush3.bf16.msra.mxu0 %v14078_v47  ;;  %v3531_v47 = vor.u32 %v3529_v54, %v3527_v9  ;;  %v14098_v17 = vld [vmem:[%s14537_s26 + $0x48] sm:$0xff]  }
 0x1d9   : > { %12783 = vmatprep.subr.bf16.mxu0 %v14085_v22  ;;  %v3553_v28 = vshrl.u32 %v14098_v17, 16 }
 0x1dc   : > { %12784 = vmatpush3.bf16.msra.mxu0 %v14085_v22  ;;  %v14107_v22 = vld [vmem:[%s18422_s2 + $0xd0] sm:$0xff]  }
 0x1dd   : > { %12833 = vmatprep.subr.bf16.mxu0 %v15419_v43 }
 0x1df   : > { %12738 = vmatmul.mubr.msk.bf16.gmra.mrb[8].mxu0 %vm291_vm0, %v11378_v4  ;;  %v3541_v4 = vshll.u32 %v14097_v0, 16 }
 0x1e0   : > { %12741 = vmatprep.mubr.msk.bf16.mxu0 %vm291_vm0, %v11379_v39  ;;  %v3528_v39 = vsel %vm1570_vm2, %v3523_v51, %v3527_v9  ;;  %v3609_v9 = vshrl.u32 %v14106_v55, 16 }
 0x1e7   : > { %12742 = vmatmul.mubr.msk.bf16.gmra.mrb[12].mxu0 %vm291_vm0, %v11380_v5  ;;  %v3537_v5 = vshrl.u32 %v14096_v62, 16  ;;  %v3587_v62 = vor.u32 %v3585_v24, %v3583_v14 }
 0x1e8   : > { %12745 = vmatprep.mubr.msk.bf16.mxu0 %vm291_vm0, %v11381_v30  ;;  %v3545_v30 = vshrl.u32 %v14097_v0, 16  ;;  %v3613_v0 = vshll.u32 %v14108_v27, 16 }
 0x1ef   : > { %12746 = vmatmul.mubr.msk.bf16.gmra.mrb[16].mxu0 %vm291_vm0, %v11382_v33  ;;  %v3549_v33 = vshll.u32 %v14098_v17, 16 }
 0x1f0   : > { %12749 = vmatprep.mubr.msk.bf16.mxu0 %vm291_vm0, %v11383_v34  ;;  %v14114_v34 = vld [vmem:[%s18422_s2 + $0xd8] sm:$0xff]  }
 0x1f7   : > { %12750 = vmatmul.mubr.msk.bf16.gmra.mrb[20].mxu0 %vm291_vm0, %v11384_v18  ;;  %v3543_v18 = vrot.slane %v3541_v4, 1  ;;  %v14110_v4 = vld [vmem:[%s14537_s26 + $0x98] sm:$0xff]  }
 0x1f8   : > { %12753 = vmatprep.mubr.msk.bf16.mxu0 %vm291_vm0, %v11385_v56  ;;  %v14099_v56 = vld [vmem:[%s14537_s26 + $0x50] sm:$0xff]  }
 0x1ff   : > { %12754 = vmatmul.mubr.msk.bf16.gmra.mrb[24].mxu0 %vm291_vm0, %v11386_v44  ;;  %v3539_v44 = vor.u32 %v3537_v5, %v3535_v59 }
 0x200   : > { %12757 = vmatprep.mubr.msk.bf16.mxu0 %vm291_vm0, %v11387_v15  ;;  %v3547_v15 = vor.u32 %v3545_v30, %v3543_v18 }
 0x207   : > { %12758 = vmatmul.mubr.msk.bf16.gmra.mrb[28].mxu0 %vm291_vm0, %v11388_v19  ;;  %v3551_v19 = vrot.slane %v3549_v33, 1 }
 0x208   : > { %12761 = vmatprep.mubr.msk.bf16.mxu0 %vm291_vm0, %v11389_v52  ;;  %v14101_v52 = vld [vmem:[%s14537_s26 + $0x58] sm:$0xff]  }
 0x209   : > { %v3552_v2 = vsel %vm1570_vm2, %v3547_v15, %v3551_v19  ;;  %v3565_v21 = vshll.u32 %v14101_v52, 16  ;;  %v3555_v25 = vor.u32 %v3553_v28, %v3551_v19  ;;  %v3569_v7 = vshrl.u32 %v14101_v52, 16  ;;  %v14112_v52 = vld [vmem:[%s14537_s26 + $0xa8] sm:$0xff]  }
 0x20a   : > { %v3633_v28 = vshrl.u32 %v14110_v4, 16 }
 0x20b   : > { %v3567_v57 = vrot.slane %v3565_v21, 1  ;;  %v3645_v21 = vshll.u32 %v14112_v52, 16 }
 0x20d   : > { %v3571_v23 = vor.u32 %v3569_v7, %v3567_v57  ;;  %v3649_v7 = vshrl.u32 %v14112_v52, 16 }
 0x20f   : > { %12762 = vmatmul.mubr.msk.bf16.gmra.mrb[32].mxu0 %vm291_vm0, %v11390_v20  ;;  %v15520_v20 = vld [vmem:[%s18422_s2 + $0xe0] sm:$0xff]  }
 0x210   : > { %12765 = vmatprep.mubr.msk.bf16.mxu0 %vm291_vm0, %v11391_v50  ;;  %v3557_v50 = vshll.u32 %v14099_v56, 16 }
 0x212   : > { %v3559_v6 = vrot.slane %v3557_v50, 1 }
 0x214   : > { %v3560_v61 = vsel %vm1570_vm2, %v3555_v25, %v3559_v6 }
 0x217   : > { %12766 = vmatmul.mubr.msk.bf16.gmra.mrb[36].mxu0 %vm291_vm0, %v11392_v31  ;;  %v3544_v31 = vsel %vm1570_vm2, %v3539_v44, %v3543_v18 }
 0x218   : > { %12769 = vmatprep.mubr.msk.bf16.mxu0 %vm291_vm0, %v11393_v3  ;;  %v3561_v3 = vshrl.u32 %v14099_v56, 16  ;;  %v14111_v56 = vld [vmem:[%s14537_s26 + $0xa0] sm:$0xff]  }
 0x219   : > { %v3637_v50 = vshll.u32 %v14111_v56, 16 }
 0x21f   : > { %12770 = vmatmul.mubr.msk.bf16.gmra.mrb[40].mxu0 %vm291_vm0, %v11394_v49  ;;  %v3563_v49 = vor.u32 %v3561_v3, %v3559_v6  ;;  %v3641_v3 = vshrl.u32 %v14111_v56, 16  ;;  %v3639_v6 = vrot.slane %v3637_v50, 1 }
 0x220   : > { %12773 = vmatprep.mubr.msk.bf16.mxu0 %vm291_vm0, %v11395_v37  ;;  %v3573_v37 = vshll.u32 %v14102_v29, 16  ;;  %v14113_v29 = vld [vmem:[%s14537_s26 + $0xb0] sm:$0xff]  }
 0x221   : > { %v3568_v63 = vsel %vm1570_vm2, %v3563_v49, %v3567_v57  ;;  %v3643_v49 = vor.u32 %v3641_v3, %v3639_v6  ;;  %v3647_v57 = vrot.slane %v3645_v21, 1  ;;  %v15598_v21 = vld [vmem:[%s14537_s26 + $0x38] sm:$0xf] }
 0x222   : > { %v3575_v1 = vrot.slane %v3573_v37, 1  ;;  %v3653_v37 = vshll.u32 %v14113_v29, 16 }
 0x224   : > { %v3576_v40 = vsel %vm1570_vm2, %v3571_v23, %v3575_v1  ;;  %v3651_v23 = vor.u32 %v3649_v7, %v3647_v57 }
 0x227   : > { %12774 = vmatmul.mubr.msk.bf16.gmra.mrb[44].mxu0 %vm291_vm0, %v11396_v26  ;;  %v3579_v26 = vor.u32 %v3577_v11, %v3575_v1  ;;  %v3657_v11 = vshrl.u32 %v14113_v29, 16  ;;  %v14116_v1 = vld [vmem:[%s14537_s26 + $0xc0] sm:$0xff]  }
 0x228   : > { %12785 = vmatprep.mubr.msk.bf16.mxu0 %vm291_vm0, %v3504_v46  ;;  %v3589_v46 = vshll.u32 %v14104_v41, 16  ;;  %v3655_v41 = vrot.slane %v3653_v37, 1  ;;  %v3669_v24 = vshll.u32 %v14116_v1, 16  ;;  %v15604_v29 = vld [vmem:[%s14537_s26 + $0x40] sm:$0xf] }
 0x229   : > { %v3584_v45 = vsel %vm1570_vm2, %v3579_v26, %v3583_v14  ;;  %v14117_v26 = vld [vmem:[%s14537_s26 + $0xc8] sm:$0xff]  }
 0x22a   : > { %v3591_v42 = vrot.slane %v3589_v46, 1  ;;  %v3659_v14 = vor.u32 %v3657_v11, %v3655_v41  ;;  %v4058_v46 = vld [vmem:[%s14537_s26 + $0x18] sm:$0x8] }
 0x22c   : > { %v3595_v53 = vor.u32 %v3593_v12, %v3591_v42  ;;  %v3592_v54 = vsel %vm1570_vm2, %v3587_v62, %v3591_v42  ;;  %v3665_v12 = vshrl.u32 %v14115_v58, 16  ;;  %v3673_v42 = vshrl.u32 %v14116_v1, 16 }
 0x22f   : > { %12786 = vmatmul.mubr.msk.bf16.vlgmr.msra.gmra.mrb[0].mxu0 %vm291_vm0, %v3512_v10  ;;  %v3599_v10 = vrot.slane %v3597_v13, 1  ;;  %v3656_v13 = vsel %vm1570_vm2, %v3651_v23, %v3655_v41 }
 0x230   : > { %12834 = vmatpush3.bf16.msra.mxu0 %v15419_v43  ;;  %12789 = vmatprep.mubr.msk.bf16.mxu0 %vm291_vm0, %v3520_v16  ;;  %v3536_v43 = vsel %vm1570_vm2, %v3531_v47, %v3535_v59  ;;  %v3605_v16 = vshll.u32 %v14106_v55, 16  ;;  %v14109_v47 = vld [vmem:[%s14537_s26 + $0x90] sm:$0xff]   ;;  %v3677_v55 = vshll.u32 %v14117_v26, 16 }
 0x231   : > { %12835 = vmatprep.subr.bf16.mxu0 %v14100_v32  ;;  %v3603_v59 = vor.u32 %v3601_v36, %v3599_v10  ;;  %v3625_v33 = vshrl.u32 %v14109_v47, 16 }
 0x232   : > { %v3607_v51 = vrot.slane %v3605_v16, 1  ;;  %v3667_v16 = vor.u32 %v3665_v12, %v3663_v38  ;;  %v3679_v36 = vrot.slane %v3677_v55, 1  ;;  %v15627_v12 = vld [vmem:[%s14537_s26 + $0x54] sm:$0xf] }
 0x234   : > { %12836 = vmatpush3.bf16.msra.mxu0 %v14100_v32  ;;  %v3600_v32 = vsel %vm1570_vm2, %v3595_v53, %v3599_v10  ;;  %v3611_v17 = vor.u32 %v3609_v9, %v3607_v51  ;;  %v3608_v5 = vsel %vm1570_vm2, %v3603_v59, %v3607_v51  ;;  %v3664_v53 = vsel %vm1570_vm2, %v3659_v14, %v3663_v38  ;;  %v15618_v38 = vld [vmem:[%s14537_s26 + $0x48] sm:$0xf] }
 0x235   : > { %12837 = vmatprep.subr.bf16.mxu0 %v14107_v22 }
 0x237   : > { %12790 = vmatmul.mubr.msk.bf16.gmra.mrb[4].mxu0 %vm291_vm0, %v3528_v39  ;;  %v3621_v39 = vshll.u32 %v14109_v47, 16 }
 0x238   : > { %12793 = vmatprep.mubr.msk.bf16.mxu0 %vm291_vm0, %v3536_v43  ;;  %12838 = vmatpush3.bf16.msra.mxu0 %v14107_v22  ;;  %v3615_v22 = vrot.slane %v3613_v0, 1  ;;  %v3617_v43 = vshrl.u32 %v14108_v27, 16  ;;  %v3671_v27 = vrot.slane %v3669_v24, 1  ;;  %v15581_v0 = vld [vmem:[%s14537_s26 + $0x2c] sm:$0xf] }
 0x239   : > { %12839 = vmatprep.subr.bf16.mxu0 %v14114_v34  ;;  %v3623_v18 = vrot.slane %v3621_v39, 1  ;;  %v3681_v39 = vshrl.u32 %v14117_v26, 16  ;;  %v15624_v24 = vld [vmem:[%s14537_s26 + $0x50] sm:$0xf] }
 0x23a   : > { %v3616_v30 = vsel %vm1570_vm2, %v3611_v17, %v3615_v22  ;;  %v3619_v44 = vor.u32 %v3617_v43, %v3615_v22  ;;  %v15584_v17 = vld [vmem:[%s14537_s26 + $0x30] sm:$0xf]  ;;  %v15587_v22 = vld [vmem:[%s14537_s26 + $0x34] sm:$0xf] }
 0x23b   : > { %v3627_v15 = vor.u32 %v3625_v33, %v3623_v18 }
 0x23c   : > { %12840 = vmatpush3.bf16.msra.mxu0 %v14114_v34  ;;  %v3629_v34 = vshll.u32 %v14110_v4, 16  ;;  %v3672_v4 = vsel %vm1570_vm2, %v3667_v16, %v3671_v27  ;;  %v11501_v16 = vcombine.low %v15624_v24, %v15627_v12 }
 0x23d   : > { %12889 = vmatprep.subr.bf16.mxu0 %v15520_v20 }
 0x23e   : > { %v3631_v19 = vrot.slane %v3629_v34, 1 }
 0x23f   : > { %12794 = vmatmul.mubr.msk.bf16.gmra.mrb[8].mxu0 %vm291_vm0, %v3544_v31  ;;  %v3624_v31 = vsel %vm1570_vm2, %v3619_v44, %v3623_v18  ;;  %v11497_v44 = vcombine.low %v15584_v17, %v15587_v22 }
 0x240   : > { %12797 = vmatprep.mubr.msk.bf16.mxu0 %vm291_vm0, %v3552_v2  ;;  %v3632_v2 = vsel %vm1570_vm2, %v3627_v15, %v3631_v19  ;;  %v3635_v25 = vor.u32 %v3633_v28, %v3631_v19  ;;  %v3683_v15 = vor.u32 %v3681_v39, %v3679_v36  ;;  %v15645_v39 = vld [vmem:[%s14537_s26 + $0x5c] sm:$0xf] }
 0x241   : > { %v4269_v3 = vshll.u32 %v11497_v44, 16 }
 0x247   : > { %12798 = vmatmul.mubr.msk.bf16.gmra.mrb[12].mxu0 %vm291_vm0, %v3560_v61  ;;  %v3640_v61 = vsel %vm1570_vm2, %v3635_v25, %v3639_v6  ;;  %v15601_v6 = vld [vmem:[%s14537_s26 + $0x3c] sm:$0xf]  ;;  %v15607_v25 = vld [vmem:[%s14537_s26 + $0x44] sm:$0xf] }
 0x248   : > { %12801 = vmatprep.mubr.msk.bf16.mxu0 %vm291_vm0, %v3568_v63  ;;  %v3648_v63 = vsel %vm1570_vm2, %v3643_v49, %v3647_v57  ;;  %v11498_v37 = vcombine.low %v15598_v21, %v15601_v6  ;;  %v11499_v11 = vcombine.low %v15604_v29, %v15607_v25 }
 0x24a   : > { %v4275_v1 = vshrl.u32 %v11498_v37, 16  ;;  %v4278_v41 = vshll.u32 %v11498_v37, 16  ;;  %v4284_v26 = vshrl.u32 %v11499_v11, 16  ;;  %v4287_v14 = vshll.u32 %v11499_v11, 16  ;;  %v15676_v37 = vld [vmem:[%s18422_s2 + $0x100] sm:$0xff]  }
 0x24c   : > { %v4280_v55 = vrot.slane %v4278_v41, 4 }
 0x24f   : > { %12802 = vmatmul.mubr.msk.bf16.gmra.mrb[16].mxu0 %vm291_vm0, %v3576_v40  ;;  %v15567_v40 = vld [vmem:[%s14537_s26 + $0x1c] sm:$0xf] }
 0x250   : > { %12805 = vmatprep.mubr.msk.bf16.mxu0 %vm291_vm0, %v3584_v45  ;;  %v15570_v45 = vld [vmem:[%s14537_s26 + $0x20] sm:$0xf]  ;;  %v11494_v62 = vcombine.low %v4058_v46, %v15567_v40  ;;  %v15621_v46 = vld [vmem:[%s14537_s26 + $0x4c] sm:$0xf] }
 0x251   : > { %v11495_v10 = vcombine.low %v15570_v45, %v15458_v8 }
 0x252   : > { %v4240_v9 = vshrl.u32 %v11494_v62, 16  ;;  %v4243_v51 = vshll.u32 %v11494_v62, 16  ;;  %v11500_v62 = vcombine.low %v15618_v38, %v15621_v46 }
 0x253   : > { %v4248_v47 = vshrl.u32 %v11495_v10, 16  ;;  %v4251_v59 = vshll.u32 %v11495_v10, 16  ;;  %v4286_v10 = vrot.slane %v4284_v26, 3 }
 0x254   : > { %v4242_v33 = vrot.slane %v4240_v9, 3  ;;  %v4245_v34 = vrot.slane %v4243_v51, 4  ;;  %v4296_v9 = vshll.u32 %v11500_v62, 16  ;;  %v15642_v51 = vld [vmem:[%s14537_s26 + $0x58] sm:$0xf] }
 0x255   : > { %v4250_v18 = vrot.slane %v4248_v47, 3  ;;  %v4253_v56 = vrot.slane %v4251_v59, 4  ;;  %v4302_v59 = vshrl.u32 %v11501_v16, 16 }
 0x257   : > { %12806 = vmatmul.mubr.msk.bf16.gmra.mrb[20].mxu0 %vm291_vm0, %v3592_v54  ;;  %v3675_v54 = vor.u32 %v3673_v42, %v3671_v27  ;;  %v4254_v28 = vor.u32 %v4253_v56, %v4250_v18  ;;  %v4277_v42 = vrot.slane %v4275_v1, 3  ;;  %v4289_v27 = vrot.slane %v4287_v14, 4 }
 0x258   : > { %12809 = vmatprep.mubr.msk.bf16.mxu0 %vm291_vm0, %v3600_v32  ;;  %v14118_v32 = vld [vmem:[%s14537_s26 + $0xd0] ss:$0 sps:$4 sm:$0x11]   ;;  %v11502_v18 = vcombine.low %v15642_v51, %v15645_v39 }
 0x259   : > { %v3685_v43 = vshll.u32 %v14118_v32, 16  ;;  %v4293_v32 = vshrl.u32 %v11500_v62, 16  ;;  %v4290_v47 = vor.u32 %v4289_v27, %v4286_v10  ;;  %v15694_v27 = vld [vmem:[%s14537_s26 + $0x78] sm:$0xf] }
 0x25b   : > { %v3687_v19 = vrot.slane %v3685_v43, 1  ;;  %v15651_v43 = vld [vmem:[%s14537_s26 + $0x60] sm:$0xf] }
 0x25d   : > { %v3688_v49 = vsel %vm1570_vm2, %v3683_v15, %v3687_v19 }
 0x25f   : > { %12810 = vmatmul.mubr.msk.bf16.gmra.mrb[24].mxu0 %vm291_vm0, %v3608_v5  ;;  %v3680_v5 = vsel %vm1570_vm2, %v3675_v54, %v3679_v36  ;;  %v14130_v54 = vld [vmem:[%s18422_s2 + $0xe8] sm:$0xff]   ;;  %v4281_v36 = vor.u32 %v4280_v55, %v4277_v42 }
 0x260   : > { %12813 = vmatprep.mubr.msk.bf16.mxu0 %vm291_vm0, %v3616_v30  ;;  %v11496_v30 = vcombine.low %v15461_v35, %v15581_v0 }
 0x261   : > { %v4291_v56 = vsel %vm843_vm1, %v4281_v36, %v4290_v47 }
 0x262   : > { %v4257_v52 = vshrl.u32 %v11496_v30, 16  ;;  %v4260_v50 = vshll.u32 %v11496_v30, 16 }
 0x264   : > { %v4259_v57 = vrot.slane %v4257_v52, 3  ;;  %v4262_v58 = vrot.slane %v4260_v50, 4  ;;  %v14144_v52 = vld [vmem:[%s18422_s2 + $0xf8] sm:$0xff]  }
 0x266   : > { %v4263_v48 = vor.u32 %v4262_v58, %v4259_v57  ;;  %v15671_v58 = vld [vmem:[%s14537_s26 + $0x6c] sm:$0xf] }
 0x267   : > { %12814 = vmatmul.mubr.msk.bf16.gmra.mrb[28].mxu0 %vm291_vm0, %v3624_v31  ;;  %v4246_v31 = vor.u32 %v4245_v34, %v4242_v33  ;;  %v4295_v33 = vrot.slane %v4293_v32, 3  ;;  %v4298_v34 = vrot.slane %v4296_v9, 4 }
 0x268   : > { %12817 = vmatprep.mubr.msk.bf16.mxu0 %vm291_vm0, %v3632_v2  ;;  %v4266_v2 = vshrl.u32 %v11497_v44, 16  ;;  %v4304_v44 = vrot.slane %v4302_v59, 3 }
 0x269   : > { %v4299_v50 = vor.u32 %v4298_v34, %v4295_v33 }
 0x26a   : > { %v4268_v7 = vrot.slane %v4266_v2, 3  ;;  %v15668_v2 = vld [vmem:[%s14537_s26 + $0x68] sm:$0xf] }
 0x26b   : > { %v11504_v1 = vcombine.low %v15668_v2, %v15671_v58 }
 0x26d   : > { %v4329_v42 = vshrl.u32 %v11504_v1, 16  ;;  %v4332_v55 = vshll.u32 %v11504_v1, 16 }
 0x26f   : > { %12818 = vmatmul.mubr.msk.bf16.gmra.mrb[32].mxu0 %vm291_vm0, %v3640_v61  ;;  %v4255_v61 = vsel %vm843_vm1, %v4246_v31, %v4254_v28  ;;  %v4311_v31 = vshrl.u32 %v11502_v18, 16  ;;  %v4331_v9 = vrot.slane %v4329_v42, 3 }
 0x270   : > { %12821 = vmatprep.mubr.msk.bf16.mxu0 %vm291_vm0, %v3648_v63  ;;  %v4271_v63 = vrot.slane %v4269_v3, 4 }
 0x271   : > { %v4313_v11 = vrot.slane %v4311_v31, 3  ;;  %v15720_v31 = vld [vmem:[%s14537_s26 + $0x90] sm:$0xf] }
 0x272   : > { %v4272_v23 = vor.u32 %v4271_v63, %v4268_v7  ;;  %v15682_v7 = vld [vmem:[%s14537_s26 + $0x74] sm:$0xf]  ;;  %v4300_v63 = vsel %vm843_vm1, %v4290_v47, %v4299_v50  ;;  %v4334_v47 = vrot.slane %v4332_v55, 4 }
 0x274   : > { %v4282_v30 = vsel %vm843_vm1, %v4272_v23, %v4281_v36  ;;  %v15703_v36 = vld [vmem:[%s14537_s26 + $0x84] sm:$0xf]  ;;  %v4335_v34 = vor.u32 %v4334_v47, %v4331_v9 }
 0x277   : > { %12822 = vmatmul.mubr.msk.bf16.gmra.mrb[36].mxu0 %vm291_vm0, %v3656_v13  ;;  %v4264_v13 = vsel %vm843_vm1, %v4254_v28, %v4263_v48  ;;  %v4314_v28 = vshll.u32 %v11502_v18, 16 }
 0x278   : > { %12825 = vmatprep.mubr.msk.bf16.mxu0 %vm291_vm0, %v3664_v53  ;;  %v4273_v53 = vsel %vm843_vm1, %v4263_v48, %v4272_v23 }
 0x279   : > { %v4316_v48 = vrot.slane %v4314_v28, 4  ;;  %v15723_v28 = vld [vmem:[%s14537_s26 + $0x94] sm:$0xf] }
 0x27f   : > { %12826 = vmatmul.mubr.msk.bf16.gmra.mrb[40].mxu0 %vm291_vm0, %v3672_v4  ;;  %v4305_v4 = vshll.u32 %v11501_v16, 16  ;;  %v15697_v16 = vld [vmem:[%s14537_s26 + $0x7c] sm:$0xf] }
 0x280   : > { %12829 = vmatprep.mubr.msk.bf16.mxu0 %vm291_vm0, %v3680_v5  ;;  %v14137_v5 = vld [vmem:[%s18422_s2 + $0xf0] sm:$0xff]   ;;  %v11506_v59 = vcombine.low %v15694_v27, %v15697_v16 }
 0x281   : > { %v4307_v15 = vrot.slane %v4305_v4, 4 }
 0x282   : > { %v4347_v18 = vshrl.u32 %v11506_v59, 16 }
 0x283   : > { %v4308_v3 = vor.u32 %v4307_v15, %v4304_v44 }
 0x285   : > { %v4309_v41 = vsel %vm843_vm1, %v4299_v50, %v4308_v3  ;;  %v15717_v50 = vld [vmem:[%s14537_s26 + $0x8c] sm:$0xf] }
 0x287   : > { %12830 = vmatmul.mubr.msk.bf16.gmra.mrb[44].mxu0 %vm291_vm0, %v3688_v49 }
 0x288   : > { %12841 = vmatprep.mubr.msk.bf16.mxu0 %vm291_vm0, %v4255_v61  ;;  %v15679_v61 = vld [vmem:[%s14537_s26 + $0x70] sm:$0xf] }
 0x289   : > { %v11505_v14 = vcombine.low %v15679_v61, %v15682_v7 }
 0x28b   : > { %v4341_v10 = vshll.u32 %v11505_v14, 16 }
 0x28f   : > { %12842 = vmatmul.mubr.msk.bf16.vlgmr.msra.gmra.mrb[0].mxu0 %vm291_vm0, %v4264_v13  ;;  %v4317_v13 = vor.u32 %v4316_v48, %v4313_v11 }
 0x290   : > { %12890 = vmatpush3.bf16.msra.mxu0 %v15520_v20  ;;  %12845 = vmatprep.mubr.msk.bf16.mxu0 %vm291_vm0, %v4273_v53  ;;  %v15654_v20 = vld [vmem:[%s14537_s26 + $0x64] sm:$0xf]  ;;  %v4338_v53 = vshrl.u32 %v11505_v14, 16 }
 0x291   : > { %12891 = vmatprep.subr.bf16.mxu0 %v14130_v54  ;;  %v11503_v19 = vcombine.low %v15651_v43, %v15654_v20  ;;  %v4318_v32 = vsel %vm843_vm1, %v4308_v3, %v4317_v13 }
 0x293   : > { %v4320_v49 = vshrl.u32 %v11503_v19, 16  ;;  %v4323_v57 = vshll.u32 %v11503_v19, 16 }
 0x294   : > { %12892 = vmatpush3.bf16.msra.mxu0 %v14130_v54  ;;  %v15700_v54 = vld [vmem:[%s14537_s26 + $0x80] sm:$0xf] }
 0x295   : > { %12893 = vmatprep.subr.bf16.mxu0 %v14137_v5  ;;  %v4322_v23 = vrot.slane %v4320_v49, 3  ;;  %v4325_v26 = vrot.slane %v4323_v57, 4  ;;  %v11507_v33 = vcombine.low %v15700_v54, %v15703_v36  ;;  %v4349_v49 = vrot.slane %v4347_v18, 3 }
 0x297   : > { %12846 = vmatmul.mubr.msk.bf16.gmra.mrb[4].mxu0 %vm291_vm0, %v4282_v30  ;;  %v4326_v62 = vor.u32 %v4325_v26, %v4322_v23  ;;  %v4343_v30 = vrot.slane %v4341_v10, 4  ;;  %v4356_v15 = vshrl.u32 %v11507_v33, 16  ;;  %v4359_v19 = vshll.u32 %v11507_v33, 16  ;;  %v15740_v10 = vld [vmem:[%s14537_s26 + $0xa0] sm:$0xf] }
 0x298   : > { %12849 = vmatprep.mubr.msk.bf16.mxu0 %vm291_vm0, %v4291_v56  ;;  %12894 = vmatpush3.bf16.msra.mxu0 %v14137_v5  ;;  %v4340_v5 = vrot.slane %v4338_v53, 3  ;;  %v4350_v56 = vshll.u32 %v11506_v59, 16  ;;  %v15737_v53 = vld [vmem:[%s14537_s26 + $0x9c] sm:$0xf] }
 0x299   : > { %12895 = vmatprep.subr.bf16.mxu0 %v14144_v52  ;;  %v4327_v4 = vsel %vm843_vm1, %v4317_v13, %v4326_v62  ;;  %v4336_v3 = vsel %vm843_vm1, %v4326_v62, %v4335_v34  ;;  %v4358_v48 = vrot.slane %v4356_v15, 3  ;;  %v4361_v1 = vrot.slane %v4359_v19, 4  ;;  %v15734_v62 = vld [vmem:[%s14537_s26 + $0x98] sm:$0xf] }
 0x29a   : > { %v4344_v44 = vor.u32 %v4343_v30, %v4340_v5  ;;  %v4352_v57 = vrot.slane %v4350_v56, 4 }
 0x29b   : > { %v4362_v13 = vor.u32 %v4361_v1, %v4358_v48 }
 0x29c   : > { %12896 = vmatpush3.bf16.msra.mxu0 %v14144_v52  ;;  %v15714_v52 = vld [vmem:[%s14537_s26 + $0x88] sm:$0xf]  ;;  %v4345_v11 = vsel %vm843_vm1, %v4335_v34, %v4344_v44  ;;  %v4353_v23 = vor.u32 %v4352_v57, %v4349_v49  ;;  %v15757_v57 = vld [vmem:[%s14537_s26 + $0xac] sm:$0xf] }
 0x29d   : > { %12945 = vmatprep.subr.bf16.mxu0 %v15676_v37  ;;  %v15754_v49 = vld [vmem:[%s14537_s26 + $0xa8] sm:$0xf] }
 0x29e   : > { %v4354_v9 = vsel %vm843_vm1, %v4344_v44, %v4353_v23  ;;  %v4363_v5 = vsel %vm843_vm1, %v4353_v23, %v4362_v13  ;;  %v11512_v23 = vcombine.low %v15754_v49, %v15757_v57 }
 0x29f   : > { %12850 = vmatmul.mubr.msk.bf16.gmra.mrb[8].mxu0 %vm291_vm0, %v4300_v63  ;;  %v11508_v63 = vcombine.low %v15714_v52, %v15717_v50 }
 0x2a0   : > { %12853 = vmatprep.mubr.msk.bf16.mxu0 %vm291_vm0, %v4309_v41  ;;  %v11509_v41 = vcombine.low %v15720_v31, %v15723_v28 }
 0x2a1   : > { %v4365_v26 = vshrl.u32 %v11508_v63, 16  ;;  %v4368_v14 = vshll.u32 %v11508_v63, 16  ;;  %v15760_v63 = vld [vmem:[%s14537_s26 + $0xb0] sm:$0xf] }
 0x2a2   : > { %v4374_v42 = vshrl.u32 %v11509_v41, 16  ;;  %v4377_v55 = vshll.u32 %v11509_v41, 16 }
 0x2a3   : > { %v4367_v47 = vrot.slane %v4365_v26, 3  ;;  %v4370_v59 = vrot.slane %v4368_v14, 4 }
 0x2a4   : > { %v4376_v30 = vrot.slane %v4374_v42, 3  ;;  %v4379_v33 = vrot.slane %v4377_v55, 4 }
 0x2a5   : > { %v4371_v18 = vor.u32 %v4370_v59, %v4367_v47  ;;  %v4404_v47 = vshll.u32 %v11512_v23, 16 }
 0x2a6   : > { %v4380_v15 = vor.u32 %v4379_v33, %v4376_v30  ;;  %v15774_v30 = vld [vmem:[%s14537_s26 + $0xb8] sm:$0xf]  ;;  %v15777_v33 = vld [vmem:[%s14537_s26 + $0xbc] sm:$0xf] }
 0x2a7   : > { %12854 = vmatmul.mubr.msk.bf16.gmra.mrb[12].mxu0 %vm291_vm0, %v4318_v32  ;;  %v15743_v32 = vld [vmem:[%s14537_s26 + $0xa4] sm:$0xf]  ;;  %v4372_v48 = vsel %vm843_vm1, %v4362_v13, %v4371_v18  ;;  %18533 = vst [vmem:[#allocation18_spill] sm:$0xff] %v15777_v33 }
 0x2a8   : > { %12857 = vmatprep.mubr.msk.bf16.mxu0 %vm291_vm0, %v4327_v4  ;;  %v11510_v4 = vcombine.low %v15734_v62, %v15737_v53  ;;  %v11511_v34 = vcombine.low %v15740_v10, %v15743_v32  ;;  %v4381_v26 = vsel %vm843_vm1, %v4371_v18, %v4380_v15  ;;  %v15783_v18 = vld [vmem:[%s14537_s26 + $0xc4] sm:$0xf] }
 0x2a9   : > { %18535 = vst [vmem:[#allocation20_spill] sm:$0xff] %v15783_v18 }
 0x2aa   : > { %v4383_v56 = vshrl.u32 %v11510_v4, 16  ;;  %v4386_v44 = vshll.u32 %v11510_v4, 16  ;;  %v4392_v19 = vshrl.u32 %v11511_v34, 16 }
 0x2ac   : > { %v4385_v1 = vrot.slane %v4383_v56, 3  ;;  %v4388_v41 = vrot.slane %v4386_v44, 4  ;;  %v4394_v14 = vrot.slane %v4392_v19, 3  ;;  %v4406_v19 = vrot.slane %v4404_v47, 4  ;;  %v15794_v47 = vld [vmem:[%s14537_s26 + $0xc8] sm:$0xf] }
 0x2ae   : > { %v4389_v13 = vor.u32 %v4388_v41, %v4385_v1 }
 0x2af   : > { %12858 = vmatmul.mubr.msk.bf16.gmra.mrb[16].mxu0 %vm291_vm0, %v4336_v3  ;;  %v4395_v3 = vshll.u32 %v11511_v34, 16  ;;  %v15780_v34 = vld [vmem:[%s14537_s26 + $0xc0] sm:$0xf] }
 0x2b0   : > { %12861 = vmatprep.mubr.msk.bf16.mxu0 %vm291_vm0, %v4345_v11  ;;  %v15763_v11 = vld [vmem:[%s14537_s26 + $0xb4] sm:$0xf]  ;;  %18534 = vst [vmem:[#allocation17_spill] sm:$0xff] %v15780_v34  ;;  %v4390_v56 = vsel %vm843_vm1, %v4380_v15, %v4389_v13 }
 0x2b1   : > { %v4397_v42 = vrot.slane %v4395_v3, 4  ;;  %v11513_v55 = vcombine.low %v15760_v63, %v15763_v11  ;;  %v11514_v3 = vcombine.low %v15774_v30, %v15777_v33 }
 0x2b3   : > { %v4398_v59 = vor.u32 %v4397_v42, %v4394_v14  ;;  %v4410_v4 = vshrl.u32 %v11513_v55, 16  ;;  %v4422_v14 = vshll.u32 %v11514_v3, 16 }
 0x2b5   : > { %v4412_v1 = vrot.slane %v4410_v4, 3  ;;  %v15803_v4 = vld [vmem:[%s14537_s26 + $0xd4] sm:$0xf] }
 0x2b6   : > { %18538 = vst [vmem:[#allocation21_spill] sm:$0xff] %v15803_v4 }
 0x2b7   : > { %12862 = vmatmul.mubr.msk.bf16.gmra.mrb[20].mxu0 %vm291_vm0, %v4354_v9  ;;  %v4401_v9 = vshrl.u32 %v11512_v23, 16  ;;  %v11515_v23 = vcombine.low %v15780_v34, %v15783_v18  ;;  %v4424_v18 = vrot.slane %v4422_v14, 4  ;;  %v15814_v34 = vld [vmem:[%s14537_s26 + $0xd8] sm:$0xf] }
 0x2b8   : > { %12865 = vmatprep.mubr.msk.bf16.mxu0 %vm291_vm0, %v4363_v5  ;;  %v4413_v5 = vshll.u32 %v11513_v55, 16 }
 0x2b9   : > { %v4403_v44 = vrot.slane %v4401_v9, 3  ;;  %v4428_v55 = vshrl.u32 %v11515_v23, 16  ;;  %v4431_v9 = vshll.u32 %v11515_v23, 16 }
 0x2ba   : > { %v4415_v41 = vrot.slane %v4413_v5, 4 }
 0x2bb   : > { %v4407_v15 = vor.u32 %v4406_v19, %v4403_v44  ;;  %v11516_v44 = vcombine.low %v15794_v47, %v15797_v60 }
 0x2bc   : > { %v4416_v42 = vor.u32 %v4415_v41, %v4412_v1 }
 0x2bd   : > { %v4408_v5 = vsel %vm843_vm1, %v4398_v59, %v4407_v15  ;;  %v4437_v23 = vshrl.u32 %v11516_v44, 16 }
 0x2be   : > { %v4417_v19 = vsel %vm843_vm1, %v4407_v15, %v4416_v42 }
 0x2bf   : > { %12866 = vmatmul.mubr.msk.bf16.gmra.mrb[24].mxu0 %vm291_vm0, %v4372_v48  ;;  %v4399_v48 = vsel %vm843_vm1, %v4389_v13, %v4398_v59  ;;  %v15800_v13 = vld [vmem:[%s14537_s26 + $0xd0] sm:$0xf]  ;;  %v4440_v59 = vshll.u32 %v11516_v44, 16  ;;  %v4439_v15 = vrot.slane %v4437_v23, 3 }
 0x2c0   : > { %12869 = vmatprep.mubr.msk.bf16.mxu0 %vm291_vm0, %v4381_v26  ;;  %v4419_v26 = vshrl.u32 %v11514_v3, 16  ;;  %18537 = vst [vmem:[#allocation22_spill] sm:$0xff] %v15800_v13  ;;  %v4430_v3 = vrot.slane %v4428_v55, 3  ;;  %v11517_v1 = vcombine.low %v15800_v13, %v15803_v4 }
 0x2c1   : > { %v4442_v55 = vrot.slane %v4440_v59, 4 }
 0x2c2   : > { %v4449_v14 = vshll.u32 %v11517_v1, 16 }
 0x2c4   : > { %v4451_v13 = vrot.slane %v4449_v14, 4 }
 0x2c7   : > { %12870 = vmatmul.mubr.msk.bf16.gmra.mrb[28].mxu0 %vm291_vm0, %v4390_v56  ;;  %v4421_v56 = vrot.slane %v4419_v26, 3  ;;  %v4446_v26 = vshrl.u32 %v11517_v1, 16 }
 0x2c8   : > { %12873 = vmatprep.mubr.msk.bf16.mxu0 %vm291_vm0, %v4399_v48  ;;  %v4433_v48 = vrot.slane %v4431_v9, 4  ;;  %v11518_v9 = vcombine.low %v15814_v34, %v15814_v34 }
 0x2c9   : > { %v4425_v41 = vor.u32 %v4424_v18, %v4421_v56  ;;  %v4443_v18 = vor.u32 %v4442_v55, %v4439_v15  ;;  %v14180_v15 = vld [vmem:[%s14537_s26 + $0x3c] sm:$0xff]  }
 0x2ca   : > { %v4434_v33 = vor.u32 %v4433_v48, %v4430_v3  ;;  %v4455_v56 = vshrl.u32 %v11518_v9, 16  ;;  %v4458_v44 = vshll.u32 %v11518_v9, 16 }
 0x2cb   : > { %v4426_v60 = vsel %vm843_vm1, %v4416_v42, %v4425_v41 }
 0x2cc   : > { %v4435_v4 = vsel %vm843_vm1, %v4425_v41, %v4434_v33  ;;  %v4444_v3 = vsel %vm843_vm1, %v4434_v33, %v4443_v18  ;;  %v4457_v42 = vrot.slane %v4455_v56, 3  ;;  %v4460_v48 = vrot.slane %v4458_v44, 4 }
 0x2cd   : > { %v11557_v33 = vcombine.low %v15581_v0, %v15584_v17  ;;  %v11559_v0 = vcombine.low %v15601_v6, %v15604_v29  ;;  %v11561_v17 = vcombine.low %v15621_v46, %v15624_v24  ;;  %v11564_v6 = vcombine.low %v15654_v20, %v15668_v2  ;;  %v18540_v2 = vld [vmem:[#allocation17_spill] sm:$0xff] }
 0x2ce   : > { %v4461_v41 = vor.u32 %v4460_v48, %v4457_v42  ;;  %v11565_v29 = vcombine.low %v15671_v58, %v15679_v61  ;;  %v11568_v46 = vcombine.low %v15703_v36, %v15714_v52  ;;  %v11569_v24 = vcombine.low %v15717_v50, %v15720_v31  ;;  %v18541_v58 = vld [vmem:[#allocation18_spill] sm:$0xff]  ;;  %v14176_v61 = vld [vmem:[%s14537_s26 + $0x1c] sm:$0xff]   ;;  %v18544_v52 = vld [vmem:[#allocation19_spill] sm:$0xff] }
 0x2cf   : > { %12874 = vmatmul.mubr.msk.bf16.gmra.mrb[32].mxu0 %vm291_vm0, %v4408_v5  ;;  %v4448_v5 = vrot.slane %v4446_v26, 3  ;;  %v11574_v20 = vcombine.low %v15763_v11, %v15774_v30  ;;  %v18543_v36 = vld [vmem:[#allocation22_spill] sm:$0xff]  ;;  %v5416_v31 = vshrl.u32 %v14176_v61, 16  ;;  %v5447_v56 = vshll.u32 %v14180_v15, 16 }
 0x2d0   : > { %12877 = vmatprep.mubr.msk.bf16.mxu0 %vm291_vm0, %v4417_v19  ;;  %v11577_v50 = vcombine.low %v18544_v52, %v18543_v36 }
 0x2d1   : > { %v4452_v19 = vor.u32 %v4451_v13, %v4448_v5  ;;  %v14157_v13 = vld [vmem:[%s18422_s2 + $0x108] sm:$0xff]   ;;  %v5449_v48 = vrot.slane %v5447_v56, 1 }
 0x2d3   : > { %v4453_v1 = vsel %vm843_vm1, %v4443_v18, %v4452_v19  ;;  %v4462_v23 = vsel %vm843_vm1, %v4452_v19, %v4461_v41  ;;  %v14181_v18 = vld [vmem:[%s14537_s26 + $0x44] sm:$0xff]  }
 0x2d4   : > { %v5455_v42 = vshll.u32 %v14181_v18, 16 }
 0x2d7   : > { %12878 = vmatmul.mubr.msk.bf16.gmra.mrb[36].mxu0 %vm291_vm0, %v4426_v60  ;;  %v11555_v60 = vcombine.low %v15567_v40, %v15570_v45  ;;  %v14164_v40 = vld [vmem:[%s18422_s2 + $0x110] sm:$0xff]   ;;  %v11558_v45 = vcombine.low %v15587_v22, %v15598_v21  ;;  %v11562_v22 = vcombine.low %v15627_v12, %v15642_v51  ;;  %v11563_v21 = vcombine.low %v15645_v39, %v15651_v43 }
 0x2d8   : > { %12881 = vmatprep.mubr.msk.bf16.mxu0 %vm291_vm0, %v4435_v4  ;;  %v18539_v4 = vcombine.low %v15458_v8, %v15461_v35  ;;  %v14171_v8 = vld [vmem:[%s18422_s2 + $0x118] sm:$0xff]   ;;  %v11560_v35 = vcombine.low %v15607_v25, %v15618_v38  ;;  %v11566_v25 = vcombine.low %v15682_v7, %v15694_v27  ;;  %v11567_v38 = vcombine.low %v15697_v16, %v15700_v54  ;;  %v14177_v7 = vld [vmem:[%s14537_s26 + $0x24] sm:$0xff]  }
 0x2d9   : > { %v11570_v12 = vcombine.low %v15723_v28, %v15734_v62  ;;  %v11571_v51 = vcombine.low %v15737_v53, %v15740_v10  ;;  %v11572_v39 = vcombine.low %v15743_v32, %v15754_v49  ;;  %v11573_v43 = vcombine.low %v15757_v57, %v15760_v63  ;;  %v18542_v16 = vld [vmem:[#allocation20_spill] sm:$0xff]  ;;  %v14178_v53 = vld [vmem:[%s14537_s26 + $0x2c] sm:$0xff]   ;;  %v18545_v57 = vld [vmem:[#allocation21_spill] sm:$0xff] }
 0x2da   : > { %v5418_v27 = vshll.u32 %v14176_v61, 16  ;;  %v11576_v54 = vcombine.low %v18542_v16, %v15794_v47  ;;  %v5423_v62 = vshll.u32 %v14177_v7, 16  ;;  %v14179_v49 = vld [vmem:[%s14537_s26 + $0x34] sm:$0xff]   ;;  %v11578_v63 = vcombine.low %v18545_v57, %v15814_v34 }
 0x2db   : > { %v5431_v11 = vshll.u32 %v14178_v53, 16  ;;  %v5427_v30 = vshrl.u32 %v14177_v7, 16  ;;  %v5435_v59 = vshrl.u32 %v14178_v53, 16  ;;  %v5439_v26 = vshll.u32 %v14179_v49, 16  ;;  %v14189_v53 = vld [vmem:[%s14537_s26 + $0x84] sm:$0xff]  }
 0x2dc   : > { %v5420_v28 = vrot.slane %v5418_v27, 1  ;;  %v5425_v32 = vrot.slane %v5423_v62, 1  ;;  %v5443_v44 = vshrl.u32 %v14179_v49, 16 }
 0x2dd   : > { %v5433_v14 = vrot.slane %v5431_v11, 1  ;;  %v5441_v5 = vrot.slane %v5439_v26, 1  ;;  %v5519_v11 = vshll.u32 %v14189_v53, 16 }
 0x2de   : > { %v5421_v10 = vor.u32 %v5420_v28, %v5416_v31  ;;  %v5429_v55 = vor.u32 %v5427_v30, %v5425_v32 }
 0x2df   : > { %12882 = vmatmul.mubr.msk.bf16.gmra.mrb[40].mxu0 %vm291_vm0, %v4444_v3  ;;  %v5437_v9 = vor.u32 %v5435_v59, %v5433_v14  ;;  %v5451_v3 = vshrl.u32 %v14180_v15, 16  ;;  %v5445_v41 = vor.u32 %v5443_v44, %v5441_v5  ;;  %v14191_v15 = vld [vmem:[%s14537_s26 + $0x94] sm:$0xff]  }
 0x2e0   : > { %12885 = vmatprep.mubr.msk.bf16.mxu0 %vm291_vm0, %v4453_v1  ;;  %v5426_v47 = vsel %vm1570_vm2, %v5421_v10, %v5425_v32  ;;  %v5434_v34 = vsel %vm1570_vm2, %v5429_v55, %v5433_v14  ;;  %v14182_v1 = vld [vmem:[%s14537_s26 + $0x4c] sm:$0xff]   ;;  %v5521_v14 = vrot.slane %v5519_v11, 1 }
 0x2e1   : > { %v5442_v19 = vsel %vm1570_vm2, %v5437_v9, %v5441_v5  ;;  %v5523_v5 = vshrl.u32 %v14189_v53, 16 }
 0x2e7   : > { %12886 = vmatmul.mubr.msk.bf16.gmra.mrb[44].mxu0 %vm291_vm0, %v4462_v23  ;;  %v5453_v23 = vor.u32 %v5451_v3, %v5449_v48  ;;  %v5525_v3 = vor.u32 %v5523_v5, %v5521_v14  ;;  %v14201_v5 = vld [vmem:[%s18424_s4 + $0x20] sm:$0xff]  }
 0x2e8   : > { %12897 = vmatprep.mubr.msk.bf16.mxu0 %vm291_vm0, %v11555_v60  ;;  %v5457_v60 = vrot.slane %v5455_v42, 1  ;;  %13001 = vmatprep.subr.bf16.mxu1 %v14201_v5 }
 0x2e9   : > { %13002 = vmatpush3.bf16.msra.mxu1 %v14201_v5 }
 0x2ef   : > { %12898 = vmatmul.mubr.msk.bf16.vlgmr.msra.gmra.mrb[0].mxu0 %vm291_vm0, %v18539_v4  ;;  %v5450_v4 = vsel %vm1570_vm2, %v5445_v41, %v5449_v48 }
 0x2f0   : > { %12946 = vmatpush3.bf16.msra.mxu0 %v15676_v37  ;;  %12901 = vmatprep.mubr.msk.bf16.mxu0 %vm291_vm0, %v11557_v33  ;;  %v11575_v37 = vcombine.low %v18541_v58, %v18540_v2  ;;  %v14183_v33 = vld [vmem:[%s14537_s26 + $0x54] sm:$0xff]  }
 0x2f1   : > { %12947 = vmatprep.subr.bf16.mxu0 %v14157_v13 }
 0x2f4   : > { %12948 = vmatpush3.bf16.msra.mxu0 %v14157_v13  ;;  %v5463_v13 = vshll.u32 %v14182_v1, 16 }
 0x2f5   : > { %12949 = vmatprep.subr.bf16.mxu0 %v14164_v40 }
 0x2f7   : > { %12902 = vmatmul.mubr.msk.bf16.gmra.mrb[4].mxu0 %vm291_vm0, %v11558_v45  ;;  %v5458_v45 = vsel %vm1570_vm2, %v5453_v23, %v5457_v60 }
 0x2f8   : > { %12905 = vmatprep.mubr.msk.bf16.mxu0 %vm291_vm0, %v11559_v0  ;;  %12950 = vmatpush3.bf16.msra.mxu0 %v14164_v40  ;;  %v5459_v40 = vshrl.u32 %v14181_v18, 16  ;;  %v5467_v0 = vshrl.u32 %v14182_v1, 16  ;;  %v14193_v1 = vld [vmem:[%s14537_s26 + $0xa4] sm:$0xff]  }
 0x2f9   : > { %12951 = vmatprep.subr.bf16.mxu0 %v14171_v8 }
 0x2fc   : > { %12952 = vmatpush3.bf16.msra.mxu0 %v14171_v8  ;;  %v5471_v8 = vshll.u32 %v14183_v33, 16 }
 0x2ff   : > { %12906 = vmatmul.mubr.msk.bf16.gmra.mrb[8].mxu0 %vm291_vm0, %v11560_v35  ;;  %v5465_v35 = vrot.slane %v5463_v13, 1 }
 0x300   : > { %12909 = vmatprep.mubr.msk.bf16.mxu0 %vm291_vm0, %v11561_v17  ;;  %v14184_v17 = vld [vmem:[%s14537_s26 + $0x5c] sm:$0xff]  }
 0x307   : > { %12910 = vmatmul.mubr.msk.bf16.gmra.mrb[12].mxu0 %vm291_vm0, %v11562_v22  ;;  %v5461_v22 = vor.u32 %v5459_v40, %v5457_v60  ;;  %v5539_v60 = vshrl.u32 %v14191_v15, 16 }
 0x308   : > { %12913 = vmatprep.mubr.msk.bf16.mxu0 %vm291_vm0, %v11563_v21  ;;  %v5469_v21 = vor.u32 %v5467_v0, %v5465_v35 }
 0x30f   : > { %12914 = vmatmul.mubr.msk.bf16.gmra.mrb[16].mxu0 %vm291_vm0, %v11564_v6  ;;  %v5473_v6 = vrot.slane %v5471_v8, 1 }
 0x310   : > { %12917 = vmatprep.mubr.msk.bf16.mxu0 %vm291_vm0, %v11565_v29  ;;  %v14185_v29 = vld [vmem:[%s14537_s26 + $0x64] sm:$0xff]  }
 0x311   : > { %v5491_v27 = vshrl.u32 %v14185_v29, 16 }
 0x317   : > { %12918 = vmatmul.mubr.msk.bf16.gmra.mrb[20].mxu0 %vm291_vm0, %v11566_v25  ;;  %v5479_v25 = vshll.u32 %v14184_v17, 16 }
 0x318   : > { %12921 = vmatprep.mubr.msk.bf16.mxu0 %vm291_vm0, %v11567_v38  ;;  %v5466_v38 = vsel %vm1570_vm2, %v5461_v22, %v5465_v35 }
 0x31f   : > { %12922 = vmatmul.mubr.msk.bf16.gmra.mrb[24].mxu0 %vm291_vm0, %v11568_v46  ;;  %v5475_v46 = vshrl.u32 %v14183_v33, 16 }
 0x320   : > { %12925 = vmatprep.mubr.msk.bf16.mxu0 %vm291_vm0, %v11569_v24  ;;  %v5474_v24 = vsel %vm1570_vm2, %v5469_v21, %v5473_v6 }
 0x327   : > { %12926 = vmatmul.mubr.msk.bf16.gmra.mrb[28].mxu0 %vm291_vm0, %v11570_v12  ;;  %v5483_v12 = vshrl.u32 %v14184_v17, 16  ;;  %v14195_v17 = vld [vmem:[%s14537_s26 + $0xb4] sm:$0xff]  }
 0x328   : > { %12929 = vmatprep.mubr.msk.bf16.mxu0 %vm291_vm0, %v11571_v51  ;;  %v5487_v51 = vshll.u32 %v14185_v29, 16 }
 0x32a   : > { %v5489_v58 = vrot.slane %v5487_v51, 1 }
 0x32c   : > { %v5493_v31 = vor.u32 %v5491_v27, %v5489_v58 }
 0x32f   : > { %12930 = vmatmul.mubr.msk.bf16.gmra.mrb[32].mxu0 %vm291_vm0, %v11572_v39  ;;  %v5481_v39 = vrot.slane %v5479_v25, 1 }
 0x330   : > { %12933 = vmatprep.mubr.msk.bf16.mxu0 %vm291_vm0, %v11573_v43  ;;  %v14186_v43 = vld [vmem:[%s14537_s26 + $0x6c] sm:$0xff]  }
 0x331   : > { %v5485_v2 = vor.u32 %v5483_v12, %v5481_v39  ;;  %v5495_v61 = vshll.u32 %v14186_v43, 16 }
 0x333   : > { %v5490_v16 = vsel %vm1570_vm2, %v5485_v2, %v5489_v58  ;;  %v5497_v52 = vrot.slane %v5495_v61, 1  ;;  %v5571_v58 = vshrl.u32 %v14195_v17, 16 }
 0x335   : > { %v5498_v32 = vsel %vm1570_vm2, %v5493_v31, %v5497_v52 }
 0x337   : > { %12934 = vmatmul.mubr.msk.bf16.gmra.mrb[36].mxu0 %vm291_vm0, %v11574_v20  ;;  %v5477_v20 = vor.u32 %v5475_v46, %v5473_v6  ;;  %v5555_v6 = vshrl.u32 %v14193_v1, 16 }
 0x338   : > { %12937 = vmatprep.mubr.msk.bf16.mxu0 %vm291_vm0, %v11575_v37  ;;  %v14187_v37 = vld [vmem:[%s14537_s26 + $0x74] sm:$0xff]  }
 0x339   : > { %v5482_v7 = vsel %vm1570_vm2, %v5477_v20, %v5481_v39  ;;  %v5503_v36 = vshll.u32 %v14187_v37, 16  ;;  %v5507_v49 = vshrl.u32 %v14187_v37, 16 }
 0x33b   : > { %v5505_v62 = vrot.slane %v5503_v36, 1 }
 0x33d   : > { %v5509_v59 = vor.u32 %v5507_v49, %v5505_v62 }
 0x33f   : > { %12938 = vmatmul.mubr.msk.bf16.gmra.mrb[40].mxu0 %vm291_vm0, %v11576_v54  ;;  %v5499_v54 = vshrl.u32 %v14186_v43, 16  ;;  %v14197_v43 = vld [vmem:[%s14537_s26 + $0xc4] sm:$0xff]  }
 0x340   : > { %12941 = vmatprep.mubr.msk.bf16.mxu0 %vm291_vm0, %v11577_v50  ;;  %v14188_v50 = vld [vmem:[%s14537_s26 + $0x7c] sm:$0xff]  }
 0x341   : > { %v5501_v28 = vor.u32 %v5499_v54, %v5497_v52  ;;  %v5511_v10 = vshll.u32 %v14188_v50, 16 }
 0x343   : > { %v5506_v57 = vsel %vm1570_vm2, %v5501_v28, %v5505_v62  ;;  %v5513_v30 = vrot.slane %v5511_v10, 1  ;;  %v5587_v62 = vshrl.u32 %v14197_v43, 16 }
 0x345   : > { %v5514_v9 = vsel %vm1570_vm2, %v5509_v59, %v5513_v30 }
 0x347   : > { %12942 = vmatmul.mubr.msk.bf16.gmra.mrb[44].mxu0 %vm291_vm0, %v11578_v63  ;;  %v5515_v63 = vshrl.u32 %v14188_v50, 16  ;;  %v14199_v50 = vld [vmem:[%s14537_s26 + $0xd4] sm:$0xff]  }
 0x348   : > { %12953 = vmatprep.mubr.msk.bf16.mxu0 %vm291_vm0, %v5426_v47  ;;  %v14190_v47 = vld [vmem:[%s14537_s26 + $0x8c] sm:$0xff]   ;;  %v5603_v59 = vshrl.u32 %v14199_v50, 16 }
 0x349   : > { %v5517_v26 = vor.u32 %v5515_v63, %v5513_v30  ;;  %v5527_v55 = vshll.u32 %v14190_v47, 16  ;;  %v5531_v56 = vshrl.u32 %v14190_v47, 16  ;;  %v14200_v63 = vld [vmem:[%s14537_s26 + $0xdc] ss:$0 sps:$4 sm:$0x11]  }
 0x34b   : > { %v5522_v18 = vsel %vm1570_vm2, %v5517_v26, %v5521_v14  ;;  %v5529_v44 = vrot.slane %v5527_v55, 1  ;;  %v5607_v26 = vshll.u32 %v14200_v63, 16 }
 0x34d   : > { %v5533_v42 = vor.u32 %v5531_v56, %v5529_v44  ;;  %v5530_v23 = vsel %vm1570_vm2, %v5525_v3, %v5529_v44  ;;  %v5609_v55 = vrot.slane %v5607_v26, 1  ;;  %v14202_v56 = vld [vmem:[%s18424_s4 + $0x28] sm:$0xff]  }
 0x34e   : > { %13003 = vmatprep.subr.bf16.mxu1 %v14202_v56 }
 0x34f   : > { %12954 = vmatmul.mubr.msk.bf16.vlgmr.msra.gmra.mrb[0].mxu0 %vm291_vm0, %v5434_v34  ;;  %v5535_v34 = vshll.u32 %v14191_v15, 16  ;;  %13004 = vmatpush3.bf16.msra.mxu1 %v14202_v56 }
 0x350   : > { %12957 = vmatprep.mubr.msk.bf16.mxu0 %vm291_vm0, %v5442_v19  ;;  %v14192_v19 = vld [vmem:[%s14537_s26 + $0x9c] sm:$0xff]  }
 0x351   : > { %v5537_v48 = vrot.slane %v5535_v34, 1  ;;  %v5543_v41 = vshll.u32 %v14192_v19, 16  ;;  %v5547_v13 = vshrl.u32 %v14192_v19, 16  ;;  %v14203_v34 = vld [vmem:[%s18424_s4 + $0x30] sm:$0xff]  }
 0x352   : > { %13005 = vmatprep.subr.bf16.mxu1 %v14203_v34 }
 0x353   : > { %v5538_v33 = vsel %vm1570_vm2, %v5533_v42, %v5537_v48  ;;  %v5545_v40 = vrot.slane %v5543_v41, 1  ;;  %v5541_v0 = vor.u32 %v5539_v60, %v5537_v48  ;;  %13006 = vmatpush3.bf16.msra.mxu1 %v14203_v34  ;;  %v14204_v41 = vld [vmem:[%s18424_s4 + $0x38] sm:$0xff]  }
 0x354   : > { %13007 = vmatprep.subr.bf16.mxu1 %v14204_v41 }
 0x355   : > { %v5549_v8 = vor.u32 %v5547_v13, %v5545_v40  ;;  %v5546_v21 = vsel %vm1570_vm2, %v5541_v0, %v5545_v40  ;;  %v16016_v0 = vld [vmem:[%s18424_s4] sm:$0xff]  }
 0x357   : > { %12958 = vmatmul.mubr.msk.bf16.gmra.mrb[4].mxu0 %vm291_vm0, %v5450_v4  ;;  %v5551_v4 = vshll.u32 %v14193_v1, 16  ;;  %13008 = vmatpush3.bf16.msra.mxu1 %v14204_v41 }
 0x358   : > { %12961 = vmatprep.mubr.msk.bf16.mxu0 %vm291_vm0, %v5458_v45  ;;  %v14194_v45 = vld [vmem:[%s14537_s26 + $0xac] sm:$0xff]   ;;  %13057 = vmatprep.subr.bf16.mxu1 %v16016_v0 }
 0x359   : > { %v5553_v35 = vrot.slane %v5551_v4, 1  ;;  %v5559_v22 = vshll.u32 %v14194_v45, 16  ;;  %v5563_v25 = vshrl.u32 %v14194_v45, 16 }
 0x35b   : > { %v5554_v29 = vsel %vm1570_vm2, %v5549_v8, %v5553_v35  ;;  %v5561_v46 = vrot.slane %v5559_v22, 1  ;;  %v5557_v12 = vor.u32 %v5555_v6, %v5553_v35  ;;  %v296_v8 = vlaneseq }
 0x35d   : > { %v5565_v51 = vor.u32 %v5563_v25, %v5561_v46  ;;  %v5562_v2 = vsel %vm1570_vm2, %v5557_v12, %v5561_v46  ;;  %v16019_v35 = vshrl.u32 %v296_v8, 7 }
 0x35f   : > { %12962 = vmatmul.mubr.msk.bf16.gmra.mrb[8].mxu0 %vm291_vm0, %v5466_v38  ;;  %v5567_v38 = vshll.u32 %v14195_v17, 16  ;;  %18546 = vst [vmem:[#allocation23_spill] sm:$0xff] %v16019_v35  ;;  %v16024_v17 = vld [vmem:[%s18423_s3] ss:$0 sm:$0xff]  ;;  %v16027_v22 = vadd.s32 16, %v16019_v35  ;;  %vm300_vm4 = vcmp.ge.s32.totalorder %v16019_v35, 1 }
 0x360   : > { %12965 = vmatprep.mubr.msk.bf16.mxu0 %vm291_vm0, %v5474_v24  ;;  %v14196_v24 = vld [vmem:[%s14537_s26 + $0xbc] sm:$0xff]  }
 0x361   : > { %v5569_v39 = vrot.slane %v5567_v38, 1  ;;  %v5575_v20 = vshll.u32 %v14196_v24, 16  ;;  %v5579_v61 = vshrl.u32 %v14196_v24, 16  ;;  %vm305_vm5 = vcmp.le.s32.totalorder %v16027_v22, 16 }
 0x363   : > { %v5570_v37 = vsel %vm1570_vm2, %v5565_v51, %v5569_v39  ;;  %v5577_v27 = vrot.slane %v5575_v20, 1  ;;  %v5573_v54 = vor.u32 %v5571_v58, %v5569_v39 }
 0x365   : > { %v5581_v36 = vor.u32 %v5579_v61, %v5577_v27  ;;  %v5578_v28 = vsel %vm1570_vm2, %v5573_v54, %v5577_v27 }
 0x367   : > { %12966 = vmatmul.mubr.msk.bf16.gmra.mrb[12].mxu0 %vm291_vm0, %v5482_v7  ;;  %v5583_v7 = vshll.u32 %v14197_v43, 16 }
 0x368   : > { %12969 = vmatprep.mubr.msk.bf16.mxu0 %vm291_vm0, %v5490_v16  ;;  %v14198_v16 = vld [vmem:[%s14537_s26 + $0xcc] sm:$0xff]  }
 0x369   : > { %v5585_v52 = vrot.slane %v5583_v7, 1  ;;  %v5591_v31 = vshll.u32 %v14198_v16, 16  ;;  %v5595_v10 = vshrl.u32 %v14198_v16, 16 }
 0x36b   : > { %v5586_v53 = vsel %vm1570_vm2, %v5581_v36, %v5585_v52  ;;  %v5593_v49 = vrot.slane %v5591_v31, 1 }
 0x36d   : > { %v5597_v11 = vor.u32 %v5595_v10, %v5593_v49 }
 0x36f   : > { %12970 = vmatmul.mubr.msk.bf16.gmra.mrb[16].mxu0 %vm291_vm0, %v5498_v32  ;;  %v5599_v32 = vshll.u32 %v14199_v50, 16 }
 0x370   : > { %12973 = vmatprep.mubr.msk.bf16.mxu0 %vm291_vm0, %v5506_v57  ;;  %v5589_v57 = vor.u32 %v5587_v62, %v5585_v52 }
 0x371   : > { %v5601_v30 = vrot.slane %v5599_v32, 1 }
 0x372   : > { %v5594_v47 = vsel %vm1570_vm2, %v5589_v57, %v5593_v49 }
 0x373   : > { %v5602_v14 = vsel %vm1570_vm2, %v5597_v11, %v5601_v30  ;;  %v5605_v15 = vor.u32 %v5603_v59, %v5601_v30 }
 0x377   : > { %12974 = vmatmul.mubr.msk.bf16.gmra.mrb[20].mxu0 %vm291_vm0, %v5514_v9  ;;  %v5610_v9 = vsel %vm1570_vm2, %v5605_v15, %v5609_v55 }
 0x378   : > { %12977 = vmatprep.mubr.msk.bf16.mxu0 %vm291_vm0, %v5522_v18  ;;  %v14369_v18 = vmov 0  }
 0x379   : > { %292 = vst.msk [vmem:[#allocation2] sm:$0xff] %vm291_vm0, %v14369_v18  ;;  %293 = vst.msk [vmem:[#allocation2 + $0x8] sm:$0xff] %vm291_vm0, %v14369_v18 }
 0x37a   : > { %294 = vst.msk [vmem:[#allocation2 + $0xd0] sm:$0xff] %vm291_vm0, %v14369_v18  ;;  %295 = vst.msk [vmem:[#allocation2 + $0xd8] sm:$0xff] %vm291_vm0, %v14369_v18 }
 0x37f   : > { %12978 = vmatmul.mubr.msk.bf16.gmra.mrb[24].mxu0 %vm291_vm0, %v5530_v23 }
 0x380   : > { %12981 = vmatprep.mubr.msk.bf16.mxu0 %vm291_vm0, %v5538_v33  ;;  %v15997_v44 = vld [vmem:[#allocation2] sm:$0xf0]  ;;  %v15999_v19 = vld [vmem:[#allocation2 + $0x8] sm:$0xff] }
 0x381   : > { %v6230_v3 = vshrl.u32 %v15997_v44, 16  ;;  %v6233_v42 = vshll.u32 %v15997_v44, 16  ;;  %v6238_v48 = vshrl.u32 %v15999_v19, 16  ;;  %v6241_v1 = vshll.u32 %v15999_v19, 16 }
 0x382   : > { %v6785_v30 = vrot.slane %v15999_v19, 4  ;;  %v7152_v55 = vrot.slane %v15999_v19, 5 }
 0x383   : > { %v6232_v23 = vrot.slane %v6230_v3, 4  ;;  %v6235_v60 = vrot.slane %v6233_v42, 5  ;;  %v6240_v33 = vrot.slane %v6238_v48, 4  ;;  %v6243_v13 = vrot.slane %v6241_v1, 5 }
 0x385   : > { %v6236_v4 = vor.u32 %v6235_v60, %v6232_v23  ;;  %v16008_v40 = vor.u32 %v6243_v13, %v6240_v33 }
 0x387   : > { %12982 = vmatmul.mubr.msk.bf16.gmra.mrb[28].mxu0 %vm291_vm0, %v5546_v21  ;;  %v6245_v45 = vsel %vm6228_vm3, %v6236_v4, %v16008_v40 }
 0x388   : > { %12985 = vmatprep.mubr.msk.bf16.mxu0 %vm291_vm0, %v5554_v29  ;;  %13009 = vmatprep.mubr.msk.bf16.mxu1 %vm291_vm0, %v6245_v45 }
 0x38f   : > { %12986 = vmatmul.mubr.msk.bf16.gmra.mrb[32].mxu0 %vm291_vm0, %v5562_v2 }
 0x390   : > { %12989 = vmatprep.mubr.msk.bf16.mxu0 %vm291_vm0, %v5570_v37 }
 0x397   : > { %12990 = vmatmul.mubr.msk.bf16.gmra.mrb[36].mxu0 %vm291_vm0, %v5578_v28 }
 0x398   : > { %12993 = vmatprep.mubr.msk.bf16.mxu0 %vm291_vm0, %v5586_v53 }
 0x39f   : > { %12994 = vmatmul.mubr.msk.bf16.gmra.mrb[40].mxu0 %vm291_vm0, %v5594_v47 }
 0x3a0   : > { %12997 = vmatprep.mubr.msk.bf16.mxu0 %vm291_vm0, %v5602_v14 }
 0x3a7   : > { %12998 = vmatmul.mubr.msk.bf16.gmra.mrb[44].mxu0 %vm291_vm0, %v5610_v9 }
 0x422   : > { %v12955_v21 = vpop.f32.mrb[0].mxu0 }
 0x423   : > { %v5989_v6 = vadd.f32 %v12955_v21, %v16024_v17  ;;  %v5741_v29 = vpop.f32.mrb[1].mxu0 }
 0x424   : > { %v5987_v25 = vadd.f32 %v16024_v17, %v5741_v29  ;;  %v12956_v38 = vpop.f32.mrb[2].mxu0 }
 0x425   : > { %v6037_v46 = vmax.f32 %v5989_v6, 0.0  ;;  %v5990_v24 = vadd.f32 %v12956_v38, %v16024_v17  ;;  %v5744_v12 = vpop.f32.mrb[3].mxu0 }
 0x426   : > { %v6035_v51 = vmax.f32 %v5987_v25, 0.0  ;;  %v5988_v39 = vadd.f32 %v16024_v17, %v5744_v12  ;;  %v14206_v12 = vld [vmem:[%s18424_s4 + $0x8] sm:$0xff]  }
 0x427   : > { %v6038_v43 = vmax.f32 %v5990_v24, 0.0  ;;  %v6091_v58 = vsel %vm305_vm5, %v6037_v46, 0.0 }
 0x428   : > { %v6089_v20 = vsel %vm300_vm4, %v6035_v51, 0.0  ;;  %v6036_v2 = vmax.f32 %v5988_v39, 0.0 }
 0x429   : > { %v6092_v37 = vsel %vm300_vm4, %v6038_v43, 0.0 }
 0x42a   : > { %v6138_v61 = vpack.c.bf16 %v6092_v37, %v6091_v58  ;;  %v6137_v7 = vpack.c.bf16 %v6036_v2, %v6089_v20  ;;  %v12959_v27 = vpop.f32.mrb[4].mxu0 }
 0x42b   : > { %v5993_v16 = vadd.f32 %v12959_v27, %v16024_v17  ;;  %v5757_v54 = vpop.f32.mrb[5].mxu0 }
 0x42c   : > { %6162 = vst.msk [vmem:[#allocation2 + $0x18] sm:$0xff] %vm291_vm0, %v6138_v61  ;;  %6161 = vst.msk [vmem:[#allocation2 + $0x10] sm:$0xff] %vm291_vm0, %v6137_v7  ;;  %v12960_v36 = vpop.f32.mrb[6].mxu0  ;;  %v5991_v50 = vadd.f32 %v16024_v17, %v5757_v54 }
 0x42d   : > { %v6041_v52 = vmax.f32 %v5993_v16, 0.0  ;;  %v5994_v31 = vadd.f32 %v12960_v36, %v16024_v17  ;;  %v5760_v28 = vpop.f32.mrb[7].mxu0 }
 0x42e   : > { %v5992_v62 = vadd.f32 %v16024_v17, %v5760_v28  ;;  %v6039_v49 = vmax.f32 %v5991_v50, 0.0 }
 0x42f   : > { %v6095_v53 = vsel %vm300_vm4, %v6041_v52, 0.0  ;;  %v6042_v10 = vmax.f32 %v5994_v31, 0.0 }
 0x430   : > { %v6040_v32 = vmax.f32 %v5992_v62, 0.0 }
 0x431   : > { %v6140_v57 = vpack.c.bf16 %v6042_v10, %v6095_v53 }
 0x432   : > { %v6094_v63 = vsel %vm305_vm5, %v6040_v32, 0.0  ;;  %v12963_v11 = vpop.f32.mrb[8].mxu0 }
 0x433   : > { %6164 = vst.msk [vmem:[#allocation2 + $0x28] sm:$0xff] %vm291_vm0, %v6140_v57  ;;  %v6139_v47 = vpack.c.bf16 %v6094_v63, %v6039_v49  ;;  %v5997_v59 = vadd.f32 %v12963_v11, %v16024_v17  ;;  %v5773_v26 = vpop.f32.mrb[9].mxu0  ;;  %v16054_v14 = vld [vmem:[#allocation2 + $0x10] sm:$0xff]  ;;  %v16056_v15 = vld [vmem:[#allocation2 + $0x18] sm:$0xff] }
 0x434   : > { %v5995_v9 = vadd.f32 %v16024_v17, %v5773_v26  ;;  %v12964_v5 = vpop.f32.mrb[10].mxu0  ;;  %v6247_v18 = vshrl.u32 %v16054_v14, 16  ;;  %v6250_v56 = vshll.u32 %v16054_v14, 16  ;;  %v6256_v34 = vshrl.u32 %v16056_v15, 16  ;;  %v14207_v57 = vld [vmem:[%s18424_s4 + $0x10] sm:$0xff]  }
 0x435   : > { %6163 = vst.msk [vmem:[#allocation2 + $0x20] sm:$0xff] %vm291_vm0, %v6139_v47  ;;  %v6045_v3 = vmax.f32 %v5997_v59, 0.0  ;;  %v5998_v42 = vadd.f32 %v12964_v5, %v16024_v17  ;;  %v5776_v48 = vpop.f32.mrb[11].mxu0  ;;  %v6259_v1 = vshll.u32 %v16056_v15, 16  ;;  %v6787_v41 = vrot.slane %v16054_v14, 4 }
 0x436   : > { %v6043_v23 = vmax.f32 %v5995_v9, 0.0  ;;  %v5996_v60 = vadd.f32 %v16024_v17, %v5776_v48  ;;  %v6249_v33 = vrot.slane %v6247_v18, 4  ;;  %v6252_v13 = vrot.slane %v6250_v56, 5 }
 0x437   : > { %v6046_v4 = vmax.f32 %v5998_v42, 0.0  ;;  %v6258_v45 = vrot.slane %v6256_v34, 4  ;;  %v6261_v8 = vrot.slane %v6259_v1, 5  ;;  %v16071_v21 = vsel %vm6783_vm6, %v6785_v30, %v6787_v41 }
 0x438   : > { %v6097_v6 = vsel %vm305_vm5, %v6043_v23, 0.0  ;;  %v6044_v29 = vmax.f32 %v5996_v60, 0.0  ;;  %v6253_v25 = vor.u32 %v6252_v13, %v6249_v33  ;;  %v6789_v38 = vrot.slane %v16056_v15, 4  ;;  %v14208_v33 = vld [vmem:[%s18424_s4 + $0x18] sm:$0xff]  }
 0x439   : > { %v6100_v46 = vsel %vm305_vm5, %v6046_v4, 0.0  ;;  %v6262_v24 = vor.u32 %v6261_v8, %v6258_v45  ;;  %v7154_v51 = vrot.slane %v16054_v14, 5  ;;  %v7156_v39 = vrot.slane %v16056_v15, 5 }
 0x43a   : > { %v6142_v43 = vpack.c.bf16 %v6100_v46, %v6045_v3  ;;  %v6098_v20 = vsel %vm300_vm4, %v6044_v29, 0.0  ;;  %v12967_v2 = vpop.f32.mrb[12].mxu0  ;;  %v6254_v58 = vsel %vm6228_vm3, %v16008_v40, %v6253_v25  ;;  %v16087_v37 = vld [vmem:[#allocation2 + $0x28] sm:$0xff]  ;;  %v16090_v61 = vsel %vm6783_vm6, %v6787_v41, %v6789_v38 }
 0x43b   : > { %v6141_v7 = vpack.c.bf16 %v6098_v20, %v6097_v6  ;;  %v6001_v27 = vadd.f32 %v12967_v2, %v16024_v17  ;;  %v5789_v16 = vpop.f32.mrb[13].mxu0  ;;  %13010 = vmatmul.mubr.msk.bf16.vlgmr.msra.gmra.mrb[0].mxu1 %vm291_vm0, %v6254_v58  ;;  %v6263_v54 = vsel %vm6228_vm3, %v6253_v25, %v6262_v24  ;;  %v6274_v36 = vshrl.u32 %v16087_v37, 16 }
 0x43c   : > { %6166 = vst.msk [vmem:[#allocation2 + $0x38] sm:$0xff] %vm291_vm0, %v6142_v43  ;;  %v5999_v52 = vadd.f32 %v16024_v17, %v5789_v16  ;;  %v12968_v40 = vpop.f32.mrb[14].mxu0  ;;  %13013 = vmatprep.mubr.msk.bf16.mxu1 %vm291_vm0, %v6263_v54  ;;  %13058 = vmatpush3.bf16.msra.mxu1 %v16016_v0  ;;  %v16100_v50 = vld [vmem:[#allocation2 + $0x20] sm:$0xff]  ;;  %v6277_v31 = vshll.u32 %v16087_v37, 16  ;;  %v6793_v28 = vrot.slane %v16087_v37, 4  ;;  %v16107_v62 = vsel %vm7150_vm7, %v7152_v55, %v7154_v51 }
 0x43d   : > { %6165 = vst.msk [vmem:[#allocation2 + $0x30] sm:$0xff] %vm291_vm0, %v6141_v7  ;;  %v6049_v53 = vmax.f32 %v6001_v27, 0.0  ;;  %v6002_v10 = vadd.f32 %v12968_v40, %v16024_v17  ;;  %v5792_v32 = vpop.f32.mrb[15].mxu0  ;;  %v6265_v49 = vshrl.u32 %v16100_v50, 16  ;;  %v6268_v0 = vshll.u32 %v16100_v50, 16  ;;  %13059 = vmatprep.subr.bf16.mxu1 %v14206_v12 }
 0x43e   : > { %v6047_v63 = vmax.f32 %v5999_v52, 0.0  ;;  %v6000_v11 = vadd.f32 %v16024_v17, %v5792_v32  ;;  %v6276_v47 = vrot.slane %v6274_v36, 4  ;;  %v6279_v59 = vrot.slane %v6277_v31, 5  ;;  %v16166_v36 = vld [vmem:[%s18424_s4 + $0x40] sm:$0xff]  }
 0x43f   : > { %v6103_v26 = vsel %vm305_vm5, %v6049_v53, 0.0  ;;  %v6050_v14 = vmax.f32 %v6002_v10, 0.0  ;;  %v6267_v15 = vrot.slane %v6265_v49, 4  ;;  %v6270_v9 = vrot.slane %v6268_v0, 5 }
 0x440   : > { %v6101_v5 = vsel %vm300_vm4, %v6047_v63, 0.0  ;;  %v6048_v18 = vmax.f32 %v6000_v11, 0.0  ;;  %v16121_v56 = vor.u32 %v6279_v59, %v6276_v47  ;;  %13060 = vmatpush3.bf16.msra.mxu1 %v14206_v12  ;;  %v6791_v34 = vrot.slane %v16100_v50, 4 }
 0x441   : > { %v6104_v3 = vsel %vm300_vm4, %v6050_v14, 0.0  ;;  %v6271_v42 = vor.u32 %v6270_v9, %v6267_v15  ;;  %13061 = vmatprep.subr.bf16.mxu1 %v14207_v57  ;;  %v16127_v48 = vsel %vm7150_vm7, %v7154_v51, %v7156_v39  ;;  %v7158_v1 = vrot.slane %v16100_v50, 5 }
 0x442   : > { %v6144_v41 = vpack.c.bf16 %v6104_v3, %v6103_v26  ;;  %v6143_v23 = vpack.c.bf16 %v6048_v18, %v6101_v5  ;;  %v12971_v60 = vpop.f32.mrb[16].mxu0  ;;  %v16134_v13 = vsel %vm6783_vm6, %v6789_v38, %v6791_v34  ;;  %v16139_v4 = vsel %vm6783_vm6, %v6791_v34, %v6793_v28 }
 0x443   : > { %v6005_v45 = vadd.f32 %v12971_v60, %v16024_v17  ;;  %v5805_v8 = vpop.f32.mrb[17].mxu0  ;;  %v6272_v6 = vsel %vm6228_vm3, %v6262_v24, %v6271_v42  ;;  %v6281_v29 = vsel %vm6228_vm3, %v6271_v42, %v16121_v56  ;;  %v16145_v25 = vld [vmem:[#allocation2 + $0x38] sm:$0xff]  ;;  %v16148_v46 = vsel %vm7150_vm7, %v7156_v39, %v7158_v1 }
 0x444   : > { %6168 = vst.msk [vmem:[#allocation2 + $0x48] sm:$0xff] %vm291_vm0, %v6144_v41  ;;  %6167 = vst.msk [vmem:[#allocation2 + $0x40] sm:$0xff] %vm291_vm0, %v6143_v23  ;;  %v6003_v38 = vadd.f32 %v16024_v17, %v5805_v8  ;;  %v12972_v12 = vpop.f32.mrb[18].mxu0  ;;  %13014 = vmatmul.mubr.msk.bf16.gmra.mrb[4].mxu1 %vm291_vm0, %v6272_v6  ;;  %v16154_v51 = vld [vmem:[#allocation2 + $0x30] sm:$0xff]  ;;  %v6292_v24 = vshrl.u32 %v16145_v25, 16  ;;  %v6295_v43 = vshll.u32 %v16145_v25, 16 }
 0x445   : > { %v6053_v20 = vmax.f32 %v6005_v45, 0.0  ;;  %v6006_v2 = vadd.f32 %v12972_v12, %v16024_v17  ;;  %v5808_v39 = vpop.f32.mrb[19].mxu0  ;;  %13017 = vmatprep.mubr.msk.bf16.mxu1 %vm291_vm0, %v6281_v29  ;;  %v6283_v58 = vshrl.u32 %v16154_v51, 16  ;;  %v6286_v7 = vshll.u32 %v16154_v51, 16  ;;  %13062 = vmatpush3.bf16.msra.mxu1 %v14207_v57 }
 0x446   : > { %v6004_v27 = vadd.f32 %v16024_v17, %v5808_v39  ;;  %v6294_v16 = vrot.slane %v6292_v24, 4  ;;  %v6297_v54 = vrot.slane %v6295_v43, 5  ;;  %13063 = vmatprep.subr.bf16.mxu1 %v14208_v33  ;;  %v6797_v52 = vrot.slane %v16145_v25, 4 }
 0x447   : > { %v6107_v40 = vsel %vm300_vm4, %v6053_v20, 0.0  ;;  %v6054_v50 = vmax.f32 %v6006_v2, 0.0  ;;  %v6285_v31 = vrot.slane %v6283_v58, 4  ;;  %v6288_v53 = vrot.slane %v6286_v7, 5 }
 0x448   : > { %v6052_v10 = vmax.f32 %v6004_v27, 0.0  ;;  %v6298_v32 = vor.u32 %v6297_v54, %v6294_v16  ;;  %v6795_v49 = vrot.slane %v16154_v51, 4  ;;  %v7160_v0 = vrot.slane %v16087_v37, 5 }
 0x449   : > { %v6051_v57 = vmax.f32 %v6003_v38, 0.0  ;;  %v6146_v63 = vpack.c.bf16 %v6054_v50, %v6107_v40  ;;  %v6289_v11 = vor.u32 %v6288_v53, %v6285_v31  ;;  %13064 = vmatpush3.bf16.msra.mxu1 %v14208_v33  ;;  %v7162_v8 = vrot.slane %v16154_v51, 5 }
 0x44a   : > { %v6106_v47 = vsel %vm305_vm5, %v6052_v10, 0.0  ;;  %v12975_v59 = vpop.f32.mrb[20].mxu0  ;;  %13113 = vmatprep.subr.bf16.mxu1 %v16166_v36  ;;  %v16179_v26 = vsel %vm6783_vm6, %v6793_v28, %v6795_v49  ;;  %v16184_v14 = vsel %vm6783_vm6, %v6795_v49, %v6797_v52  ;;  %v16187_v15 = vsel %vm7150_vm7, %v7158_v1, %v7160_v0 }
 0x44b   : > { %6170 = vst.msk [vmem:[#allocation2 + $0x58] sm:$0xff] %vm291_vm0, %v6146_v63  ;;  %v6145_v9 = vpack.c.bf16 %v6106_v47, %v6051_v57  ;;  %v6009_v5 = vadd.f32 %v12975_v59, %v16024_v17  ;;  %v5821_v18 = vpop.f32.mrb[21].mxu0  ;;  %v6290_v37 = vsel %vm6228_vm3, %v16121_v56, %v6289_v11  ;;  %v6299_v28 = vsel %vm6228_vm3, %v6289_v11, %v6298_v32  ;;  %v16194_v34 = vld [vmem:[#allocation2 + $0x40] sm:$0xff]  ;;  %v16196_v3 = vld [vmem:[#allocation2 + $0x48] sm:$0xff] }
 0x44c   : > { %v6007_v42 = vadd.f32 %v16024_v17, %v5821_v18  ;;  %v12976_v41 = vpop.f32.mrb[22].mxu0  ;;  %13018 = vmatmul.mubr.msk.bf16.gmra.mrb[8].mxu1 %vm291_vm0, %v6290_v37  ;;  %v6301_v1 = vshrl.u32 %v16194_v34, 16  ;;  %v6304_v23 = vshll.u32 %v16194_v34, 16  ;;  %v6310_v60 = vshrl.u32 %v16196_v3, 16 }
 0x44d   : > { %6169 = vst.msk [vmem:[#allocation2 + $0x50] sm:$0xff] %vm291_vm0, %v6145_v9  ;;  %v6010_v56 = vadd.f32 %v12976_v41, %v16024_v17  ;;  %v5824_v33 = vpop.f32.mrb[23].mxu0  ;;  %13021 = vmatprep.mubr.msk.bf16.mxu1 %vm291_vm0, %v6299_v28  ;;  %v6313_v45 = vshll.u32 %v16196_v3, 16  ;;  %v7164_v6 = vrot.slane %v16145_v25, 5  ;;  %v6057_v39 = vmax.f32 %v6009_v5, 0.0 }
 0x44e   : > { %v6055_v29 = vmax.f32 %v6007_v42, 0.0  ;;  %v6008_v38 = vadd.f32 %v16024_v17, %v5824_v33  ;;  %v6303_v12 = vrot.slane %v6301_v1, 4  ;;  %v6306_v24 = vrot.slane %v6304_v23, 5 }
 0x44f   : > { %v6058_v43 = vmax.f32 %v6010_v56, 0.0  ;;  %v6312_v20 = vrot.slane %v6310_v60, 4  ;;  %v6315_v2 = vrot.slane %v6313_v45, 5  ;;  %v16213_v54 = vsel %vm7150_vm7, %v7160_v0, %v7162_v8 }
 0x450   : > { %v6056_v58 = vmax.f32 %v6008_v38, 0.0  ;;  %v6307_v7 = vor.u32 %v6306_v24, %v6303_v12  ;;  %v16218_v51 = vsel %vm7150_vm7, %v7162_v8, %v7164_v6  ;;  %v6109_v40 = vsel %vm305_vm5, %v6055_v29, 0.0 }
 0x451   : > { %v6112_v27 = vsel %vm305_vm5, %v6058_v43, 0.0  ;;  %v6316_v16 = vor.u32 %v6315_v2, %v6312_v20 }
 0x452   : > { %v6148_v50 = vpack.c.bf16 %v6112_v27, %v6057_v39  ;;  %v6110_v31 = vsel %vm300_vm4, %v6056_v58, 0.0  ;;  %v12979_v53 = vpop.f32.mrb[24].mxu0  ;;  %v6308_v10 = vsel %vm6228_vm3, %v6298_v32, %v6307_v7  ;;  %v16225_v49 = vld [vmem:[#allocation2 + $0x58] sm:$0xff] }
 0x453   : > { %v6147_v57 = vpack.c.bf16 %v6110_v31, %v6109_v40  ;;  %v6013_v0 = vadd.f32 %v12979_v53, %v16024_v17  ;;  %v5837_v63 = vpop.f32.mrb[25].mxu0  ;;  %v6328_v11 = vshrl.u32 %v16225_v49, 16  ;;  %v6317_v9 = vsel %vm6228_vm3, %v6307_v7, %v6316_v16 }
 0x454   : > { %6172 = vst.msk [vmem:[#allocation2 + $0x68] sm:$0xff] %vm291_vm0, %v6148_v50  ;;  %v6011_v47 = vadd.f32 %v16024_v17, %v5837_v63  ;;  %v12980_v59 = vpop.f32.mrb[26].mxu0  ;;  %13022 = vmatmul.mubr.msk.bf16.gmra.mrb[12].mxu1 %vm291_vm0, %v6308_v10  ;;  %v16233_v5 = vld [vmem:[#allocation2 + $0x50] sm:$0xff]  ;;  %v6331_v32 = vshll.u32 %v16225_v49, 16 }
 0x455   : > { %6171 = vst.msk [vmem:[#allocation2 + $0x60] sm:$0xff] %vm291_vm0, %v6147_v57  ;;  %v6061_v18 = vmax.f32 %v6013_v0, 0.0  ;;  %v6014_v37 = vadd.f32 %v12980_v59, %v16024_v17  ;;  %v5840_v28 = vpop.f32.mrb[27].mxu0  ;;  %13025 = vmatprep.mubr.msk.bf16.mxu1 %vm291_vm0, %v6317_v9  ;;  %v6319_v42 = vshrl.u32 %v16233_v5, 16  ;;  %v6322_v41 = vshll.u32 %v16233_v5, 16 }
 0x456   : > { %v6059_v1 = vmax.f32 %v6011_v47, 0.0  ;;  %v6012_v23 = vadd.f32 %v16024_v17, %v5840_v28  ;;  %v6330_v60 = vrot.slane %v6328_v11, 4  ;;  %v6333_v56 = vrot.slane %v6331_v32, 5 }
 0x457   : > { %v6062_v33 = vmax.f32 %v6014_v37, 0.0  ;;  %v6321_v45 = vrot.slane %v6319_v42, 4  ;;  %v6324_v8 = vrot.slane %v6322_v41, 5  ;;  %v6115_v12 = vsel %vm305_vm5, %v6061_v18, 0.0 }
 0x458   : > { %v6113_v29 = vsel %vm300_vm4, %v6059_v1, 0.0  ;;  %v6060_v38 = vmax.f32 %v6012_v23, 0.0  ;;  %v6334_v20 = vor.u32 %v6333_v56, %v6330_v60 }
 0x459   : > { %v6116_v24 = vsel %vm300_vm4, %v6062_v33, 0.0  ;;  %v6325_v43 = vor.u32 %v6324_v8, %v6321_v45 }
 0x45a   : > { %v6150_v2 = vpack.c.bf16 %v6116_v24, %v6115_v12  ;;  %v6149_v39 = vpack.c.bf16 %v6060_v38, %v6113_v29  ;;  %v12983_v58 = vpop.f32.mrb[28].mxu0 }
 0x45b   : > { %v6017_v7 = vadd.f32 %v12983_v58, %v16024_v17  ;;  %v5853_v27 = vpop.f32.mrb[29].mxu0  ;;  %v6326_v40 = vsel %vm6228_vm3, %v6316_v16, %v6325_v43  ;;  %v6335_v50 = vsel %vm6228_vm3, %v6325_v43, %v6334_v20  ;;  %v16251_v31 = vld [vmem:[#allocation2 + $0x68] sm:$0xff] }
 0x45c   : > { %6174 = vst.msk [vmem:[#allocation2 + $0x78] sm:$0xff] %vm291_vm0, %v6150_v2  ;;  %6173 = vst.msk [vmem:[#allocation2 + $0x70] sm:$0xff] %vm291_vm0, %v6149_v39  ;;  %v6015_v53 = vadd.f32 %v16024_v17, %v5853_v27  ;;  %v12984_v10 = vpop.f32.mrb[30].mxu0  ;;  %13026 = vmatmul.mubr.msk.bf16.gmra.mrb[16].mxu1 %vm291_vm0, %v6326_v40  ;;  %v16257_v57 = vld [vmem:[#allocation2 + $0x60] sm:$0xff]  ;;  %v6346_v0 = vshrl.u32 %v16251_v31, 16  ;;  %v6349_v63 = vshll.u32 %v16251_v31, 16 }
 0x45d   : > { %v6065_v16 = vmax.f32 %v6017_v7, 0.0  ;;  %v6018_v11 = vadd.f32 %v12984_v10, %v16024_v17  ;;  %v5856_v47 = vpop.f32.mrb[31].mxu0  ;;  %13029 = vmatprep.mubr.msk.bf16.mxu1 %vm291_vm0, %v6335_v50  ;;  %v6337_v59 = vshrl.u32 %v16257_v57, 16  ;;  %v6340_v9 = vshll.u32 %v16257_v57, 16 }
 0x45e   : > { %v6016_v32 = vadd.f32 %v16024_v17, %v5856_v47  ;;  %v6348_v18 = vrot.slane %v6346_v0, 4  ;;  %v6351_v37 = vrot.slane %v6349_v63, 5  ;;  %v6063_v56 = vmax.f32 %v6015_v53, 0.0 }
 0x45f   : > { %v6119_v28 = vsel %vm300_vm4, %v6065_v16, 0.0  ;;  %v6066_v42 = vmax.f32 %v6018_v11, 0.0  ;;  %v6339_v41 = vrot.slane %v6337_v59, 4  ;;  %v6342_v1 = vrot.slane %v6340_v9, 5 }
 0x460   : > { %v6064_v23 = vmax.f32 %v6016_v32, 0.0  ;;  %v6352_v60 = vor.u32 %v6351_v37, %v6348_v18 }
 0x461   : > { %v6152_v33 = vpack.c.bf16 %v6066_v42, %v6119_v28  ;;  %v6343_v45 = vor.u32 %v6342_v1, %v6339_v41 }
 0x462   : > { %v6118_v8 = vsel %vm305_vm5, %v6064_v23, 0.0  ;;  %v12987_v29 = vpop.f32.mrb[32].mxu0 }
 0x463   : > { %6176 = vst.msk [vmem:[#allocation2 + $0x88] sm:$0xff] %vm291_vm0, %v6152_v33  ;;  %v6151_v38 = vpack.c.bf16 %v6118_v8, %v6063_v56  ;;  %v6021_v12 = vadd.f32 %v12987_v29, %v16024_v17  ;;  %v5869_v24 = vpop.f32.mrb[33].mxu0  ;;  %v6344_v43 = vsel %vm6228_vm3, %v6334_v20, %v6343_v45  ;;  %v6353_v2 = vsel %vm6228_vm3, %v6343_v45, %v6352_v60  ;;  %v16274_v39 = vld [vmem:[#allocation2 + $0x70] sm:$0xff]  ;;  %v16276_v58 = vld [vmem:[#allocation2 + $0x78] sm:$0xff] }
 0x464   : > { %v6019_v7 = vadd.f32 %v16024_v17, %v5869_v24  ;;  %v12988_v27 = vpop.f32.mrb[34].mxu0  ;;  %13030 = vmatmul.mubr.msk.bf16.gmra.mrb[20].mxu1 %vm291_vm0, %v6344_v43  ;;  %v6355_v40 = vshrl.u32 %v16274_v39, 16  ;;  %v6358_v50 = vshll.u32 %v16274_v39, 16  ;;  %v6364_v53 = vshrl.u32 %v16276_v58, 16 }
 0x465   : > { %6175 = vst.msk [vmem:[#allocation2 + $0x80] sm:$0xff] %vm291_vm0, %v6151_v38  ;;  %v6022_v20 = vadd.f32 %v12988_v27, %v16024_v17  ;;  %v5872_v10 = vpop.f32.mrb[35].mxu0  ;;  %13033 = vmatprep.mubr.msk.bf16.mxu1 %vm291_vm0, %v6353_v2  ;;  %v6367_v0 = vshll.u32 %v16276_v58, 16  ;;  %v6069_v18 = vmax.f32 %v6021_v12, 0.0 }
 0x466   : > { %v6067_v63 = vmax.f32 %v6019_v7, 0.0  ;;  %v6020_v16 = vadd.f32 %v16024_v17, %v5872_v10  ;;  %v6357_v11 = vrot.slane %v6355_v40, 4  ;;  %v6360_v47 = vrot.slane %v6358_v50, 5 }
 0x467   : > { %v6070_v59 = vmax.f32 %v6022_v20, 0.0  ;;  %v6366_v9 = vrot.slane %v6364_v53, 4  ;;  %v6369_v32 = vrot.slane %v6367_v0, 5 }
 0x468   : > { %v6068_v37 = vmax.f32 %v6020_v16, 0.0  ;;  %v6361_v28 = vor.u32 %v6360_v47, %v6357_v11  ;;  %v6121_v1 = vsel %vm305_vm5, %v6067_v63, 0.0 }
 0x469   : > { %v6124_v42 = vsel %vm305_vm5, %v6070_v59, 0.0  ;;  %v6370_v41 = vor.u32 %v6369_v32, %v6366_v9 }
 0x46a   : > { %v6154_v23 = vpack.c.bf16 %v6124_v42, %v6069_v18  ;;  %v6122_v56 = vsel %vm300_vm4, %v6068_v37, 0.0  ;;  %v12991_v33 = vpop.f32.mrb[36].mxu0  ;;  %v6362_v45 = vsel %vm6228_vm3, %v6352_v60, %v6361_v28  ;;  %v16295_v8 = vld [vmem:[#allocation2 + $0x88] sm:$0xff] }
 0x46b   : > { %v6153_v29 = vpack.c.bf16 %v6122_v56, %v6121_v1  ;;  %v6025_v38 = vadd.f32 %v12991_v33, %v16024_v17  ;;  %v5885_v12 = vpop.f32.mrb[37].mxu0  ;;  %v6382_v24 = vshrl.u32 %v16295_v8, 16  ;;  %v6371_v7 = vsel %vm6228_vm3, %v6361_v28, %v6370_v41 }
 0x46c   : > { %6178 = vst.msk [vmem:[#allocation2 + $0x98] sm:$0xff] %vm291_vm0, %v6154_v23  ;;  %v6023_v43 = vadd.f32 %v16024_v17, %v5885_v12  ;;  %v12992_v2 = vpop.f32.mrb[38].mxu0  ;;  %13034 = vmatmul.mubr.msk.bf16.gmra.mrb[24].mxu1 %vm291_vm0, %v6362_v45  ;;  %v16303_v27 = vld [vmem:[#allocation2 + $0x80] sm:$0xff]  ;;  %v6385_v60 = vshll.u32 %v16295_v8, 16 }
 0x46d   : > { %6177 = vst.msk [vmem:[#allocation2 + $0x90] sm:$0xff] %vm291_vm0, %v6153_v29  ;;  %v6073_v40 = vmax.f32 %v6025_v38, 0.0  ;;  %v6026_v50 = vadd.f32 %v12992_v2, %v16024_v17  ;;  %v5888_v53 = vpop.f32.mrb[39].mxu0  ;;  %13037 = vmatprep.mubr.msk.bf16.mxu1 %vm291_vm0, %v6371_v7  ;;  %v6373_v20 = vshrl.u32 %v16303_v27, 16  ;;  %v6376_v10 = vshll.u32 %v16303_v27, 16 }
 0x46e   : > { %v6071_v0 = vmax.f32 %v6023_v43, 0.0  ;;  %v6024_v63 = vadd.f32 %v16024_v17, %v5888_v53  ;;  %v6384_v16 = vrot.slane %v6382_v24, 4  ;;  %v6387_v11 = vrot.slane %v6385_v60, 5 }
 0x46f   : > { %v6074_v47 = vmax.f32 %v6026_v50, 0.0  ;;  %v6375_v59 = vrot.slane %v6373_v20, 4  ;;  %v6378_v9 = vrot.slane %v6376_v10, 5  ;;  %v6127_v37 = vsel %vm305_vm5, %v6073_v40, 0.0 }
 0x470   : > { %v6125_v32 = vsel %vm300_vm4, %v6071_v0, 0.0  ;;  %v6072_v18 = vmax.f32 %v6024_v63, 0.0  ;;  %v6388_v1 = vor.u32 %v6387_v11, %v6384_v16 }
 0x471   : > { %v6128_v28 = vsel %vm300_vm4, %v6074_v47, 0.0  ;;  %v6379_v42 = vor.u32 %v6378_v9, %v6375_v59 }
 0x472   : > { %v6156_v23 = vpack.c.bf16 %v6128_v28, %v6127_v37  ;;  %v6155_v56 = vpack.c.bf16 %v6072_v18, %v6125_v32  ;;  %v12995_v33 = vpop.f32.mrb[40].mxu0 }
 0x473   : > { %v6029_v45 = vadd.f32 %v12995_v33, %v16024_v17  ;;  %v5901_v29 = vpop.f32.mrb[41].mxu0  ;;  %v6380_v38 = vsel %vm6228_vm3, %v6370_v41, %v6379_v42  ;;  %v6389_v12 = vsel %vm6228_vm3, %v6379_v42, %v6388_v1  ;;  %v16321_v24 = vld [vmem:[#allocation2 + $0x98] sm:$0xff] }
 0x474   : > { %6180 = vst.msk [vmem:[#allocation2 + $0xa8] sm:$0xff] %vm291_vm0, %v6156_v23  ;;  %6179 = vst.msk [vmem:[#allocation2 + $0xa0] sm:$0xff] %vm291_vm0, %v6155_v56  ;;  %v6027_v43 = vadd.f32 %v16024_v17, %v5901_v29  ;;  %v12996_v2 = vpop.f32.mrb[42].mxu0  ;;  %13038 = vmatmul.mubr.msk.bf16.gmra.mrb[28].mxu1 %vm291_vm0, %v6380_v38  ;;  %v16327_v7 = vld [vmem:[#allocation2 + $0x90] sm:$0xff]  ;;  %v6400_v60 = vshrl.u32 %v16321_v24, 16  ;;  %v6403_v40 = vshll.u32 %v16321_v24, 16 }
 0x475   : > { %v6077_v41 = vmax.f32 %v6029_v45, 0.0  ;;  %v6030_v50 = vadd.f32 %v12996_v2, %v16024_v17  ;;  %v5904_v53 = vpop.f32.mrb[43].mxu0  ;;  %13041 = vmatprep.mubr.msk.bf16.mxu1 %vm291_vm0, %v6389_v12  ;;  %v6391_v20 = vshrl.u32 %v16327_v7, 16  ;;  %v6394_v10 = vshll.u32 %v16327_v7, 16 }
 0x476   : > { %v6028_v0 = vadd.f32 %v16024_v17, %v5904_v53  ;;  %v6402_v63 = vrot.slane %v6400_v60, 4  ;;  %v6405_v16 = vrot.slane %v6403_v40, 5  ;;  %v6075_v37 = vmax.f32 %v6027_v43, 0.0 }
 0x477   : > { %v6131_v11 = vsel %vm300_vm4, %v6077_v41, 0.0  ;;  %v6078_v47 = vmax.f32 %v6030_v50, 0.0  ;;  %v6393_v59 = vrot.slane %v6391_v20, 4  ;;  %v6396_v9 = vrot.slane %v6394_v10, 5 }
 0x478   : > { %v6076_v32 = vmax.f32 %v6028_v0, 0.0  ;;  %v6406_v18 = vor.u32 %v6405_v16, %v6402_v63 }
 0x479   : > { %v6158_v28 = vpack.c.bf16 %v6078_v47, %v6131_v11  ;;  %v6397_v42 = vor.u32 %v6396_v9, %v6393_v59 }
 0x47a   : > { %v6130_v23 = vsel %vm305_vm5, %v6076_v32, 0.0  ;;  %v12999_v56 = vpop.f32.mrb[44].mxu0 }
 0x47b   : > { %6182 = vst.msk [vmem:[#allocation2 + $0xb8] sm:$0xff] %vm291_vm0, %v6158_v28  ;;  %v6157_v33 = vpack.c.bf16 %v6130_v23, %v6075_v37  ;;  %v6033_v45 = vadd.f32 %v12999_v56, %v16024_v17  ;;  %v5917_v29 = vpop.f32.mrb[45].mxu0  ;;  %v6398_v38 = vsel %vm6228_vm3, %v6388_v1, %v6397_v42  ;;  %v6407_v12 = vsel %vm6228_vm3, %v6397_v42, %v6406_v18  ;;  %v16344_v2 = vld [vmem:[#allocation2 + $0xa0] sm:$0xff]  ;;  %v16346_v60 = vld [vmem:[#allocation2 + $0xa8] sm:$0xff] }
 0x47c   : > { %v6031_v43 = vadd.f32 %v16024_v17, %v5917_v29  ;;  %v13000_v40 = vpop.f32.mrb[46].mxu0  ;;  %13042 = vmatmul.mubr.msk.bf16.gmra.mrb[32].mxu1 %vm291_vm0, %v6398_v38  ;;  %v6409_v41 = vshrl.u32 %v16344_v2, 16  ;;  %v6412_v50 = vshll.u32 %v16344_v2, 16  ;;  %v6418_v53 = vshrl.u32 %v16346_v60, 16 }
 0x47d   : > { %6181 = vst.msk [vmem:[#allocation2 + $0xb0] sm:$0xff] %vm291_vm0, %v6157_v33  ;;  %v6034_v1 = vadd.f32 %v13000_v40, %v16024_v17  ;;  %v5920_v20 = vpop.f32.mrb[47].mxu0  ;;  %13045 = vmatprep.mubr.msk.bf16.mxu1 %vm291_vm0, %v6407_v12  ;;  %v6421_v10 = vshll.u32 %v16346_v60, 16  ;;  %v6081_v32 = vmax.f32 %v6033_v45, 0.0 }
 0x47e   : > { %v6079_v0 = vmax.f32 %v6031_v43, 0.0  ;;  %v6032_v63 = vadd.f32 %v16024_v17, %v5920_v20  ;;  %v6411_v16 = vrot.slane %v6409_v41, 4  ;;  %v6414_v11 = vrot.slane %v6412_v50, 5 }
 0x47f   : > { %v6082_v47 = vmax.f32 %v6034_v1, 0.0  ;;  %v6420_v59 = vrot.slane %v6418_v53, 4  ;;  %v6423_v9 = vrot.slane %v6421_v10, 5 }
 0x480   : > { %v6080_v37 = vmax.f32 %v6032_v63, 0.0  ;;  %v6415_v28 = vor.u32 %v6414_v11, %v6411_v16  ;;  %v6133_v56 = vsel %vm305_vm5, %v6079_v0, 0.0 }
 0x481   : > { %v6136_v42 = vsel %vm305_vm5, %v6082_v47, 0.0  ;;  %v6424_v23 = vor.u32 %v6423_v9, %v6420_v59  ;;  %v6784_v9 = vrot.slane %v15997_v44, 4  ;;  %v14211_v44 = vld [vmem:[%s18424_s4 + $0x50] sm:$0xff]  }
 0x482   : > { %v6160_v33 = vpack.c.bf16 %v6136_v42, %v6081_v32  ;;  %v6134_v29 = vsel %vm300_vm4, %v6080_v37, 0.0  ;;  %v6416_v17 = vsel %vm6228_vm3, %v6406_v18, %v6415_v28  ;;  %v16365_v38 = vld [vmem:[#allocation2 + $0xb8] sm:$0xff] }
 0x483   : > { %v6159_v12 = vpack.c.bf16 %v6134_v29, %v6133_v56  ;;  %v6436_v45 = vshrl.u32 %v16365_v38, 16  ;;  %v6439_v43 = vshll.u32 %v16365_v38, 16  ;;  %v6425_v22 = vsel %vm6228_vm3, %v6415_v28, %v6424_v23  ;;  %v14210_v56 = vld [vmem:[%s18424_s4 + $0x48] sm:$0xff]  }
 0x484   : > { %6184 = vst.msk [vmem:[#allocation2 + $0xc8] sm:$0xff] %vm291_vm0, %v6160_v33  ;;  %13046 = vmatmul.mubr.msk.bf16.gmra.mrb[36].mxu1 %vm291_vm0, %v6416_v17  ;;  %v16372_v40 = vld [vmem:[#allocation2 + $0xb0] sm:$0xff]  ;;  %v6786_v42 = vsel %vm6783_vm6, %v6784_v9, %v6785_v30  ;;  %v14212_v30 = vld [vmem:[%s18424_s4 + $0x58] sm:$0xff]   ;;  %v6803_v17 = vrot.slane %v16233_v5, 4  ;;  %v6811_v9 = vrot.slane %v16274_v39, 4 }
 0x485   : > { %6183 = vst.msk [vmem:[#allocation2 + $0xc0] sm:$0xff] %vm291_vm0, %v6159_v12  ;;  %13049 = vmatprep.mubr.msk.bf16.mxu1 %vm291_vm0, %v6425_v22  ;;  %v6427_v18 = vshrl.u32 %v16372_v40, 16  ;;  %v6430_v41 = vshll.u32 %v16372_v40, 16  ;;  %v6438_v50 = vrot.slane %v6436_v45, 4  ;;  %v6441_v53 = vrot.slane %v6439_v43, 5 }
 0x486   : > { %v6807_v22 = vrot.slane %v16257_v57, 4 }
 0x487   : > { %v6429_v1 = vrot.slane %v6427_v18, 4  ;;  %v6432_v20 = vrot.slane %v6430_v41, 5  ;;  %v6442_v0 = vor.u32 %v6441_v53, %v6438_v50  ;;  %v6809_v18 = vrot.slane %v16251_v31, 4  ;;  %v8896_v41 = vld [vmem:[#allocation2 + $0x18] sm:$0xf0]  ;;  %v16445_v50 = vld [vmem:[#allocation2 + $0x20] sm:$0xff] }
 0x488   : > { %18549 = vst [vmem:[#allocation11_spill] sm:$0xff] %v16445_v50 }
 0x489   : > { %v6433_v10 = vor.u32 %v6432_v20, %v6429_v1  ;;  %v16448_v1 = vld [vmem:[#allocation2 + $0x28] sm:$0xff]  ;;  %v9352_v20 = vshrl.u32 %v8896_v41, 16 }
 0x48b   : > { %v6434_v63 = vsel %vm6228_vm3, %v6424_v23, %v6433_v10  ;;  %v6443_v16 = vsel %vm6228_vm3, %v6433_v10, %v6442_v0  ;;  %v16426_v33 = vld [vmem:[#allocation2 + $0xc8] sm:$0xff]  ;;  %v6810_v10 = vsel %vm6783_vm6, %v6807_v22, %v6809_v18 }
 0x48c   : > { %13050 = vmatmul.mubr.msk.bf16.gmra.mrb[40].mxu1 %vm291_vm0, %v6434_v63  ;;  %v16381_v11 = vld [vmem:[#allocation2 + $0xc0] sm:$0x1f]  ;;  %18547 = vst [vmem:[#allocation9_spill] sm:$0xff] %v16426_v33  ;;  %v16454_v63 = vld [vmem:[#allocation2 + $0x38] sm:$0xff] }
 0x48d   : > { %13053 = vmatprep.mubr.msk.bf16.mxu1 %vm291_vm0, %v6443_v16  ;;  %v6445_v47 = vshrl.u32 %v16381_v11, 16  ;;  %v6448_v59 = vshll.u32 %v16381_v11, 16  ;;  %18550 = vst [vmem:[#allocation12_spill] sm:$0xff] %v16454_v63  ;;  %v9355_v16 = vshll.u32 %v8896_v41, 16 }
 0x48f   : > { %v6447_v32 = vrot.slane %v6445_v47, 4  ;;  %v6450_v37 = vrot.slane %v6448_v59, 5  ;;  %v9360_v47 = vshrl.u32 %v16445_v50, 16  ;;  %v9363_v59 = vshll.u32 %v16445_v50, 16 }
 0x491   : > { %v6451_v28 = vor.u32 %v6450_v37, %v6447_v32  ;;  %v6813_v32 = vrot.slane %v16276_v58, 4  ;;  %v9354_v37 = vrot.slane %v9352_v20, 4 }
 0x493   : > { %v6452_v23 = vsel %vm6228_vm3, %v6442_v0, %v6451_v28  ;;  %v16452_v0 = vld [vmem:[#allocation2 + $0x30] sm:$0xff]  ;;  %v9357_v28 = vrot.slane %v9355_v16, 5  ;;  %v6814_v16 = vsel %vm6783_vm6, %v6811_v9, %v6813_v32 }
 0x494   : > { %13054 = vmatmul.mubr.msk.bf16.gmra.mrb[44].mxu1 %vm291_vm0, %v6452_v23  ;;  %v9365_v23 = vrot.slane %v9363_v59, 5 }
 0x495   : > { %13065 = vmatprep.mubr.msk.bf16.mxu1 %vm291_vm0, %v6786_v42  ;;  %v9362_v42 = vrot.slane %v9360_v47, 4 }
 0x49c   : > { %13066 = vmatmul.mubr.msk.bf16.vlgmr.msra.gmra.mrb[48].mxu1 %vm291_vm0, %v16071_v21  ;;  %v16414_v21 = vld [vmem:[%s18424_s4 + $0x60] sm:$0xff]  }
 0x49d   : > { %13069 = vmatprep.mubr.msk.bf16.mxu1 %vm291_vm0, %v16090_v61  ;;  %13114 = vmatpush3.bf16.msra.mxu1 %v16166_v36  ;;  %v6799_v61 = vrot.slane %v16194_v34, 4 }
 0x49e   : > { %13115 = vmatprep.subr.bf16.mxu1 %v14210_v56 }
 0x49f   : > { %v6800_v36 = vsel %vm6783_vm6, %v6797_v52, %v6799_v61  ;;  %v6805_v52 = vrot.slane %v16225_v49, 4 }
 0x4a1   : > { %13116 = vmatpush3.bf16.msra.mxu1 %v14210_v56  ;;  %v6806_v43 = vsel %vm6783_vm6, %v6803_v17, %v6805_v52  ;;  %v6808_v53 = vsel %vm6783_vm6, %v6805_v52, %v6807_v22  ;;  %v9369_v56 = vshrl.u32 %v16448_v1, 16 }
 0x4a2   : > { %13117 = vmatprep.subr.bf16.mxu1 %v14211_v44 }
 0x4a4   : > { %13070 = vmatmul.mubr.msk.bf16.gmra.mrb[52].mxu1 %vm291_vm0, %v16134_v13  ;;  %v6801_v13 = vrot.slane %v16196_v3, 4 }
 0x4a5   : > { %13073 = vmatprep.mubr.msk.bf16.mxu1 %vm291_vm0, %v16139_v4  ;;  %13118 = vmatpush3.bf16.msra.mxu1 %v14211_v44  ;;  %v7931_v4 = vld [vmem:[#allocation2 + $0xd0] sm:$0x1]  ;;  %v9372_v44 = vshll.u32 %v16448_v1, 16 }
 0x4a6   : > { %13119 = vmatprep.subr.bf16.mxu1 %v14212_v30  ;;  %v6802_v29 = vsel %vm6783_vm6, %v6799_v61, %v6801_v13  ;;  %v6804_v45 = vsel %vm6783_vm6, %v6801_v13, %v6803_v17  ;;  %v9381_v61 = vshll.u32 %v16452_v0, 16  ;;  %v9387_v13 = vshrl.u32 %v16454_v63, 16 }
 0x4a7   : > { %v9374_v17 = vrot.slane %v9372_v44, 5  ;;  %v6821_v44 = vrot.slane %v16321_v24, 4 }
 0x4a9   : > { %13120 = vmatpush3.bf16.msra.mxu1 %v14212_v30  ;;  %v9378_v30 = vshrl.u32 %v16452_v0, 16 }
 0x4aa   : > { %13169 = vmatprep.subr.bf16.mxu1 %v16414_v21 }
 0x4ab   : > { %v9380_v52 = vrot.slane %v9378_v30, 4 }
 0x4ac   : > { %13074 = vmatmul.mubr.msk.bf16.gmra.mrb[56].mxu1 %vm291_vm0, %v16179_v26  ;;  %v8557_v26 = vrot.slane %v7931_v4, 1  ;;  %v9358_v4 = vor.u32 %v9357_v28, %v9354_v37 }
 0x4ad   : > { %13077 = vmatprep.mubr.msk.bf16.mxu1 %vm291_vm0, %v16184_v14  ;;  %v18457_v14 = vrot.slane %v16426_v33, 1 }
 0x4af   : > { %v16436_v12 = vsel %vm8509_vm8, %v18457_v14, %v8557_v26  ;;  %v9390_v26 = vshll.u32 %v16454_v63, 16  ;;  %v7196_v14 = vrot.slane %v16365_v38, 5 }
 0x4b0   : > { %18548 = vst [vmem:[#allocation10_spill] sm:$0xff] %v16436_v12 }
 0x4b1   : > { %v9392_v41 = vrot.slane %v9390_v26, 5 }
 0x4b4   : > { %13078 = vmatmul.mubr.msk.bf16.gmra.mrb[60].mxu1 %vm291_vm0, %v6800_v36  ;;  %v9366_v36 = vor.u32 %v9365_v23, %v9362_v42  ;;  %v6817_v42 = vrot.slane %v16295_v8, 4 }
 0x4b5   : > { %13081 = vmatprep.mubr.msk.bf16.mxu1 %vm291_vm0, %v6802_v29  ;;  %v9371_v29 = vrot.slane %v9369_v56, 4  ;;  %v6819_v56 = vrot.slane %v16327_v7, 4 }
 0x4b6   : > { %v16468_v22 = vsel %vm6228_vm3, %v9358_v4, %v9366_v36  ;;  %v6825_v4 = vrot.slane %v16346_v60, 4 }
 0x4b7   : > { %18551 = vst [vmem:[#allocation14_spill] sm:$0xff] %v16468_v22  ;;  %v9375_v20 = vor.u32 %v9374_v17, %v9371_v29  ;;  %v6820_v30 = vsel %vm6783_vm6, %v6817_v42, %v6819_v56  ;;  %v16502_v29 = vld [vmem:[#allocation2 + $0xd0] sm:$0xff] }
 0x4b8   : > { %18557 = vst [vmem:[#allocation20_spill] sm:$0xff] %v16502_v29 }
 0x4b9   : > { %v16477_v59 = vsel %vm6228_vm3, %v9366_v36, %v9375_v20  ;;  %v8918_v36 = vld [vmem:[#allocation2 + $0xc8] sm:$0xff] }
 0x4ba   : > { %18553 = vst [vmem:[#allocation13_spill] sm:$0xff] %v16477_v59 }
 0x4bc   : > { %13082 = vmatmul.mubr.msk.bf16.gmra.mrb[64].mxu1 %vm291_vm0, %v6804_v45  ;;  %v9383_v45 = vrot.slane %v9381_v61, 5  ;;  %v6822_v61 = vsel %vm6783_vm6, %v6819_v56, %v6821_v44 }
 0x4bd   : > { %13085 = vmatprep.mubr.msk.bf16.mxu1 %vm291_vm0, %v6806_v43  ;;  %v9389_v43 = vrot.slane %v9387_v13, 4  ;;  %v16499_v13 = vld [vmem:[#allocation2 + $0xc0] sm:$0xff] }
 0x4be   : > { %18556 = vst [vmem:[#allocation18_spill] sm:$0xff] %v16499_v13  ;;  %v9540_v26 = vshrl.u32 %v16499_v13, 16 }
 0x4bf   : > { %v16473_v47 = vor.u32 %v9392_v41, %v9389_v43  ;;  %v9552_v43 = vshll.u32 %v8918_v36, 16 }
 0x4c1   : > { %18552 = vst [vmem:[#allocation16_spill] sm:$0xff] %v16473_v47 }
 0x4c4   : > { %13086 = vmatmul.mubr.msk.bf16.gmra.mrb[68].mxu1 %vm291_vm0, %v6808_v53  ;;  %v6812_v53 = vsel %vm6783_vm6, %v6809_v18, %v6811_v9  ;;  %v6815_v18 = vrot.slane %v16303_v27, 4 }
 0x4c5   : > { %13089 = vmatprep.mubr.msk.bf16.mxu1 %vm291_vm0, %v6810_v10  ;;  %v9384_v10 = vor.u32 %v9383_v45, %v9380_v52  ;;  %v9543_v52 = vshll.u32 %v16499_v13, 16  ;;  %v9549_v45 = vshrl.u32 %v8918_v36, 16 }
 0x4c6   : > { %v6816_v9 = vsel %vm6783_vm6, %v6813_v32, %v6815_v18  ;;  %v6818_v23 = vsel %vm6783_vm6, %v6815_v18, %v6817_v42  ;;  %v6823_v32 = vrot.slane %v16344_v2, 4  ;;  %v9554_v18 = vrot.slane %v9552_v43, 5 }
 0x4c7   : > { %v16480_v37 = vsel %vm6228_vm3, %v9375_v20, %v9384_v10  ;;  %v16484_v28 = vsel %vm6228_vm3, %v9384_v10, %v16473_v47  ;;  %v9558_v20 = vshrl.u32 %v16502_v29, 16  ;;  %v9545_v10 = vrot.slane %v9543_v52, 5 }
 0x4c8   : > { %18554 = vst [vmem:[#allocation15_spill] sm:$0xff] %v16480_v37  ;;  %18555 = vst [vmem:[#allocation17_spill] sm:$0xff] %v16484_v28  ;;  %v6824_v17 = vsel %vm6783_vm6, %v6821_v44, %v6823_v32  ;;  %v6826_v41 = vsel %vm6783_vm6, %v6823_v32, %v6825_v4  ;;  %v6827_v42 = vrot.slane %v16372_v40, 4  ;;  %v6829_v43 = vrot.slane %v16365_v38, 4  ;;  %v14238_v28 = vld [vmem:[#allocation2 + $0x48] sm:$0xff]  ;;  %v14239_v37 = vld [vmem:[#allocation2 + $0x50] sm:$0xff] }
 0x4cc   : > { %13090 = vmatmul.mubr.msk.bf16.gmra.mrb[72].mxu1 %vm291_vm0, %v6812_v53  ;;  %v9542_v53 = vrot.slane %v9540_v26, 4  ;;  %v9929_v26 = vrot.slane %v16452_v0, 5 }
 0x4cd   : > { %13093 = vmatprep.mubr.msk.bf16.mxu1 %vm291_vm0, %v6814_v16  ;;  %v9551_v16 = vrot.slane %v9549_v45, 4 }
 0x4ce   : > { %v16513_v56 = vor.u32 %v9545_v10, %v9542_v53  ;;  %v6828_v53 = vsel %vm6783_vm6, %v6825_v4, %v6827_v42  ;;  %v6830_v10 = vsel %vm6783_vm6, %v6827_v42, %v6829_v43  ;;  %v18454_v4 = vrot.slane %v16499_v13, 5 }
 0x4cf   : > { %v9555_v44 = vor.u32 %v9554_v18, %v9551_v16  ;;  %v6209_v16 = vld [vmem:[#allocation2 + $0xc0] sm:$0xf]  ;;  %v18453_v42 = vrot.slane %v16502_v29, 5 }
 0x4d0   : > { %18558 = vst [vmem:[#allocation22_spill] sm:$0xff] %v16513_v56 }
 0x4d1   : > { %v16521_v52 = vsel %vm6228_vm3, %v16513_v56, %v9555_v44 }
 0x4d2   : > { %18559 = vst [vmem:[#allocation19_spill] sm:$0xff] %v16521_v52 }
 0x4d4   : > { %13094 = vmatmul.mubr.msk.bf16.gmra.mrb[76].mxu1 %vm291_vm0, %v6816_v9  ;;  %v9560_v9 = vrot.slane %v9558_v20, 4  ;;  %v7138_v20 = vld [vmem:[#allocation2] sm:$0xe0] }
 0x4d5   : > { %13097 = vmatprep.mubr.msk.bf16.mxu1 %vm291_vm0, %v6818_v23  ;;  %v9561_v23 = vshll.u32 %v16502_v29, 16 }
 0x4d7   : > { %v9563_v32 = vrot.slane %v9561_v23, 5  ;;  %v6831_v23 = vrot.slane %v6209_v16, 4 }
 0x4dc   : > { %13098 = vmatmul.mubr.msk.bf16.gmra.mrb[80].mxu1 %vm291_vm0, %v6820_v30  ;;  %v18456_v30 = vrot.slane %v16445_v50, 5 }
 0x4dd   : > { %13101 = vmatprep.mubr.msk.bf16.mxu1 %vm291_vm0, %v6822_v61  ;;  %v9927_v61 = vrot.slane %v16448_v1, 5 }
 0x4df   : > { %v16526_v45 = vsel %vm7150_vm7, %v18456_v30, %v9927_v61  ;;  %v16532_v1 = vsel %vm7150_vm7, %v9927_v61, %v9929_v26 }
 0x4e0   : > { %18560 = vst [vmem:[#allocation21_spill] sm:$0xff] %v16526_v45  ;;  %18562 = vst [vmem:[#allocation25_spill] sm:$0xff] %v16532_v1 }
 0x4e4   : > { %13102 = vmatmul.mubr.msk.bf16.gmra.mrb[84].mxu1 %vm291_vm0, %v6824_v17  ;;  %v18455_v17 = vrot.slane %v16454_v63, 5  ;;  %v14220_v63 = vld [vmem:[%s18424_s4 + $0x98] sm:$0xff]  }
 0x4e5   : > { %13105 = vmatprep.mubr.msk.bf16.mxu1 %vm291_vm0, %v6826_v41  ;;  %v16529_v41 = vor.u32 %v9563_v32, %v9560_v9  ;;  %v7151_v9 = vrot.slane %v7138_v20, 5  ;;  %v6832_v32 = vsel %vm6783_vm6, %v6829_v43, %v6831_v23  ;;  %v14216_v43 = vld [vmem:[%s18424_s4 + $0x78] sm:$0xff]   ;;  %v7172_v23 = vrot.slane %v16225_v49, 5 }
 0x4e6   : > { %v16537_v0 = vsel %vm7150_vm7, %v9929_v26, %v18455_v17  ;;  %v9967_v26 = vrot.slane %v8918_v36, 5  ;;  %v14215_v36 = vld [vmem:[%s18424_s4 + $0x70] sm:$0xff]  }
 0x4e7   : > { %18561 = vst [vmem:[#allocation24_spill] sm:$0xff] %v16529_v41  ;;  %18563 = vst [vmem:[#allocation26_spill] sm:$0xff] %v16537_v0  ;;  %v16544_v18 = vsel %vm6228_vm3, %v9555_v44, %v16529_v41  ;;  %v7153_v61 = vsel %vm7150_vm7, %v7151_v9, %v7152_v55  ;;  %v14214_v55 = vld [vmem:[%s18424_s4 + $0x68] sm:$0xff]   ;;  %v16746_v41 = vld [vmem:[#allocation2 + $0x38] sm:$0xff] }
 0x4e8   : > { %18564 = vst [vmem:[#allocation27_spill] sm:$0xff] %v16544_v18  ;;  %v16558_v44 = vsel %vm7150_vm7, %v18454_v4, %v9967_v26  ;;  %v16563_v19 = vsel %vm7150_vm7, %v9967_v26, %v18453_v42  ;;  %v7176_v26 = vrot.slane %v16251_v31, 5  ;;  %v16728_v0 = vld [vmem:[#allocation2 + $0x28] sm:$0xff] }
 0x4e9   : > { %18565 = vst [vmem:[#allocation28_spill] sm:$0xff] %v16558_v44  ;;  %18566 = vst [vmem:[#allocation29_spill] sm:$0xff] %v16563_v19  ;;  %v16694_v44 = vld [vmem:[#allocation2 + $0x10] sm:$0xff] }
 0x4ec   : > { %13106 = vmatmul.mubr.msk.bf16.gmra.mrb[88].mxu1 %vm291_vm0, %v6828_v53  ;;  %v7168_v53 = vrot.slane %v16196_v3, 5 }
 0x4ed   : > { %13109 = vmatprep.mubr.msk.bf16.mxu1 %vm291_vm0, %v6830_v10 }
 0x4f4   : > { %13110 = vmatmul.mubr.msk.bf16.gmra.mrb[92].mxu1 %vm291_vm0, %v6832_v32  ;;  %v7174_v32 = vrot.slane %v16257_v57, 5 }
 0x4f5   : > { %13121 = vmatprep.mubr.msk.bf16.mxu1 %vm291_vm0, %v7153_v61 }
 0x4f6   : > { %v7175_v49 = vsel %vm7150_vm7, %v7172_v23, %v7174_v32 }
 0x4fc   : > { %13122 = vmatmul.mubr.msk.bf16.vlgmr.msra.gmra.mrb[96].mxu1 %vm291_vm0, %v16107_v62  ;;  %v16586_v62 = vld [vmem:[%s18424_s4 + $0x80] sm:$0xff]  }
 0x4fd   : > { %13125 = vmatprep.mubr.msk.bf16.mxu1 %vm291_vm0, %v16127_v48  ;;  %13170 = vmatpush3.bf16.msra.mxu1 %v16414_v21 }
 0x4fe   : > { %13171 = vmatprep.subr.bf16.mxu1 %v14214_v55 }
 0x501   : > { %13172 = vmatpush3.bf16.msra.mxu1 %v14214_v55 }
 0x502   : > { %13173 = vmatprep.subr.bf16.mxu1 %v14215_v36 }
 0x504   : > { %13126 = vmatmul.mubr.msk.bf16.gmra.mrb[100].mxu1 %vm291_vm0, %v16148_v46 }
 0x505   : > { %13129 = vmatprep.mubr.msk.bf16.mxu1 %vm291_vm0, %v16187_v15  ;;  %13174 = vmatpush3.bf16.msra.mxu1 %v14215_v36  ;;  %v7166_v15 = vrot.slane %v16194_v34, 5  ;;  %v7170_v34 = vrot.slane %v16233_v5, 5 }
 0x506   : > { %13175 = vmatprep.subr.bf16.mxu1 %v14216_v43 }
 0x507   : > { %v7167_v10 = vsel %vm7150_vm7, %v7164_v6, %v7166_v15  ;;  %v7171_v25 = vsel %vm7150_vm7, %v7168_v53, %v7170_v34  ;;  %v7173_v6 = vsel %vm7150_vm7, %v7170_v34, %v7172_v23 }
 0x509   : > { %13176 = vmatpush3.bf16.msra.mxu1 %v14216_v43  ;;  %v7177_v43 = vsel %vm7150_vm7, %v7174_v32, %v7176_v26 }
 0x50a   : > { %13225 = vmatprep.subr.bf16.mxu1 %v16586_v62 }
 0x50c   : > { %13130 = vmatmul.mubr.msk.bf16.gmra.mrb[104].mxu1 %vm291_vm0, %v16213_v54  ;;  %v7169_v54 = vsel %vm7150_vm7, %v7166_v15, %v7168_v53  ;;  %v7178_v15 = vrot.slane %v16274_v39, 5 }
 0x50d   : > { %13133 = vmatprep.mubr.msk.bf16.mxu1 %vm291_vm0, %v16218_v51 }
 0x50e   : > { %v13011_v48 = vpop.f32.mrb[0].mxu1  ;;  %v7179_v34 = vsel %vm7150_vm7, %v7176_v26, %v7178_v15 }
 0x50f   : > { %v16593_v46 = vpop.f32.mrb[1].mxu1 }
 0x510   : > { %v16596_v21 = vpop.f32.mrb[2].mxu1 }
 0x511   : > { %v16599_v20 = vpop.f32.mrb[3].mxu1 }
 0x514   : > { %13134 = vmatmul.mubr.msk.bf16.gmra.mrb[108].mxu1 %vm291_vm0, %v7167_v10  ;;  %v7180_v10 = vrot.slane %v16276_v58, 5 }
 0x515   : > { %13137 = vmatprep.mubr.msk.bf16.mxu1 %vm291_vm0, %v7169_v54 }
 0x517   : > { %v16607_v51 = vpop.f32.mrb[4].mxu1 }
 0x518   : > { %v16610_v16 = vpop.f32.mrb[5].mxu1 }
 0x519   : > { %v16612_v9 = vpop.f32.mrb[6].mxu1 }
 0x51a   : > { %v6601_v3 = vpop.f32.mrb[7].mxu1 }
 0x51b   : > { %v7181_v3 = vsel %vm7150_vm7, %v7178_v15, %v7180_v10 }
 0x51c   : > { %13138 = vmatmul.mubr.msk.bf16.gmra.mrb[112].mxu1 %vm291_vm0, %v7171_v25  ;;  %v7182_v25 = vrot.slane %v16303_v27, 5 }
 0x51d   : > { %13141 = vmatprep.mubr.msk.bf16.mxu1 %vm291_vm0, %v7173_v6 }
 0x51f   : > { %v16619_v61 = vpop.f32.mrb[8].mxu1 }
 0x520   : > { %v6613_v5 = vpop.f32.mrb[9].mxu1 }
 0x521   : > { %v13020_v55 = vpop.f32.mrb[10].mxu1 }
 0x522   : > { %v16623_v36 = vpop.f32.mrb[11].mxu1  ;;  %v7184_v55 = vrot.slane %v16295_v8, 5 }
 0x524   : > { %13142 = vmatmul.mubr.msk.bf16.gmra.mrb[116].mxu1 %vm291_vm0, %v7175_v49  ;;  %v7183_v49 = vsel %vm7150_vm7, %v7180_v10, %v7182_v25  ;;  %v7185_v26 = vsel %vm7150_vm7, %v7182_v25, %v7184_v55 }
 0x525   : > { %13145 = vmatprep.mubr.msk.bf16.mxu1 %vm291_vm0, %v7177_v43 }
 0x527   : > { %v13023_v48 = vpop.f32.mrb[12].mxu1 }
 0x528   : > { %v16630_v53 = vpop.f32.mrb[13].mxu1  ;;  %v7186_v48 = vrot.slane %v16327_v7, 5 }
 0x529   : > { %v16633_v54 = vpop.f32.mrb[14].mxu1 }
 0x52a   : > { %v16635_v31 = vpop.f32.mrb[15].mxu1 }
 0x52c   : > { %13146 = vmatmul.mubr.msk.bf16.gmra.mrb[120].mxu1 %vm291_vm0, %v7179_v34  ;;  %v7188_v34 = vrot.slane %v16321_v24, 5 }
 0x52d   : > { %13149 = vmatprep.mubr.msk.bf16.mxu1 %vm291_vm0, %v7181_v3 }
 0x52e   : > { %v7189_v10 = vsel %vm7150_vm7, %v7186_v48, %v7188_v34 }
 0x52f   : > { %v16641_v23 = vpop.f32.mrb[16].mxu1 }
 0x530   : > { %v16644_v6 = vpop.f32.mrb[17].mxu1 }
 0x531   : > { %v16646_v32 = vpop.f32.mrb[18].mxu1 }
 0x532   : > { %v6645_v5 = vpop.f32.mrb[19].mxu1 }
 0x533   : > { %v7187_v5 = vsel %vm7150_vm7, %v7184_v55, %v7186_v48 }
 0x534   : > { %13150 = vmatmul.mubr.msk.bf16.gmra.mrb[124].mxu1 %vm291_vm0, %v7183_v49  ;;  %v7190_v49 = vrot.slane %v16344_v2, 5 }
 0x535   : > { %13153 = vmatprep.mubr.msk.bf16.mxu1 %vm291_vm0, %v7185_v26 }
 0x536   : > { %v7191_v17 = vsel %vm7150_vm7, %v7188_v34, %v7190_v49 }
 0x537   : > { %v16653_v43 = vpop.f32.mrb[20].mxu1 }
 0x538   : > { %v6657_v15 = vpop.f32.mrb[21].mxu1 }
 0x539   : > { %v13032_v3 = vpop.f32.mrb[22].mxu1  ;;  %v7192_v15 = vrot.slane %v16346_v60, 5 }
 0x53a   : > { %v16657_v42 = vpop.f32.mrb[23].mxu1 }
 0x53b   : > { %v7193_v55 = vsel %vm7150_vm7, %v7190_v49, %v7192_v15  ;;  %v7198_v49 = vrot.slane %v16381_v11, 5  ;;  %v14218_v11 = vld [vmem:[%s18424_s4 + $0x88] sm:$0xff]  }
 0x53c   : > { %13154 = vmatmul.mubr.msk.bf16.gmra.mrb[128].mxu1 %vm291_vm0, %v7187_v5  ;;  %v7194_v5 = vrot.slane %v16372_v40, 5 }
 0x53d   : > { %13157 = vmatprep.mubr.msk.bf16.mxu1 %vm291_vm0, %v7189_v10 }
 0x53e   : > { %v7195_v35 = vsel %vm7150_vm7, %v7192_v15, %v7194_v5 }
 0x53f   : > { %v13035_v25 = vpop.f32.mrb[24].mxu1 }
 0x540   : > { %v16664_v26 = vpop.f32.mrb[25].mxu1 }
 0x541   : > { %v16667_v4 = vpop.f32.mrb[26].mxu1 }
 0x542   : > { %v16669_v3 = vpop.f32.mrb[27].mxu1 }
 0x544   : > { %13158 = vmatmul.mubr.msk.bf16.gmra.mrb[132].mxu1 %vm291_vm0, %v7191_v17  ;;  %v7197_v17 = vsel %vm7150_vm7, %v7194_v5, %v7196_v14 }
 0x545   : > { %13161 = vmatprep.mubr.msk.bf16.mxu1 %vm291_vm0, %v7193_v55 }
 0x547   : > { %v16675_v48 = vpop.f32.mrb[28].mxu1 }
 0x548   : > { %v16678_v10 = vpop.f32.mrb[29].mxu1 }
 0x549   : > { %v16680_v25 = vpop.f32.mrb[30].mxu1 }
 0x54a   : > { %v6689_v30 = vpop.f32.mrb[31].mxu1 }
 0x54b   : > { %v7199_v30 = vsel %vm7150_vm7, %v7196_v14, %v7198_v49  ;;  %v16711_v14 = vld [vmem:[#allocation2 + $0x20] sm:$0xff]  ;;  %v14219_v49 = vld [vmem:[%s18424_s4 + $0x90] sm:$0xff]  }
 0x54c   : > { %13162 = vmatmul.mubr.msk.bf16.gmra.mrb[136].mxu1 %vm291_vm0, %v7195_v35 }
 0x54d   : > { %13165 = vmatprep.mubr.msk.bf16.mxu1 %vm291_vm0, %v7197_v17 }
 0x54f   : > { %v16687_v34 = vpop.f32.mrb[32].mxu1 }
 0x550   : > { %v6701_v55 = vpop.f32.mrb[33].mxu1 }
 0x551   : > { %v13044_v29 = vpop.f32.mrb[34].mxu1 }
 0x552   : > { %v16690_v19 = vpop.f32.mrb[35].mxu1  ;;  %v16707_v29 = vld [vmem:[#allocation2 + $0x18] sm:$0xff] }
 0x554   : > { %13166 = vmatmul.mubr.msk.bf16.gmra.mrb[140].mxu1 %vm291_vm0, %v7199_v30 }
 0x555   : > { %13177 = vmatprep.mubr.msk.bf16.mxu1 %vm291_vm0, %v16694_v44 }
 0x557   : > { %v13047_v35 = vpop.f32.mrb[36].mxu1 }
 0x558   : > { %v16698_v15 = vpop.f32.mrb[37].mxu1 }
 0x559   : > { %v16700_v5 = vpop.f32.mrb[38].mxu1 }
 0x55a   : > { %v16702_v17 = vpop.f32.mrb[39].mxu1 }
 0x55c   : > { %13178 = vmatmul.mubr.msk.bf16.vlgmr.msra.gmra.mrb[144].mxu1 %vm291_vm0, %v16707_v29 }
 0x55d   : > { %13181 = vmatprep.mubr.msk.bf16.mxu1 %vm291_vm0, %v16711_v14  ;;  %13226 = vmatpush3.bf16.msra.mxu1 %v16586_v62  ;;  %v16732_v62 = vld [vmem:[#allocation2 + $0x30] sm:$0xff] }
 0x55e   : > { %13227 = vmatprep.subr.bf16.mxu1 %v14218_v11 }
 0x55f   : > { %v16719_v55 = vpop.f32.mrb[40].mxu1 }
 0x560   : > { %v16721_v30 = vpop.f32.mrb[41].mxu1 }
 0x561   : > { %v16723_v35 = vpop.f32.mrb[42].mxu1  ;;  %13228 = vmatpush3.bf16.msra.mxu1 %v14218_v11 }
 0x562   : > { %v6733_v13 = vpop.f32.mrb[43].mxu1  ;;  %13229 = vmatprep.subr.bf16.mxu1 %v14219_v49 }
 0x563   : > { %v16739_v13 = vld [vmem:[%s18424_s4 + $0xa0] sm:$0xff]  }
 0x564   : > { %13182 = vmatmul.mubr.msk.bf16.gmra.mrb[148].mxu1 %vm291_vm0, %v16728_v0 }
 0x565   : > { %13185 = vmatprep.mubr.msk.bf16.mxu1 %vm291_vm0, %v16732_v62  ;;  %13230 = vmatpush3.bf16.msra.mxu1 %v14219_v49  ;;  %v14237_v49 = vld [vmem:[#allocation2 + $0x40] sm:$0xff] }
 0x566   : > { %13231 = vmatprep.subr.bf16.mxu1 %v14220_v63 }
 0x567   : > { %v16741_v11 = vpop.f32.mrb[44].mxu1 }
 0x568   : > { %v6745_v1 = vpop.f32.mrb[45].mxu1 }
 0x569   : > { %v13056_v45 = vpop.f32.mrb[46].mxu1  ;;  %13232 = vmatpush3.bf16.msra.mxu1 %v14220_v63 }
 0x56a   : > { %v16743_v50 = vpop.f32.mrb[47].mxu1  ;;  %13281 = vmatprep.subr.bf16.mxu1 %v16739_v13 }
 0x56c   : > { %13186 = vmatmul.mubr.msk.bf16.gmra.mrb[152].mxu1 %vm291_vm0, %v16746_v41 }
 0x56d   : > { %13189 = vmatprep.mubr.msk.bf16.mxu1 %vm291_vm0, %v14237_v49 }
 0x56f   : > { %v13067_v18 = vpop.f32.mrb[48].mxu1 }
 0x570   : > { %v6963_v52 = vpop.f32.mrb[49].mxu1 }
 0x571   : > { %v16752_v56 = vadd.f32 %v6963_v52, %v16593_v46  ;;  %v13068_v1 = vpop.f32.mrb[50].mxu1 }
 0x572   : > { %v16755_v63 = vadd.f32 %v13068_v1, %v16596_v21  ;;  %v6966_v45 = vpop.f32.mrb[51].mxu1 }
 0x573   : > { %v16758_v47 = vadd.f32 %v6966_v45, %v16599_v20  ;;  %v14240_v45 = vld [vmem:[#allocation2 + $0x58] sm:$0xff] }
 0x574   : > { %13190 = vmatmul.mubr.msk.bf16.gmra.mrb[156].mxu1 %vm291_vm0, %v14238_v28 }
 0x575   : > { %13193 = vmatprep.mubr.msk.bf16.mxu1 %vm291_vm0, %v14239_v37 }
 0x577   : > { %v13071_v49 = vpop.f32.mrb[52].mxu1 }
 0x578   : > { %v16763_v18 = vadd.f32 %v13071_v49, %v16607_v51  ;;  %v6978_v52 = vpop.f32.mrb[53].mxu1 }
 0x579   : > { %v16766_v46 = vadd.f32 %v6978_v52, %v16610_v16  ;;  %v13072_v21 = vpop.f32.mrb[54].mxu1  ;;  %v14241_v52 = vld [vmem:[#allocation2 + $0x68] sm:$0xff] }
 0x57a   : > { %v16769_v1 = vadd.f32 %v13072_v21, %v16612_v9  ;;  %v6981_v20 = vpop.f32.mrb[55].mxu1 }
 0x57c   : > { %13194 = vmatmul.mubr.msk.bf16.gmra.mrb[160].mxu1 %vm291_vm0, %v14240_v45 }
 0x57d   : > { %13197 = vmatprep.mubr.msk.bf16.mxu1 %vm291_vm0, %v16257_v57 }
 0x57f   : > { %v13075_v37 = vpop.f32.mrb[56].mxu1 }
 0x580   : > { %v16775_v28 = vadd.f32 %v13075_v37, %v16619_v61  ;;  %v6993_v51 = vpop.f32.mrb[57].mxu1 }
 0x581   : > { %v13076_v49 = vpop.f32.mrb[58].mxu1 }
 0x582   : > { %v6995_v59 = vpop.f32.mrb[59].mxu1 }
 0x583   : > { %v16778_v16 = vadd.f32 %v6995_v59, %v16623_v36 }
 0x584   : > { %13198 = vmatmul.mubr.msk.bf16.gmra.mrb[164].mxu1 %vm291_vm0, %v14241_v52 }
 0x585   : > { %13201 = vmatprep.mubr.msk.bf16.mxu1 %vm291_vm0, %v16274_v39 }
 0x587   : > { %v13079_v9 = vpop.f32.mrb[60].mxu1 }
 0x588   : > { %v7007_v21 = vpop.f32.mrb[61].mxu1 }
 0x589   : > { %v16784_v57 = vadd.f32 %v7007_v21, %v16630_v53  ;;  %v13080_v20 = vpop.f32.mrb[62].mxu1 }
 0x58a   : > { %v16787_v61 = vadd.f32 %v13080_v20, %v16633_v54  ;;  %v7010_v45 = vpop.f32.mrb[63].mxu1 }
 0x58b   : > { %v16790_v37 = vadd.f32 %v7010_v45, %v16635_v31 }
 0x58c   : > { %13202 = vmatmul.mubr.msk.bf16.gmra.mrb[168].mxu1 %vm291_vm0, %v16276_v58 }
 0x58d   : > { %13205 = vmatprep.mubr.msk.bf16.mxu1 %vm291_vm0, %v16303_v27 }
 0x58f   : > { %v13083_v39 = vpop.f32.mrb[64].mxu1 }
 0x590   : > { %v16797_v59 = vadd.f32 %v13083_v39, %v16641_v23  ;;  %v7022_v36 = vpop.f32.mrb[65].mxu1 }
 0x591   : > { %v16800_v53 = vadd.f32 %v7022_v36, %v16644_v6  ;;  %v13084_v54 = vpop.f32.mrb[66].mxu1  ;;  %v7949_v36 = vshll.u32 %v16707_v29, 16 }
 0x592   : > { %v16803_v51 = vadd.f32 %v13084_v54, %v16646_v32  ;;  %v7025_v31 = vpop.f32.mrb[67].mxu1 }
 0x594   : > { %13206 = vmatmul.mubr.msk.bf16.gmra.mrb[172].mxu1 %vm291_vm0, %v16295_v8 }
 0x595   : > { %13209 = vmatprep.mubr.msk.bf16.mxu1 %vm291_vm0, %v16327_v7 }
 0x597   : > { %v13087_v58 = vpop.f32.mrb[68].mxu1 }
 0x598   : > { %v16810_v27 = vadd.f32 %v13087_v58, %v16653_v43  ;;  %v7037_v23 = vpop.f32.mrb[69].mxu1  ;;  %v7957_v58 = vshll.u32 %v16711_v14, 16 }
 0x599   : > { %v13088_v49 = vpop.f32.mrb[70].mxu1 }
 0x59a   : > { %v7039_v52 = vpop.f32.mrb[71].mxu1  ;;  %v7951_v49 = vrot.slane %v7949_v36, 1 }
 0x59b   : > { %v16813_v6 = vadd.f32 %v7039_v52, %v16657_v42 }
 0x59c   : > { %13210 = vmatmul.mubr.msk.bf16.gmra.mrb[176].mxu1 %vm291_vm0, %v16321_v24 }
 0x59d   : > { %13213 = vmatprep.mubr.msk.bf16.mxu1 %vm291_vm0, %v16344_v2 }
 0x59f   : > { %v13091_v8 = vpop.f32.mrb[72].mxu1 }
 0x5a0   : > { %v7051_v32 = vpop.f32.mrb[73].mxu1  ;;  %v7959_v8 = vrot.slane %v7957_v58, 1 }
 0x5a1   : > { %v16820_v7 = vadd.f32 %v7051_v32, %v16664_v26  ;;  %v13092_v9 = vpop.f32.mrb[74].mxu1  ;;  %v7944_v26 = vshll.u32 %v16694_v44, 16  ;;  %v7965_v32 = vshll.u32 %v16728_v0, 16 }
 0x5a2   : > { %v16823_v43 = vadd.f32 %v13092_v9, %v16667_v4  ;;  %v7054_v21 = vpop.f32.mrb[75].mxu1  ;;  %v7953_v9 = vshrl.u32 %v16707_v29, 16 }
 0x5a3   : > { %v16826_v20 = vadd.f32 %v7054_v21, %v16669_v3  ;;  %v7967_v36 = vrot.slane %v7965_v32, 1 }
 0x5a4   : > { %13214 = vmatmul.mubr.msk.bf16.gmra.mrb[180].mxu1 %vm291_vm0, %v16346_v60  ;;  %v16844_v60 = vld [vmem:[#allocation2 + $0xc0] sm:$0xff] }
 0x5a5   : > { %13217 = vmatprep.mubr.msk.bf16.mxu1 %vm291_vm0, %v16372_v40  ;;  %18567 = vst [vmem:[#allocation30_spill] sm:$0xff] %v16844_v60  ;;  %v7946_v40 = vrot.slane %v7944_v26, 1  ;;  %v7955_v26 = vor.u32 %v7953_v9, %v7951_v49 }
 0x5a7   : > { %v13095_v24 = vpop.f32.mrb[76].mxu1 }
 0x5a8   : > { %v16833_v2 = vadd.f32 %v13095_v24, %v16675_v48  ;;  %v7066_v42 = vpop.f32.mrb[77].mxu1  ;;  %v7942_v48 = vshrl.u32 %v16694_v44, 16 }
 0x5a9   : > { %v16837_v4 = vadd.f32 %v7066_v42, %v16678_v10  ;;  %v13096_v45 = vpop.f32.mrb[78].mxu1 }
 0x5aa   : > { %v16840_v3 = vadd.f32 %v13096_v45, %v16680_v25  ;;  %v7069_v39 = vpop.f32.mrb[79].mxu1  ;;  %v7947_v31 = vor.u32 %v7946_v40, %v7942_v48 }
 0x5ac   : > { %13218 = vmatmul.mubr.msk.bf16.gmra.mrb[184].mxu1 %vm291_vm0, %v16365_v38  ;;  %v7952_v44 = vsel %vm1570_vm2, %v7947_v31, %v7951_v49  ;;  %v7960_v31 = vsel %vm1570_vm2, %v7955_v26, %v7959_v8 }
 0x5ad   : > { %13221 = vmatprep.mubr.msk.bf16.mxu1 %vm291_vm0, %v16844_v60 }
 0x5af   : > { %v13099_v10 = vpop.f32.mrb[80].mxu1 }
 0x5b0   : > { %v16851_v54 = vadd.f32 %v13099_v10, %v16687_v34  ;;  %v7081_v25 = vpop.f32.mrb[81].mxu1  ;;  %v7961_v34 = vshrl.u32 %v16711_v14, 16  ;;  %v14222_v10 = vld [vmem:[%s18424_s4 + $0xa8] sm:$0xff]  }
 0x5b1   : > { %v13100_v23 = vpop.f32.mrb[82].mxu1 }
 0x5b2   : > { %v7083_v38 = vpop.f32.mrb[83].mxu1  ;;  %v7963_v42 = vor.u32 %v7961_v34, %v7959_v8  ;;  %v7977_v23 = vshrl.u32 %v16732_v62, 16 }
 0x5b3   : > { %v16855_v52 = vadd.f32 %v7083_v38, %v16690_v19  ;;  %v7973_v19 = vshll.u32 %v16732_v62, 16  ;;  %v7981_v38 = vshll.u32 %v16746_v41, 16 }
 0x5b4   : > { %13222 = vmatmul.mubr.msk.bf16.gmra.mrb[188].mxu1 %vm291_vm0, %v16426_v33  ;;  %v16970_v33 = vld [vmem:[#allocation2 + $0x78] sm:$0xff] }
 0x5b5   : > { %13233 = vmatprep.mubr.msk.bf16.mxu1 %vm291_vm0, %v7952_v44  ;;  %v7975_v58 = vrot.slane %v7973_v19, 1  ;;  %v7969_v44 = vshrl.u32 %v16728_v0, 16  ;;  %v7983_v26 = vrot.slane %v7981_v38, 1 }
 0x5b7   : > { %v13103_v21 = vpop.f32.mrb[84].mxu1  ;;  %v7979_v32 = vor.u32 %v7977_v23, %v7975_v58  ;;  %v7985_v23 = vshrl.u32 %v16746_v41, 16 }
 0x5b8   : > { %v7095_v24 = vpop.f32.mrb[85].mxu1 }
 0x5b9   : > { %v16866_v45 = vadd.f32 %v7095_v24, %v16698_v15  ;;  %v13104_v39 = vpop.f32.mrb[86].mxu1  ;;  %v7968_v15 = vsel %vm1570_vm2, %v7963_v42, %v7967_v36  ;;  %v7971_v24 = vor.u32 %v7969_v44, %v7967_v36 }
 0x5ba   : > { %v16869_v40 = vadd.f32 %v13104_v39, %v16700_v5  ;;  %v7098_v48 = vpop.f32.mrb[87].mxu1  ;;  %v16882_v5 = vld [vmem:[#allocation2 + $0x40] sm:$0xff] }
 0x5bb   : > { %v16875_v25 = vadd.f32 %v7098_v48, %v16702_v17  ;;  %v14223_v17 = vld [vmem:[%s18424_s4 + $0xb0] sm:$0xff]   ;;  %v7976_v39 = vsel %vm1570_vm2, %v7971_v24, %v7975_v58  ;;  %v16904_v48 = vld [vmem:[#allocation2 + $0x48] sm:$0xff] }
 0x5bc   : > { %13234 = vmatmul.mubr.msk.bf16.vlgmr.msra.gmra.mrb[192].mxu1 %vm291_vm0, %v7960_v31  ;;  %v7997_v31 = vshll.u32 %v16904_v48, 16 }
 0x5bd   : > { %13237 = vmatprep.mubr.msk.bf16.mxu1 %vm291_vm0, %v7968_v15  ;;  %13282 = vmatpush3.bf16.msra.mxu1 %v16739_v13  ;;  %v7989_v13 = vshll.u32 %v16882_v5, 16  ;;  %v16916_v15 = vld [vmem:[%s18424_s4 + $0xc0] sm:$0xff]  }
 0x5be   : > { %13283 = vmatprep.subr.bf16.mxu1 %v14222_v10 }
 0x5bf   : > { %v13107_v49 = vpop.f32.mrb[88].mxu1  ;;  %v7991_v36 = vrot.slane %v7989_v13, 1 }
 0x5c0   : > { %v16891_v8 = vadd.f32 %v13107_v49, %v16719_v55  ;;  %v7110_v34 = vpop.f32.mrb[89].mxu1  ;;  %v14224_v55 = vld [vmem:[%s18424_s4 + $0xb8] sm:$0xff]  }
 0x5c1   : > { %v16895_v9 = vadd.f32 %v7110_v34, %v16721_v30  ;;  %v13108_v21 = vpop.f32.mrb[90].mxu1  ;;  %13284 = vmatpush3.bf16.msra.mxu1 %v14222_v10  ;;  %v7984_v30 = vsel %vm1570_vm2, %v7979_v32, %v7983_v26  ;;  %v7993_v10 = vshrl.u32 %v16882_v5, 16  ;;  %v7987_v32 = vor.u32 %v7985_v23, %v7983_v26  ;;  %v16933_v26 = vld [vmem:[#allocation2 + $0x60] sm:$0xff] }
 0x5c2   : > { %v16898_v42 = vadd.f32 %v13108_v21, %v16723_v35  ;;  %v7113_v19 = vpop.f32.mrb[91].mxu1  ;;  %13285 = vmatprep.subr.bf16.mxu1 %v14223_v17  ;;  %v16909_v35 = vld [vmem:[#allocation2 + $0x50] sm:$0xff]  ;;  %v7999_v21 = vrot.slane %v7997_v31, 1  ;;  %v8021_v23 = vshll.u32 %v16933_v26, 16 }
 0x5c3   : > { %v7995_v44 = vor.u32 %v7993_v10, %v7991_v36  ;;  %v7992_v19 = vsel %vm1570_vm2, %v7987_v32, %v7991_v36 }
 0x5c4   : > { %13238 = vmatmul.mubr.msk.bf16.gmra.mrb[196].mxu1 %vm291_vm0, %v7976_v39  ;;  %v16928_v39 = vld [vmem:[#allocation2 + $0x58] sm:$0xff] }
 0x5c5   : > { %13241 = vmatprep.mubr.msk.bf16.mxu1 %vm291_vm0, %v7984_v30  ;;  %13286 = vmatpush3.bf16.msra.mxu1 %v14223_v17  ;;  %v8005_v17 = vshll.u32 %v16909_v35, 16  ;;  %v8013_v10 = vshll.u32 %v16928_v39, 16 }
 0x5c6   : > { %13287 = vmatprep.subr.bf16.mxu1 %v14224_v55 }
 0x5c7   : > { %v13111_v58 = vpop.f32.mrb[92].mxu1  ;;  %v8007_v30 = vrot.slane %v8005_v17, 1 }
 0x5c8   : > { %v16920_v38 = vadd.f32 %v13111_v58, %v16741_v11  ;;  %v7125_v49 = vpop.f32.mrb[93].mxu1  ;;  %v8000_v11 = vsel %vm1570_vm2, %v7995_v44, %v7999_v21 }
 0x5c9   : > { %v13112_v34 = vpop.f32.mrb[94].mxu1  ;;  %13288 = vmatpush3.bf16.msra.mxu1 %v14224_v55  ;;  %v8009_v55 = vshrl.u32 %v16909_v35, 16 }
 0x5ca   : > { %v7127_v13 = vpop.f32.mrb[95].mxu1  ;;  %13337 = vmatprep.subr.bf16.mxu1 %v16916_v15 }
 0x5cb   : > { %v16925_v24 = vadd.f32 %v7127_v13, %v16743_v50  ;;  %v8001_v50 = vshrl.u32 %v16904_v48, 16  ;;  %v8011_v36 = vor.u32 %v8009_v55, %v8007_v30  ;;  %v8015_v13 = vrot.slane %v8013_v10, 1 }
 0x5cc   : > { %13242 = vmatmul.mubr.msk.bf16.gmra.mrb[200].mxu1 %vm291_vm0, %v7992_v19 }
 0x5cd   : > { %13245 = vmatprep.mubr.msk.bf16.mxu1 %vm291_vm0, %v8000_v11  ;;  %v8003_v17 = vor.u32 %v8001_v50, %v7999_v21  ;;  %v8016_v55 = vsel %vm1570_vm2, %v8011_v36, %v8015_v13  ;;  %v16954_v21 = vld [vmem:[#allocation2 + $0x70] sm:$0xff] }
 0x5ce   : > { %18568 = vst [vmem:[#allocation31_spill] sm:$0xff] %v16954_v21 }
 0x5cf   : > { %v13123_v31 = vpop.f32.mrb[96].mxu1  ;;  %v8008_v11 = vsel %vm1570_vm2, %v8003_v17, %v8007_v30  ;;  %v8037_v17 = vshll.u32 %v16954_v21, 16 }
 0x5d0   : > { %v7330_v58 = vpop.f32.mrb[97].mxu1  ;;  %v16949_v31 = vld [vmem:[#allocation2 + $0x68] sm:$0xff] }
 0x5d1   : > { %v16940_v49 = vadd.f32 %v7330_v58, %v16752_v56  ;;  %v13124_v44 = vpop.f32.mrb[98].mxu1  ;;  %v8023_v56 = vrot.slane %v8021_v23, 1  ;;  %v8029_v10 = vshll.u32 %v16949_v31, 16 }
 0x5d2   : > { %v16943_v34 = vadd.f32 %v13124_v44, %v16755_v63  ;;  %v7333_v32 = vpop.f32.mrb[99].mxu1  ;;  %v8025_v63 = vshrl.u32 %v16933_v26, 16 }
 0x5d3   : > { %v16946_v19 = vadd.f32 %v7333_v32, %v16758_v47  ;;  %v8017_v47 = vshrl.u32 %v16928_v39, 16  ;;  %v8031_v22 = vrot.slane %v8029_v10, 1  ;;  %v8033_v10 = vshrl.u32 %v16949_v31, 16 }
 0x5d4   : > { %13246 = vmatmul.mubr.msk.bf16.gmra.mrb[204].mxu1 %vm291_vm0, %v8008_v11  ;;  %v8027_v44 = vor.u32 %v8025_v63, %v8023_v56  ;;  %v8039_v63 = vrot.slane %v8037_v17, 1 }
 0x5d5   : > { %13249 = vmatprep.mubr.msk.bf16.mxu1 %vm291_vm0, %v8016_v55  ;;  %v8019_v32 = vor.u32 %v8017_v47, %v8015_v13  ;;  %v8041_v13 = vshrl.u32 %v16954_v21, 16  ;;  %v8035_v17 = vor.u32 %v8033_v10, %v8031_v22  ;;  %v16988_v21 = vld [vmem:[#allocation2 + $0x88] sm:$0xff] }
 0x5d7   : > { %v13127_v50 = vpop.f32.mrb[100].mxu1  ;;  %v8024_v12 = vsel %vm1570_vm2, %v8019_v32, %v8023_v56 }
 0x5d8   : > { %v16960_v30 = vadd.f32 %v13127_v50, %v16763_v18  ;;  %v7345_v58 = vpop.f32.mrb[101].mxu1  ;;  %v8032_v18 = vsel %vm1570_vm2, %v8027_v44, %v8031_v22 }
 0x5d9   : > { %v16964_v36 = vadd.f32 %v7345_v58, %v16766_v46  ;;  %v13128_v23 = vpop.f32.mrb[102].mxu1  ;;  %v16975_v46 = vld [vmem:[#allocation2 + $0x80] sm:$0xff]  ;;  %v8043_v58 = vor.u32 %v8041_v13, %v8039_v63  ;;  %v16993_v13 = vld [vmem:[#allocation2 + $0x90] sm:$0xff] }
 0x5da   : > { %v16967_v11 = vadd.f32 %v13128_v23, %v16769_v1  ;;  %v7348_v55 = vpop.f32.mrb[103].mxu1  ;;  %18569 = vst [vmem:[#allocation32_spill] sm:$0xff] %v16975_v46  ;;  %v8045_v1 = vshll.u32 %v16970_v33, 16  ;;  %18571 = vst [vmem:[#allocation34_spill] sm:$0xff] %v16993_v13  ;;  %v8057_v22 = vshrl.u32 %v16975_v46, 16 }
 0x5dc   : > { %13250 = vmatmul.mubr.msk.bf16.gmra.mrb[208].mxu1 %vm291_vm0, %v8024_v12  ;;  %v8053_v12 = vshll.u32 %v16975_v46, 16  ;;  %v8047_v32 = vrot.slane %v8045_v1, 1  ;;  %v8061_v1 = vshll.u32 %v16988_v21, 16 }
 0x5dd   : > { %13253 = vmatprep.mubr.msk.bf16.mxu1 %vm291_vm0, %v8032_v18  ;;  %v8040_v18 = vsel %vm1570_vm2, %v8035_v17, %v8039_v63 }
 0x5df   : > { %v13131_v50 = vpop.f32.mrb[104].mxu1 }
 0x5e0   : > { %v16981_v56 = vadd.f32 %v13131_v50, %v16775_v28  ;;  %v7360_v47 = vpop.f32.mrb[105].mxu1  ;;  %v8048_v28 = vsel %vm1570_vm2, %v8043_v58, %v8047_v32  ;;  %v8055_v50 = vrot.slane %v8053_v12, 1 }
 0x5e1   : > { %v13132_v44 = vpop.f32.mrb[106].mxu1 }
 0x5e2   : > { %v7362_v23 = vpop.f32.mrb[107].mxu1  ;;  %v8059_v63 = vor.u32 %v8057_v22, %v8055_v50  ;;  %v8069_v44 = vshll.u32 %v16993_v13, 16 }
 0x5e3   : > { %v16985_v55 = vadd.f32 %v7362_v23, %v16778_v16  ;;  %v8049_v16 = vshrl.u32 %v16970_v33, 16 }
 0x5e4   : > { %13254 = vmatmul.mubr.msk.bf16.gmra.mrb[212].mxu1 %vm291_vm0, %v8040_v18 }
 0x5e5   : > { %18570 = vst [vmem:[#allocation33_spill] sm:$0xff] %v16985_v55  ;;  %13257 = vmatprep.mubr.msk.bf16.mxu1 %vm291_vm0, %v8048_v28  ;;  %v8051_v12 = vor.u32 %v8049_v16, %v8047_v32  ;;  %v8063_v28 = vrot.slane %v8061_v1, 1  ;;  %v17009_v55 = vld [vmem:[#allocation2 + $0x98] sm:$0xff]  ;;  %v17014_v32 = vld [vmem:[#allocation2 + $0xa0] sm:$0xff] }
 0x5e6   : > { %18574 = vst [vmem:[#allocation37_spill] sm:$0xff] %v17014_v32  ;;  %v8077_v1 = vshll.u32 %v17009_v55, 16 }
 0x5e7   : > { %v13135_v10 = vpop.f32.mrb[108].mxu1  ;;  %v8064_v22 = vsel %vm1570_vm2, %v8059_v63, %v8063_v28 }
 0x5e8   : > { %v7374_v47 = vpop.f32.mrb[109].mxu1  ;;  %v8056_v10 = vsel %vm1570_vm2, %v8051_v12, %v8055_v50  ;;  %v8085_v12 = vshll.u32 %v17014_v32, 16 }
 0x5e9   : > { %v17000_v17 = vadd.f32 %v7374_v47, %v16784_v57  ;;  %v13136_v58 = vpop.f32.mrb[110].mxu1  ;;  %v8071_v57 = vrot.slane %v8069_v44, 1 }
 0x5ea   : > { %v17003_v23 = vadd.f32 %v13136_v58, %v16787_v61  ;;  %v7377_v18 = vpop.f32.mrb[111].mxu1  ;;  %v8073_v61 = vshrl.u32 %v16993_v13, 16  ;;  %v8079_v13 = vrot.slane %v8077_v1, 1  ;;  %v8081_v1 = vshrl.u32 %v17009_v55, 16 }
 0x5eb   : > { %v17006_v46 = vadd.f32 %v7377_v18, %v16790_v37  ;;  %v8065_v37 = vshrl.u32 %v16988_v21, 16 }
 0x5ec   : > { %18572 = vst [vmem:[#allocation35_spill] sm:$0xff] %v17003_v23  ;;  %13258 = vmatmul.mubr.msk.bf16.gmra.mrb[216].mxu1 %vm291_vm0, %v8056_v10  ;;  %v8075_v58 = vor.u32 %v8073_v61, %v8071_v57  ;;  %v17030_v23 = vld [vmem:[#allocation2 + $0xa8] sm:$0xff]  ;;  %v8087_v61 = vrot.slane %v8085_v12, 1  ;;  %v8083_v12 = vor.u32 %v8081_v1, %v8079_v13 }
 0x5ed   : > { %18573 = vst [vmem:[#allocation36_spill] sm:$0xff] %v17006_v46  ;;  %13261 = vmatprep.mubr.msk.bf16.mxu1 %vm291_vm0, %v8064_v22  ;;  %v8067_v18 = vor.u32 %v8065_v37, %v8063_v28  ;;  %v8089_v28 = vshrl.u32 %v17014_v32, 16  ;;  %v17048_v32 = vld [vmem:[#allocation2 + $0xb8] sm:$0xff] }
 0x5ef   : > { %v13139_v16 = vpop.f32.mrb[112].mxu1  ;;  %v8072_v46 = vsel %vm1570_vm2, %v8067_v18, %v8071_v57 }
 0x5f0   : > { %v17020_v50 = vadd.f32 %v13139_v16, %v16797_v59  ;;  %v7389_v47 = vpop.f32.mrb[113].mxu1  ;;  %v8080_v59 = vsel %vm1570_vm2, %v8075_v58, %v8079_v13  ;;  %v8109_v13 = vshll.u32 %v17048_v32, 16 }
 0x5f1   : > { %v17024_v63 = vadd.f32 %v7389_v47, %v16800_v53  ;;  %v13140_v44 = vpop.f32.mrb[114].mxu1  ;;  %v17035_v53 = vld [vmem:[#allocation2 + $0xb0] sm:$0xff]  ;;  %v8091_v47 = vor.u32 %v8089_v28, %v8087_v61 }
 0x5f2   : > { %v17027_v10 = vadd.f32 %v13140_v44, %v16803_v51  ;;  %v7392_v22 = vpop.f32.mrb[115].mxu1  ;;  %18575 = vst [vmem:[#allocation38_spill] sm:$0xff] %v17035_v53  ;;  %v8093_v51 = vshll.u32 %v17030_v23, 16  ;;  %v8105_v28 = vshrl.u32 %v17035_v53, 16 }
 0x5f4   : > { %13262 = vmatmul.mubr.msk.bf16.gmra.mrb[220].mxu1 %vm291_vm0, %v8072_v46  ;;  %v8101_v46 = vshll.u32 %v17035_v53, 16  ;;  %v8095_v18 = vrot.slane %v8093_v51, 1  ;;  %v8097_v51 = vshrl.u32 %v17030_v23, 16 }
 0x5f5   : > { %13265 = vmatprep.mubr.msk.bf16.mxu1 %vm291_vm0, %v8080_v59  ;;  %v8088_v59 = vsel %vm1570_vm2, %v8083_v12, %v8087_v61  ;;  %v8117_v61 = vshll.u32 %v16844_v60, 16 }
 0x5f7   : > { %v13143_v16 = vpop.f32.mrb[116].mxu1  ;;  %v8119_v53 = vrot.slane %v8117_v61, 1 }
 0x5f8   : > { %v17041_v57 = vadd.f32 %v13143_v16, %v16810_v27  ;;  %v7404_v37 = vpop.f32.mrb[117].mxu1  ;;  %v8096_v27 = vsel %vm1570_vm2, %v8091_v47, %v8095_v18  ;;  %v8103_v16 = vrot.slane %v8101_v46, 1 }
 0x5f9   : > { %v13144_v58 = vpop.f32.mrb[118].mxu1 }
 0x5fa   : > { %v7406_v44 = vpop.f32.mrb[119].mxu1  ;;  %v8107_v37 = vor.u32 %v8105_v28, %v8103_v16 }
 0x5fb   : > { %v17045_v22 = vadd.f32 %v7406_v44, %v16813_v6  ;;  %v8099_v44 = vor.u32 %v8097_v51, %v8095_v18  ;;  %v14242_v18 = vld [vmem:[#allocation2 + $0xc8] sm:$0xff] }
 0x5fc   : > { %13266 = vmatmul.mubr.msk.bf16.gmra.mrb[224].mxu1 %vm291_vm0, %v8088_v59  ;;  %v8111_v59 = vrot.slane %v8109_v13, 1  ;;  %v8125_v51 = vshll.u32 %v14242_v18, 16 }
 0x5fd   : > { %13269 = vmatprep.mubr.msk.bf16.mxu1 %vm291_vm0, %v8096_v27 }
 0x5fe   : > { %v8112_v28 = vsel %vm1570_vm2, %v8107_v37, %v8111_v59 }
 0x5ff   : > { %v13147_v1 = vpop.f32.mrb[120].mxu1 }
 0x600   : > { %v7418_v6 = vpop.f32.mrb[121].mxu1  ;;  %v8104_v1 = vsel %vm1570_vm2, %v8099_v44, %v8103_v16 }
 0x601   : > { %v17058_v58 = vadd.f32 %v7418_v6, %v16820_v7  ;;  %v13148_v12 = vpop.f32.mrb[122].mxu1  ;;  %v8121_v7 = vshrl.u32 %v16844_v60, 16  ;;  %v8113_v6 = vshrl.u32 %v17048_v32, 16  ;;  %v14243_v60 = vld [vmem:[#allocation2 + $0xd0] sm:$0x1] }
 0x602   : > { %v17061_v47 = vadd.f32 %v13148_v12, %v16823_v43  ;;  %v7421_v46 = vpop.f32.mrb[123].mxu1 }
 0x603   : > { %v17064_v27 = vadd.f32 %v7421_v46, %v16826_v20  ;;  %v8123_v12 = vor.u32 %v8121_v7, %v8119_v53  ;;  %v8115_v37 = vor.u32 %v8113_v6, %v8111_v59  ;;  %v8129_v7 = vshrl.u32 %v14242_v18, 16 }
 0x604   : > { %13270 = vmatmul.mubr.msk.bf16.gmra.mrb[228].mxu1 %vm291_vm0, %v8104_v1  ;;  %v8127_v1 = vrot.slane %v8125_v51, 1 }
 0x605   : > { %18576 = vst [vmem:[#allocation39_spill] sm:$0xff] %v17064_v27  ;;  %13273 = vmatprep.mubr.msk.bf16.mxu1 %vm291_vm0, %v8112_v28  ;;  %v8120_v28 = vsel %vm1570_vm2, %v8115_v37, %v8119_v53  ;;  %v8133_v27 = vshll.u32 %v14243_v60, 16 }
 0x607   : > { %v13151_v43 = vpop.f32.mrb[124].mxu1  ;;  %v8135_v59 = vrot.slane %v8133_v27, 1 }
 0x608   : > { %v17073_v13 = vadd.f32 %v13151_v43, %v16833_v2  ;;  %v7433_v20 = vpop.f32.mrb[125].mxu1  ;;  %v8128_v2 = vsel %vm1570_vm2, %v8123_v12, %v8127_v1 }
 0x609   : > { %v17076_v16 = vadd.f32 %v7433_v20, %v16837_v4  ;;  %v13152_v44 = vpop.f32.mrb[126].mxu1  ;;  %v8474_v4 = vld [vmem:[#allocation2 + $0x10] sm:$0xfe]  ;;  %v8131_v20 = vor.u32 %v8129_v7, %v8127_v1 }
 0x60a   : > { %v17079_v61 = vadd.f32 %v13152_v44, %v16840_v3  ;;  %v7436_v46 = vpop.f32.mrb[127].mxu1  ;;  %v8510_v3 = vrot.slane %v8474_v4, 1  ;;  %v8511_v44 = vrot.slane %v16707_v29, 1 }
 0x60b   : > { %v8136_v37 = vsel %vm1570_vm2, %v8131_v20, %v8135_v59  ;;  %v8513_v46 = vrot.slane %v16711_v14, 1 }
 0x60c   : > { %13274 = vmatmul.mubr.msk.bf16.gmra.mrb[232].mxu1 %vm291_vm0, %v8120_v28  ;;  %v8512_v18 = vsel %vm8509_vm8, %v8510_v3, %v8511_v44 }
 0x60d   : > { %13277 = vmatprep.mubr.msk.bf16.mxu1 %vm291_vm0, %v8128_v2  ;;  %v8515_v2 = vrot.slane %v16728_v0, 1  ;;  %v8514_v4 = vsel %vm8509_vm8, %v8511_v44, %v8513_v46  ;;  %v14227_v0 = vld [vmem:[%s18424_s4 + $0xd0] sm:$0xff]   ;;  %v14228_v44 = vld [vmem:[%s18424_s4 + $0xd8] sm:$0xff]  }
 0x60f   : > { %v13155_v43 = vpop.f32.mrb[128].mxu1  ;;  %v8516_v14 = vsel %vm8509_vm8, %v8513_v46, %v8515_v2 }
 0x610   : > { %v7448_v6 = vpop.f32.mrb[129].mxu1  ;;  %v17087_v51 = vadd.f32 %v13155_v43, %v16851_v54 }
 0x611   : > { %v13156_v53 = vpop.f32.mrb[130].mxu1 }
 0x612   : > { %v7450_v60 = vpop.f32.mrb[131].mxu1 }
 0x613   : > { %v17091_v12 = vadd.f32 %v7450_v60, %v16855_v52  ;;  %v14226_v52 = vld [vmem:[%s18424_s4 + $0xc8] sm:$0xff]   ;;  %v8521_v60 = vrot.slane %v16882_v5, 1 }
 0x614   : > { %13278 = vmatmul.mubr.msk.bf16.gmra.mrb[236].mxu1 %vm291_vm0, %v8136_v37  ;;  %v8523_v37 = vrot.slane %v16904_v48, 1 }
 0x615   : > { %13289 = vmatprep.mubr.msk.bf16.mxu1 %vm291_vm0, %v8512_v18 }
 0x617   : > { %v13159_v27 = vpop.f32.mrb[132].mxu1 }
 0x618   : > { %v7462_v29 = vpop.f32.mrb[133].mxu1 }
 0x619   : > { %v13160_v1 = vpop.f32.mrb[134].mxu1  ;;  %v17098_v54 = vadd.f32 %v7462_v29, %v16866_v45 }
 0x61a   : > { %v7465_v28 = vpop.f32.mrb[135].mxu1  ;;  %v17105_v7 = vadd.f32 %v13160_v1, %v16869_v40  ;;  %v8517_v40 = vrot.slane %v16732_v62, 1 }
 0x61b   : > { %v17109_v43 = vadd.f32 %v7465_v28, %v16875_v25  ;;  %v8519_v25 = vrot.slane %v16746_v41, 1  ;;  %v8524_v28 = vsel %vm8509_vm8, %v8521_v60, %v8523_v37 }
 0x61c   : > { %13290 = vmatmul.mubr.msk.bf16.vlgmr.msra.gmra.mrb[240].mxu1 %vm291_vm0, %v8514_v4  ;;  %v8518_v62 = vsel %vm8509_vm8, %v8515_v2, %v8517_v40 }
 0x61d   : > { %13293 = vmatprep.mubr.msk.bf16.mxu1 %vm291_vm0, %v8516_v14  ;;  %13338 = vmatpush3.bf16.msra.mxu1 %v16916_v15  ;;  %v8520_v41 = vsel %vm8509_vm8, %v8517_v40, %v8519_v25  ;;  %v8522_v29 = vsel %vm8509_vm8, %v8519_v25, %v8521_v60 }
 0x61e   : > { %13339 = vmatprep.subr.bf16.mxu1 %v14226_v52 }
 0x61f   : > { %v13163_v45 = vpop.f32.mrb[136].mxu1 }
 0x620   : > { %v7477_v20 = vpop.f32.mrb[137].mxu1  ;;  %v17121_v59 = vadd.f32 %v13163_v45, %v16891_v8  ;;  %v17139_v8 = vld [vmem:[%s18424_s4 + $0xe0] sm:$0xff]   ;;  %v8527_v45 = vrot.slane %v16928_v39, 1 }
 0x621   : > { %v13164_v6 = vpop.f32.mrb[138].mxu1  ;;  %13340 = vmatpush3.bf16.msra.mxu1 %v14226_v52  ;;  %v17124_v3 = vadd.f32 %v7477_v20, %v16895_v9 }
 0x622   : > { %v7480_v15 = vpop.f32.mrb[139].mxu1  ;;  %13341 = vmatprep.subr.bf16.mxu1 %v14227_v0  ;;  %v17130_v53 = vadd.f32 %v13164_v6, %v16898_v42 }
 0x624   : > { %13294 = vmatmul.mubr.msk.bf16.gmra.mrb[244].mxu1 %vm291_vm0, %v8518_v62 }
 0x625   : > { %13297 = vmatprep.mubr.msk.bf16.mxu1 %vm291_vm0, %v8520_v41  ;;  %13342 = vmatpush3.bf16.msra.mxu1 %v14227_v0 }
 0x626   : > { %13343 = vmatprep.subr.bf16.mxu1 %v14228_v44 }
 0x627   : > { %v13167_v9 = vpop.f32.mrb[140].mxu1 }
 0x628   : > { %v7492_v42 = vpop.f32.mrb[141].mxu1  ;;  %v17144_v18 = vadd.f32 %v13167_v9, %v16920_v38  ;;  %v8525_v38 = vrot.slane %v16909_v35, 1 }
 0x629   : > { %v13168_v27 = vpop.f32.mrb[142].mxu1  ;;  %13344 = vmatpush3.bf16.msra.mxu1 %v14228_v44  ;;  %v8531_v44 = vrot.slane %v16949_v31, 1 }
 0x62a   : > { %v7494_v46 = vpop.f32.mrb[143].mxu1  ;;  %13393 = vmatprep.subr.bf16.mxu1 %v17139_v8  ;;  %v8526_v40 = vsel %vm8509_vm8, %v8523_v37, %v8525_v38  ;;  %v8528_v25 = vsel %vm8509_vm8, %v8525_v38, %v8527_v45  ;;  %v18577_v37 = vld [vmem:[#allocation31_spill] sm:$0xff]  ;;  %v18578_v38 = vld [vmem:[#allocation33_spill] sm:$0xff] }
 0x62b   : > { %v17149_v1 = vadd.f32 %v7494_v46, %v16925_v24  ;;  %v8533_v27 = vrot.slane %v18577_v37, 1 }
 0x62c   : > { %13298 = vmatmul.mubr.msk.bf16.gmra.mrb[248].mxu1 %vm291_vm0, %v8522_v29  ;;  %v8535_v29 = vrot.slane %v16970_v33, 1 }
 0x62d   : > { %13301 = vmatprep.mubr.msk.bf16.mxu1 %vm291_vm0, %v8524_v28 }
 0x62f   : > { %v13179_v2 = vpop.f32.mrb[144].mxu1 }
 0x630   : > { %v7700_v52 = vpop.f32.mrb[145].mxu1  ;;  %v8534_v2 = vsel %vm8509_vm8, %v8531_v44, %v8533_v27 }
 0x631   : > { %v13180_v4 = vpop.f32.mrb[146].mxu1  ;;  %v17156_v14 = vadd.f32 %v7700_v52, %v16940_v49  ;;  %v8529_v49 = vrot.slane %v16933_v26, 1 }
 0x632   : > { %v7703_v0 = vpop.f32.mrb[147].mxu1  ;;  %v17160_v24 = vadd.f32 %v13180_v4, %v16943_v34  ;;  %v8536_v4 = vsel %vm8509_vm8, %v8533_v27, %v8535_v29 }
 0x633   : > { %v17164_v20 = vadd.f32 %v7703_v0, %v16946_v19  ;;  %v8530_v60 = vsel %vm8509_vm8, %v8527_v45, %v8529_v49  ;;  %v8532_v42 = vsel %vm8509_vm8, %v8529_v49, %v8531_v44  ;;  %v18579_v0 = vld [vmem:[#allocation32_spill] sm:$0xff]  ;;  %v18580_v44 = vld [vmem:[#allocation35_spill] sm:$0xff] }
 0x634   : > { %13302 = vmatmul.mubr.msk.bf16.gmra.mrb[252].mxu1 %vm291_vm0, %v8526_v40  ;;  %v8537_v45 = vrot.slane %v18579_v0, 1 }
 0x635   : > { %13305 = vmatprep.mubr.msk.bf16.mxu1 %vm291_vm0, %v8528_v25 }
 0x637   : > { %v13183_v6 = vpop.f32.mrb[148].mxu1 }
 0x638   : > { %v7715_v15 = vpop.f32.mrb[149].mxu1  ;;  %v17172_v34 = vadd.f32 %v13183_v6, %v16960_v30 }
 0x639   : > { %v13184_v62 = vpop.f32.mrb[150].mxu1  ;;  %v17175_v41 = vadd.f32 %v7715_v15, %v16964_v36  ;;  %v8539_v15 = vrot.slane %v16988_v21, 1 }
 0x63a   : > { %v7718_v19 = vpop.f32.mrb[151].mxu1  ;;  %v17178_v9 = vadd.f32 %v13184_v62, %v16967_v11 }
 0x63b   : > { %v8538_v19 = vsel %vm8509_vm8, %v8535_v29, %v8537_v45  ;;  %v8540_v27 = vsel %vm8509_vm8, %v8537_v45, %v8539_v15 }
 0x63c   : > { %13306 = vmatmul.mubr.msk.bf16.gmra.mrb[0].mxu1 %vm291_vm0, %v8530_v60  ;;  %v18581_v60 = vld [vmem:[#allocation36_spill] sm:$0xff] }
 0x63d   : > { %13309 = vmatprep.mubr.msk.bf16.mxu1 %vm291_vm0, %v8532_v42 }
 0x63f   : > { %v13187_v30 = vpop.f32.mrb[152].mxu1 }
 0x640   : > { %v7730_v46 = vpop.f32.mrb[153].mxu1  ;;  %v17187_v36 = vadd.f32 %v13187_v30, %v16981_v56  ;;  %v18582_v30 = vld [vmem:[#allocation34_spill] sm:$0xff] }
 0x641   : > { %v13188_v28 = vpop.f32.mrb[154].mxu1 }
 0x642   : > { %v7732_v11 = vpop.f32.mrb[155].mxu1 }
 0x643   : > { %v17191_v52 = vadd.f32 %v7732_v11, %v18578_v38  ;;  %v8543_v11 = vrot.slane %v17009_v55, 1 }
 0x644   : > { %13310 = vmatmul.mubr.msk.bf16.gmra.mrb[4].mxu1 %vm291_vm0, %v8534_v2 }
 0x645   : > { %13313 = vmatprep.mubr.msk.bf16.mxu1 %vm291_vm0, %v8536_v4 }
 0x647   : > { %v13191_v40 = vpop.f32.mrb[156].mxu1 }
 0x648   : > { %v7744_v25 = vpop.f32.mrb[157].mxu1 }
 0x649   : > { %v13192_v49 = vpop.f32.mrb[158].mxu1  ;;  %v17198_v56 = vadd.f32 %v7744_v25, %v17000_v17  ;;  %v8541_v17 = vrot.slane %v18582_v30, 1 }
 0x64a   : > { %v7747_v6 = vpop.f32.mrb[159].mxu1  ;;  %v17202_v62 = vadd.f32 %v13192_v49, %v18580_v44  ;;  %v18583_v49 = vld [vmem:[#allocation37_spill] sm:$0xff] }
 0x64b   : > { %v17206_v42 = vadd.f32 %v7747_v6, %v18581_v60  ;;  %v8542_v45 = vsel %vm8509_vm8, %v8539_v15, %v8541_v17  ;;  %v8544_v25 = vsel %vm8509_vm8, %v8541_v17, %v8543_v11  ;;  %v8545_v6 = vrot.slane %v18583_v49, 1 }
 0x64c   : > { %13314 = vmatmul.mubr.msk.bf16.gmra.mrb[8].mxu1 %vm291_vm0, %v8538_v19  ;;  %v8547_v19 = vrot.slane %v17030_v23, 1 }
 0x64d   : > { %13317 = vmatprep.mubr.msk.bf16.mxu1 %vm291_vm0, %v8540_v27  ;;  %v8546_v27 = vsel %vm8509_vm8, %v8543_v11, %v8545_v6  ;;  %v8551_v11 = vrot.slane %v17048_v32, 1 }
 0x64e   : > { %v8548_v17 = vsel %vm8509_vm8, %v8545_v6, %v8547_v19 }
 0x64f   : > { %v13195_v46 = vpop.f32.mrb[160].mxu1 }
 0x650   : > { %v7759_v28 = vpop.f32.mrb[161].mxu1  ;;  %v17214_v2 = vadd.f32 %v13195_v46, %v17020_v50  ;;  %v18584_v46 = vld [vmem:[#allocation38_spill] sm:$0xff] }
 0x651   : > { %v13196_v38 = vpop.f32.mrb[162].mxu1  ;;  %v17217_v29 = vadd.f32 %v7759_v28, %v17024_v63  ;;  %v8549_v28 = vrot.slane %v18584_v46, 1 }
 0x652   : > { %v7762_v4 = vpop.f32.mrb[163].mxu1  ;;  %v17220_v40 = vadd.f32 %v13196_v38, %v17027_v10 }
 0x654   : > { %13318 = vmatmul.mubr.msk.bf16.gmra.mrb[12].mxu1 %vm291_vm0, %v8542_v45 }
 0x655   : > { %13321 = vmatprep.mubr.msk.bf16.mxu1 %vm291_vm0, %v8544_v25 }
 0x657   : > { %v13199_v50 = vpop.f32.mrb[164].mxu1 }
 0x658   : > { %v7774_v44 = vpop.f32.mrb[165].mxu1  ;;  %v17229_v63 = vadd.f32 %v13199_v50, %v17041_v57  ;;  %v8550_v50 = vsel %vm8509_vm8, %v8547_v19, %v8549_v28 }
 0x659   : > { %v13200_v60 = vpop.f32.mrb[166].mxu1  ;;  %v18585_v44 = vld [vmem:[#allocation39_spill] sm:$0xff] }
 0x65a   : > { %v7776_v10 = vpop.f32.mrb[167].mxu1  ;;  %v8552_v60 = vsel %vm8509_vm8, %v8549_v28, %v8551_v11  ;;  %v18587_v28 = vld [vmem:[#allocation9_spill] sm:$0xff] }
 0x65b   : > { %v17233_v15 = vadd.f32 %v7776_v10, %v17045_v22  ;;  %v18586_v10 = vld [vmem:[#allocation30_spill] sm:$0xff] }
 0x65c   : > { %13322 = vmatmul.mubr.msk.bf16.gmra.mrb[16].mxu1 %vm291_vm0, %v8546_v27 }
 0x65d   : > { %13325 = vmatprep.mubr.msk.bf16.mxu1 %vm291_vm0, %v8548_v17 }
 0x65f   : > { %v13203_v38 = vpop.f32.mrb[168].mxu1 }
 0x660   : > { %v7788_v4 = vpop.f32.mrb[169].mxu1 }
 0x661   : > { %v13204_v45 = vpop.f32.mrb[170].mxu1  ;;  %v17240_v57 = vadd.f32 %v7788_v4, %v17058_v58  ;;  %v8553_v58 = vrot.slane %v18586_v10, 1  ;;  %v14244_v10 = vld [vmem:[#allocation2 + $0x20] sm:$0xff] }
 0x662   : > { %v7791_v25 = vpop.f32.mrb[171].mxu1  ;;  %v17244_v22 = vadd.f32 %v13204_v45, %v17061_v47 }
 0x663   : > { %v17248_v6 = vadd.f32 %v7791_v25, %v18585_v44  ;;  %v8554_v25 = vsel %vm8509_vm8, %v8551_v11, %v8553_v58 }
 0x664   : > { %13326 = vmatmul.mubr.msk.bf16.gmra.mrb[20].mxu1 %vm291_vm0, %v8550_v50  ;;  %v18588_v50 = vrot.slane %v18587_v28, 1 }
 0x665   : > { %13329 = vmatprep.mubr.msk.bf16.mxu1 %vm291_vm0, %v8552_v60 }
 0x666   : > { %v8556_v44 = vsel %vm8509_vm8, %v8553_v58, %v18588_v50  ;;  %v14246_v50 = vld [vmem:[#allocation2 + $0x30] sm:$0xff] }
 0x667   : > { %v13207_v27 = vpop.f32.mrb[172].mxu1 }
 0x668   : > { %v7803_v17 = vpop.f32.mrb[173].mxu1  ;;  %v17255_v38 = vadd.f32 %v13207_v27, %v17073_v13  ;;  %v8956_v27 = vrot.slane %v14244_v10, 4 }
 0x669   : > { %v13208_v47 = vpop.f32.mrb[174].mxu1  ;;  %v17258_v4 = vadd.f32 %v7803_v17, %v17076_v16 }
 0x66a   : > { %v7806_v19 = vpop.f32.mrb[175].mxu1  ;;  %v17261_v45 = vadd.f32 %v13208_v47, %v17079_v61  ;;  %v14245_v47 = vld [vmem:[#allocation2 + $0x18] sm:$0xf0] }
 0x66b   : > { %v8955_v19 = vrot.slane %v14245_v47, 4  ;;  %v14230_v47 = vld [vmem:[%s18424_s4 + $0xe8] sm:$0xff]  }
 0x66c   : > { %13330 = vmatmul.mubr.msk.bf16.gmra.mrb[24].mxu1 %vm291_vm0, %v8554_v25  ;;  %v18589_v25 = vld [vmem:[#allocation10_spill] sm:$0xff] }
 0x66d   : > { %13333 = vmatprep.mubr.msk.bf16.mxu1 %vm291_vm0, %v8556_v44  ;;  %v8957_v58 = vsel %vm6783_vm6, %v8955_v19, %v8956_v27  ;;  %v8960_v44 = vrot.slane %v14246_v50, 4  ;;  %v8964_v50 = vrot.slane %v16882_v5, 4 }
 0x66f   : > { %v13211_v13 = vpop.f32.mrb[176].mxu1 }
 0x670   : > { %v17270_v60 = vadd.f32 %v13211_v13, %v17087_v51  ;;  %v7818_v16 = vpop.f32.mrb[177].mxu1  ;;  %v14247_v13 = vld [vmem:[#allocation2 + $0x28] sm:$0xff] }
 0x671   : > { %v13212_v17 = vpop.f32.mrb[178].mxu1  ;;  %v8958_v16 = vrot.slane %v14247_v13, 4 }
 0x672   : > { %v7820_v61 = vpop.f32.mrb[179].mxu1 }
 0x673   : > { %v17273_v11 = vadd.f32 %v7820_v61, %v17091_v12  ;;  %v8959_v19 = vsel %vm6783_vm6, %v8956_v27, %v8958_v16 }
 0x674   : > { %13334 = vmatmul.mubr.msk.bf16.gmra.mrb[28].mxu1 %vm291_vm0, %v18589_v25 }
 0x675   : > { %13345 = vmatprep.mubr.msk.bf16.mxu1 %vm291_vm0, %v8957_v58  ;;  %v8961_v58 = vsel %vm6783_vm6, %v8958_v16, %v8960_v44 }
 0x677   : > { %v13215_v28 = vpop.f32.mrb[180].mxu1 }
 0x678   : > { %v7832_v51 = vpop.f32.mrb[181].mxu1 }
 0x679   : > { %v17280_v10 = vadd.f32 %v7832_v51, %v17098_v54  ;;  %v13216_v17 = vpop.f32.mrb[182].mxu1  ;;  %v14231_v54 = vld [vmem:[%s18424_s4 + $0xf0] sm:$0xff]  }
 0x67a   : > { %v17283_v12 = vadd.f32 %v13216_v17, %v17105_v7  ;;  %v7835_v61 = vpop.f32.mrb[183].mxu1  ;;  %v14248_v7 = vld [vmem:[#allocation2 + $0x38] sm:$0xff] }
 0x67b   : > { %v17290_v25 = vadd.f32 %v7835_v61, %v17109_v43  ;;  %v8962_v28 = vrot.slane %v14248_v7, 4  ;;  %v14232_v61 = vld [vmem:[%s18424_s4 + $0xf8] sm:$0xff]  }
 0x67c   : > { %13346 = vmatmul.mubr.msk.bf16.vlgmr.msra.gmra.mrb[32].mxu1 %vm291_vm0, %v8959_v19 }
 0x67d   : > { %13349 = vmatprep.mubr.msk.bf16.mxu1 %vm291_vm0, %v8961_v58  ;;  %13394 = vmatpush3.bf16.msra.mxu1 %v17139_v8  ;;  %v8965_v5 = vsel %vm6783_vm6, %v8962_v28, %v8964_v50  ;;  %v8968_v58 = vrot.slane %v16909_v35, 4  ;;  %v8972_v35 = vrot.slane %v16933_v26, 4 }
 0x67e   : > { %13395 = vmatprep.subr.bf16.mxu1 %v14230_v47 }
 0x67f   : > { %v13219_v51 = vpop.f32.mrb[184].mxu1 }
 0x680   : > { %v17300_v27 = vadd.f32 %v13219_v51, %v17121_v59  ;;  %v7847_v43 = vpop.f32.mrb[185].mxu1  ;;  %v8963_v59 = vsel %vm6783_vm6, %v8960_v44, %v8962_v28 }
 0x681   : > { %v17304_v13 = vadd.f32 %v7847_v43, %v17124_v3  ;;  %v13220_v16 = vpop.f32.mrb[186].mxu1  ;;  %13396 = vmatpush3.bf16.msra.mxu1 %v14230_v47  ;;  %v17319_v3 = vld [vmem:[%s18424_s4 + $0x100] sm:$0xff]  }
 0x682   : > { %v17307_v8 = vadd.f32 %v13220_v16, %v17130_v53  ;;  %v7850_v17 = vpop.f32.mrb[187].mxu1  ;;  %13397 = vmatprep.subr.bf16.mxu1 %v14231_v54  ;;  %v8966_v53 = vrot.slane %v16904_v48, 4  ;;  %v8970_v16 = vrot.slane %v16928_v39, 4  ;;  %v8974_v39 = vrot.slane %v16949_v31, 4 }
 0x684   : > { %13350 = vmatmul.mubr.msk.bf16.gmra.mrb[36].mxu1 %vm291_vm0, %v8963_v59  ;;  %v8969_v48 = vsel %vm6783_vm6, %v8966_v53, %v8968_v58  ;;  %v8971_v59 = vsel %vm6783_vm6, %v8968_v58, %v8970_v16 }
 0x685   : > { %13353 = vmatprep.mubr.msk.bf16.mxu1 %vm291_vm0, %v8965_v5  ;;  %13398 = vmatpush3.bf16.msra.mxu1 %v14231_v54  ;;  %v8967_v54 = vsel %vm6783_vm6, %v8964_v50, %v8966_v53  ;;  %v8973_v53 = vsel %vm6783_vm6, %v8970_v16, %v8972_v35 }
 0x686   : > { %13399 = vmatprep.subr.bf16.mxu1 %v14232_v61 }
 0x687   : > { %v13223_v47 = vpop.f32.mrb[188].mxu1 }
 0x688   : > { %v17323_v19 = vadd.f32 %v13223_v47, %v17144_v18  ;;  %v7862_v44 = vpop.f32.mrb[189].mxu1  ;;  %v8976_v47 = vrot.slane %v18577_v37, 4 }
 0x689   : > { %v13224_v7 = vpop.f32.mrb[190].mxu1  ;;  %13400 = vmatpush3.bf16.msra.mxu1 %v14232_v61 }
 0x68a   : > { %v7864_v28 = vpop.f32.mrb[191].mxu1  ;;  %13449 = vmatprep.subr.bf16.mxu1 %v17319_v3  ;;  %v8977_v31 = vsel %vm6783_vm6, %v8974_v39, %v8976_v47 }
 0x68b   : > { %v17329_v51 = vadd.f32 %v7864_v28, %v17149_v1  ;;  %v8975_v28 = vsel %vm6783_vm6, %v8972_v35, %v8974_v39 }
 0x68c   : > { %13354 = vmatmul.mubr.msk.bf16.gmra.mrb[40].mxu1 %vm291_vm0, %v8967_v54 }
 0x68d   : > { %13357 = vmatprep.mubr.msk.bf16.mxu1 %vm291_vm0, %v8969_v48  ;;  %v8980_v48 = vrot.slane %v18579_v0, 4 }
 0x68f   : > { %v13235_v18 = vpop.f32.mrb[192].mxu1 }
 0x690   : > { %v8267_v43 = vpop.f32.mrb[193].mxu1 }
 0x691   : > { %v17337_v17 = vadd.f32 %v8267_v43, %v17156_v14  ;;  %v13236_v61 = vpop.f32.mrb[194].mxu1 }
 0x692   : > { %v17340_v50 = vadd.f32 %v13236_v61, %v17160_v24  ;;  %v8270_v1 = vpop.f32.mrb[195].mxu1 }
 0x693   : > { %v17344_v5 = vadd.f32 %v8270_v1, %v17164_v20  ;;  %v8982_v1 = vrot.slane %v16988_v21, 4  ;;  %v8986_v21 = vrot.slane %v17009_v55, 4 }
 0x694   : > { %13358 = vmatmul.mubr.msk.bf16.gmra.mrb[44].mxu1 %vm291_vm0, %v8971_v59 }
 0x695   : > { %13361 = vmatprep.mubr.msk.bf16.mxu1 %vm291_vm0, %v8973_v53  ;;  %v8983_v39 = vsel %vm6783_vm6, %v8980_v48, %v8982_v1 }
 0x697   : > { %v13239_v26 = vpop.f32.mrb[196].mxu1 }
 0x698   : > { %v17351_v14 = vadd.f32 %v13239_v26, %v17172_v34  ;;  %v8282_v24 = vpop.f32.mrb[197].mxu1  ;;  %v8978_v34 = vrot.slane %v16970_v33, 4 }
 0x699   : > { %v17355_v44 = vadd.f32 %v8282_v24, %v17175_v41  ;;  %v13240_v20 = vpop.f32.mrb[198].mxu1 }
 0x69a   : > { %v17358_v58 = vadd.f32 %v13240_v20, %v17178_v9  ;;  %v8285_v7 = vpop.f32.mrb[199].mxu1  ;;  %v8979_v43 = vsel %vm6783_vm6, %v8976_v47, %v8978_v34  ;;  %v8981_v16 = vsel %vm6783_vm6, %v8978_v34, %v8980_v48  ;;  %v8988_v47 = vrot.slane %v18583_v49, 4 }
 0x69c   : > { %13362 = vmatmul.mubr.msk.bf16.gmra.mrb[48].mxu1 %vm291_vm0, %v8975_v28  ;;  %v8989_v55 = vsel %vm6783_vm6, %v8986_v21, %v8988_v47 }
 0x69d   : > { %13365 = vmatprep.mubr.msk.bf16.mxu1 %vm291_vm0, %v8977_v31 }
 0x69f   : > { %v13243_v54 = vpop.f32.mrb[200].mxu1 }
 0x6a0   : > { %v17366_v37 = vadd.f32 %v13243_v54, %v17187_v36  ;;  %v8297_v41 = vpop.f32.mrb[201].mxu1  ;;  %v8984_v36 = vrot.slane %v18582_v30, 4  ;;  %v8992_v54 = vrot.slane %v18584_v46, 4 }
 0x6a1   : > { %v13244_v9 = vpop.f32.mrb[202].mxu1 }
 0x6a2   : > { %v8299_v18 = vpop.f32.mrb[203].mxu1  ;;  %v8985_v24 = vsel %vm6783_vm6, %v8982_v1, %v8984_v36  ;;  %v8987_v31 = vsel %vm6783_vm6, %v8984_v36, %v8986_v21  ;;  %v14251_v21 = vld [vmem:[#allocation2 + $0xd0] sm:$0xff] }
 0x6a3   : > { %v17371_v35 = vadd.f32 %v8299_v18, %v17191_v52 }
 0x6a4   : > { %13366 = vmatmul.mubr.msk.bf16.gmra.mrb[52].mxu1 %vm291_vm0, %v8979_v43 }
 0x6a5   : > { %13369 = vmatprep.mubr.msk.bf16.mxu1 %vm291_vm0, %v8981_v16 }
 0x6a7   : > { %v13247_v33 = vpop.f32.mrb[204].mxu1 }
 0x6a8   : > { %v8311_v61 = vpop.f32.mrb[205].mxu1  ;;  %v8994_v33 = vrot.slane %v17048_v32, 4  ;;  %v14250_v32 = vld [vmem:[#allocation2 + $0xc8] sm:$0xff] }
 0x6a9   : > { %v17379_v0 = vadd.f32 %v8311_v61, %v17198_v56  ;;  %v13248_v59 = vpop.f32.mrb[206].mxu1 }
 0x6aa   : > { %v17382_v53 = vadd.f32 %v13248_v59, %v17202_v62  ;;  %v8314_v52 = vpop.f32.mrb[207].mxu1  ;;  %v8995_v1 = vsel %vm6783_vm6, %v8992_v54, %v8994_v33 }
 0x6ab   : > { %v17386_v26 = vadd.f32 %v8314_v52, %v17206_v42 }
 0x6ac   : > { %13370 = vmatmul.mubr.msk.bf16.gmra.mrb[56].mxu1 %vm291_vm0, %v8983_v39  ;;  %v8998_v39 = vrot.slane %v14250_v32, 4 }
 0x6ad   : > { %13373 = vmatprep.mubr.msk.bf16.mxu1 %vm291_vm0, %v8985_v24 }
 0x6af   : > { %v13251_v56 = vpop.f32.mrb[208].mxu1 }
 0x6b0   : > { %v17393_v30 = vadd.f32 %v13251_v56, %v17214_v2  ;;  %v8326_v62 = vpop.f32.mrb[209].mxu1  ;;  %v8990_v2 = vrot.slane %v17030_v23, 4  ;;  %v9000_v56 = vrot.slane %v14251_v21, 4 }
 0x6b1   : > { %v17397_v20 = vadd.f32 %v8326_v62, %v17217_v29  ;;  %v13252_v42 = vpop.f32.mrb[210].mxu1 }
 0x6b2   : > { %v17400_v7 = vadd.f32 %v13252_v42, %v17220_v40  ;;  %v8329_v28 = vpop.f32.mrb[211].mxu1  ;;  %v8991_v48 = vsel %vm6783_vm6, %v8988_v47, %v8990_v2  ;;  %v8993_v18 = vsel %vm6783_vm6, %v8990_v2, %v8992_v54 }
 0x6b3   : > { %v8920_v28 = vld [vmem:[#allocation2 + $0xd8] sm:$0xf] }
 0x6b4   : > { %13374 = vmatmul.mubr.msk.bf16.gmra.mrb[60].mxu1 %vm291_vm0, %v8987_v31 }
 0x6b5   : > { %13377 = vmatprep.mubr.msk.bf16.mxu1 %vm291_vm0, %v8989_v55  ;;  %v9001_v55 = vsel %vm6783_vm6, %v8998_v39, %v9000_v56 }
 0x6b7   : > { %v13255_v34 = vpop.f32.mrb[212].mxu1 }
 0x6b8   : > { %v17408_v49 = vadd.f32 %v13255_v34, %v17229_v63  ;;  %v8341_v29 = vpop.f32.mrb[213].mxu1  ;;  %v14249_v63 = vld [vmem:[#allocation2 + $0xc0] sm:$0xff] }
 0x6b9   : > { %v13256_v40 = vpop.f32.mrb[214].mxu1  ;;  %v8996_v16 = vrot.slane %v14249_v63, 4 }
 0x6ba   : > { %v8343_v41 = vpop.f32.mrb[215].mxu1 }
 0x6bb   : > { %v17413_v9 = vadd.f32 %v8343_v41, %v17233_v15  ;;  %v8997_v52 = vsel %vm6783_vm6, %v8994_v33, %v8996_v16  ;;  %v8999_v31 = vsel %vm6783_vm6, %v8996_v16, %v8998_v39  ;;  %v18590_v41 = vld [vmem:[#allocation14_spill] sm:$0xff]  ;;  %v18592_v39 = vld [vmem:[#allocation15_spill] sm:$0xff] }
 0x6bc   : > { %13378 = vmatmul.mubr.msk.bf16.gmra.mrb[64].mxu1 %vm291_vm0, %v8991_v48 }
 0x6bd   : > { %13381 = vmatprep.mubr.msk.bf16.mxu1 %vm291_vm0, %v8993_v18 }
 0x6bf   : > { %v13259_v23 = vpop.f32.mrb[216].mxu1 }
 0x6c0   : > { %v8355_v43 = vpop.f32.mrb[217].mxu1  ;;  %v17455_v23 = vld [vmem:[#allocation2 + $0x40] sm:$0xff] }
 0x6c1   : > { %v17420_v46 = vadd.f32 %v8355_v43, %v17240_v57  ;;  %v13260_v61 = vpop.f32.mrb[218].mxu1  ;;  %v9399_v43 = vshll.u32 %v17455_v23, 16 }
 0x6c2   : > { %v17423_v36 = vadd.f32 %v13260_v61, %v17244_v22  ;;  %v8358_v15 = vpop.f32.mrb[219].mxu1  ;;  %v14234_v61 = vld [vmem:[%s18424_s4 + $0x108] sm:$0xff]  }
 0x6c3   : > { %v17427_v59 = vadd.f32 %v8358_v15, %v17248_v6  ;;  %v9401_v32 = vrot.slane %v9399_v43, 5 }
 0x6c4   : > { %13382 = vmatmul.mubr.msk.bf16.gmra.mrb[68].mxu1 %vm291_vm0, %v8995_v1  ;;  %v18591_v1 = vld [vmem:[#allocation13_spill] sm:$0xff] }
 0x6c5   : > { %13385 = vmatprep.mubr.msk.bf16.mxu1 %vm291_vm0, %v8997_v52 }
 0x6c7   : > { %v13263_v57 = vpop.f32.mrb[220].mxu1 }
 0x6c8   : > { %v17433_v24 = vadd.f32 %v13263_v57, %v17255_v38  ;;  %v8370_v22 = vpop.f32.mrb[221].mxu1  ;;  %v9002_v38 = vrot.slane %v8920_v28, 4  ;;  %v17479_v57 = vld [vmem:[#allocation2 + $0x48] sm:$0xff] }
 0x6c9   : > { %v17436_v62 = vadd.f32 %v8370_v22, %v17258_v4  ;;  %v13264_v6 = vpop.f32.mrb[222].mxu1  ;;  %v9408_v22 = vshll.u32 %v17479_v57, 16 }
 0x6ca   : > { %v17439_v47 = vadd.f32 %v13264_v6, %v17261_v45  ;;  %v8373_v42 = vpop.f32.mrb[223].mxu1  ;;  %v9003_v29 = vsel %vm6783_vm6, %v9000_v56, %v9002_v38 }
 0x6cb   : > { %v17486_v42 = vld [vmem:[#allocation2 + $0x50] sm:$0xff] }
 0x6cc   : > { %13386 = vmatmul.mubr.msk.bf16.gmra.mrb[72].mxu1 %vm291_vm0, %v8999_v31  ;;  %v9417_v28 = vshll.u32 %v17486_v42, 16 }
 0x6cd   : > { %13389 = vmatprep.mubr.msk.bf16.mxu1 %vm291_vm0, %v9001_v55 }
 0x6cf   : > { %v13267_v2 = vpop.f32.mrb[224].mxu1 }
 0x6d0   : > { %v17446_v34 = vadd.f32 %v13267_v2, %v17270_v60  ;;  %v8385_v4 = vpop.f32.mrb[225].mxu1  ;;  %v9396_v60 = vshrl.u32 %v17455_v23, 16 }
 0x6d1   : > { %v13268_v45 = vpop.f32.mrb[226].mxu1 }
 0x6d2   : > { %v8387_v54 = vpop.f32.mrb[227].mxu1  ;;  %v9398_v52 = vrot.slane %v9396_v60, 4  ;;  %v18593_v45 = vld [vmem:[#allocation17_spill] sm:$0xff] }
 0x6d3   : > { %v17450_v40 = vadd.f32 %v8387_v54, %v17273_v11  ;;  %v18594_v54 = vld [vmem:[#allocation16_spill] sm:$0xff] }
 0x6d4   : > { %13390 = vmatmul.mubr.msk.bf16.gmra.mrb[76].mxu1 %vm291_vm0, %v9003_v29  ;;  %v9402_v6 = vor.u32 %v9401_v32, %v9398_v52  ;;  %v9410_v29 = vrot.slane %v9408_v22, 5  ;;  %v17511_v32 = vld [vmem:[#allocation2 + $0x58] sm:$0xff] }
 0x6d5   : > { %13401 = vmatprep.mubr.msk.bf16.mxu1 %vm291_vm0, %v18590_v41 }
 0x6d7   : > { %v13271_v48 = vpop.f32.mrb[228].mxu1 }
 0x6d8   : > { %v8399_v18 = vpop.f32.mrb[229].mxu1  ;;  %v9419_v48 = vrot.slane %v9417_v28, 5 }
 0x6d9   : > { %v17460_v63 = vadd.f32 %v8399_v18, %v17280_v10  ;;  %v13272_v16 = vpop.f32.mrb[230].mxu1  ;;  %v14235_v10 = vld [vmem:[%s18424_s4 + $0x110] sm:$0xff]  }
 0x6da   : > { %v17463_v11 = vadd.f32 %v13272_v16, %v17283_v12  ;;  %v8402_v33 = vpop.f32.mrb[231].mxu1 }
 0x6db   : > { %v17469_v15 = vadd.f32 %v8402_v33, %v17290_v25  ;;  %v9405_v25 = vshrl.u32 %v17479_v57, 16  ;;  %v17507_v33 = vld [vmem:[#allocation2 + $0x60] sm:$0xff] }
 0x6dc   : > { %13402 = vmatmul.mubr.msk.bf16.vlgmr.msra.gmra.mrb[80].mxu1 %vm291_vm0, %v18591_v1  ;;  %v9435_v1 = vshll.u32 %v17507_v33, 16 }
 0x6dd   : > { %13405 = vmatprep.mubr.msk.bf16.mxu1 %vm291_vm0, %v18592_v39  ;;  %13450 = vmatpush3.bf16.msra.mxu1 %v17319_v3  ;;  %v9414_v3 = vshrl.u32 %v17486_v42, 16  ;;  %v9407_v4 = vrot.slane %v9405_v25, 4  ;;  %v9423_v39 = vshrl.u32 %v17511_v32, 16 }
 0x6de   : > { %13451 = vmatprep.subr.bf16.mxu1 %v14234_v61 }
 0x6df   : > { %v13275_v12 = vpop.f32.mrb[232].mxu1  ;;  %v9416_v41 = vrot.slane %v9414_v3, 4  ;;  %v9437_v3 = vrot.slane %v9435_v1, 5  ;;  %v9425_v28 = vrot.slane %v9423_v39, 4 }
 0x6e0   : > { %v17484_v21 = vadd.f32 %v13275_v12, %v17300_v27  ;;  %v8414_v56 = vpop.f32.mrb[233].mxu1  ;;  %v14236_v27 = vld [vmem:[%s18424_s4 + $0x118] sm:$0xff]  }
 0x6e1   : > { %v17491_v31 = vadd.f32 %v8414_v56, %v17304_v13  ;;  %v13276_v55 = vpop.f32.mrb[234].mxu1  ;;  %13452 = vmatpush3.bf16.msra.mxu1 %v14234_v61  ;;  %v9403_v13 = vsel %vm6228_vm3, %v18594_v54, %v9402_v6  ;;  %v9420_v16 = vor.u32 %v9419_v48, %v9416_v41  ;;  %v9432_v61 = vshrl.u32 %v17507_v33, 16 }
 0x6e2   : > { %v17494_v38 = vadd.f32 %v13276_v55, %v17307_v8  ;;  %v8417_v2 = vpop.f32.mrb[235].mxu1  ;;  %13453 = vmatprep.subr.bf16.mxu1 %v14235_v10  ;;  %v9411_v8 = vor.u32 %v9410_v29, %v9407_v4  ;;  %v17522_v4 = vld [vmem:[#allocation2 + $0x68] sm:$0xff] }
 0x6e3   : > { %v9434_v56 = vrot.slane %v9432_v61, 4 }
 0x6e4   : > { %13406 = vmatmul.mubr.msk.bf16.gmra.mrb[84].mxu1 %vm291_vm0, %v18593_v45  ;;  %v9421_v22 = vsel %vm6228_vm3, %v9411_v8, %v9420_v16  ;;  %v17526_v45 = vld [vmem:[#allocation2 + $0x70] sm:$0xff] }
 0x6e5   : > { %13409 = vmatprep.mubr.msk.bf16.mxu1 %vm291_vm0, %v9403_v13  ;;  %13454 = vmatpush3.bf16.msra.mxu1 %v14235_v10  ;;  %v9426_v10 = vshll.u32 %v17511_v32, 16  ;;  %v9450_v54 = vshrl.u32 %v17526_v45, 16  ;;  %v9453_v13 = vshll.u32 %v17526_v45, 16 }
 0x6e6   : > { %13455 = vmatprep.subr.bf16.mxu1 %v14236_v27 }
 0x6e7   : > { %v13279_v18 = vpop.f32.mrb[236].mxu1  ;;  %v9428_v55 = vrot.slane %v9426_v10, 5 }
 0x6e8   : > { %v17505_v60 = vadd.f32 %v13279_v18, %v17323_v19  ;;  %v8429_v43 = vpop.f32.mrb[237].mxu1  ;;  %v9412_v19 = vsel %vm6228_vm3, %v9402_v6, %v9411_v8  ;;  %v9444_v6 = vshll.u32 %v17522_v4, 16 }
 0x6e9   : > { %v13280_v52 = vpop.f32.mrb[238].mxu1  ;;  %13456 = vmatpush3.bf16.msra.mxu1 %v14236_v27  ;;  %v9441_v27 = vshrl.u32 %v17522_v4, 16  ;;  %v9429_v41 = vor.u32 %v9428_v55, %v9425_v28  ;;  %v17550_v55 = vld [vmem:[#allocation2 + $0x80] sm:$0xff] }
 0x6ea   : > { %v8431_v12 = vpop.f32.mrb[239].mxu1  ;;  %v9446_v39 = vrot.slane %v9444_v6, 5 }
 0x6eb   : > { %v17517_v25 = vadd.f32 %v8431_v12, %v17329_v51  ;;  %v9438_v51 = vor.u32 %v9437_v3, %v9434_v56  ;;  %v9430_v61 = vsel %vm6228_vm3, %v9420_v16, %v9429_v41  ;;  %v9443_v52 = vrot.slane %v9441_v27, 4 }
 0x6ec   : > { %13410 = vmatmul.mubr.msk.bf16.gmra.mrb[88].mxu1 %vm291_vm0, %v9412_v19  ;;  %v9452_v12 = vrot.slane %v9450_v54, 4  ;;  %v9455_v19 = vrot.slane %v9453_v13, 5  ;;  %v9471_v27 = vshll.u32 %v17550_v55, 16 }
 0x6ed   : > { %13413 = vmatprep.mubr.msk.bf16.mxu1 %vm291_vm0, %v9421_v22  ;;  %v9439_v10 = vsel %vm6228_vm3, %v9429_v41, %v9438_v51 }
 0x6ee   : > { %v9456_v28 = vor.u32 %v9455_v19, %v9452_v12  ;;  %v17567_v19 = vld [vmem:[#allocation2 + $0x90] sm:$0xff] }
 0x6ef   : > { %v13291_v2 = vpop.f32.mrb[240].mxu1 }
 0x6f0   : > { %v8689_v29 = vpop.f32.mrb[241].mxu1  ;;  %v9468_v2 = vshrl.u32 %v17550_v55, 16 }
 0x6f1   : > { %v17531_v48 = vadd.f32 %v8689_v29, %v17337_v17  ;;  %v13292_v8 = vpop.f32.mrb[242].mxu1  ;;  %v9447_v17 = vor.u32 %v9446_v39, %v9443_v52  ;;  %v9473_v52 = vrot.slane %v9471_v27, 5 }
 0x6f2   : > { %v17534_v18 = vadd.f32 %v13292_v8, %v17340_v50  ;;  %v8692_v43 = vpop.f32.mrb[243].mxu1  ;;  %v17543_v50 = vld [vmem:[#allocation2 + $0x78] sm:$0xff] }
 0x6f3   : > { %v17538_v1 = vadd.f32 %v8692_v43, %v17344_v5  ;;  %v9459_v56 = vshrl.u32 %v17543_v50, 16  ;;  %v9462_v16 = vshll.u32 %v17543_v50, 16  ;;  %v9448_v41 = vsel %vm6228_vm3, %v9438_v51, %v9447_v17 }
 0x6f4   : > { %13414 = vmatmul.mubr.msk.bf16.gmra.mrb[92].mxu1 %vm291_vm0, %v9430_v61  ;;  %v9457_v43 = vsel %vm6228_vm3, %v9447_v17, %v9456_v28  ;;  %v9470_v61 = vrot.slane %v9468_v2, 4  ;;  %v9486_v51 = vshrl.u32 %v17567_v19, 16 }
 0x6f5   : > { %13417 = vmatprep.mubr.msk.bf16.mxu1 %vm291_vm0, %v9439_v10  ;;  %v9464_v8 = vrot.slane %v9462_v16, 5  ;;  %v17571_v16 = vld [vmem:[#allocation2 + $0x88] sm:$0xff] }
 0x6f6   : > { %v9474_v12 = vor.u32 %v9473_v52, %v9470_v61  ;;  %v9477_v17 = vshrl.u32 %v17571_v16, 16  ;;  %v17582_v61 = vld [vmem:[#allocation2 + $0x98] sm:$0xff] }
 0x6f7   : > { %v13295_v22 = vpop.f32.mrb[244].mxu1  ;;  %v9495_v52 = vshrl.u32 %v17582_v61, 16 }
 0x6f8   : > { %v17548_v5 = vadd.f32 %v13295_v22, %v17351_v14  ;;  %v8704_v3 = vpop.f32.mrb[245].mxu1  ;;  %v9461_v14 = vrot.slane %v9459_v56, 4  ;;  %v9489_v22 = vshll.u32 %v17567_v19, 16 }
 0x6f9   : > { %v17555_v6 = vadd.f32 %v8704_v3, %v17355_v44  ;;  %v13296_v29 = vpop.f32.mrb[246].mxu1  ;;  %v9480_v3 = vshll.u32 %v17571_v16, 16 }
 0x6fa   : > { %v17558_v54 = vadd.f32 %v13296_v29, %v17358_v58  ;;  %v8707_v13 = vpop.f32.mrb[247].mxu1  ;;  %v9465_v39 = vor.u32 %v9464_v8, %v9461_v14  ;;  %v9479_v14 = vrot.slane %v9477_v17, 4 }
 0x6fb   : > { %v9488_v13 = vrot.slane %v9486_v51, 4  ;;  %v9482_v8 = vrot.slane %v9480_v3, 5 }
 0x6fc   : > { %13418 = vmatmul.mubr.msk.bf16.gmra.mrb[96].mxu1 %vm291_vm0, %v9448_v41  ;;  %v9466_v27 = vsel %vm6228_vm3, %v9456_v28, %v9465_v39  ;;  %v9475_v29 = vsel %vm6228_vm3, %v9465_v39, %v9474_v12  ;;  %v9491_v41 = vrot.slane %v9489_v22, 5  ;;  %v9498_v28 = vshll.u32 %v17582_v61, 16 }
 0x6fd   : > { %13421 = vmatprep.mubr.msk.bf16.mxu1 %vm291_vm0, %v9457_v43  ;;  %v9483_v51 = vor.u32 %v9482_v8, %v9479_v14 }
 0x6ff   : > { %v13299_v44 = vpop.f32.mrb[248].mxu1 }
 0x700   : > { %v17565_v10 = vadd.f32 %v13299_v44, %v17366_v37  ;;  %v8719_v58 = vpop.f32.mrb[249].mxu1 }
 0x701   : > { %v13300_v56 = vpop.f32.mrb[250].mxu1  ;;  %v17586_v58 = vld [vmem:[#allocation2 + $0xa0] sm:$0xff] }
 0x702   : > { %v8721_v2 = vpop.f32.mrb[251].mxu1  ;;  %v9504_v56 = vshrl.u32 %v17586_v58, 16  ;;  %v9507_v39 = vshll.u32 %v17586_v58, 16 }
 0x703   : > { %v17577_v37 = vadd.f32 %v8721_v2, %v17371_v35  ;;  %v9492_v35 = vor.u32 %v9491_v41, %v9488_v13  ;;  %v9497_v13 = vrot.slane %v9495_v52, 4  ;;  %v9500_v41 = vrot.slane %v9498_v28, 5 }
 0x704   : > { %13422 = vmatmul.mubr.msk.bf16.gmra.mrb[100].mxu1 %vm291_vm0, %v9466_v27  ;;  %v9484_v27 = vsel %vm6228_vm3, %v9474_v12, %v9483_v51  ;;  %v9506_v14 = vrot.slane %v9504_v56, 4  ;;  %v9509_v8 = vrot.slane %v9507_v39, 5 }
 0x705   : > { %13425 = vmatprep.mubr.msk.bf16.mxu1 %vm291_vm0, %v9475_v29 }
 0x706   : > { %v9510_v28 = vor.u32 %v9509_v8, %v9506_v14 }
 0x707   : > { %v13303_v43 = vpop.f32.mrb[252].mxu1 }
 0x708   : > { %v8733_v44 = vpop.f32.mrb[253].mxu1  ;;  %v9493_v43 = vsel %vm6228_vm3, %v9483_v51, %v9492_v35 }
 0x709   : > { %v17591_v22 = vadd.f32 %v8733_v44, %v17379_v0  ;;  %v13304_v17 = vpop.f32.mrb[254].mxu1  ;;  %v9501_v0 = vor.u32 %v9500_v41, %v9497_v13 }
 0x70a   : > { %v17594_v3 = vadd.f32 %v13304_v17, %v17382_v53  ;;  %v8736_v2 = vpop.f32.mrb[255].mxu1  ;;  %v17603_v53 = vld [vmem:[#allocation2 + $0xa8] sm:$0xff] }
 0x70b   : > { %v17598_v29 = vadd.f32 %v8736_v2, %v17386_v26  ;;  %18595 = vst [vmem:[#allocation31_spill] sm:$0xff] %v17603_v53  ;;  %v9513_v17 = vshrl.u32 %v17603_v53, 16  ;;  %v9516_v12 = vshll.u32 %v17603_v53, 16  ;;  %v17610_v2 = vld [vmem:[#allocation2 + $0xb0] sm:$0xff]  ;;  %v9511_v14 = vsel %vm6228_vm3, %v9501_v0, %v9510_v28 }
 0x70c   : > { %13426 = vmatmul.mubr.msk.bf16.gmra.mrb[104].mxu1 %vm291_vm0, %v9484_v27  ;;  %18596 = vst [vmem:[#allocation33_spill] sm:$0xff] %v17610_v2  ;;  %v9522_v56 = vshrl.u32 %v17610_v2, 16  ;;  %v9525_v39 = vshll.u32 %v17610_v2, 16 }
 0x70d   : > { %13429 = vmatprep.mubr.msk.bf16.mxu1 %vm291_vm0, %v9493_v43  ;;  %v9502_v43 = vsel %vm6228_vm3, %v9492_v35, %v9501_v0 }
 0x70e   : > { %v9524_v8 = vrot.slane %v9522_v56, 4  ;;  %v9527_v53 = vrot.slane %v9525_v39, 5 }
 0x70f   : > { %v13307_v44 = vpop.f32.mrb[0].mxu1 }
 0x710   : > { %v17608_v26 = vadd.f32 %v13307_v44, %v17393_v30  ;;  %v8748_v52 = vpop.f32.mrb[1].mxu1  ;;  %v9515_v30 = vrot.slane %v9513_v17, 4  ;;  %v9518_v44 = vrot.slane %v9516_v12, 5 }
 0x711   : > { %v17615_v51 = vadd.f32 %v8748_v52, %v17397_v20  ;;  %v13308_v27 = vpop.f32.mrb[2].mxu1 }
 0x712   : > { %v17618_v13 = vadd.f32 %v13308_v27, %v17400_v7  ;;  %v8751_v41 = vpop.f32.mrb[3].mxu1  ;;  %v9519_v2 = vor.u32 %v9518_v44, %v9515_v30  ;;  %v9528_v27 = vor.u32 %v9527_v53, %v9524_v8 }
 0x714   : > { %18597 = vst [vmem:[#allocation32_spill] sm:$0xff] %v17618_v13  ;;  %13430 = vmatmul.mubr.msk.bf16.gmra.mrb[108].mxu1 %vm291_vm0, %v9502_v43  ;;  %v17627_v13 = vld [vmem:[#allocation2 + $0xb8] sm:$0xff]  ;;  %v9520_v0 = vsel %vm6228_vm3, %v9510_v28, %v9519_v2 }
 0x715   : > { %13433 = vmatprep.mubr.msk.bf16.mxu1 %vm291_vm0, %v9511_v14  ;;  %v9531_v35 = vshrl.u32 %v17627_v13, 16  ;;  %v9534_v17 = vshll.u32 %v17627_v13, 16 }
 0x717   : > { %v13311_v20 = vpop.f32.mrb[4].mxu1  ;;  %v9533_v39 = vrot.slane %v9531_v35, 4  ;;  %v9536_v43 = vrot.slane %v9534_v17, 5 }
 0x718   : > { %v17625_v52 = vadd.f32 %v13311_v20, %v17408_v49  ;;  %v8763_v7 = vpop.f32.mrb[5].mxu1  ;;  %v9529_v49 = vsel %vm6228_vm3, %v9519_v2, %v9528_v27  ;;  %v17644_v20 = vld [vmem:[#allocation2 + $0xd8] sm:$0x1f] }
 0x719   : > { %v13312_v41 = vpop.f32.mrb[6].mxu1  ;;  %v9537_v44 = vor.u32 %v9536_v43, %v9533_v39 }
 0x71a   : > { %v8765_v12 = vpop.f32.mrb[7].mxu1  ;;  %v18598_v41 = vld [vmem:[#allocation22_spill] sm:$0xff] }
 0x71b   : > { %v17633_v56 = vadd.f32 %v8765_v12, %v17413_v9  ;;  %v9538_v7 = vsel %vm6228_vm3, %v9528_v27, %v9537_v44  ;;  %v9547_v35 = vsel %vm6228_vm3, %v9537_v44, %v18598_v41  ;;  %v18601_v41 = vld [vmem:[#allocation24_spill] sm:$0xff] }
 0x71c   : > { %13434 = vmatmul.mubr.msk.bf16.gmra.mrb[112].mxu1 %vm291_vm0, %v9520_v0 }
 0x71d   : > { %13437 = vmatprep.mubr.msk.bf16.mxu1 %vm291_vm0, %v9529_v49 }
 0x71f   : > { %v13315_v53 = vpop.f32.mrb[8].mxu1 }
 0x720   : > { %v8777_v30 = vpop.f32.mrb[9].mxu1 }
 0x721   : > { %v17639_v14 = vadd.f32 %v8777_v30, %v17420_v46  ;;  %v13316_v8 = vpop.f32.mrb[10].mxu1  ;;  %v9567_v46 = vshrl.u32 %v17644_v20, 16  ;;  %v18599_v30 = vld [vmem:[#allocation19_spill] sm:$0xff] }
 0x722   : > { %v17642_v28 = vadd.f32 %v13316_v8, %v17423_v36  ;;  %v8780_v9 = vpop.f32.mrb[11].mxu1  ;;  %v9570_v36 = vshll.u32 %v17644_v20, 16  ;;  %v18600_v8 = vld [vmem:[#allocation27_spill] sm:$0xff] }
 0x723   : > { %v17648_v2 = vadd.f32 %v8780_v9, %v17427_v59  ;;  %v9569_v49 = vrot.slane %v9567_v46, 4  ;;  %v9912_v9 = vld [vmem:[#allocation2 + $0x18] sm:$0xe0] }
 0x724   : > { %13438 = vmatmul.mubr.msk.bf16.gmra.mrb[116].mxu1 %vm291_vm0, %v9538_v7  ;;  %v9572_v39 = vrot.slane %v9570_v36, 5  ;;  %v9924_v36 = vrot.slane %v9912_v9, 5  ;;  %v18605_v9 = vld [vmem:[#allocation25_spill] sm:$0xff] }
 0x725   : > { %13441 = vmatprep.mubr.msk.bf16.mxu1 %vm291_vm0, %v9547_v35 }
 0x726   : > { %v9573_v44 = vor.u32 %v9572_v39, %v9569_v49 }
 0x727   : > { %v13319_v17 = vpop.f32.mrb[12].mxu1 }
 0x728   : > { %v17657_v12 = vadd.f32 %v13319_v17, %v17433_v24  ;;  %v8792_v0 = vpop.f32.mrb[13].mxu1  ;;  %v9574_v35 = vsel %vm6228_vm3, %v18601_v41, %v9573_v44 }
 0x729   : > { %v17660_v27 = vadd.f32 %v8792_v0, %v17436_v62  ;;  %v13320_v59 = vpop.f32.mrb[14].mxu1  ;;  %v18602_v0 = vld [vmem:[#allocation11_spill] sm:$0xff] }
 0x72a   : > { %v17663_v43 = vadd.f32 %v13320_v59, %v17439_v47  ;;  %v8795_v53 = vpop.f32.mrb[15].mxu1  ;;  %v18603_v59 = vrot.slane %v18602_v0, 5  ;;  %v18607_v0 = vld [vmem:[#allocation12_spill] sm:$0xff] }
 0x72c   : > { %13442 = vmatmul.mubr.msk.bf16.gmra.mrb[120].mxu1 %vm291_vm0, %v18599_v30  ;;  %v9926_v49 = vsel %vm7150_vm7, %v9924_v36, %v18603_v59  ;;  %v18606_v36 = vld [vmem:[#allocation26_spill] sm:$0xff]  ;;  %v18608_v59 = vrot.slane %v18607_v0, 5 }
 0x72d   : > { %13445 = vmatprep.mubr.msk.bf16.mxu1 %vm291_vm0, %v18600_v8 }
 0x72f   : > { %v13323_v24 = vpop.f32.mrb[16].mxu1 }
 0x730   : > { %v17670_v7 = vadd.f32 %v13323_v24, %v17446_v34  ;;  %v8807_v62 = vpop.f32.mrb[17].mxu1  ;;  %v18604_v24 = vld [vmem:[#allocation21_spill] sm:$0xff] }
 0x731   : > { %v13324_v46 = vpop.f32.mrb[18].mxu1 }
 0x732   : > { %v8809_v47 = vpop.f32.mrb[19].mxu1 }
 0x733   : > { %v17675_v17 = vadd.f32 %v8809_v47, %v17450_v40 }
 0x734   : > { %13446 = vmatmul.mubr.msk.bf16.gmra.mrb[124].mxu1 %vm291_vm0, %v9574_v35  ;;  %v9933_v35 = vrot.slane %v17455_v23, 5 }
 0x735   : > { %13457 = vmatprep.mubr.msk.bf16.mxu1 %vm291_vm0, %v9926_v49 }
 0x736   : > { %v9934_v49 = vsel %vm7150_vm7, %v18608_v59, %v9933_v35  ;;  %v9945_v59 = vrot.slane %v17526_v45, 5 }
 0x737   : > { %v13327_v34 = vpop.f32.mrb[20].mxu1 }
 0x738   : > { %v8821_v39 = vpop.f32.mrb[21].mxu1 }
 0x739   : > { %v17683_v53 = vadd.f32 %v8821_v39, %v17460_v63  ;;  %v13328_v30 = vpop.f32.mrb[22].mxu1 }
 0x73a   : > { %v17686_v44 = vadd.f32 %v13328_v30, %v17463_v11  ;;  %v8824_v8 = vpop.f32.mrb[23].mxu1 }
 0x73b   : > { %v17689_v40 = vadd.f32 %v8824_v8, %v17469_v15 }
 0x73c   : > { %13458 = vmatmul.mubr.msk.bf16.vlgmr.msra.gmra.mrb[128].mxu1 %vm291_vm0, %v18604_v24 }
 0x73d   : > { %13461 = vmatprep.mubr.msk.bf16.mxu1 %vm291_vm0, %v18605_v9 }
 0x73f   : > { %v13331_v62 = vpop.f32.mrb[24].mxu1 }
 0x740   : > { %v17696_v41 = vadd.f32 %v13331_v62, %v17484_v21  ;;  %v8836_v63 = vpop.f32.mrb[25].mxu1  ;;  %v9935_v21 = vrot.slane %v17479_v57, 5 }
 0x741   : > { %v17700_v11 = vadd.f32 %v8836_v63, %v17491_v31  ;;  %v13332_v46 = vpop.f32.mrb[26].mxu1  ;;  %v9939_v63 = vrot.slane %v17511_v32, 5 }
 0x742   : > { %v17703_v15 = vadd.f32 %v13332_v46, %v17494_v38  ;;  %v8839_v47 = vpop.f32.mrb[27].mxu1  ;;  %v9937_v38 = vrot.slane %v17486_v42, 5  ;;  %v9936_v8 = vsel %vm7150_vm7, %v9933_v35, %v9935_v21 }
 0x744   : > { %13462 = vmatmul.mubr.msk.bf16.gmra.mrb[132].mxu1 %vm291_vm0, %v18606_v36  ;;  %v9938_v9 = vsel %vm7150_vm7, %v9935_v21, %v9937_v38  ;;  %v9940_v47 = vsel %vm7150_vm7, %v9937_v38, %v9939_v63 }
 0x745   : > { %13465 = vmatprep.mubr.msk.bf16.mxu1 %vm291_vm0, %v9934_v49 }
 0x747   : > { %v13335_v23 = vpop.f32.mrb[28].mxu1 }
 0x748   : > { %v17713_v31 = vadd.f32 %v13335_v23, %v17505_v60  ;;  %v8851_v34 = vpop.f32.mrb[29].mxu1  ;;  %v9941_v60 = vrot.slane %v17507_v33, 5  ;;  %v9943_v33 = vrot.slane %v17522_v4, 5 }
 0x749   : > { %v13336_v39 = vpop.f32.mrb[30].mxu1 }
 0x74a   : > { %v8853_v30 = vpop.f32.mrb[31].mxu1  ;;  %v9942_v0 = vsel %vm7150_vm7, %v9939_v63, %v9941_v60  ;;  %v9944_v34 = vsel %vm7150_vm7, %v9941_v60, %v9943_v33  ;;  %v9946_v4 = vsel %vm7150_vm7, %v9943_v33, %v9945_v59  ;;  %v9949_v39 = vrot.slane %v17550_v55, 5 }
 0x74b   : > { %v17718_v24 = vadd.f32 %v8853_v30, %v17517_v25  ;;  %v9951_v60 = vrot.slane %v17571_v16, 5  ;;  %v9957_v33 = vrot.slane %v17586_v58, 5 }
 0x74c   : > { %13466 = vmatmul.mubr.msk.bf16.gmra.mrb[136].mxu1 %vm291_vm0, %v9936_v8 }
 0x74d   : > { %13469 = vmatprep.mubr.msk.bf16.mxu1 %vm291_vm0, %v9938_v9 }
 0x74f   : > { %v13347_v57 = vpop.f32.mrb[32].mxu1 }
 0x750   : > { %v9134_v62 = vpop.f32.mrb[33].mxu1 }
 0x751   : > { %v17726_v42 = vadd.f32 %v9134_v62, %v17531_v48  ;;  %v13348_v46 = vpop.f32.mrb[34].mxu1 }
 0x752   : > { %v17729_v35 = vadd.f32 %v13348_v46, %v17534_v18  ;;  %v9137_v25 = vpop.f32.mrb[35].mxu1 }
 0x753   : > { %v17733_v36 = vadd.f32 %v9137_v25, %v17538_v1  ;;  %v9952_v25 = vsel %vm7150_vm7, %v9949_v39, %v9951_v60 }
 0x754   : > { %13470 = vmatmul.mubr.msk.bf16.gmra.mrb[140].mxu1 %vm291_vm0, %v9940_v47 }
 0x755   : > { %13473 = vmatprep.mubr.msk.bf16.mxu1 %vm291_vm0, %v9942_v0 }
 0x757   : > { %v13351_v32 = vpop.f32.mrb[36].mxu1 }
 0x758   : > { %v17740_v48 = vadd.f32 %v13351_v32, %v17548_v5  ;;  %v9149_v18 = vpop.f32.mrb[37].mxu1  ;;  %v9947_v5 = vrot.slane %v17543_v50, 5 }
 0x759   : > { %v17744_v49 = vadd.f32 %v9149_v18, %v17555_v6  ;;  %v13352_v1 = vpop.f32.mrb[38].mxu1  ;;  %v18609_v18 = vld [vmem:[#allocation32_spill] sm:$0xff] }
 0x75a   : > { %v17747_v21 = vadd.f32 %v13352_v1, %v17558_v54  ;;  %v9152_v23 = vpop.f32.mrb[39].mxu1  ;;  %v9948_v8 = vsel %vm7150_vm7, %v9945_v59, %v9947_v5  ;;  %v9950_v57 = vsel %vm7150_vm7, %v9947_v5, %v9949_v39  ;;  %v18611_v5 = vld [vmem:[#allocation33_spill] sm:$0xff] }
 0x75c   : > { %13474 = vmatmul.mubr.msk.bf16.gmra.mrb[144].mxu1 %vm291_vm0, %v9944_v34 }
 0x75d   : > { %13477 = vmatprep.mubr.msk.bf16.mxu1 %vm291_vm0, %v9946_v4 }
 0x75f   : > { %v13355_v38 = vpop.f32.mrb[40].mxu1 }
 0x760   : > { %v17755_v45 = vadd.f32 %v13355_v38, %v17565_v10  ;;  %v9164_v6 = vpop.f32.mrb[41].mxu1  ;;  %v9953_v10 = vrot.slane %v17567_v19, 5  ;;  %v9955_v19 = vrot.slane %v17582_v61, 5  ;;  %v9961_v38 = vrot.slane %v18611_v5, 5 }
 0x761   : > { %v13356_v54 = vpop.f32.mrb[42].mxu1 }
 0x762   : > { %v9166_v30 = vpop.f32.mrb[43].mxu1  ;;  %v9954_v0 = vsel %vm7150_vm7, %v9951_v60, %v9953_v10  ;;  %v9956_v23 = vsel %vm7150_vm7, %v9953_v10, %v9955_v19  ;;  %v9958_v61 = vsel %vm7150_vm7, %v9955_v19, %v9957_v33 }
 0x763   : > { %v17760_v9 = vadd.f32 %v9166_v30, %v17577_v37 }
 0x764   : > { %13478 = vmatmul.mubr.msk.bf16.gmra.mrb[148].mxu1 %vm291_vm0, %v9948_v8 }
 0x765   : > { %13481 = vmatprep.mubr.msk.bf16.mxu1 %vm291_vm0, %v9950_v57 }
 0x767   : > { %v13359_v50 = vpop.f32.mrb[44].mxu1 }
 0x768   : > { %v9178_v62 = vpop.f32.mrb[45].mxu1 }
 0x769   : > { %v17768_v55 = vadd.f32 %v9178_v62, %v17591_v22  ;;  %v13360_v63 = vpop.f32.mrb[46].mxu1 }
 0x76a   : > { %v17771_v46 = vadd.f32 %v13360_v63, %v17594_v3  ;;  %v9181_v37 = vpop.f32.mrb[47].mxu1 }
 0x76b   : > { %v17775_v47 = vadd.f32 %v9181_v37, %v17598_v29 }
 0x76c   : > { %13482 = vmatmul.mubr.msk.bf16.gmra.mrb[152].mxu1 %vm291_vm0, %v9952_v25  ;;  %v18612_v25 = vld [vmem:[#allocation18_spill] sm:$0xff] }
 0x76d   : > { %13485 = vmatprep.mubr.msk.bf16.mxu1 %vm291_vm0, %v9954_v0  ;;  %v18613_v0 = vrot.slane %v18612_v25, 5 }
 0x76f   : > { %v13363_v16 = vpop.f32.mrb[48].mxu1 }
 0x770   : > { %v17782_v22 = vadd.f32 %v13363_v16, %v17608_v26  ;;  %v9193_v3 = vpop.f32.mrb[49].mxu1  ;;  %v18610_v26 = vld [vmem:[#allocation31_spill] sm:$0xff] }
 0x771   : > { %v17786_v32 = vadd.f32 %v9193_v3, %v17615_v51  ;;  %v13364_v29 = vpop.f32.mrb[50].mxu1  ;;  %v9959_v34 = vrot.slane %v18610_v26, 5 }
 0x772   : > { %v17789_v59 = vadd.f32 %v13364_v29, %v18609_v18  ;;  %v9196_v1 = vpop.f32.mrb[51].mxu1  ;;  %v18614_v29 = vld [vmem:[#allocation28_spill] sm:$0xff]  ;;  %v9971_v18 = vrot.slane %v17644_v20, 5 }
 0x773   : > { %v9960_v54 = vsel %vm7150_vm7, %v9957_v33, %v9959_v34  ;;  %v9962_v8 = vsel %vm7150_vm7, %v9959_v34, %v9961_v38  ;;  %v18615_v1 = vld [vmem:[#allocation29_spill] sm:$0xff] }
 0x774   : > { %13486 = vmatmul.mubr.msk.bf16.gmra.mrb[156].mxu1 %vm291_vm0, %v9956_v23 }
 0x775   : > { %13489 = vmatprep.mubr.msk.bf16.mxu1 %vm291_vm0, %v9958_v61 }
 0x777   : > { %v13367_v4 = vpop.f32.mrb[52].mxu1 }
 0x778   : > { %v17797_v58 = vadd.f32 %v13367_v4, %v17625_v52  ;;  %v9208_v51 = vpop.f32.mrb[53].mxu1  ;;  %v9963_v52 = vrot.slane %v17627_v13, 5 }
 0x779   : > { %v13368_v6 = vpop.f32.mrb[54].mxu1 }
 0x77a   : > { %v9210_v39 = vpop.f32.mrb[55].mxu1  ;;  %v9966_v19 = vsel %vm7150_vm7, %v9963_v52, %v18613_v0 }
 0x77b   : > { %v17802_v30 = vadd.f32 %v9210_v39, %v17633_v56  ;;  %v9964_v56 = vsel %vm7150_vm7, %v9961_v38, %v9963_v52 }
 0x77c   : > { %13490 = vmatmul.mubr.msk.bf16.gmra.mrb[160].mxu1 %vm291_vm0, %v9960_v54 }
 0x77d   : > { %13493 = vmatprep.mubr.msk.bf16.mxu1 %vm291_vm0, %v9962_v8 }
 0x77f   : > { %v13371_v57 = vpop.f32.mrb[56].mxu1 }
 0x780   : > { %v9222_v50 = vpop.f32.mrb[57].mxu1 }
 0x781   : > { %v17809_v62 = vadd.f32 %v9222_v50, %v17639_v14  ;;  %v13372_v10 = vpop.f32.mrb[58].mxu1 }
 0x782   : > { %v17812_v60 = vadd.f32 %v13372_v10, %v17642_v28  ;;  %v9225_v63 = vpop.f32.mrb[59].mxu1 }
 0x783   : > { %v17816_v37 = vadd.f32 %v9225_v63, %v17648_v2 }
 0x784   : > { %13494 = vmatmul.mubr.msk.bf16.gmra.mrb[164].mxu1 %vm291_vm0, %v9964_v56 }
 0x785   : > { %13497 = vmatprep.mubr.msk.bf16.mxu1 %vm291_vm0, %v9966_v19 }
 0x787   : > { %v13375_v13 = vpop.f32.mrb[60].mxu1 }
 0x788   : > { %v17824_v14 = vadd.f32 %v13375_v13, %v17657_v12  ;;  %v9237_v28 = vpop.f32.mrb[61].mxu1 }
 0x789   : > { %v17827_v16 = vadd.f32 %v9237_v28, %v17660_v27  ;;  %v13376_v3 = vpop.f32.mrb[62].mxu1  ;;  %v18616_v27 = vld [vmem:[#allocation20_spill] sm:$0xff] }
 0x78a   : > { %v17830_v2 = vadd.f32 %v13376_v3, %v17663_v43  ;;  %v9240_v33 = vpop.f32.mrb[63].mxu1  ;;  %v18617_v26 = vrot.slane %v18616_v27, 5 }
 0x78c   : > { %13498 = vmatmul.mubr.msk.bf16.gmra.mrb[168].mxu1 %vm291_vm0, %v18614_v29  ;;  %v9972_v34 = vsel %vm7150_vm7, %v18617_v26, %v9971_v18 }
 0x78d   : > { %13501 = vmatprep.mubr.msk.bf16.mxu1 %vm291_vm0, %v18615_v1 }
 0x78f   : > { %v13379_v23 = vpop.f32.mrb[64].mxu1 }
 0x790   : > { %v17838_v12 = vadd.f32 %v13379_v23, %v17670_v7  ;;  %v9252_v61 = vpop.f32.mrb[65].mxu1 }
 0x791   : > { %v13380_v43 = vpop.f32.mrb[66].mxu1 }
 0x792   : > { %v9254_v4 = vpop.f32.mrb[67].mxu1 }
 0x793   : > { %v17844_v51 = vadd.f32 %v9254_v4, %v17675_v17 }
 0x794   : > { %13502 = vmatmul.mubr.msk.bf16.gmra.mrb[172].mxu1 %vm291_vm0, %v9972_v34 }
 0x797   : > { %v13383_v20 = vpop.f32.mrb[68].mxu1 }
 0x798   : > { %v9266_v5 = vpop.f32.mrb[69].mxu1 }
 0x799   : > { %v17848_v38 = vadd.f32 %v9266_v5, %v17683_v53  ;;  %v13384_v6 = vpop.f32.mrb[70].mxu1 }
 0x79a   : > { %v17851_v7 = vadd.f32 %v13384_v6, %v17686_v44  ;;  %v9269_v39 = vpop.f32.mrb[71].mxu1 }
 0x79b   : > { %v17854_v54 = vadd.f32 %v9269_v39, %v17689_v40 }
 0x79f   : > { %v13387_v8 = vpop.f32.mrb[72].mxu1 }
 0x7a0   : > { %v17857_v57 = vadd.f32 %v13387_v8, %v17696_v41  ;;  %v9281_v17 = vpop.f32.mrb[73].mxu1 }
 0x7a1   : > { %v17860_v50 = vadd.f32 %v9281_v17, %v17700_v11  ;;  %v13388_v52 = vpop.f32.mrb[74].mxu1 }
 0x7a2   : > { %v17863_v53 = vadd.f32 %v13388_v52, %v17703_v15  ;;  %v9284_v10 = vpop.f32.mrb[75].mxu1 }
 0x7a7   : > { %v13391_v63 = vpop.f32.mrb[76].mxu1 }
 0x7a8   : > { %v17866_v44 = vadd.f32 %v13391_v63, %v17713_v31  ;;  %v9296_v56 = vpop.f32.mrb[77].mxu1 }
 0x7a9   : > { %v13392_v40 = vpop.f32.mrb[78].mxu1 }
 0x7aa   : > { %v9298_v25 = vpop.f32.mrb[79].mxu1 }
 0x7ab   : > { %v17869_v0 = vadd.f32 %v9298_v25, %v17718_v24 }
 0x7af   : > { %v13403_v41 = vpop.f32.mrb[80].mxu1 }
 0x7b0   : > { %v9705_v19 = vpop.f32.mrb[81].mxu1 }
 0x7b1   : > { %v17872_v11 = vadd.f32 %v9705_v19, %v17726_v42  ;;  %v13404_v13 = vpop.f32.mrb[82].mxu1 }
 0x7b2   : > { %v17875_v15 = vadd.f32 %v13404_v13, %v17729_v35  ;;  %v9708_v28 = vpop.f32.mrb[83].mxu1 }
 0x7b3   : > { %v17878_v3 = vadd.f32 %v9708_v28, %v17733_v36 }
 0x7b7   : > { %v13407_v31 = vpop.f32.mrb[84].mxu1 }
 0x7b8   : > { %v17881_v33 = vadd.f32 %v13407_v31, %v17740_v48  ;;  %v9720_v29 = vpop.f32.mrb[85].mxu1 }
 0x7b9   : > { %v17884_v24 = vadd.f32 %v9720_v29, %v17744_v49  ;;  %v13408_v18 = vpop.f32.mrb[86].mxu1 }
 0x7ba   : > { %v17887_v42 = vadd.f32 %v13408_v18, %v17747_v21  ;;  %v9723_v1 = vpop.f32.mrb[87].mxu1 }
 0x7bf   : > { %v13411_v23 = vpop.f32.mrb[88].mxu1 }
 0x7c0   : > { %v17890_v35 = vadd.f32 %v13411_v23, %v17755_v45  ;;  %v9735_v61 = vpop.f32.mrb[89].mxu1 }
 0x7c1   : > { %v13412_v36 = vpop.f32.mrb[90].mxu1 }
 0x7c2   : > { %v9737_v27 = vpop.f32.mrb[91].mxu1 }
 0x7c3   : > { %v17893_v26 = vadd.f32 %v9737_v27, %v17760_v9 }
 0x7c7   : > { %v13415_v48 = vpop.f32.mrb[92].mxu1 }
 0x7c8   : > { %v9749_v34 = vpop.f32.mrb[93].mxu1 }
 0x7c9   : > { %v17896_v49 = vadd.f32 %v9749_v34, %v17768_v55  ;;  %v13416_v43 = vpop.f32.mrb[94].mxu1 }
 0x7ca   : > { %v17899_v21 = vadd.f32 %v13416_v43, %v17771_v46  ;;  %v9752_v4 = vpop.f32.mrb[95].mxu1 }
 0x7cb   : > { %v17902_v20 = vadd.f32 %v9752_v4, %v17775_v47 }
 0x7cf   : > { %v13419_v45 = vpop.f32.mrb[96].mxu1 }
 0x7d0   : > { %v17905_v5 = vadd.f32 %v13419_v45, %v17782_v22  ;;  %v9764_v6 = vpop.f32.mrb[97].mxu1 }
 0x7d1   : > { %v17908_v9 = vadd.f32 %v9764_v6, %v17786_v32  ;;  %v13420_v39 = vpop.f32.mrb[98].mxu1 }
 0x7d2   : > { %v17911_v55 = vadd.f32 %v13420_v39, %v17789_v59  ;;  %v9767_v8 = vpop.f32.mrb[99].mxu1 }
 0x7d7   : > { %v13423_v17 = vpop.f32.mrb[100].mxu1 }
 0x7d8   : > { %v17914_v46 = vadd.f32 %v13423_v17, %v17797_v58  ;;  %v9779_v52 = vpop.f32.mrb[101].mxu1 }
 0x7d9   : > { %v13424_v47 = vpop.f32.mrb[102].mxu1 }
 0x7da   : > { %v9781_v10 = vpop.f32.mrb[103].mxu1 }
 0x7db   : > { %v17917_v63 = vadd.f32 %v9781_v10, %v17802_v30 }
 0x7df   : > { %v13427_v22 = vpop.f32.mrb[104].mxu1 }
 0x7e0   : > { %v9793_v56 = vpop.f32.mrb[105].mxu1 }
 0x7e1   : > { %v17920_v32 = vadd.f32 %v9793_v56, %v17809_v62  ;;  %v13428_v40 = vpop.f32.mrb[106].mxu1 }
 0x7e2   : > { %v17923_v59 = vadd.f32 %v13428_v40, %v17812_v60  ;;  %v9796_v25 = vpop.f32.mrb[107].mxu1 }
 0x7e3   : > { %v17926_v41 = vadd.f32 %v9796_v25, %v17816_v37 }
 0x7e7   : > { %v13431_v58 = vpop.f32.mrb[108].mxu1 }
 0x7e8   : > { %v17929_v19 = vadd.f32 %v13431_v58, %v17824_v14  ;;  %v9808_v13 = vpop.f32.mrb[109].mxu1 }
 0x7e9   : > { %v17932_v30 = vadd.f32 %v9808_v13, %v17827_v16  ;;  %v13432_v28 = vpop.f32.mrb[110].mxu1 }
 0x7ea   : > { %v17935_v62 = vadd.f32 %v13432_v28, %v17830_v2  ;;  %v9811_v31 = vpop.f32.mrb[111].mxu1 }
 0x7ef   : > { %v13435_v29 = vpop.f32.mrb[112].mxu1 }
 0x7f0   : > { %v17938_v60 = vadd.f32 %v13435_v29, %v17838_v12  ;;  %v9823_v18 = vpop.f32.mrb[113].mxu1 }
 0x7f1   : > { %v13436_v37 = vpop.f32.mrb[114].mxu1 }
 0x7f2   : > { %v9825_v1 = vpop.f32.mrb[115].mxu1 }
 0x7f3   : > { %v17941_v23 = vadd.f32 %v9825_v1, %v17844_v51 }
 0x7f7   : > { %v13439_v14 = vpop.f32.mrb[116].mxu1 }
 0x7f8   : > { %v9837_v61 = vpop.f32.mrb[117].mxu1 }
 0x7f9   : > { %v17944_v16 = vadd.f32 %v9837_v61, %v17848_v38  ;;  %v13440_v36 = vpop.f32.mrb[118].mxu1 }
 0x7fa   : > { %v17947_v2 = vadd.f32 %v13440_v36, %v17851_v7  ;;  %v9840_v27 = vpop.f32.mrb[119].mxu1 }
 0x7fb   : > { %v17950_v48 = vadd.f32 %v9840_v27, %v17854_v54 }
 0x7ff   : > { %v13443_v12 = vpop.f32.mrb[120].mxu1 }
 0x800   : > { %v17953_v34 = vadd.f32 %v13443_v12, %v17857_v57  ;;  %v9852_v43 = vpop.f32.mrb[121].mxu1 }
 0x801   : > { %v17956_v51 = vadd.f32 %v9852_v43, %v17860_v50  ;;  %v13444_v4 = vpop.f32.mrb[122].mxu1 }
 0x802   : > { %v17959_v38 = vadd.f32 %v13444_v4, %v17863_v53  ;;  %v9855_v45 = vpop.f32.mrb[123].mxu1 }
 0x807   : > { %v13447_v6 = vpop.f32.mrb[124].mxu1 }
 0x808   : > { %v17962_v7 = vadd.f32 %v13447_v6, %v17866_v44  ;;  %v9867_v39 = vpop.f32.mrb[125].mxu1  ;;  %v17973_v44 = vld [vmem:[%s18425_s5] ss:$0 sm:$0xff]  ;;  %v18618_v6 = vld [vmem:[#allocation23_spill] sm:$0xff] }
 0x809   : > { %v13448_v54 = vpop.f32.mrb[126].mxu1 }
 0x80a   : > { %v9869_v8 = vpop.f32.mrb[127].mxu1 }
 0x80b   : > { %v17965_v17 = vadd.f32 %v9869_v8, %v17869_v0 }
 0x80f   : > { %v13459_v57 = vpop.f32.mrb[128].mxu1 }
 0x810   : > { %v10103_v52 = vpop.f32.mrb[129].mxu1 }
 0x811   : > { %v10278_v50 = vadd.f32 %v10103_v52, %v17872_v11  ;;  %v13460_v47 = vpop.f32.mrb[130].mxu1 }
 0x812   : > { %v10280_v10 = vadd.f32 %v13460_v47, %v17875_v15  ;;  %v10106_v53 = vpop.f32.mrb[131].mxu1 }
 0x813   : > { %v10279_v22 = vadd.f32 %v10106_v53, %v17878_v3  ;;  %v10317_v11 = vadd.f32 %v17973_v44, %v10278_v50  ;;  %v14370_v3 = vmov 1983009808  }
 0x814   : > { %v10352_v31 = vunpack.c.l.s4 %v14370_v3  ;;  %v10319_v57 = vadd.f32 %v17973_v44, %v10280_v10 }
 0x815   : > { %v10318_v29 = vadd.f32 %v17973_v44, %v10279_v22 }
 0x817   : > { %v13463_v56 = vpop.f32.mrb[132].mxu1 }
 0x818   : > { %v10282_v40 = vadd.f32 %v13463_v56, %v17881_v33  ;;  %v10118_v0 = vpop.f32.mrb[133].mxu1 }
 0x819   : > { %v10281_v25 = vadd.f32 %v10118_v0, %v17884_v24  ;;  %v13464_v58 = vpop.f32.mrb[134].mxu1  ;;  %v10353_v24 = vunpack.c.0.s8 %v10352_v31 }
 0x81a   : > { %v10321_v13 = vadd.f32 %v17973_v44, %v10282_v40  ;;  %v10283_v15 = vadd.f32 %v13464_v58, %v17887_v42  ;;  %v10121_v28 = vpop.f32.mrb[135].mxu1 }
 0x81b   : > { %v10320_v43 = vadd.f32 %v17973_v44, %v10281_v25  ;;  %v17987_v39 = vsub.s32 %v10353_v24, %v18618_v6 }
 0x81c   : > { %v10349_v18 = vcombine.low %v10317_v11, %v10321_v13  ;;  %v10350_v37 = vcombine.high %v10317_v11, %v10321_v13  ;;  %v10322_v1 = vadd.f32 %v17973_v44, %v10283_v15 }
 0x81e   : > { %v10621_v33 = vcombine.low %v10318_v29, %v10322_v1  ;;  %v10622_v14 = vcombine.high %v10318_v29, %v10322_v1  ;;  %v10357_v10 = vrot.slane %v10349_v18, %v17987_v39  ;;  %v18002_v31 = vrot.slane %v10350_v37, %v17987_v39 }
 0x81f   : > { %v13467_v61 = vpop.f32.mrb[136].mxu1 }
 0x820   : > { %v10285_v36 = vadd.f32 %v13467_v61, %v17890_v35  ;;  %v10133_v27 = vpop.f32.mrb[137].mxu1  ;;  %v10629_v35 = vrot.slane %v10621_v33, %v17987_v39  ;;  %v10636_v50 = vrot.slane %v10622_v14, %v17987_v39 }
 0x821   : > { %v13468_v12 = vpop.f32.mrb[138].mxu1 }
 0x822   : > { %v10324_v42 = vadd.f32 %v17973_v44, %v10285_v36  ;;  %v10135_v4 = vpop.f32.mrb[139].mxu1  ;;  %v14371_v36 = vmov 1934713408  }
 0x823   : > { %v10284_v45 = vadd.f32 %v10135_v4, %v17893_v26  ;;  %v10416_v27 = vunpack.c.l.s4 %v14371_v36 }
 0x824   : > { %v10637_v54 = vcombine.low %v10320_v43, %v10324_v42  ;;  %v10638_v8 = vcombine.high %v10320_v43, %v10324_v42 }
 0x825   : > { %v10323_v52 = vadd.f32 %v17973_v44, %v10284_v45 }
 0x826   : > { %v10645_v47 = vrot.slane %v10637_v54, %v17987_v39  ;;  %v10652_v53 = vrot.slane %v10638_v8, %v17987_v39  ;;  %v10417_v54 = vunpack.c.0.s8 %v10416_v27 }
 0x827   : > { %v10365_v22 = vcombine.low %v10319_v57, %v10323_v52  ;;  %v10366_v56 = vcombine.high %v10319_v57, %v10323_v52  ;;  %v13471_v26 = vpop.f32.mrb[140].mxu1 }
 0x828   : > { %v10147_v40 = vpop.f32.mrb[141].mxu1  ;;  %v10685_v0 = vcombine.low %v10629_v35, %v10645_v47  ;;  %v10686_v25 = vcombine.high %v10629_v35, %v10645_v47  ;;  %v10701_v58 = vcombine.low %v10636_v50, %v10652_v53  ;;  %v10702_v11 = vcombine.high %v10636_v50, %v10652_v53 }
 0x829   : > { %v10373_v13 = vrot.slane %v10365_v22, %v17987_v39  ;;  %v17998_v15 = vrot.slane %v10366_v56, %v17987_v39  ;;  %v10286_v28 = vadd.f32 %v10147_v40, %v17896_v49  ;;  %v13472_v3 = vpop.f32.mrb[142].mxu1 }
 0x82a   : > { %v10288_v29 = vadd.f32 %v13472_v3, %v17899_v21  ;;  %v10150_v1 = vpop.f32.mrb[143].mxu1 }
 0x82b   : > { %v10287_v33 = vadd.f32 %v10150_v1, %v17902_v20  ;;  %v10414_v14 = vcombine.high %v10357_v10, %v10373_v13  ;;  %v10413_v61 = vcombine.low %v10357_v10, %v10373_v13  ;;  %v10429_v18 = vcombine.low %v18002_v31, %v17998_v15 }
 0x82c   : > { %v10430_v24 = vcombine.high %v18002_v31, %v17998_v15  ;;  %v10325_v42 = vadd.f32 %v17973_v44, %v10286_v28 }
 0x82d   : > { %v10326_v8 = vadd.f32 %v17973_v44, %v10287_v33 }
 0x82f   : > { %v13475_v49 = vpop.f32.mrb[144].mxu1 }
 0x830   : > { %v10290_v12 = vadd.f32 %v13475_v49, %v17905_v5  ;;  %v10162_v37 = vpop.f32.mrb[145].mxu1 }
 0x831   : > { %v10289_v43 = vadd.f32 %v10162_v37, %v17908_v9  ;;  %v13476_v21 = vpop.f32.mrb[146].mxu1  ;;  %v18018_v9 = vsub.s32 %v10417_v54, %v18618_v6  ;;  %v10327_v6 = vadd.f32 %v17973_v44, %v10288_v29 }
 0x832   : > { %v10329_v20 = vadd.f32 %v17973_v44, %v10290_v12  ;;  %v10291_v4 = vadd.f32 %v13476_v21, %v17911_v55  ;;  %v10165_v45 = vpop.f32.mrb[147].mxu1 }
 0x833   : > { %v10328_v55 = vadd.f32 %v17973_v44, %v10289_v43  ;;  %v18025_v3 = vrot.slane %v10685_v0, %v18018_v9  ;;  %v18028_v1 = vrot.slane %v10686_v25, %v18018_v9  ;;  %v18033_v33 = vrot.slane %v10701_v58, %v18018_v9 }
 0x834   : > { %v10381_v57 = vcombine.low %v10325_v42, %v10329_v20  ;;  %v10382_v52 = vcombine.high %v10325_v42, %v10329_v20  ;;  %v10330_v35 = vadd.f32 %v17973_v44, %v10291_v4  ;;  %v18036_v36 = vrot.slane %v10702_v11, %v18018_v9 }
 0x835   : > { %v18043_v29 = vrot.slane %v10414_v14, %v18018_v9  ;;  %v18046_v58 = vrot.slane %v10413_v61, %v18018_v9 }
 0x836   : > { %v10653_v50 = vcombine.low %v10326_v8, %v10330_v35  ;;  %v10654_v5 = vcombine.high %v10326_v8, %v10330_v35  ;;  %v10389_v4 = vrot.slane %v10381_v57, %v17987_v39 }
 0x837   : > { %v13479_v47 = vpop.f32.mrb[148].mxu1 }
 0x838   : > { %v10293_v53 = vadd.f32 %v13479_v47, %v17914_v46  ;;  %v10177_v22 = vpop.f32.mrb[149].mxu1  ;;  %v10668_v27 = vrot.slane %v10654_v5, %v17987_v39 }
 0x839   : > { %v13480_v56 = vpop.f32.mrb[150].mxu1 }
 0x83a   : > { %v10332_v26 = vadd.f32 %v17973_v44, %v10293_v53  ;;  %v10179_v40 = vpop.f32.mrb[151].mxu1 }
 0x83b   : > { %v10292_v10 = vadd.f32 %v10179_v40, %v17917_v63  ;;  %v10661_v63 = vrot.slane %v10653_v50, %v17987_v39 }
 0x83c   : > { %v10669_v13 = vcombine.low %v10328_v55, %v10332_v26  ;;  %v10670_v28 = vcombine.high %v10328_v55, %v10332_v26 }
 0x83d   : > { %v10331_v46 = vadd.f32 %v17973_v44, %v10292_v10 }
 0x83e   : > { %v10677_v0 = vrot.slane %v10669_v13, %v17987_v39  ;;  %v10684_v49 = vrot.slane %v10670_v28, %v17987_v39 }
 0x83f   : > { %v10397_v25 = vcombine.low %v10327_v6, %v10331_v46  ;;  %v10398_v12 = vcombine.high %v10327_v6, %v10331_v46  ;;  %v13483_v37 = vpop.f32.mrb[152].mxu1 }
 0x840   : > { %v10191_v43 = vpop.f32.mrb[153].mxu1  ;;  %v10717_v11 = vcombine.low %v10661_v63, %v10677_v0  ;;  %v10718_v21 = vcombine.high %v10661_v63, %v10677_v0  ;;  %v10733_v42 = vcombine.low %v10668_v27, %v10684_v49  ;;  %v10734_v20 = vcombine.high %v10668_v27, %v10684_v49 }
 0x841   : > { %v10405_v45 = vrot.slane %v10397_v25, %v17987_v39  ;;  %v10412_v54 = vrot.slane %v10398_v12, %v17987_v39  ;;  %v10294_v8 = vadd.f32 %v10191_v43, %v17920_v32  ;;  %v13484_v35 = vpop.f32.mrb[154].mxu1  ;;  %v18069_v32 = vrot.slane %v10429_v18, %v18018_v9 }
 0x842   : > { %v18053_v14 = vadd.f32 %v13484_v35, %v17923_v59  ;;  %v10194_v50 = vpop.f32.mrb[155].mxu1  ;;  %v18056_v61 = vrot.slane %v10717_v11, %v18018_v9  ;;  %v18059_v5 = vrot.slane %v10718_v21, %v18018_v9  ;;  %v18062_v47 = vrot.slane %v10733_v42, %v18018_v9 }
 0x843   : > { %v10295_v57 = vadd.f32 %v10194_v50, %v17926_v41  ;;  %v10446_v53 = vcombine.high %v10389_v4, %v10405_v45  ;;  %v10445_v22 = vcombine.low %v10389_v4, %v10405_v45  ;;  %v10396_v59 = vrot.slane %v10382_v52, %v17987_v39 }
 0x844   : > { %v10750_v56 = vcombine.high %v18025_v3, %v18056_v61  ;;  %v10749_v55 = vcombine.low %v18025_v3, %v18056_v61  ;;  %v10752_v26 = vcombine.high %v18028_v1, %v18059_v5  ;;  %v10754_v40 = vcombine.high %v18033_v33, %v18062_v47 }
 0x845   : > { %v18079_v41 = vrot.slane %v10446_v53, %v18018_v9  ;;  %v18084_v18 = vrot.slane %v10445_v22, %v18018_v9  ;;  %v18090_v52 = vrot.slane %v10430_v24, %v18018_v9  ;;  %v10461_v10 = vcombine.low %v10396_v59, %v10412_v54 }
 0x846   : > { %10927 = vrot.lane.b32.xlu0 %v10750_v56, %s14372_s19  ;;  %v10462_v13 = vcombine.high %v10396_v59, %v10412_v54  ;;  %v18094_v28 = vrot.slane %v10734_v20, %v18018_v9  ;;  %v10751_v6 = vcombine.low %v18028_v1, %v18059_v5  ;;  %v10753_v24 = vcombine.low %v18033_v33, %v18062_v47 }
 0x847   : > { %v13487_v46 = vpop.f32.mrb[156].mxu1  ;;  %v10480_v63 = vcombine.high %v18043_v29, %v18079_v41  ;;  %v10479_v15 = vcombine.low %v18043_v29, %v18079_v41  ;;  %v10478_v31 = vcombine.high %v18046_v58, %v18084_v18  ;;  %v18108_v49 = vrot.slane %v10461_v10, %v18018_v9 }
 0x848   : > { %v10298_v27 = vadd.f32 %v13487_v46, %v17929_v19  ;;  %v10206_v0 = vpop.f32.mrb[157].mxu1  ;;  %v18111_v25 = vrot.slane %v10462_v13, %v18018_v9  ;;  %v10756_v12 = vcombine.high %v18036_v36, %v18094_v28  ;;  %v10333_v37 = vadd.f32 %v17973_v44, %v10294_v8 }
 0x849   : > { %v10297_v43 = vadd.f32 %v10206_v0, %v17932_v30  ;;  %v13488_v11 = vpop.f32.mrb[158].mxu1  ;;  %10903 = vrot.lane.b32.xlu1 %v10480_v63, %s14372_s19  ;;  %v10477_v19 = vcombine.low %v18046_v58, %v18084_v18  ;;  %v10482_v4 = vcombine.high %v18069_v32, %v18108_v49  ;;  %v10334_v30 = vadd.f32 %v17973_v44, %v10295_v57 }
 0x84a   : > { %v10337_v21 = vadd.f32 %v17973_v44, %v10298_v27  ;;  %v10299_v42 = vadd.f32 %v13488_v11, %v17935_v62  ;;  %v10209_v20 = vpop.f32.mrb[159].mxu1  ;;  %10935 = vrot.lane.b32.xlu0 %v10752_v26, %s14372_s19  ;;  %v10484_v45 = vcombine.high %v18090_v52, %v18111_v25  ;;  %v10481_v54 = vcombine.low %v18069_v32, %v18108_v49 }
 0x84b   : > { %v10483_v62 = vcombine.low %v18090_v52, %v18111_v25  ;;  %v10336_v13 = vadd.f32 %v17973_v44, %v10297_v43  ;;  %v10335_v11 = vadd.f32 %v17973_v44, %v18053_v14 }
 0x84c   : > { %v10485_v8 = vcombine.low %v10333_v37, %v10337_v21  ;;  %v10486_v35 = vcombine.high %v10333_v37, %v10337_v21  ;;  %v10338_v50 = vadd.f32 %v17973_v44, %v10299_v42 }
 0x84e   : > { %v18134_v53 = vrot.slane %v10486_v35, %v17987_v39  ;;  %v10757_v22 = vcombine.low %v10334_v30, %v10338_v50  ;;  %v10758_v59 = vcombine.high %v10334_v30, %v10338_v50  ;;  %10943 = vrot.lane.b32.xlu0 %v10754_v40, %s14372_s19 }
 0x84f   : > { %v13491_v56 = vpop.f32.mrb[160].mxu1 }
 0x850   : > { %v10301_v57 = vadd.f32 %v13491_v56, %v17938_v60  ;;  %v10221_v26 = vpop.f32.mrb[161].mxu1  ;;  %v10765_v60 = vrot.slane %v10757_v22, %v17987_v39  ;;  %v10772_v21 = vrot.slane %v10758_v59, %v17987_v39 }
 0x851   : > { %v13492_v10 = vpop.f32.mrb[162].mxu1 }
 0x852   : > { %v10340_v46 = vadd.f32 %v17973_v44, %v10301_v57  ;;  %v10223_v63 = vpop.f32.mrb[163].mxu1  ;;  %10895 = vrot.lane.b32.xlu0 %v10478_v31, %s14372_s19  ;;  %v10493_v57 = vrot.slane %v10485_v8, %v17987_v39 }
 0x853   : > { %v10300_v27 = vadd.f32 %v10223_v63, %v17941_v23 }
 0x854   : > { %v10773_v0 = vcombine.low %v10336_v13, %v10340_v46  ;;  %v10774_v37 = vcombine.high %v10336_v13, %v10340_v46 }
 0x855   : > { %v10339_v40 = vadd.f32 %v17973_v44, %v10300_v27 }
 0x856   : > { %v10781_v43 = vrot.slane %v10773_v0, %v17987_v39  ;;  %v10788_v42 = vrot.slane %v10774_v37, %v17987_v39  ;;  %10911 = vrot.lane.b32.xlu0 %v10482_v4, %s14372_s19 }
 0x857   : > { %v10501_v31 = vcombine.low %v10335_v11, %v10339_v40  ;;  %v10502_v20 = vcombine.high %v10335_v11, %v10339_v40  ;;  %v13495_v23 = vpop.f32.mrb[164].mxu1 }
 0x858   : > { %v10235_v30 = vpop.f32.mrb[165].mxu1  ;;  %v10821_v35 = vcombine.low %v10765_v60, %v10781_v43  ;;  %v10822_v50 = vcombine.high %v10765_v60, %v10781_v43  ;;  %v10837_v56 = vcombine.low %v10772_v21, %v10788_v42  ;;  %v10838_v14 = vcombine.high %v10772_v21, %v10788_v42 }
 0x859   : > { %v10509_v22 = vrot.slane %v10501_v31, %v17987_v39  ;;  %v10516_v59 = vrot.slane %v10502_v20, %v17987_v39  ;;  %v10302_v26 = vadd.f32 %v10235_v30, %v17944_v16  ;;  %v13496_v10 = vpop.f32.mrb[166].mxu1 }
 0x85a   : > { %v10304_v13 = vadd.f32 %v13496_v10, %v17947_v2  ;;  %v10238_v4 = vpop.f32.mrb[167].mxu1  ;;  %10919 = vrot.lane.b32.xlu0 %v10484_v45, %s14372_s19 }
 0x85b   : > { %v10303_v46 = vadd.f32 %v10238_v4, %v17950_v48  ;;  %v10549_v63 = vcombine.low %v10493_v57, %v10509_v22  ;;  %v10550_v27 = vcombine.high %v10493_v57, %v10509_v22  ;;  %v10565_v0 = vcombine.low %v18134_v53, %v10516_v59 }
 0x85c   : > { %v10566_v8 = vcombine.high %v18134_v53, %v10516_v59  ;;  %v10341_v2 = vadd.f32 %v17973_v44, %v10302_v26  ;;  %v18172_v4 = vrot.slane %v10821_v35, %v18018_v9  ;;  %v18189_v35 = vrot.slane %v10838_v14, %v18018_v9 }
 0x85d   : > { %v10342_v43 = vadd.f32 %v17973_v44, %v10303_v46  ;;  %v18175_v46 = vrot.slane %v10822_v50, %v18018_v9 }
 0x85f   : > { %v13499_v37 = vpop.f32.mrb[168].mxu1 }
 0x860   : > { %v10306_v11 = vadd.f32 %v13499_v37, %v17953_v34  ;;  %v10250_v40 = vpop.f32.mrb[169].mxu1  ;;  %v10343_v37 = vadd.f32 %v17973_v44, %v10304_v13 }
 0x861   : > { %v10305_v16 = vadd.f32 %v10250_v40, %v17956_v51  ;;  %v13500_v60 = vpop.f32.mrb[170].mxu1 }
 0x862   : > { %v10345_v21 = vadd.f32 %v17973_v44, %v10306_v11  ;;  %v10307_v45 = vadd.f32 %v13500_v60, %v17959_v38  ;;  %v10253_v48 = vpop.f32.mrb[171].mxu1  ;;  %v18183_v60 = vrot.slane %v10549_v63, %v18018_v9  ;;  %v18199_v63 = vrot.slane %v10566_v8, %v18018_v9 }
 0x863   : > { %v10344_v59 = vadd.f32 %v17973_v44, %v10305_v16 }
 0x864   : > { %v10517_v42 = vcombine.low %v10341_v2, %v10345_v21  ;;  %v10518_v31 = vcombine.high %v10341_v2, %v10345_v21  ;;  %v10346_v53 = vadd.f32 %v17973_v44, %v10307_v45 }
 0x866   : > { %v10532_v20 = vrot.slane %v10518_v31, %v17987_v39  ;;  %v10789_v34 = vcombine.low %v10342_v43, %v10346_v53  ;;  %v10790_v23 = vcombine.high %v10342_v43, %v10346_v53  ;;  %v10525_v31 = vrot.slane %v10517_v42, %v17987_v39 }
 0x867   : > { %v13503_v30 = vpop.f32.mrb[172].mxu1 }
 0x868   : > { %v10309_v51 = vadd.f32 %v13503_v30, %v17962_v7  ;;  %v10265_v57 = vpop.f32.mrb[173].mxu1  ;;  %v18179_v7 = vrot.slane %v10837_v56, %v18018_v9  ;;  %v10797_v50 = vrot.slane %v10789_v34, %v17987_v39  ;;  %v10804_v13 = vrot.slane %v10790_v23, %v17987_v39 }
 0x869   : > { %v13504_v22 = vpop.f32.mrb[174].mxu1  ;;  %v10755_v23 = vcombine.low %v18036_v36, %v18094_v28 }
 0x86a   : > { %v10348_v38 = vadd.f32 %v17973_v44, %v10309_v51  ;;  %v10267_v26 = vpop.f32.mrb[175].mxu1 }
 0x86b   : > { %v10308_v10 = vadd.f32 %v10267_v26, %v17965_v17  ;;  %v18186_v17 = vrot.slane %v10550_v27, %v18018_v9 }
 0x86c   : > { %v10805_v11 = vcombine.low %v10344_v59, %v10348_v38  ;;  %v10806_v40 = vcombine.high %v10344_v59, %v10348_v38 }
 0x86d   : > { %v10347_v16 = vadd.f32 %v17973_v44, %v10308_v10  ;;  %v18196_v44 = vrot.slane %v10565_v0, %v18018_v9 }
 0x86e   : > { %v10813_v2 = vrot.slane %v10805_v11, %v17987_v39  ;;  %v10820_v56 = vrot.slane %v10806_v40, %v17987_v39 }
 0x86f   : > { %v10533_v21 = vcombine.low %v10343_v37, %v10347_v16  ;;  %v10534_v45 = vcombine.high %v10343_v37, %v10347_v16 }
 0x870   : > { %v10853_v27 = vcombine.low %v10797_v50, %v10813_v2  ;;  %v10854_v48 = vcombine.high %v10797_v50, %v10813_v2  ;;  %v10869_v14 = vcombine.low %v10804_v13, %v10820_v56  ;;  %v10870_v43 = vcombine.high %v10804_v13, %v10820_v56 }
 0x871   : > { %v10541_v53 = vrot.slane %v10533_v21, %v17987_v39  ;;  %v10548_v34 = vrot.slane %v10534_v45, %v17987_v39 }
 0x872   : > { %v18207_v30 = vrot.slane %v10853_v27, %v18018_v9  ;;  %v18210_v0 = vrot.slane %v10854_v48, %v18018_v9  ;;  %v18213_v8 = vrot.slane %v10869_v14, %v18018_v9  ;;  %v18216_v51 = vrot.slane %v10870_v43, %v18018_v9  ;;  %v10977_v14 = vld [vmem:[%s14520_s13 + $0x20] sm:$0xff] }
 0x873   : > { %v10581_v42 = vcombine.low %v10525_v31, %v10541_v53  ;;  %v10582_v57 = vcombine.high %v10525_v31, %v10541_v53  ;;  %v10597_v22 = vcombine.low %v10532_v20, %v10548_v34  ;;  %v10598_v59 = vcombine.high %v10532_v20, %v10548_v34  ;;  %v10974_v53 = vld [vmem:[%s14520_s13 + $0x8] sm:$0xff] }
 0x874   : > { %v10886_v39 = vcombine.high %v18172_v4, %v18207_v30  ;;  %v10888_v38 = vcombine.high %v18175_v46, %v18210_v0  ;;  %v10890_v26 = vcombine.high %v18179_v7, %v18213_v8  ;;  %v10892_v10 = vcombine.high %v18189_v35, %v18216_v51 }
 0x875   : > { %v18227_v37 = vrot.slane %v10581_v42, %v18018_v9  ;;  %v18230_v11 = vrot.slane %v10582_v57, %v18018_v9  ;;  %v18233_v20 = vrot.slane %v10597_v22, %v18018_v9  ;;  %v18236_v40 = vrot.slane %v10598_v59, %v18018_v9  ;;  %v10979_v22 = vld [vmem:[%s14520_s13 + $0x30] sm:$0xff] }
 0x876   : > { %10929 = vrot.lane.b32.xlu1 %v10886_v39, %s14372_s19  ;;  %v10885_v16 = vcombine.low %v18172_v4, %v18207_v30  ;;  %v10887_v50 = vcombine.low %v18175_v46, %v18210_v0  ;;  %v10889_v13 = vcombine.low %v18179_v7, %v18213_v8  ;;  %v10978_v30 = vld [vmem:[%s14520_s13 + $0x28] sm:$0xff]  ;;  %v10975_v39 = vld [vmem:[%s14520_s13 + $0x10] sm:$0xff] }
 0x877   : > { %v10614_v2 = vcombine.high %v18183_v60, %v18227_v37  ;;  %v10616_v56 = vcombine.high %v18186_v17, %v18230_v11  ;;  %v10618_v9 = vcombine.high %v18196_v44, %v18233_v20  ;;  %v10620_v21 = vcombine.high %v18199_v63, %v18236_v40 }
 0x878   : > { %v10613_v4 = vcombine.low %v18183_v60, %v18227_v37  ;;  %v10615_v45 = vcombine.low %v18186_v17, %v18230_v11  ;;  %v10617_v27 = vcombine.low %v18196_v44, %v18233_v20  ;;  %v10619_v48 = vcombine.low %v18199_v63, %v18236_v40 }
 0x879   : > { %10897 = vrot.lane.b32.xlu0 %v10614_v2, %s14372_s19  ;;  %v10891_v60 = vcombine.low %v18189_v35, %v18216_v51  ;;  %v10986_v2 = vld [vmem:[%s14520_s13 + $0x68] sm:$0xff] }
 0x87a   : > { %10937 = vrot.lane.b32.xlu1 %v10888_v38, %s14372_s19 }
 0x87d   : > { %10951 = vrot.lane.b32.xlu0 %v10756_v12, %s14372_s19 }
 0x87e   : > { %10945 = vrot.lane.b32.xlu1 %v10890_v26, %s14372_s19 }
 0x882   : > { %10905 = vrot.lane.b32.xlu1 %v10616_v56, %s14372_s19 }
 0x886   : > { %10913 = vrot.lane.b32.xlu1 %v10618_v9, %s14372_s19 }
 0x88a   : > { %10921 = vrot.lane.b32.xlu1 %v10620_v21, %s14372_s19  ;;  %v10980_v21 = vld [vmem:[%s14520_s13 + $0x38] sm:$0xff] }
 0x88e   : > { %10953 = vrot.lane.b32.xlu1 %v10892_v10, %s14372_s19 }
 0x8b8   : > { %v10928_v43 = vpop.permute.xlu0 %10927 }
 0x8b9   : > { %v10965_v12 = vsel %vm291_vm0, %v10749_v55, %v10928_v43 }
 0x8ba   : > { %v10993_v31 = vadd.f32 %v10977_v14, %v10965_v12  ;;  %v10987_v14 = vld [vmem:[%s14520_s13 + $0x70] sm:$0xff] }
 0x8bb   : > { %v10904_v34 = vpop.permute.xlu1 %10903 }
 0x8bc   : > { %11009 = vst [vmem:[%s18283_s20 + $0x20] sm:$0xff] %v10993_v31  ;;  %v10959_v3 = vsel %vm291_vm0, %v10479_v15, %v10904_v34  ;;  %v10936_v61 = vpop.permute.xlu0 %10935  ;;  %v10973_v15 = vld [vmem:[%s14520_s13] sm:$0xff] }
 0x8bd   : > { %v10990_v55 = vadd.f32 %v10974_v53, %v10959_v3  ;;  %v10967_v42 = vsel %vm291_vm0, %v10751_v6, %v10936_v61  ;;  %v10984_v53 = vld [vmem:[%s14520_s13 + $0x58] sm:$0xff] }
 0x8be   : > { %v10994_v57 = vadd.f32 %v10978_v30, %v10967_v42 }
 0x8bf   : > { %11006 = vst [vmem:[%s18283_s20 + $0x8] sm:$0xff] %v10990_v55 }
 0x8c0   : > { %11010 = vst [vmem:[%s18283_s20 + $0x28] sm:$0xff] %v10994_v57  ;;  %v10944_v59 = vpop.permute.xlu0 %10943 }
 0x8c1   : > { %v10969_v29 = vsel %vm291_vm0, %v10753_v24, %v10944_v59  ;;  %v10976_v24 = vld [vmem:[%s14520_s13 + $0x18] sm:$0xff] }
 0x8c2   : > { %v10995_v41 = vadd.f32 %v10979_v22, %v10969_v29 }
 0x8c4   : > { %11011 = vst [vmem:[%s18283_s20 + $0x30] sm:$0xff] %v10995_v41  ;;  %v10896_v1 = vpop.permute.xlu0 %10895 }
 0x8c5   : > { %v10957_v5 = vsel %vm291_vm0, %v10477_v19, %v10896_v1  ;;  %v10985_v19 = vld [vmem:[%s14520_s13 + $0x60] sm:$0xff] }
 0x8c6   : > { %v10989_v6 = vadd.f32 %v10973_v15, %v10957_v5 }
 0x8c8   : > { %11005 = vst [vmem:[%s18283_s20] sm:$0xff] %v10989_v6  ;;  %v10912_v38 = vpop.permute.xlu0 %10911 }
 0x8c9   : > { %v10961_v33 = vsel %vm291_vm0, %v10481_v54, %v10912_v38  ;;  %v10981_v54 = vld [vmem:[%s14520_s13 + $0x40] sm:$0xff] }
 0x8ca   : > { %v10991_v47 = vadd.f32 %v10975_v39, %v10961_v33 }
 0x8cc   : > { %11007 = vst [vmem:[%s18283_s20 + $0x10] sm:$0xff] %v10991_v47  ;;  %v10920_v26 = vpop.permute.xlu0 %10919 }
 0x8cd   : > { %v10963_v58 = vsel %vm291_vm0, %v10483_v62, %v10920_v26 }
 0x8ce   : > { %v10992_v18 = vadd.f32 %v10976_v24, %v10963_v58 }
 0x8d0   : > { %11008 = vst [vmem:[%s18283_s20 + $0x18] sm:$0xff] %v10992_v18 }
 0x8e8   : > { %v10930_v10 = vpop.permute.xlu1 %10929 }
 0x8e9   : > { %v10966_v32 = vsel %vm291_vm0, %v10885_v16, %v10930_v10 }
 0x8ea   : > { %v11001_v49 = vadd.f32 %v10985_v19, %v10966_v32 }
 0x8eb   : > { %v10898_v37 = vpop.permute.xlu0 %10897 }
 0x8ec   : > { %11017 = vst [vmem:[%s18283_s20 + $0x60] sm:$0xff] %v11001_v49  ;;  %v10958_v52 = vsel %vm291_vm0, %v10613_v4, %v10898_v37  ;;  %v10938_v25 = vpop.permute.xlu1 %10937 }
 0x8ed   : > { %v10997_v62 = vadd.f32 %v10981_v54, %v10958_v52  ;;  %v10968_v56 = vsel %vm291_vm0, %v10887_v50, %v10938_v25  ;;  %v10982_v50 = vld [vmem:[%s14520_s13 + $0x48] sm:$0xff] }
 0x8ee   : > { %v11002_v9 = vadd.f32 %v10986_v2, %v10968_v56 }
 0x8ef   : > { %11013 = vst [vmem:[%s18283_s20 + $0x40] sm:$0xff] %v10997_v62  ;;  %v10952_v16 = vpop.permute.xlu0 %10951 }
 0x8f0   : > { %11018 = vst [vmem:[%s18283_s20 + $0x68] sm:$0xff] %v11002_v9  ;;  %v10971_v4 = vsel %vm291_vm0, %v10755_v23, %v10952_v16  ;;  %v10946_v43 = vpop.permute.xlu1 %10945  ;;  %v10983_v23 = vld [vmem:[%s14520_s13 + $0x50] sm:$0xff] }
 0x8f1   : > { %v10996_v12 = vadd.f32 %v10980_v21, %v10971_v4  ;;  %v10970_v46 = vsel %vm291_vm0, %v10889_v13, %v10946_v43 }
 0x8f2   : > { %v11003_v0 = vadd.f32 %v10987_v14, %v10970_v46 }
 0x8f3   : > { %11012 = vst [vmem:[%s18283_s20 + $0x38] sm:$0xff] %v10996_v12 }
 0x8f4   : > { %11019 = vst [vmem:[%s18283_s20 + $0x70] sm:$0xff] %v11003_v0  ;;  %v10906_v31 = vpop.permute.xlu1 %10905 }
 0x8f5   : > { %v10960_v36 = vsel %vm291_vm0, %v10615_v45, %v10906_v31  ;;  %v10988_v45 = vld [vmem:[%s14520_s13 + $0x78] sm:$0xff]  ;;  %s14298_s13 = scalar_lea.vmem %s18374_s11, 2048 }
 0x8f6   : > { %v10998_v28 = vadd.f32 %v10982_v50, %v10960_v36  ;;  %p14299_p6 = scmp.ne.s32.totalorder %s18374_s11, %s14298_s13  ;;  %p14306_p0 = scmp.lt.s32.totalorder %s14304_s12, %s14298_s13 }
 0x8f8   : > { %11014 = vst [vmem:[%s18283_s20 + $0x48] sm:$0xff] %v10998_v28  ;;  %v10914_v7 = vpop.permute.xlu1 %10913  ;;  %p14300_p13 = pnand %p14299_p6, %p18619_p12  ;;  %p14307_p2 = por %p14306_p0, %p14305_p10 }
 0x8f9   : > { %v10962_v8 = vsel %vm291_vm0, %v10617_v27, %v10914_v7 }
 0x8fa   : > { %v10999_v13 = vadd.f32 %v10983_v23, %v10962_v8  ;;  %p14301_p8 = pneg %p14300_p13 }
 0x8fc   : > { %11015 = vst [vmem:[%s18283_s20 + $0x50] sm:$0xff] %v10999_v13  ;;  %v10922_v34 = vpop.permute.xlu1 %10921  ;;  %p14308_p4 = pnand %p14307_p2, %p14301_p8 }
 0x8fd   : > { %v10964_v17 = vsel %vm291_vm0, %v10619_v48, %v10922_v34 }
 0x8fe   : > { %v11000_v11 = vadd.f32 %v10984_v53, %v10964_v17 }
 0x900   : > { %11016 = vst [vmem:[%s18283_s20 + $0x58] sm:$0xff] %v11000_v11  ;;  %v10954_v44 = vpop.permute.xlu1 %10953 }
 0x901   : > { %v10972_v20 = vsel %vm291_vm0, %v10891_v60, %v10954_v44 }
 0x902   : > { %v11004_v63 = vadd.f32 %v10988_v45, %v10972_v20 }
 0x904   : > { %11020 = vst [vmem:[%s18283_s20 + $0x78] sm:$0xff] %v11004_v63 }
 0x905   : > { %14311 = shalt.err (!%p14308_p4)
}
 0x906   : > { %s14312_s26 = scalar_lea.hbm %s18372_s17, 2048  ;;  %s14316_s20 = scalar_lea.hbm %s18426_s6, 4096 }
 0x907   : > { %p14313_p5 = scmp.ne.s32.totalorder %s18372_s17, %s14312_s26  ;;  %p14317_p1 = scmp.lt.u32.totalorder %s18372_s17, %s18426_s6 }
 0x908   : > { %p14318_p3 = scmp.lt.u32.totalorder %s14316_s20, %s14312_s26  ;;  %p14320_p6 = scmp.lt.u32.totalorder %s14312_s26, %s18372_s17 }
 0x909   : > { %p14314_p7 = pnand %p14313_p5, %p18619_p12 }
 0x90a   : > { %p14319_p11 = por %p14318_p3, %p14317_p1 }
 0x90b   : > { %p14315_p9 = pneg %p14314_p7 }
 0x90c   : > { %p14321_p13 = por %p14320_p6, %p14319_p11 }
 0x90e   : > { %p14322_p8 = pnand %p14321_p13, %p14315_p9 }
 0x910   : > { %14325 = shalt.err (!%p14322_p8)
}
 0x911   : > { %s14374_s15 = smov 1024  }
 0x912   : > { %13892 = dma.vmem_to_hbm [thread:$0]  (%p18619_p12), %s18374_s11, 2048, %s18372_s17, %s11022_s25, %s14374_s15, %s14374_s15, %s14372_s19  }
 0x913 PF: > { %s11050_s13 = sand.u32 1, %s14352_s21   ;;  %p18620_p10 = scmp.ne.s32.totalorder %s18484_s10, 0 }
 0x914   : > { %p18621_p0 = scmp.ge.s32.totalorder %s14364_s24, 2  ;;  %s11051_s8 = scalar_lea.sflag [#allocation5], %s11050_s13 }
 0x916   : > { %p13899_p2 = pnand %p18621_p0, %p18620_p10 }
 0x918   : > { %14347 = dma.done.wait (!%p13899_p2), %s11051_s8, 2048  }
 0x919   : > { %14349 = vsyncadd (!%p13899_p2), %s11051_s8, 4294965248  ;;  %p19_p4 = scmp.ge.s32.totalorder %s14435_s27, 4   ;;  %s18622_s21 = smov %s14356_s22 }
 0x91a   : > { %s18623_s22 = smov %s14360_s23  ;;  %s18624_s23 = smov %s14447_s30 }
 0x91b   : > { %s18625_s24 = smov %s14435_s27  ;;  %21 = sbr.rel (!%p19_p4) target bundleno = 5 (0x5), region = 108 }
 0x922   :  { %11056 = vsyncpa [#allocation4], 1 }
 0x923   :  { %11058 = vsyncpa [#allocation4 + $0x1], 1 }
 0x924   :  { %11059 = vsyncpa [#allocation5], 1 }
 0x925   :  { %11061 = vsyncpa [#allocation5 + $0x1], 1 }

</bundles_post_ra>
